<compile_context>
chip_gen: v6e
topology: v6e:2x2x1
jax: 0.10.0
libtpu: 0.0.40
codegen_flags: <defaults>
</compile_context>

<pallas_src>
import functools

import jax
import jax.numpy as jnp
from jax import lax
from jax.experimental import pallas as pl
from jax.experimental.pallas import tpu as pltpu

EPS = 1e-5


# --------------------------------------------------------------------------
# Fused kernel: ChanLayerNorm -> qkv 1x1 -> depthwise 3x3 -> linear attention
#               -> SiLU -> out 1x1 (transposed) -> output ChanLayerNorm
# --------------------------------------------------------------------------
def _linear_attention_kernel(x_ref, g_ref, wqkv_ref, dwt_ref, tapm_ref,
                             wo_ref, go_ref, hmask_ref, o_ref,
                             pre_sc, qkv_sc, *, X, Y, inner, scale):
    N = X * Y

    # ---- input ChanLayerNorm: channels on sublanes, spatial on lanes ------
    x = x_ref[0]                                               # (C, N)
    mu = jnp.mean(x, axis=0, keepdims=True)
    var = jnp.mean((x - mu) ** 2, axis=0, keepdims=True)
    xn = (x - mu) * lax.rsqrt(var + EPS) * g_ref[...]          # g: (C, 1)

    # ---- fused q|k|v 1x1 projection: one lane-dense (3*inner, N) matmul ---
    pre_sc[...] = jnp.dot(wqkv_ref[...], xn,
                          preferred_element_type=jnp.float32)

    # ---- depthwise 3x3 conv (padding=1) via lane rolls + boundary masks ---
    for blk in range(3):                                       # q, k, v blocks
        b0 = blk * inner
        t = pre_sc[b0:b0 + inner, :]                           # (inner, N)
        w = dwt_ref[b0:b0 + inner, :]                          # (inner, 9)
        acc = t * w[:, 4:5]                                    # centre tap
        for di in (-1, 0, 1):
            for dj in (-1, 0, 1):
                if di == 0 and dj == 0:
                    continue
                tap = (di + 1) * 3 + (dj + 1)
                off = di * Y + dj
                s = pltpu.roll(t, (-off) % N, axis=1)          # s[c,n] = t[c,n+off]
                acc = acc + s * tapm_ref[tap:tap + 1, :] * w[:, tap:tap + 1]
        qkv_sc[b0:b0 + inner, :] = acc

    # ---- linear attention, all heads at once (block-diagonal head mask) ---
    hmask = hmask_ref[...]                                     # (inner, inner)

    k = qkv_sc[inner:2 * inner, :]                             # (inner, N)
    k = jnp.exp(k - jnp.max(k, axis=1, keepdims=True))
    k = k / jnp.sum(k, axis=1, keepdims=True)                  # softmax over N
    v = qkv_sc[2 * inner:3 * inner, :]

    # ctx_t[e, d] = sum_n v[e, n] * k[d, n]  (== context[d, e]); cross-head
    # blocks are zeroed so a single whole-`inner` matmul serves every head.
    ctx_t = lax.dot_general(v, k, (((1,), (1,)), ((), ())),
                            preferred_element_type=jnp.float32)
    ctx_t = ctx_t * hmask

    q = qkv_sc[0:inner, :]                                     # (inner, N)
    # Softmax over the dim_head features of each head: subtracting the global
    # per-column max is exact; per-head sums come from one mask matmul.
    q = jnp.exp(q - jnp.max(q, axis=0, keepdims=True))
    denom = jnp.dot(hmask, q, preferred_element_type=jnp.float32)
    q = q * (scale / denom)

    a = jnp.dot(ctx_t, q, preferred_element_type=jnp.float32)  # (inner, N)

    # ---- SiLU -> out 1x1 projection (transposed -> (C, N)) -> out norm ----
    a = a * jax.nn.sigmoid(a)
    y = jnp.dot(wo_ref[...], a, preferred_element_type=jnp.float32)  # (C, N)
    mu = jnp.mean(y, axis=0, keepdims=True)
    var = jnp.mean((y - mu) ** 2, axis=0, keepdims=True)
    o_ref[0] = (y - mu) * lax.rsqrt(var + EPS) * go_ref[...]


# --------------------------------------------------------------------------
# Full forward (host side does only tiny one-time weight/mask prep; all
# activation reshapes are free views -- no transposes, no padding)
# --------------------------------------------------------------------------
def linear_attention_forward(fmap_nchw, params, heads, dim_head):
    B, C, X, Y = fmap_nchw.shape
    inner = heads * dim_head
    c3 = 3 * inner
    N = X * Y
    scale = dim_head ** (-0.5)

    # Pre-transposed weights: every in-kernel matmul is in native MXU
    # orientation and the final output comes out (C, N) lane-dense.
    wqkv_t = jnp.concatenate([params['wq'], params['wk'], params['wv']],
                             axis=1).T                           # (3*inner, C)
    dwt = jnp.transpose(
        jnp.concatenate([params['dwq'], params['dwk'], params['dwv']],
                        axis=-1), (2, 0, 1)).reshape(c3, 9)      # (3*inner, 9)
    wo_t = params['wo'].T                                        # (C, inner)
    g_in = params['g_norm'].reshape(C, 1)
    g_out = params['g_out'].reshape(C, 1)

    # 0/1 validity mask per 3x3 tap (zero-padding boundary), flattened to N.
    xs = jnp.arange(X, dtype=jnp.int32)
    ys = jnp.arange(Y, dtype=jnp.int32)
    rows = []
    for di in (-1, 0, 1):
        for dj in (-1, 0, 1):
            vx = (xs + di >= 0) & (xs + di < X)
            vy = (ys + dj >= 0) & (ys + dj < Y)
            rows.append(jnp.reshape(vx[:, None] & vy[None, :], (N,)))
    tap_mask = jnp.stack(rows, axis=0).astype(jnp.float32)       # (9, N)

    hid = jnp.arange(inner, dtype=jnp.int32) // dim_head
    head_mask = (hid[:, None] == hid[None, :]).astype(jnp.float32)  # (inner, inner)

    x3 = fmap_nchw.reshape(B, C, N)      # NCHW is already channel-major: free

    kernel = functools.partial(_linear_attention_kernel,
                               X=X, Y=Y, inner=inner, scale=scale)
    out = pl.pallas_call(
        kernel,
        out_shape=jax.ShapeDtypeStruct((B, C, N), jnp.float32),
        grid=(B,),
        in_specs=[
            pl.BlockSpec((1, C, N), lambda b: (b, 0, 0)),        # fmap
            pl.BlockSpec((C, 1), lambda b: (0, 0)),              # input norm gain
            pl.BlockSpec((c3, C), lambda b: (0, 0)),             # fused qkv 1x1
            pl.BlockSpec((c3, 9), lambda b: (0, 0)),             # depthwise taps
            pl.BlockSpec((9, N), lambda b: (0, 0)),              # tap boundary masks
            pl.BlockSpec((C, inner), lambda b: (0, 0)),          # out 1x1 (transposed)
            pl.BlockSpec((C, 1), lambda b: (0, 0)),              # output norm gain
            pl.BlockSpec((inner, inner), lambda b: (0, 0)),      # block-diag head mask
        ],
        out_specs=pl.BlockSpec((1, C, N), lambda b: (b, 0, 0)),
        scratch_shapes=[pltpu.VMEM((c3, N), jnp.float32),        # pre-conv qkv
                        pltpu.VMEM((c3, N), jnp.float32)],       # post-conv qkv
        compiler_params=pltpu.CompilerParams(
            dimension_semantics=("parallel",),
            vmem_limit_bytes=32 * 1024 * 1024),
    )(x3, g_in, wqkv_t, dwt, tap_mask, wo_t, g_out, head_mask)

    return out.reshape(B, C, X, Y)       # already NCHW: free view


# --------------------------------------------------------------------------
# Pure-JAX reference (for correctness check of the Pallas kernel)
# --------------------------------------------------------------------------
def reference_forward(fmap_nchw, params, heads, dim_head):
    B, C, X, Y = fmap_nchw.shape
    inner = heads * dim_head
    N = X * Y
    scale = dim_head ** (-0.5)

    x = jnp.transpose(fmap_nchw, (0, 2, 3, 1))                 # (B, X, Y, C)

    def chan_norm(t, g):
        mean = jnp.mean(t, axis=-1, keepdims=True)
        var = jnp.mean((t - mean) ** 2, axis=-1, keepdims=True)
        return (t - mean) / jnp.sqrt(var + EPS) * g

    xn = chan_norm(x, params['g_norm'])

    def proj(w, dw):
        y = jnp.einsum('bxyc,cd->bxyd', xn, w)
        return lax.conv_general_dilated(
            y, dw.reshape(3, 3, 1, inner), (1, 1), 'SAME',
            feature_group_count=inner,
            dimension_numbers=('NHWC', 'HWIO', 'NHWC'))

    q = proj(params['wq'], params['dwq'])
    k = proj(params['wk'], params['dwk'])
    v = proj(params['wv'], params['dwv'])

    def to_heads(t):
        t = t.reshape(B, N, heads, dim_head)
        return jnp.transpose(t, (0, 2, 1, 3)).reshape(B * heads, N, dim_head)

    q, k, v = map(to_heads, (q, k, v))
    q = jax.nn.softmax(q, axis=-1) * scale
    k = jax.nn.softmax(k, axis=-2)
    ctx = jnp.einsum('bnd,bne->bde', k, v)
    o = jnp.einsum('bnd,bde->bne', q, ctx)
    o = o.reshape(B, heads, N, dim_head)
    o = jnp.transpose(o, (0, 2, 1, 3)).reshape(B, X, Y, inner)
    o = o * jax.nn.sigmoid(o)                                  # SiLU
    out = jnp.einsum('bxyc,cd->bxyd', o, params['wo'])
    out = chan_norm(out, params['g_out'])
    return jnp.transpose(out, (0, 3, 1, 2))


if __name__ == "__main__":
    B, dim, X, Y = 2, 32, 16, 16
    heads, dim_head = 4, 16
    inner = heads * dim_head

    key = jax.random.PRNGKey(0)
    keys = jax.random.split(key, 10)
    fmap = jax.random.normal(keys[0], (B, dim, X, Y), jnp.float32)

    params = {
        'g_norm': 1.0 + 0.1 * jax.random.normal(keys[8], (dim,), jnp.float32),
        'wq': 0.05 * jax.random.normal(keys[1], (dim, inner), jnp.float32),
        'wk': 0.05 * jax.random.normal(keys[2], (dim, inner), jnp.float32),
        'wv': 0.05 * jax.random.normal(keys[3], (dim, inner), jnp.float32),
        'dwq': 0.1 * jax.random.normal(keys[4], (3, 3, inner), jnp.float32),
        'dwk': 0.1 * jax.random.normal(keys[5], (3, 3, inner), jnp.float32),
        'dwv': 0.1 * jax.random.normal(keys[6], (3, 3, inner), jnp.float32),
        'wo': 0.05 * jax.random.normal(keys[7], (inner, dim), jnp.float32),
        'g_out': 1.0 + 0.1 * jax.random.normal(keys[9], (dim,), jnp.float32),
    }

    out = jax.block_until_ready(
        linear_attention_forward(fmap, params, heads, dim_head))
    ref = reference_forward(fmap, params, heads, dim_head)

    assert out.shape == (B, dim, X, Y), out.shape
    max_err = float(jnp.max(jnp.abs(out - ref)))
    assert jnp.allclose(out, ref, atol=1e-4, rtol=1e-4), max_err
    print("KERNEL_OK")
</pallas_src>

<mosaic_0001>
module attributes {stable_mosaic.version = 11 : i64} {
  func.func @_linear_attention_kernel(%arg0: i32, %arg1: memref<1x32x256xf32, #tpu.memory_space<vmem>>, %arg2: memref<32x1xf32, #tpu.memory_space<vmem>>, %arg3: memref<192x32xf32, #tpu.memory_space<vmem>>, %arg4: memref<192x9xf32, #tpu.memory_space<vmem>>, %arg5: memref<9x256xf32, #tpu.memory_space<vmem>>, %arg6: memref<32x64xf32, #tpu.memory_space<vmem>>, %arg7: memref<32x1xf32, #tpu.memory_space<vmem>>, %arg8: memref<64x64xf32, #tpu.memory_space<vmem>>, %arg9: memref<1x32x256xf32, #tpu.memory_space<vmem>>, %arg10: memref<192x256xf32, #tpu.memory_space<vmem>>, %arg11: memref<192x256xf32, #tpu.memory_space<vmem>>) attributes {dimension_semantics = [#tpu.dimension_semantics<parallel>], iteration_bounds = array<i64: 2>, scalar_prefetch = 0 : i64, scratch_operands = 2 : i64, tpu.core_type = #tpu.core_type<tc>, window_params = [{transform_indices = @transform_0, window_bounds = array<i64: 1, 32, 256>}, {pipeline_mode = #tpu.pipeline_mode<synchronous>, transform_indices = @transform_1, window_bounds = array<i64: 32, 1>}, {pipeline_mode = #tpu.pipeline_mode<synchronous>, transform_indices = @transform_2, window_bounds = array<i64: 192, 32>}, {pipeline_mode = #tpu.pipeline_mode<synchronous>, transform_indices = @transform_3, window_bounds = array<i64: 192, 9>}, {pipeline_mode = #tpu.pipeline_mode<synchronous>, transform_indices = @transform_4, window_bounds = array<i64: 9, 256>}, {pipeline_mode = #tpu.pipeline_mode<synchronous>, transform_indices = @transform_5, window_bounds = array<i64: 32, 64>}, {pipeline_mode = #tpu.pipeline_mode<synchronous>, transform_indices = @transform_6, window_bounds = array<i64: 32, 1>}, {pipeline_mode = #tpu.pipeline_mode<synchronous>, transform_indices = @transform_7, window_bounds = array<i64: 64, 64>}, {transform_indices = @transform_8, window_bounds = array<i64: 1, 32, 256>}]} {
    %c0 = arith.constant 0 : index
    %c0_0 = arith.constant 0 : index
    %c0_1 = arith.constant 0 : index
    %0 = vector.load %arg1[%c0, %c0_0, %c0_1] : memref<1x32x256xf32, #tpu.memory_space<vmem>>, vector<1x32x256xf32>
    %1 = vector.shape_cast %0 : vector<1x32x256xf32> to vector<32x256xf32>
    %cst = arith.constant dense<0.000000e+00> : vector<256xf32>
    %2 = vector.multi_reduction <add>, %1, %cst [0] : vector<32x256xf32> to vector<256xf32>
    %3 = vector.shape_cast %2 : vector<256xf32> to vector<1x256xf32>
    %cst_2 = arith.constant 3.200000e+01 : f32
    %4 = vector.broadcast %cst_2 : f32 to vector<1x256xf32>
    %5 = arith.divf %3, %4 : vector<1x256xf32>
    %6 = vector.broadcast %5 : vector<1x256xf32> to vector<32x256xf32>
    %7 = arith.subf %1, %6 : vector<32x256xf32>
    %8 = arith.mulf %7, %7 : vector<32x256xf32>
    %cst_3 = arith.constant dense<0.000000e+00> : vector<256xf32>
    %9 = vector.multi_reduction <add>, %8, %cst_3 [0] : vector<32x256xf32> to vector<256xf32>
    %10 = vector.shape_cast %9 : vector<256xf32> to vector<1x256xf32>
    %cst_4 = arith.constant 3.200000e+01 : f32
    %11 = vector.broadcast %cst_4 : f32 to vector<1x256xf32>
    %12 = arith.divf %10, %11 : vector<1x256xf32>
    %13 = vector.broadcast %5 : vector<1x256xf32> to vector<32x256xf32>
    %14 = arith.subf %1, %13 : vector<32x256xf32>
    %cst_5 = arith.constant 9.99999974E-6 : f32
    %15 = vector.broadcast %cst_5 : f32 to vector<1x256xf32>
    %16 = arith.addf %12, %15 : vector<1x256xf32>
    %17 = math.rsqrt %16 : vector<1x256xf32>
    %18 = vector.broadcast %17 : vector<1x256xf32> to vector<32x256xf32>
    %19 = arith.mulf %14, %18 : vector<32x256xf32>
    %c0_6 = arith.constant 0 : index
    %c0_7 = arith.constant 0 : index
    %20 = vector.load %arg2[%c0_6, %c0_7] : memref<32x1xf32, #tpu.memory_space<vmem>>, vector<32x1xf32>
    %21 = vector.broadcast %20 : vector<32x1xf32> to vector<32x256xf32>
    %22 = arith.mulf %19, %21 : vector<32x256xf32>
    %c0_8 = arith.constant 0 : index
    %c0_9 = arith.constant 0 : index
    %23 = vector.load %arg3[%c0_8, %c0_9] : memref<192x32xf32, #tpu.memory_space<vmem>>, vector<192x32xf32>
    %cst_10 = arith.constant dense<0.000000e+00> : vector<192x256xf32>
    %24 = tpu.matmul %23, %22, %cst_10 {dimension_numbers = #tpu.dot_dimension_numbers<[1], [0], [0], [1], [0, 0, 1, 1], [], []>} : vector<192x32xf32>, vector<32x256xf32>, vector<192x256xf32> -> vector<192x256xf32>
    %c0_11 = arith.constant 0 : index
    %c0_12 = arith.constant 0 : index
    %25 = vector.load %arg10[%c0_11, %c0_12] : memref<192x256xf32, #tpu.memory_space<vmem>>, vector<192x256xf32>
    tpu.vector_store %arg10[%c0_11, %c0_12], %24 {strides = array<i32>} : memref<192x256xf32, #tpu.memory_space<vmem>>, vector<192x256xf32>,
    %c0_13 = arith.constant 0 : index
    %c0_14 = arith.constant 0 : index
    %26 = vector.load %arg10[%c0_13, %c0_14] : memref<192x256xf32, #tpu.memory_space<vmem>>, vector<64x256xf32>
    %c0_15 = arith.constant 0 : index
    %c0_16 = arith.constant 0 : index
    %27 = vector.load %arg4[%c0_15, %c0_16] : memref<192x9xf32, #tpu.memory_space<vmem>>, vector<64x9xf32>
    %28 = vector.extract_strided_slice %27 {offsets = [0, 4], sizes = [64, 1], strides = [1, 1]} : vector<64x9xf32> to vector<64x1xf32>
    %29 = vector.broadcast %28 : vector<64x1xf32> to vector<64x256xf32>
    %30 = arith.mulf %26, %29 : vector<64x256xf32>
    %c17_i32 = arith.constant 17 : i32
    %31 = tpu.dynamic_rotate %26 by %c17_i32 dim 1 : vector<64x256xf32>, i32 -> vector<64x256xf32>
    %c0_17 = arith.constant 0 : index
    %c0_18 = arith.constant 0 : index
    %32 = vector.load %arg5[%c0_17, %c0_18] : memref<9x256xf32, #tpu.memory_space<vmem>>, vector<1x256xf32>
    %33 = vector.broadcast %32 : vector<1x256xf32> to vector<64x256xf32>
    %34 = arith.mulf %31, %33 : vector<64x256xf32>
    %35 = vector.extract_strided_slice %27 {offsets = [0, 0], sizes = [64, 1], strides = [1, 1]} : vector<64x9xf32> to vector<64x1xf32>
    %36 = vector.broadcast %35 : vector<64x1xf32> to vector<64x256xf32>
    %37 = arith.mulf %34, %36 : vector<64x256xf32>
    %38 = arith.addf %30, %37 : vector<64x256xf32>
    %c16_i32 = arith.constant 16 : i32
    %39 = tpu.dynamic_rotate %26 by %c16_i32 dim 1 : vector<64x256xf32>, i32 -> vector<64x256xf32>
    %c1 = arith.constant 1 : index
    %c0_19 = arith.constant 0 : index
    %40 = vector.load %arg5[%c1, %c0_19] : memref<9x256xf32, #tpu.memory_space<vmem>>, vector<1x256xf32>
    %41 = vector.broadcast %40 : vector<1x256xf32> to vector<64x256xf32>
    %42 = arith.mulf %39, %41 : vector<64x256xf32>
    %43 = vector.extract_strided_slice %27 {offsets = [0, 1], sizes = [64, 1], strides = [1, 1]} : vector<64x9xf32> to vector<64x1xf32>
    %44 = vector.broadcast %43 : vector<64x1xf32> to vector<64x256xf32>
    %45 = arith.mulf %42, %44 : vector<64x256xf32>
    %46 = arith.addf %38, %45 : vector<64x256xf32>
    %c15_i32 = arith.constant 15 : i32
    %47 = tpu.dynamic_rotate %26 by %c15_i32 dim 1 : vector<64x256xf32>, i32 -> vector<64x256xf32>
    %c2 = arith.constant 2 : index
    %c0_20 = arith.constant 0 : index
    %48 = vector.load %arg5[%c2, %c0_20] : memref<9x256xf32, #tpu.memory_space<vmem>>, vector<1x256xf32>
    %49 = vector.broadcast %48 : vector<1x256xf32> to vector<64x256xf32>
    %50 = arith.mulf %47, %49 : vector<64x256xf32>
    %51 = vector.extract_strided_slice %27 {offsets = [0, 2], sizes = [64, 1], strides = [1, 1]} : vector<64x9xf32> to vector<64x1xf32>
    %52 = vector.broadcast %51 : vector<64x1xf32> to vector<64x256xf32>
    %53 = arith.mulf %50, %52 : vector<64x256xf32>
    %54 = arith.addf %46, %53 : vector<64x256xf32>
    %c1_i32 = arith.constant 1 : i32
    %55 = tpu.dynamic_rotate %26 by %c1_i32 dim 1 : vector<64x256xf32>, i32 -> vector<64x256xf32>
    %c3 = arith.constant 3 : index
    %c0_21 = arith.constant 0 : index
    %56 = vector.load %arg5[%c3, %c0_21] : memref<9x256xf32, #tpu.memory_space<vmem>>, vector<1x256xf32>
    %57 = vector.broadcast %56 : vector<1x256xf32> to vector<64x256xf32>
    %58 = arith.mulf %55, %57 : vector<64x256xf32>
    %59 = vector.extract_strided_slice %27 {offsets = [0, 3], sizes = [64, 1], strides = [1, 1]} : vector<64x9xf32> to vector<64x1xf32>
    %60 = vector.broadcast %59 : vector<64x1xf32> to vector<64x256xf32>
    %61 = arith.mulf %58, %60 : vector<64x256xf32>
    %62 = arith.addf %54, %61 : vector<64x256xf32>
    %c255_i32 = arith.constant 255 : i32
    %63 = tpu.dynamic_rotate %26 by %c255_i32 dim 1 : vector<64x256xf32>, i32 -> vector<64x256xf32>
    %c5 = arith.constant 5 : index
    %c0_22 = arith.constant 0 : index
    %64 = vector.load %arg5[%c5, %c0_22] : memref<9x256xf32, #tpu.memory_space<vmem>>, vector<1x256xf32>
    %65 = vector.broadcast %64 : vector<1x256xf32> to vector<64x256xf32>
    %66 = arith.mulf %63, %65 : vector<64x256xf32>
    %67 = vector.extract_strided_slice %27 {offsets = [0, 5], sizes = [64, 1], strides = [1, 1]} : vector<64x9xf32> to vector<64x1xf32>
    %68 = vector.broadcast %67 : vector<64x1xf32> to vector<64x256xf32>
    %69 = arith.mulf %66, %68 : vector<64x256xf32>
    %70 = arith.addf %62, %69 : vector<64x256xf32>
    %c241_i32 = arith.constant 241 : i32
    %71 = tpu.dynamic_rotate %26 by %c241_i32 dim 1 : vector<64x256xf32>, i32 -> vector<64x256xf32>
    %c6 = arith.constant 6 : index
    %c0_23 = arith.constant 0 : index
    %72 = vector.load %arg5[%c6, %c0_23] : memref<9x256xf32, #tpu.memory_space<vmem>>, vector<1x256xf32>
    %73 = vector.broadcast %72 : vector<1x256xf32> to vector<64x256xf32>
    %74 = arith.mulf %71, %73 : vector<64x256xf32>
    %75 = vector.extract_strided_slice %27 {offsets = [0, 6], sizes = [64, 1], strides = [1, 1]} : vector<64x9xf32> to vector<64x1xf32>
    %76 = vector.broadcast %75 : vector<64x1xf32> to vector<64x256xf32>
    %77 = arith.mulf %74, %76 : vector<64x256xf32>
    %78 = arith.addf %70, %77 : vector<64x256xf32>
    %c240_i32 = arith.constant 240 : i32
    %79 = tpu.dynamic_rotate %26 by %c240_i32 dim 1 : vector<64x256xf32>, i32 -> vector<64x256xf32>
    %c7 = arith.constant 7 : index
    %c0_24 = arith.constant 0 : index
    %80 = vector.load %arg5[%c7, %c0_24] : memref<9x256xf32, #tpu.memory_space<vmem>>, vector<1x256xf32>
    %81 = vector.broadcast %80 : vector<1x256xf32> to vector<64x256xf32>
    %82 = arith.mulf %79, %81 : vector<64x256xf32>
    %83 = vector.extract_strided_slice %27 {offsets = [0, 7], sizes = [64, 1], strides = [1, 1]} : vector<64x9xf32> to vector<64x1xf32>
    %84 = vector.broadcast %83 : vector<64x1xf32> to vector<64x256xf32>
    %85 = arith.mulf %82, %84 : vector<64x256xf32>
    %86 = arith.addf %78, %85 : vector<64x256xf32>
    %c239_i32 = arith.constant 239 : i32
    %87 = tpu.dynamic_rotate %26 by %c239_i32 dim 1 : vector<64x256xf32>, i32 -> vector<64x256xf32>
    %c8 = arith.constant 8 : index
    %c0_25 = arith.constant 0 : index
    %88 = vector.load %arg5[%c8, %c0_25] : memref<9x256xf32, #tpu.memory_space<vmem>>, vector<1x256xf32>
    %89 = vector.broadcast %88 : vector<1x256xf32> to vector<64x256xf32>
    %90 = arith.mulf %87, %89 : vector<64x256xf32>
    %91 = vector.extract_strided_slice %27 {offsets = [0, 8], sizes = [64, 1], strides = [1, 1]} : vector<64x9xf32> to vector<64x1xf32>
    %92 = vector.broadcast %91 : vector<64x1xf32> to vector<64x256xf32>
    %93 = arith.mulf %90, %92 : vector<64x256xf32>
    %94 = arith.addf %86, %93 : vector<64x256xf32>
    %c0_26 = arith.constant 0 : index
    %c0_27 = arith.constant 0 : index
    %95 = vector.load %arg11[%c0_26, %c0_27] : memref<192x256xf32, #tpu.memory_space<vmem>>, vector<64x256xf32>
    tpu.vector_store %arg11[%c0_26, %c0_27], %94 {strides = array<i32>} : memref<192x256xf32, #tpu.memory_space<vmem>>, vector<64x256xf32>,
    %c64 = arith.constant 64 : index
    %c0_28 = arith.constant 0 : index
    %96 = vector.load %arg10[%c64, %c0_28] : memref<192x256xf32, #tpu.memory_space<vmem>>, vector<64x256xf32>
    %c64_29 = arith.constant 64 : index
    %c0_30 = arith.constant 0 : index
    %97 = vector.load %arg4[%c64_29, %c0_30] : memref<192x9xf32, #tpu.memory_space<vmem>>, vector<64x9xf32>
    %98 = vector.extract_strided_slice %97 {offsets = [0, 4], sizes = [64, 1], strides = [1, 1]} : vector<64x9xf32> to vector<64x1xf32>
    %99 = vector.broadcast %98 : vector<64x1xf32> to vector<64x256xf32>
    %100 = arith.mulf %96, %99 : vector<64x256xf32>
    %c17_i32_31 = arith.constant 17 : i32
    %101 = tpu.dynamic_rotate %96 by %c17_i32_31 dim 1 : vector<64x256xf32>, i32 -> vector<64x256xf32>
    %c0_32 = arith.constant 0 : index
    %c0_33 = arith.constant 0 : index
    %102 = vector.load %arg5[%c0_32, %c0_33] : memref<9x256xf32, #tpu.memory_space<vmem>>, vector<1x256xf32>
    %103 = vector.broadcast %102 : vector<1x256xf32> to vector<64x256xf32>
    %104 = arith.mulf %101, %103 : vector<64x256xf32>
    %105 = vector.extract_strided_slice %97 {offsets = [0, 0], sizes = [64, 1], strides = [1, 1]} : vector<64x9xf32> to vector<64x1xf32>
    %106 = vector.broadcast %105 : vector<64x1xf32> to vector<64x256xf32>
    %107 = arith.mulf %104, %106 : vector<64x256xf32>
    %108 = arith.addf %100, %107 : vector<64x256xf32>
    %c16_i32_34 = arith.constant 16 : i32
    %109 = tpu.dynamic_rotate %96 by %c16_i32_34 dim 1 : vector<64x256xf32>, i32 -> vector<64x256xf32>
    %c1_35 = arith.constant 1 : index
    %c0_36 = arith.constant 0 : index
    %110 = vector.load %arg5[%c1_35, %c0_36] : memref<9x256xf32, #tpu.memory_space<vmem>>, vector<1x256xf32>
    %111 = vector.broadcast %110 : vector<1x256xf32> to vector<64x256xf32>
    %112 = arith.mulf %109, %111 : vector<64x256xf32>
    %113 = vector.extract_strided_slice %97 {offsets = [0, 1], sizes = [64, 1], strides = [1, 1]} : vector<64x9xf32> to vector<64x1xf32>
    %114 = vector.broadcast %113 : vector<64x1xf32> to vector<64x256xf32>
    %115 = arith.mulf %112, %114 : vector<64x256xf32>
    %116 = arith.addf %108, %115 : vector<64x256xf32>
    %c15_i32_37 = arith.constant 15 : i32
    %117 = tpu.dynamic_rotate %96 by %c15_i32_37 dim 1 : vector<64x256xf32>, i32 -> vector<64x256xf32>
    %c2_38 = arith.constant 2 : index
    %c0_39 = arith.constant 0 : index
    %118 = vector.load %arg5[%c2_38, %c0_39] : memref<9x256xf32, #tpu.memory_space<vmem>>, vector<1x256xf32>
    %119 = vector.broadcast %118 : vector<1x256xf32> to vector<64x256xf32>
    %120 = arith.mulf %117, %119 : vector<64x256xf32>
    %121 = vector.extract_strided_slice %97 {offsets = [0, 2], sizes = [64, 1], strides = [1, 1]} : vector<64x9xf32> to vector<64x1xf32>
    %122 = vector.broadcast %121 : vector<64x1xf32> to vector<64x256xf32>
    %123 = arith.mulf %120, %122 : vector<64x256xf32>
    %124 = arith.addf %116, %123 : vector<64x256xf32>
    %c1_i32_40 = arith.constant 1 : i32
    %125 = tpu.dynamic_rotate %96 by %c1_i32_40 dim 1 : vector<64x256xf32>, i32 -> vector<64x256xf32>
    %c3_41 = arith.constant 3 : index
    %c0_42 = arith.constant 0 : index
    %126 = vector.load %arg5[%c3_41, %c0_42] : memref<9x256xf32, #tpu.memory_space<vmem>>, vector<1x256xf32>
    %127 = vector.broadcast %126 : vector<1x256xf32> to vector<64x256xf32>
    %128 = arith.mulf %125, %127 : vector<64x256xf32>
    %129 = vector.extract_strided_slice %97 {offsets = [0, 3], sizes = [64, 1], strides = [1, 1]} : vector<64x9xf32> to vector<64x1xf32>
    %130 = vector.broadcast %129 : vector<64x1xf32> to vector<64x256xf32>
    %131 = arith.mulf %128, %130 : vector<64x256xf32>
    %132 = arith.addf %124, %131 : vector<64x256xf32>
    %c255_i32_43 = arith.constant 255 : i32
    %133 = tpu.dynamic_rotate %96 by %c255_i32_43 dim 1 : vector<64x256xf32>, i32 -> vector<64x256xf32>
    %c5_44 = arith.constant 5 : index
    %c0_45 = arith.constant 0 : index
    %134 = vector.load %arg5[%c5_44, %c0_45] : memref<9x256xf32, #tpu.memory_space<vmem>>, vector<1x256xf32>
    %135 = vector.broadcast %134 : vector<1x256xf32> to vector<64x256xf32>
    %136 = arith.mulf %133, %135 : vector<64x256xf32>
    %137 = vector.extract_strided_slice %97 {offsets = [0, 5], sizes = [64, 1], strides = [1, 1]} : vector<64x9xf32> to vector<64x1xf32>
    %138 = vector.broadcast %137 : vector<64x1xf32> to vector<64x256xf32>
    %139 = arith.mulf %136, %138 : vector<64x256xf32>
    %140 = arith.addf %132, %139 : vector<64x256xf32>
    %c241_i32_46 = arith.constant 241 : i32
    %141 = tpu.dynamic_rotate %96 by %c241_i32_46 dim 1 : vector<64x256xf32>, i32 -> vector<64x256xf32>
    %c6_47 = arith.constant 6 : index
    %c0_48 = arith.constant 0 : index
    %142 = vector.load %arg5[%c6_47, %c0_48] : memref<9x256xf32, #tpu.memory_space<vmem>>, vector<1x256xf32>
    %143 = vector.broadcast %142 : vector<1x256xf32> to vector<64x256xf32>
    %144 = arith.mulf %141, %143 : vector<64x256xf32>
    %145 = vector.extract_strided_slice %97 {offsets = [0, 6], sizes = [64, 1], strides = [1, 1]} : vector<64x9xf32> to vector<64x1xf32>
    %146 = vector.broadcast %145 : vector<64x1xf32> to vector<64x256xf32>
    %147 = arith.mulf %144, %146 : vector<64x256xf32>
    %148 = arith.addf %140, %147 : vector<64x256xf32>
    %c240_i32_49 = arith.constant 240 : i32
    %149 = tpu.dynamic_rotate %96 by %c240_i32_49 dim 1 : vector<64x256xf32>, i32 -> vector<64x256xf32>
    %c7_50 = arith.constant 7 : index
    %c0_51 = arith.constant 0 : index
    %150 = vector.load %arg5[%c7_50, %c0_51] : memref<9x256xf32, #tpu.memory_space<vmem>>, vector<1x256xf32>
    %151 = vector.broadcast %150 : vector<1x256xf32> to vector<64x256xf32>
    %152 = arith.mulf %149, %151 : vector<64x256xf32>
    %153 = vector.extract_strided_slice %97 {offsets = [0, 7], sizes = [64, 1], strides = [1, 1]} : vector<64x9xf32> to vector<64x1xf32>
    %154 = vector.broadcast %153 : vector<64x1xf32> to vector<64x256xf32>
    %155 = arith.mulf %152, %154 : vector<64x256xf32>
    %156 = arith.addf %148, %155 : vector<64x256xf32>
    %c239_i32_52 = arith.constant 239 : i32
    %157 = tpu.dynamic_rotate %96 by %c239_i32_52 dim 1 : vector<64x256xf32>, i32 -> vector<64x256xf32>
    %c8_53 = arith.constant 8 : index
    %c0_54 = arith.constant 0 : index
    %158 = vector.load %arg5[%c8_53, %c0_54] : memref<9x256xf32, #tpu.memory_space<vmem>>, vector<1x256xf32>
    %159 = vector.broadcast %158 : vector<1x256xf32> to vector<64x256xf32>
    %160 = arith.mulf %157, %159 : vector<64x256xf32>
    %161 = vector.extract_strided_slice %97 {offsets = [0, 8], sizes = [64, 1], strides = [1, 1]} : vector<64x9xf32> to vector<64x1xf32>
    %162 = vector.broadcast %161 : vector<64x1xf32> to vector<64x256xf32>
    %163 = arith.mulf %160, %162 : vector<64x256xf32>
    %164 = arith.addf %156, %163 : vector<64x256xf32>
    %c64_55 = arith.constant 64 : index
    %c0_56 = arith.constant 0 : index
    %165 = vector.load %arg11[%c64_55, %c0_56] : memref<192x256xf32, #tpu.memory_space<vmem>>, vector<64x256xf32>
    tpu.vector_store %arg11[%c64_55, %c0_56], %164 {strides = array<i32>} : memref<192x256xf32, #tpu.memory_space<vmem>>, vector<64x256xf32>,
    %c128 = arith.constant 128 : index
    %c0_57 = arith.constant 0 : index
    %166 = vector.load %arg10[%c128, %c0_57] : memref<192x256xf32, #tpu.memory_space<vmem>>, vector<64x256xf32>
    %c128_58 = arith.constant 128 : index
    %c0_59 = arith.constant 0 : index
    %167 = vector.load %arg4[%c128_58, %c0_59] : memref<192x9xf32, #tpu.memory_space<vmem>>, vector<64x9xf32>
    %168 = vector.extract_strided_slice %167 {offsets = [0, 4], sizes = [64, 1], strides = [1, 1]} : vector<64x9xf32> to vector<64x1xf32>
    %169 = vector.broadcast %168 : vector<64x1xf32> to vector<64x256xf32>
    %170 = arith.mulf %166, %169 : vector<64x256xf32>
    %c17_i32_60 = arith.constant 17 : i32
    %171 = tpu.dynamic_rotate %166 by %c17_i32_60 dim 1 : vector<64x256xf32>, i32 -> vector<64x256xf32>
    %c0_61 = arith.constant 0 : index
    %c0_62 = arith.constant 0 : index
    %172 = vector.load %arg5[%c0_61, %c0_62] : memref<9x256xf32, #tpu.memory_space<vmem>>, vector<1x256xf32>
    %173 = vector.broadcast %172 : vector<1x256xf32> to vector<64x256xf32>
    %174 = arith.mulf %171, %173 : vector<64x256xf32>
    %175 = vector.extract_strided_slice %167 {offsets = [0, 0], sizes = [64, 1], strides = [1, 1]} : vector<64x9xf32> to vector<64x1xf32>
    %176 = vector.broadcast %175 : vector<64x1xf32> to vector<64x256xf32>
    %177 = arith.mulf %174, %176 : vector<64x256xf32>
    %178 = arith.addf %170, %177 : vector<64x256xf32>
    %c16_i32_63 = arith.constant 16 : i32
    %179 = tpu.dynamic_rotate %166 by %c16_i32_63 dim 1 : vector<64x256xf32>, i32 -> vector<64x256xf32>
    %c1_64 = arith.constant 1 : index
    %c0_65 = arith.constant 0 : index
    %180 = vector.load %arg5[%c1_64, %c0_65] : memref<9x256xf32, #tpu.memory_space<vmem>>, vector<1x256xf32>
    %181 = vector.broadcast %180 : vector<1x256xf32> to vector<64x256xf32>
    %182 = arith.mulf %179, %181 : vector<64x256xf32>
    %183 = vector.extract_strided_slice %167 {offsets = [0, 1], sizes = [64, 1], strides = [1, 1]} : vector<64x9xf32> to vector<64x1xf32>
    %184 = vector.broadcast %183 : vector<64x1xf32> to vector<64x256xf32>
    %185 = arith.mulf %182, %184 : vector<64x256xf32>
    %186 = arith.addf %178, %185 : vector<64x256xf32>
    %c15_i32_66 = arith.constant 15 : i32
    %187 = tpu.dynamic_rotate %166 by %c15_i32_66 dim 1 : vector<64x256xf32>, i32 -> vector<64x256xf32>
    %c2_67 = arith.constant 2 : index
    %c0_68 = arith.constant 0 : index
    %188 = vector.load %arg5[%c2_67, %c0_68] : memref<9x256xf32, #tpu.memory_space<vmem>>, vector<1x256xf32>
    %189 = vector.broadcast %188 : vector<1x256xf32> to vector<64x256xf32>
    %190 = arith.mulf %187, %189 : vector<64x256xf32>
    %191 = vector.extract_strided_slice %167 {offsets = [0, 2], sizes = [64, 1], strides = [1, 1]} : vector<64x9xf32> to vector<64x1xf32>
    %192 = vector.broadcast %191 : vector<64x1xf32> to vector<64x256xf32>
    %193 = arith.mulf %190, %192 : vector<64x256xf32>
    %194 = arith.addf %186, %193 : vector<64x256xf32>
    %c1_i32_69 = arith.constant 1 : i32
    %195 = tpu.dynamic_rotate %166 by %c1_i32_69 dim 1 : vector<64x256xf32>, i32 -> vector<64x256xf32>
    %c3_70 = arith.constant 3 : index
    %c0_71 = arith.constant 0 : index
    %196 = vector.load %arg5[%c3_70, %c0_71] : memref<9x256xf32, #tpu.memory_space<vmem>>, vector<1x256xf32>
    %197 = vector.broadcast %196 : vector<1x256xf32> to vector<64x256xf32>
    %198 = arith.mulf %195, %197 : vector<64x256xf32>
    %199 = vector.extract_strided_slice %167 {offsets = [0, 3], sizes = [64, 1], strides = [1, 1]} : vector<64x9xf32> to vector<64x1xf32>
    %200 = vector.broadcast %199 : vector<64x1xf32> to vector<64x256xf32>
    %201 = arith.mulf %198, %200 : vector<64x256xf32>
    %202 = arith.addf %194, %201 : vector<64x256xf32>
    %c255_i32_72 = arith.constant 255 : i32
    %203 = tpu.dynamic_rotate %166 by %c255_i32_72 dim 1 : vector<64x256xf32>, i32 -> vector<64x256xf32>
    %c5_73 = arith.constant 5 : index
    %c0_74 = arith.constant 0 : index
    %204 = vector.load %arg5[%c5_73, %c0_74] : memref<9x256xf32, #tpu.memory_space<vmem>>, vector<1x256xf32>
    %205 = vector.broadcast %204 : vector<1x256xf32> to vector<64x256xf32>
    %206 = arith.mulf %203, %205 : vector<64x256xf32>
    %207 = vector.extract_strided_slice %167 {offsets = [0, 5], sizes = [64, 1], strides = [1, 1]} : vector<64x9xf32> to vector<64x1xf32>
    %208 = vector.broadcast %207 : vector<64x1xf32> to vector<64x256xf32>
    %209 = arith.mulf %206, %208 : vector<64x256xf32>
    %210 = arith.addf %202, %209 : vector<64x256xf32>
    %c241_i32_75 = arith.constant 241 : i32
    %211 = tpu.dynamic_rotate %166 by %c241_i32_75 dim 1 : vector<64x256xf32>, i32 -> vector<64x256xf32>
    %c6_76 = arith.constant 6 : index
    %c0_77 = arith.constant 0 : index
    %212 = vector.load %arg5[%c6_76, %c0_77] : memref<9x256xf32, #tpu.memory_space<vmem>>, vector<1x256xf32>
    %213 = vector.broadcast %212 : vector<1x256xf32> to vector<64x256xf32>
    %214 = arith.mulf %211, %213 : vector<64x256xf32>
    %215 = vector.extract_strided_slice %167 {offsets = [0, 6], sizes = [64, 1], strides = [1, 1]} : vector<64x9xf32> to vector<64x1xf32>
    %216 = vector.broadcast %215 : vector<64x1xf32> to vector<64x256xf32>
    %217 = arith.mulf %214, %216 : vector<64x256xf32>
    %218 = arith.addf %210, %217 : vector<64x256xf32>
    %c240_i32_78 = arith.constant 240 : i32
    %219 = tpu.dynamic_rotate %166 by %c240_i32_78 dim 1 : vector<64x256xf32>, i32 -> vector<64x256xf32>
    %c7_79 = arith.constant 7 : index
    %c0_80 = arith.constant 0 : index
    %220 = vector.load %arg5[%c7_79, %c0_80] : memref<9x256xf32, #tpu.memory_space<vmem>>, vector<1x256xf32>
    %221 = vector.broadcast %220 : vector<1x256xf32> to vector<64x256xf32>
    %222 = arith.mulf %219, %221 : vector<64x256xf32>
    %223 = vector.extract_strided_slice %167 {offsets = [0, 7], sizes = [64, 1], strides = [1, 1]} : vector<64x9xf32> to vector<64x1xf32>
    %224 = vector.broadcast %223 : vector<64x1xf32> to vector<64x256xf32>
    %225 = arith.mulf %222, %224 : vector<64x256xf32>
    %226 = arith.addf %218, %225 : vector<64x256xf32>
    %c239_i32_81 = arith.constant 239 : i32
    %227 = tpu.dynamic_rotate %166 by %c239_i32_81 dim 1 : vector<64x256xf32>, i32 -> vector<64x256xf32>
    %c8_82 = arith.constant 8 : index
    %c0_83 = arith.constant 0 : index
    %228 = vector.load %arg5[%c8_82, %c0_83] : memref<9x256xf32, #tpu.memory_space<vmem>>, vector<1x256xf32>
    %229 = vector.broadcast %228 : vector<1x256xf32> to vector<64x256xf32>
    %230 = arith.mulf %227, %229 : vector<64x256xf32>
    %231 = vector.extract_strided_slice %167 {offsets = [0, 8], sizes = [64, 1], strides = [1, 1]} : vector<64x9xf32> to vector<64x1xf32>
    %232 = vector.broadcast %231 : vector<64x1xf32> to vector<64x256xf32>
    %233 = arith.mulf %230, %232 : vector<64x256xf32>
    %234 = arith.addf %226, %233 : vector<64x256xf32>
    %c128_84 = arith.constant 128 : index
    %c0_85 = arith.constant 0 : index
    %235 = vector.load %arg11[%c128_84, %c0_85] : memref<192x256xf32, #tpu.memory_space<vmem>>, vector<64x256xf32>
    tpu.vector_store %arg11[%c128_84, %c0_85], %234 {strides = array<i32>} : memref<192x256xf32, #tpu.memory_space<vmem>>, vector<64x256xf32>,
    %c0_86 = arith.constant 0 : index
    %c0_87 = arith.constant 0 : index
    %236 = vector.load %arg8[%c0_86, %c0_87] : memref<64x64xf32, #tpu.memory_space<vmem>>, vector<64x64xf32>
    %c64_88 = arith.constant 64 : index
    %c0_89 = arith.constant 0 : index
    %237 = vector.load %arg11[%c64_88, %c0_89] : memref<192x256xf32, #tpu.memory_space<vmem>>, vector<64x256xf32>
    %cst_90 = arith.constant dense<0xFF800000> : vector<64xf32>
    %238 = vector.multi_reduction <maximumf>, %237, %cst_90 [1] : vector<64x256xf32> to vector<64xf32>
    %239 = vector.shape_cast %238 : vector<64xf32> to vector<64x1xf32>
    %240 = vector.broadcast %239 : vector<64x1xf32> to vector<64x256xf32>
    %241 = arith.subf %237, %240 : vector<64x256xf32>
    %242 = math.exp %241 : vector<64x256xf32>
    %cst_91 = arith.constant dense<0.000000e+00> : vector<64xf32>
    %243 = vector.multi_reduction <add>, %242, %cst_91 [1] : vector<64x256xf32> to vector<64xf32>
    %244 = vector.shape_cast %243 : vector<64xf32> to vector<64x1xf32>
    %245 = vector.broadcast %244 : vector<64x1xf32> to vector<64x256xf32>
    %246 = arith.divf %242, %245 : vector<64x256xf32>
    %c128_92 = arith.constant 128 : index
    %c0_93 = arith.constant 0 : index
    %247 = vector.load %arg11[%c128_92, %c0_93] : memref<192x256xf32, #tpu.memory_space<vmem>>, vector<64x256xf32>
    %cst_94 = arith.constant dense<0.000000e+00> : vector<64x64xf32>
    %248 = tpu.matmul %247, %246, %cst_94 {dimension_numbers = #tpu.dot_dimension_numbers<[1], [1], [0], [0], [0, 0, 1, 0], [], []>} : vector<64x256xf32>, vector<64x256xf32>, vector<64x64xf32> -> vector<64x64xf32>
    %249 = arith.mulf %248, %236 : vector<64x64xf32>
    %c0_95 = arith.constant 0 : index
    %c0_96 = arith.constant 0 : index
    %250 = vector.load %arg11[%c0_95, %c0_96] : memref<192x256xf32, #tpu.memory_space<vmem>>, vector<64x256xf32>
    %cst_97 = arith.constant dense<0xFF800000> : vector<256xf32>
    %251 = vector.multi_reduction <maximumf>, %250, %cst_97 [0] : vector<64x256xf32> to vector<256xf32>
    %252 = vector.shape_cast %251 : vector<256xf32> to vector<1x256xf32>
    %253 = vector.broadcast %252 : vector<1x256xf32> to vector<64x256xf32>
    %254 = arith.subf %250, %253 : vector<64x256xf32>
    %255 = math.exp %254 : vector<64x256xf32>
    %cst_98 = arith.constant dense<0.000000e+00> : vector<64x256xf32>
    %256 = tpu.matmul %236, %255, %cst_98 {dimension_numbers = #tpu.dot_dimension_numbers<[1], [0], [0], [1], [0, 0, 1, 1], [], []>} : vector<64x64xf32>, vector<64x256xf32>, vector<64x256xf32> -> vector<64x256xf32>
    %cst_99 = arith.constant 2.500000e-01 : f32
    %257 = vector.broadcast %cst_99 : f32 to vector<64x256xf32>
    %258 = arith.divf %257, %256 : vector<64x256xf32>
    %259 = arith.mulf %255, %258 : vector<64x256xf32>
    %cst_100 = arith.constant dense<0.000000e+00> : vector<64x256xf32>
    %260 = tpu.matmul %249, %259, %cst_100 {dimension_numbers = #tpu.dot_dimension_numbers<[1], [0], [0], [1], [0, 0, 1, 1], [], []>} : vector<64x64xf32>, vector<64x256xf32>, vector<64x256xf32> -> vector<64x256xf32>
    %261 = arith.negf %260 : vector<64x256xf32>
    %262 = math.exp %261 : vector<64x256xf32>
    %cst_101 = arith.constant 1.000000e+00 : f32
    %263 = vector.broadcast %cst_101 : f32 to vector<64x256xf32>
    %264 = arith.addf %263, %262 : vector<64x256xf32>
    %265 = arith.divf %263, %264 : vector<64x256xf32>
    %266 = arith.mulf %260, %265 : vector<64x256xf32>
    %c0_102 = arith.constant 0 : index
    %c0_103 = arith.constant 0 : index
    %267 = vector.load %arg6[%c0_102, %c0_103] : memref<32x64xf32, #tpu.memory_space<vmem>>, vector<32x64xf32>
    %cst_104 = arith.constant dense<0.000000e+00> : vector<32x256xf32>
    %268 = tpu.matmul %267, %266, %cst_104 {dimension_numbers = #tpu.dot_dimension_numbers<[1], [0], [0], [1], [0, 0, 1, 1], [], []>} : vector<32x64xf32>, vector<64x256xf32>, vector<32x256xf32> -> vector<32x256xf32>
    %cst_105 = arith.constant dense<0.000000e+00> : vector<256xf32>
    %269 = vector.multi_reduction <add>, %268, %cst_105 [0] : vector<32x256xf32> to vector<256xf32>
    %270 = vector.shape_cast %269 : vector<256xf32> to vector<1x256xf32>
    %cst_106 = arith.constant 3.200000e+01 : f32
    %271 = vector.broadcast %cst_106 : f32 to vector<1x256xf32>
    %272 = arith.divf %270, %271 : vector<1x256xf32>
    %273 = vector.broadcast %272 : vector<1x256xf32> to vector<32x256xf32>
    %274 = arith.subf %268, %273 : vector<32x256xf32>
    %275 = arith.mulf %274, %274 : vector<32x256xf32>
    %cst_107 = arith.constant dense<0.000000e+00> : vector<256xf32>
    %276 = vector.multi_reduction <add>, %275, %cst_107 [0] : vector<32x256xf32> to vector<256xf32>
    %277 = vector.shape_cast %276 : vector<256xf32> to vector<1x256xf32>
    %cst_108 = arith.constant 3.200000e+01 : f32
    %278 = vector.broadcast %cst_108 : f32 to vector<1x256xf32>
    %279 = arith.divf %277, %278 : vector<1x256xf32>
    %280 = vector.broadcast %272 : vector<1x256xf32> to vector<32x256xf32>
    %281 = arith.subf %268, %280 : vector<32x256xf32>
    %cst_109 = arith.constant 9.99999974E-6 : f32
    %282 = vector.broadcast %cst_109 : f32 to vector<1x256xf32>
    %283 = arith.addf %279, %282 : vector<1x256xf32>
    %284 = math.rsqrt %283 : vector<1x256xf32>
    %285 = vector.broadcast %284 : vector<1x256xf32> to vector<32x256xf32>
    %286 = arith.mulf %281, %285 : vector<32x256xf32>
    %c0_110 = arith.constant 0 : index
    %c0_111 = arith.constant 0 : index
    %287 = vector.load %arg7[%c0_110, %c0_111] : memref<32x1xf32, #tpu.memory_space<vmem>>, vector<32x1xf32>
    %288 = vector.broadcast %287 : vector<32x1xf32> to vector<32x256xf32>
    %289 = arith.mulf %286, %288 : vector<32x256xf32>
    %c0_112 = arith.constant 0 : index
    %c0_113 = arith.constant 0 : index
    %c0_114 = arith.constant 0 : index
    %290 = vector.load %arg9[%c0_112, %c0_113, %c0_114] : memref<1x32x256xf32, #tpu.memory_space<vmem>>, vector<1x32x256xf32>
    %291 = vector.shape_cast %290 : vector<1x32x256xf32> to vector<32x256xf32>
    %292 = vector.shape_cast %289 : vector<32x256xf32> to vector<1x32x256xf32>
    tpu.vector_store %arg9[%c0_112, %c0_113, %c0_114], %292 {strides = array<i32>} : memref<1x32x256xf32, #tpu.memory_space<vmem>>, vector<1x32x256xf32>,
    return
  }
  func.func @transform_0(%arg0: i32) -> (i32, i32, i32) {
    %c0_i32 = arith.constant 0 : i32
    %c0_i32_0 = arith.constant 0 : i32
    %c0_i32_1 = arith.constant 0 : i32
    return %arg0, %c0_i32, %c0_i32_0 : i32, i32, i32
  }
  func.func @transform_1(%arg0: i32) -> (i32, i32) {
    %c0_i32 = arith.constant 0 : i32
    %c0_i32_0 = arith.constant 0 : i32
    %c0_i32_1 = arith.constant 0 : i32
    return %c0_i32, %c0_i32_0 : i32, i32
  }
  func.func @transform_2(%arg0: i32) -> (i32, i32) {
    %c0_i32 = arith.constant 0 : i32
    %c0_i32_0 = arith.constant 0 : i32
    %c0_i32_1 = arith.constant 0 : i32
    return %c0_i32, %c0_i32_0 : i32, i32
  }
  func.func @transform_3(%arg0: i32) -> (i32, i32) {
    %c0_i32 = arith.constant 0 : i32
    %c0_i32_0 = arith.constant 0 : i32
    %c0_i32_1 = arith.constant 0 : i32
    return %c0_i32, %c0_i32_0 : i32, i32
  }
  func.func @transform_4(%arg0: i32) -> (i32, i32) {
    %c0_i32 = arith.constant 0 : i32
    %c0_i32_0 = arith.constant 0 : i32
    %c0_i32_1 = arith.constant 0 : i32
    return %c0_i32, %c0_i32_0 : i32, i32
  }
  func.func @transform_5(%arg0: i32) -> (i32, i32) {
    %c0_i32 = arith.constant 0 : i32
    %c0_i32_0 = arith.constant 0 : i32
    %c0_i32_1 = arith.constant 0 : i32
    return %c0_i32, %c0_i32_0 : i32, i32
  }
  func.func @transform_6(%arg0: i32) -> (i32, i32) {
    %c0_i32 = arith.constant 0 : i32
    %c0_i32_0 = arith.constant 0 : i32
    %c0_i32_1 = arith.constant 0 : i32
    return %c0_i32, %c0_i32_0 : i32, i32
  }
  func.func @transform_7(%arg0: i32) -> (i32, i32) {
    %c0_i32 = arith.constant 0 : i32
    %c0_i32_0 = arith.constant 0 : i32
    %c0_i32_1 = arith.constant 0 : i32
    return %c0_i32, %c0_i32_0 : i32, i32
  }
  func.func @transform_8(%arg0: i32) -> (i32, i32, i32) {
    %c0_i32 = arith.constant 0 : i32
    %c0_i32_0 = arith.constant 0 : i32
    %c0_i32_1 = arith.constant 0 : i32
    return %arg0, %c0_i32, %c0_i32_0 : i32, i32, i32
  }
}

</mosaic_0001>

<bundles_post_ra>
// kernel: tpu_custom_call.1
= control target key start
LH: loop header
LB: loop body
LE: loop exit
PB: predicated region body
PF: predicated region fallthrough
CT: control target
= control target key end

     0   :  { %13 = vsyncpa [#allocation5], 0  ;;  %s12456_s0 = inlined_call_operand.vmem [shape: f32[2,32,256], index: 0, kind: input, shape index: {}]   ;;  %s12457_s1 = inlined_call_operand.vmem [shape: f32[32,1], index: 1, kind: input, shape index: {}]   ;;  %s12458_s2 = inlined_call_operand.vmem [shape: f32[192,32], index: 2, kind: input, shape index: {}]   ;;  %s12459_s3 = inlined_call_operand.vmem [shape: f32[192,9], index: 3, kind: input, shape index: {}]   ;;  %s12460_s4 = inlined_call_operand.vmem [shape: f32[9,256], index: 4, kind: input, shape index: {}]   ;;  %s12461_s5 = inlined_call_operand.vmem [shape: f32[32,64], index: 5, kind: input, shape index: {}]   ;;  %s12462_s6 = inlined_call_operand.vmem [shape: f32[32,1], index: 6, kind: input, shape index: {}]   ;;  %s12463_s7 = inlined_call_operand.vmem [shape: f32[64,64], index: 7, kind: input, shape index: {}]   ;;  %s12464_s8 = inlined_call_operand.hbm [shape: f32[2,32,256], index: 8, kind: output, shape index: {}]  }
   0x1   :  { %15 = vsyncpa [#allocation5 + $0x1], 0  ;;  %s6077_s27 = smov 0   ;;  %s6079_s28 = smov 0  }
   0x2   :  { %s6081_s29 = smov 0   ;;  %s6083_s30 = smov 0  }
   0x3 LB: > { %s6098_s9 = sadd.s32 4294967295, %s6010_s30   ;;  %s5519_s10 = sadd.s32 4294967294, %s6010_s30   ;;  %s6010_s30 = sphi %s6083_s30, %s14517_s30   ;;  %s6006_s29 = sphi %s6081_s29, %s14516_s29   ;;  %s6002_s28 = sphi %s6079_s28, %s14515_s28   ;;  %s5998_s27 = sphi %s6077_s27, %s14514_s27  }
   0x4   : > { %s6102_s11 = sadd.s32 1, %s6010_s30   ;;  %s201_s12 = sadd.s32 1, %s6006_s29 }
   0x5   : > { %s198_s13 = ssub.s32 %s6010_s30, %s6102_s11  ;;  %p211_p0 = scmp.ne.s32.totalorder %s6006_s29, %s6002_s28 }
   0x6   : > { %p199_p1 = scmp.eq.s32.totalorder %s198_s13, 0  ;;  %p212_p2 = scmp.eq.s32.totalorder %s6098_s9, 1 }
   0x7   : > { %p217_p3 = scmp.ne.s32.totalorder %s6002_s28, %s5998_s27  ;;  %p218_p4 = scmp.eq.s32.totalorder %s5519_s10, 1 }
   0x8   : > { %s6113_s14 = scalar_select %p199_p1, %s6006_s29, %s201_s12  }
   0x9   : > { %p6115_p5 = por %p212_p2, %p211_p0  ;;  %p6119_p6 = por %p218_p4, %p217_p3 }
   0xa   : > { %p5522_p7 = scmp.ge.s32.totalorder %s6010_s30, 1  ;;  %p265_p8 = scmp.lt.s32.totalorder %s6010_s30, 3 }
   0xc   : > { %p266_p9 = pnand %p5522_p7, %p265_p8 }
   0xe   : > { %269 = sbr.rel (%p266_p9) target bundleno = 2921 (0xb69), region = 52 }
  0x13   : > { %v383_v0 = vld [vmem:[%s12457_s1 + $0x10] sm:$0xff]  ;;  %v381_v1 = vld [vmem:[%s12457_s1] sm:$0xff]  ;;  %v12475_v2 = vmov 0   ;;  %p299_p10 = scmp.lt.s32.totalorder %s6098_s9, 1  ;;  %v384_v3 = vld [vmem:[%s12457_s1 + $0x18] sm:$0xff]  ;;  %v12465_v5 = vmov 0.0  }
  0x14   : > { %5673 = vset.pattern.permute.xlu1 %v12475_v2  ;;  %5672 = vset.pattern.permute.xlu0 %v12475_v2  ;;  %v382_v4 = vld [vmem:[%s12457_s1 + $0x8] sm:$0xff]  ;;  %v12479_v25 = vmov 4   ;;  %v6154_v26 = vld [vmem:[%s12459_s3] sm:$0xff]  ;;  %v6162_v28 = vld [vmem:[%s12459_s3 + $0x10] sm:$0xff]  ;;  %vm437_vm0 = vcmask 261120   ;;  %s6022_s10 = smov 17  }
  0x15   : > { %397 = vperm.xlu1 %5673, %v383_v0   ;;  %387 = vperm.xlu0 %5672, %v381_v1   ;;  %s300_s25 = scalar_select %p299_p10, %s6098_s9, 1  ;;  %v6148_v24 = vld [vmem:[%s12459_s3 + $0x8] sm:$0xff]  ;;  %v6167_v30 = vld [vmem:[%s12459_s3 + $0x18] sm:$0xff]  ;;  %v6174_v32 = vld [vmem:[%s12459_s3 + $0x20] sm:$0xff]  ;;  %v12477_v0 = vmov 1   ;;  %vm4795_vm9 = vcmask 523264  }
  0x16   : > { %574 = vmatprep.mubr.f32.mxu0 %v12465_v5  ;;  %v6179_v34 = vld [vmem:[%s12459_s3 + $0x28] sm:$0xff]  ;;  %v6186_v36 = vld [vmem:[%s12459_s3 + $0x30] sm:$0xff]  ;;  %v6191_v38 = vld [vmem:[%s12459_s3 + $0x38] sm:$0xff]  ;;  %s6023_s12 = smov 1   ;;  %s6025_s17 = smov 113  }
  0x17   : > { %s5612_s26 = sshll.u32 %s300_s25, 6  ;;  %s6026_s18 = smov 127  }
  0x18   : > { %s303_s13 = scalar_lea.vmem %s12456_s0, %s5612_s26  ;;  %s6021_s26 = smov 16  }
  0x19   : > { %402 = vperm.xlu1 %5673, %v384_v3   ;;  %392 = vperm.xlu0 %5672, %v382_v4   ;;  %v304_v6 = vld [vmem:[%s303_s13] sm:$0xff]  ;;  %v306_v7 = vld [vmem:[%s303_s13 + $0x10] sm:$0xff]  ;;  %v305_v8 = vld [vmem:[%s303_s13 + $0x8] sm:$0xff]  ;;  %s12915_s19 = smov 112   ;;  %s12580_s20 = smov 111  }
  0x1a   : > { %v307_v9 = vld [vmem:[%s303_s13 + $0x18] sm:$0xff]  ;;  %v312_v10 = vadd.f32 %v306_v7, %v304_v6  ;;  %v308_v11 = vld [vmem:[%s303_s13 + $0x20] sm:$0xff]  ;;  %v309_v13 = vld [vmem:[%s303_s13 + $0x28] sm:$0xff]  ;;  %s13336_s22 = smov 111   ;;  %s296_s21 = sand.u32 1, %s6002_s28  }
  0x1b   : > { %v321_v12 = vadd.f32 %v307_v9, %v305_v8  ;;  %v310_v15 = vld [vmem:[%s303_s13 + $0x30] sm:$0xff]  ;;  %v311_v17 = vld [vmem:[%s303_s13 + $0x38] sm:$0xff]  ;;  %s6024_s13 = smov 15   ;;  %s5523_s23 = sshll.u32 %s296_s21, 6 }
  0x1c   : > { %v313_v14 = vadd.f32 %v312_v10, %v308_v11  ;;  %s298_s24 = scalar_lea.vmem [#allocation4], %s5523_s23 }
  0x1d   : > { %v322_v16 = vadd.f32 %v321_v12, %v309_v13  ;;  %5675 = vset.pattern.permute.xlu1 %v12479_v25  ;;  %5674 = vset.pattern.permute.xlu0 %v12479_v25  ;;  %v12481_v12 = vmov 2  }
  0x1e   : > { %v314_v18 = vadd.f32 %v313_v14, %v310_v15  ;;  %798 = vperm.xlu1 %5675, %v6148_v24   ;;  %793 = vperm.xlu0 %5674, %v6154_v26  }
  0x1f   : > { %v323_v19 = vadd.f32 %v322_v16, %v311_v17 }
  0x20   : > { %v315_v20 = vrot.slane %v314_v18, 4 }
  0x21   : > { %v324_v21 = vrot.slane %v323_v19, 4 }
  0x22   : > { %v316_v22 = vadd.f32 %v315_v20, %v314_v18  ;;  %803 = vperm.xlu1 %5675, %v6162_v28   ;;  %808 = vperm.xlu0 %5674, %v6167_v30  }
  0x23   : > { %v325_v23 = vadd.f32 %v324_v21, %v323_v19  ;;  %v12473_v21 = vmov 3  }
  0x24   : > { %v317_v27 = vrot.slane %v316_v22, 2 }
  0x25   : > { %v326_v29 = vrot.slane %v325_v23, 2 }
  0x26   : > { %v318_v31 = vadd.f32 %v317_v27, %v316_v22  ;;  %813 = vperm.xlu1 %5675, %v6174_v32   ;;  %818 = vperm.xlu0 %5674, %v6179_v34  }
  0x27   : > { %v327_v33 = vadd.f32 %v326_v29, %v325_v23 }
  0x28   : > { %v319_v35 = vrot.slane %v318_v31, 1 }
  0x29   : > { %v328_v37 = vrot.slane %v327_v33, 1 }
  0x2a   : > { %823 = vperm.xlu1 %5675, %v6186_v36   ;;  %828 = vperm.xlu0 %5674, %v6191_v38   ;;  %v320_v39 = vadd.f32 %v319_v35, %v318_v31 }
  0x2b   : > { %v329_v40 = vadd.f32 %v328_v37, %v327_v33 }
  0x2c   : > { %v331_v41 = vmul.f32 0.03125, %v320_v39 }
  0x2d   : > { %v332_v42 = vmul.f32 0.03125, %v329_v40 }
  0x2e   : > { %5676 = vset.pattern.permute.xlu1 %v12475_v2  ;;  %v6197_v43 = vsub.f32 %v304_v6, %v331_v41  ;;  %v6199_v44 = vsub.f32 %v306_v7, %v331_v41  ;;  %v6206_v47 = vsub.f32 %v308_v11, %v331_v41  ;;  %v339_v53 = vsub.f32 %v310_v15, %v331_v41 }
  0x2f   : > { %927 = vperm.xlu1 %5676, %v6154_v26   ;;  %v6202_v45 = vsub.f32 %v305_v8, %v332_v42  ;;  %v6204_v46 = vsub.f32 %v307_v9, %v332_v42  ;;  %v338_v50 = vsub.f32 %v309_v13, %v332_v42  ;;  %v340_v56 = vsub.f32 %v311_v17, %v332_v42 }
  0x30   : > { %v341_v48 = vmul.f32 %v6197_v43, %v6197_v43  ;;  %v343_v49 = vmul.f32 %v6199_v44, %v6199_v44  ;;  %v345_v54 = vmul.f32 %v6206_v47, %v6206_v47  ;;  %v347_v59 = vmul.f32 %v339_v53, %v339_v53 }
  0x31   : > { %v342_v51 = vmul.f32 %v6202_v45, %v6202_v45  ;;  %v344_v52 = vmul.f32 %v6204_v46, %v6204_v46  ;;  %v346_v57 = vmul.f32 %v338_v50, %v338_v50  ;;  %v348_v61 = vmul.f32 %v340_v56, %v340_v56 }
  0x32   : > { %v349_v55 = vadd.f32 %v343_v49, %v341_v48  ;;  %v12471_v48 = vmov 5  }
  0x33   : > { %935 = vperm.xlu1 %5676, %v6162_v28   ;;  %v358_v58 = vadd.f32 %v344_v52, %v342_v51 }
  0x34   : > { %v350_v60 = vadd.f32 %v349_v55, %v345_v54 }
  0x35   : > { %v359_v62 = vadd.f32 %v358_v58, %v346_v57  ;;  %v416_v57 = vld [vmem:[%s12458_s2 + $0x18] sm:$0xff]  ;;  %v12469_v58 = vmov 6  }
  0x36   : > { %v351_v63 = vadd.f32 %v350_v60, %v347_v59  ;;  %v417_v59 = vld [vmem:[%s12458_s2 + $0x20] sm:$0xff]  ;;  %v418_v60 = vld [vmem:[%s12458_s2 + $0x28] sm:$0xff] }
  0x37   : > { %939 = vperm.xlu1 %5676, %v6167_v30   ;;  %v360_v1 = vadd.f32 %v359_v62, %v348_v61  ;;  %v420_v61 = vld [vmem:[%s12458_s2 + $0x38] sm:$0xff]  ;;  %v12467_v62 = vmov 7  }
  0x38   : > { %v352_v3 = vrot.slane %v351_v63, 4 }
  0x39   : > { %v361_v4 = vrot.slane %v360_v1, 4 }
  0x3a   : > { %v353_v6 = vadd.f32 %v352_v3, %v351_v63 }
  0x3b   : > { %947 = vperm.xlu1 %5676, %v6179_v34   ;;  %v362_v7 = vadd.f32 %v361_v4, %v360_v1  ;;  %v421_v1 = vld [vmem:[%s12458_s2 + $0x40] sm:$0xff]  ;;  %v423_v4 = vld [vmem:[%s12458_s2 + $0x50] sm:$0xff] }
  0x3c   : > { %v354_v8 = vrot.slane %v353_v6, 2 }
  0x3d   : > { %v363_v9 = vrot.slane %v362_v7, 2 }
  0x3e   : > { %v355_v10 = vadd.f32 %v354_v8, %v353_v6 }
  0x3f   : > { %955 = vperm.xlu1 %5676, %v6191_v38   ;;  %v364_v11 = vadd.f32 %v363_v9, %v362_v7  ;;  %v424_v7 = vld [vmem:[%s12458_s2 + $0x58] sm:$0xff]  ;;  %v425_v9 = vld [vmem:[%s12458_s2 + $0x60] sm:$0xff] }
  0x40   : > { %v356_v13 = vrot.slane %v355_v10, 1 }
  0x41   : > { %v365_v14 = vrot.slane %v364_v11, 1 }
  0x42   : > { %v357_v15 = vadd.f32 %v356_v13, %v355_v10  ;;  %v426_v10 = vld [vmem:[%s12458_s2 + $0x68] sm:$0xff]  ;;  %v427_v13 = vld [vmem:[%s12458_s2 + $0x70] sm:$0xff] }
  0x43   : > { %5677 = vset.pattern.permute.xlu1 %v12477_v0  ;;  %v366_v16 = vadd.f32 %v365_v14, %v364_v11 }
  0x44   : > { %1073 = vperm.xlu1 %5677, %v6148_v24   ;;  %v367_v17 = vmul.f32 0.03125, %v357_v15  ;;  %v428_v15 = vld [vmem:[%s12458_s2 + $0x78] sm:$0xff] }
  0x45   : > { %v368_v18 = vmul.f32 0.03125, %v366_v16 }
  0x46   : > { %v369_v19 = vadd.f32 1e-05, %v367_v17 }
  0x47   : > { %v370_v20 = vadd.f32 1e-05, %v368_v18 }
  0x48   : > { %1077 = vperm.xlu1 %5677, %v6162_v28   ;;  %5738 = vrsqrt.f32 %v369_v19 }
  0x49   : > { %5740 = vrsqrt.f32 %v370_v20 }
  0x4c   : > { %1085 = vperm.xlu1 %5677, %v6174_v32  }
  0x50   : > { %1093 = vperm.xlu1 %5677, %v6186_v36  }
  0x54   : > { %5678 = vset.pattern.permute.xlu1 %v12481_v12 }
  0x55   : > { %1211 = vperm.xlu1 %5678, %v6154_v26   ;;  %v5739_v22 = vpop.eup %5738 }
  0x56   : > { %v5741_v23 = vpop.eup %5740  ;;  %v379_v33 = vmul.f32 %v5739_v22, %v339_v53  ;;  %v377_v37 = vmul.f32 %v5739_v22, %v6206_v47  ;;  %v375_v51 = vmul.f32 %v5739_v22, %v6199_v44  ;;  %v373_v47 = vmul.f32 %v5739_v22, %v6197_v43  ;;  %v413_v44 = vld [vmem:[%s12458_s2] sm:$0xff]  ;;  %v414_v43 = vld [vmem:[%s12458_s2 + $0x8] sm:$0xff] }
  0x57   : > { %v380_v31 = vmul.f32 %v5741_v23, %v340_v56  ;;  %v378_v35 = vmul.f32 %v5741_v23, %v338_v50  ;;  %v376_v40 = vmul.f32 %v5741_v23, %v6204_v46  ;;  %v374_v53 = vmul.f32 %v5741_v23, %v6202_v45  ;;  %v415_v45 = vld [vmem:[%s12458_s2 + $0x10] sm:$0xff] }
  0x59   : > { %1219 = vperm.xlu1 %5678, %v6162_v28  }
  0x5d   : > { %1223 = vperm.xlu1 %5678, %v6167_v30  }
  0x61   : > { %1231 = vperm.xlu1 %5678, %v6179_v34  }
  0x65   : > { %1239 = vperm.xlu1 %5678, %v6191_v38  }
  0x69   : > { %5679 = vset.pattern.permute.xlu1 %v12473_v21 }
  0x6a   : > { %1357 = vperm.xlu1 %5679, %v6148_v24  }
  0x6e   : > { %1361 = vperm.xlu1 %5679, %v6162_v28  }
  0x72   : > { %1369 = vperm.xlu1 %5679, %v6174_v32  }
  0x76   : > { %1377 = vperm.xlu1 %5679, %v6186_v36  }
  0x7a   : > { %5680 = vset.pattern.permute.xlu1 %v12471_v48 }
  0x7b   : > { %1495 = vperm.xlu1 %5680, %v6154_v26  }
  0x7f   : > { %1503 = vperm.xlu1 %5680, %v6162_v28  }
  0x83   : > { %1507 = vperm.xlu1 %5680, %v6167_v30  }
  0x87   : > { %1515 = vperm.xlu1 %5680, %v6179_v34  }
  0x8b   : > { %1523 = vperm.xlu1 %5680, %v6191_v38  }
  0x8f   : > { %5681 = vset.pattern.permute.xlu1 %v12469_v58 }
  0x90   : > { %v398_v27 = vpop.permute.xlu1 %397  ;;  %v388_v29 = vpop.permute.xlu0 %387  ;;  %1641 = vperm.xlu1 %5681, %v6148_v24   ;;  %v419_v24 = vld [vmem:[%s12458_s2 + $0x30] sm:$0xff] }
  0x91   : > { %v410_v52 = vmul.f32 %v398_v27, %v378_v35  ;;  %v409_v50 = vmul.f32 %v398_v27, %v377_v37  ;;  %v406_v55 = vmul.f32 %v388_v29, %v374_v53  ;;  %v405_v56 = vmul.f32 %v388_v29, %v373_v47 }
  0x94   : > { %v403_v39 = vpop.permute.xlu1 %402  ;;  %v393_v49 = vpop.permute.xlu0 %392  ;;  %1645 = vperm.xlu1 %5681, %v6162_v28  }
  0x95   : > { %v412_v41 = vmul.f32 %v403_v39, %v380_v31  ;;  %v411_v42 = vmul.f32 %v403_v39, %v379_v33  ;;  %v408_v54 = vmul.f32 %v393_v49, %v376_v40  ;;  %v407_v46 = vmul.f32 %v393_v49, %v375_v51 }
  0x97   : > { %534 = vmatprep.subr.mxu0 %v412_v41 }
  0x98   : > { %535 = vmatpush1.msra.mxu0 %v411_v42  ;;  %1653 = vperm.xlu1 %5681, %v6174_v32  }
  0x99   : > { %536 = vmatprep.subr.mxu0 %v410_v52  ;;  %v6295_v32 = vpop.permute.xlu1 %798 }
  0x9a   : > { %537 = vmatpush1.msra.mxu0 %v409_v50  ;;  %13093 = vst [vmem:[#allocation7_spill] sm:$0xff] %v6295_v32  ;;  %v13277_v32 = vmov 0  }
  0x9b   : > { %538 = vmatprep.subr.mxu0 %v408_v54 }
  0x9c   : > { %539 = vmatpush1.msra.mxu0 %v407_v46  ;;  %1661 = vperm.xlu1 %5681, %v6186_v36  }
  0x9d   : > { %540 = vmatprep.subr.mxu0 %v406_v55  ;;  %v6297_v63 = vpop.permute.xlu1 %803 }
  0x9e   : > { %541 = vmatpush1.msra.mxu0 %v405_v56  ;;  %13094 = vst [vmem:[#allocation8_spill] sm:$0xff] %v6297_v63 }
  0x9f   : > { %5526 = vmatmul.mubr.msk.f32.vlgmr.msra.gmra.mxu0 %vm437_vm0, %v413_v44 }
  0xa0   : > { %580 = vmatprep.mubr.f32.mxu0 %v12465_v5  ;;  %5682 = vset.pattern.permute.xlu1 %v12467_v62 }
  0xa1   : > { %1779 = vperm.xlu1 %5682, %v6154_v26   ;;  %v6299_v36 = vpop.permute.xlu1 %813  ;;  %v422_v26 = vld [vmem:[%s12458_s2 + $0x48] sm:$0xff] }
  0xa2   : > { %13095 = vst [vmem:[#allocation9_spill] sm:$0xff] %v6299_v36  ;;  %v13259_v36 = vmov 1  }
  0xa3   : > { %5527 = vmatmul.mubr.msk.f32.gmra.mxu0 %vm437_vm0, %v414_v43  ;;  %v6503_v43 = vpop.permute.xlu0 %793 }
  0xa4   : > { %586 = vmatprep.mubr.f32.mxu0 %v12465_v5  ;;  %13127 = vst [vmem:[#allocation41_spill] sm:$0xff] %v6503_v43  ;;  %v5550_v43 = vld [vmem:[%s12460_s4 + $0x1] ss:$8 sm:$0x3] }
  0xa5   : > { %v6306_v3 = vpop.permute.xlu1 %823 }
  0xa6   : > { %13096 = vst [vmem:[#allocation10_spill] sm:$0xff] %v6306_v3 }
  0xa7   : > { %5528 = vmatmul.mubr.msk.f32.gmra.mxu0 %vm437_vm0, %v415_v45 }
  0xa8   : > { %592 = vmatprep.mubr.f32.mxu0 %v12465_v5 }
  0xaa   : > { %v6317_v6 = vpop.permute.xlu1 %927 }
  0xab   : > { %5529 = vmatmul.mubr.msk.f32.gmra.mxu0 %vm437_vm0, %v416_v57  ;;  %13097 = vst [vmem:[#allocation11_spill] sm:$0xff] %v6317_v6  ;;  %v6511_v57 = vpop.permute.xlu0 %808 }
  0xac   : > { %598 = vmatprep.mubr.f32.mxu0 %v12465_v5  ;;  %13129 = vst [vmem:[#allocation43_spill] sm:$0xff] %v6511_v57 }
  0xae   : > { %v6325_v8 = vpop.permute.xlu1 %935 }
  0xaf   : > { %5530 = vmatmul.mubr.msk.f32.gmra.mxu0 %vm437_vm0, %v417_v59  ;;  %13098 = vst [vmem:[#allocation12_spill] sm:$0xff] %v6325_v8 }
  0xb0   : > { %604 = vmatprep.mubr.f32.mxu0 %v12465_v5 }
  0xb2   : > { %v6336_v11 = vpop.permute.xlu1 %939 }
  0xb3   : > { %5531 = vmatmul.mubr.msk.f32.gmra.mxu0 %vm437_vm0, %v418_v60  ;;  %13099 = vst [vmem:[#allocation13_spill] sm:$0xff] %v6336_v11  ;;  %v6519_v60 = vpop.permute.xlu0 %818 }
  0xb4   : > { %610 = vmatprep.mubr.f32.mxu0 %v12465_v5  ;;  %13131 = vst [vmem:[#allocation45_spill] sm:$0xff] %v6519_v60 }
  0xb6   : > { %v6344_v14 = vpop.permute.xlu1 %947 }
  0xb7   : > { %5532 = vmatmul.mubr.msk.f32.gmra.mxu0 %vm437_vm0, %v419_v24  ;;  %13100 = vst [vmem:[#allocation14_spill] sm:$0xff] %v6344_v14 }
  0xb8   : > { %616 = vmatprep.mubr.f32.mxu0 %v12465_v5 }
  0xba   : > { %v6350_v16 = vpop.permute.xlu1 %955 }
  0xbb   : > { %5533 = vmatmul.mubr.msk.f32.gmra.mxu0 %vm437_vm0, %v420_v61  ;;  %13101 = vst [vmem:[#allocation15_spill] sm:$0xff] %v6350_v16 }
  0xbc   : > { %622 = vmatprep.mubr.f32.mxu0 %v12465_v5 }
  0xbf   : > { %5534 = vmatmul.mubr.msk.f32.gmra.mxu0 %vm437_vm0, %v421_v1  ;;  %v6353_v17 = vpop.permute.xlu1 %1073  ;;  %v6533_v1 = vpop.permute.xlu0 %828 }
  0xc0   : > { %628 = vmatprep.mubr.f32.mxu0 %v12465_v5  ;;  %13102 = vst [vmem:[#allocation16_spill] sm:$0xff] %v6353_v17  ;;  %13134 = vst [vmem:[#allocation48_spill] sm:$0xff] %v6533_v1 }
  0xc3   : > { %5535 = vmatmul.mubr.msk.f32.gmra.mxu0 %vm437_vm0, %v422_v26  ;;  %v6355_v18 = vpop.permute.xlu1 %1077 }
  0xc4   : > { %634 = vmatprep.mubr.f32.mxu0 %v12465_v5  ;;  %13103 = vst [vmem:[#allocation17_spill] sm:$0xff] %v6355_v18 }
  0xc7   : > { %5536 = vmatmul.mubr.msk.f32.gmra.mxu0 %vm437_vm0, %v423_v4  ;;  %v6357_v19 = vpop.permute.xlu1 %1085 }
  0xc8   : > { %640 = vmatprep.mubr.f32.mxu0 %v12465_v5  ;;  %13104 = vst [vmem:[#allocation18_spill] sm:$0xff] %v6357_v19 }
  0xcb   : > { %5537 = vmatmul.mubr.msk.f32.gmra.mxu0 %vm437_vm0, %v424_v7  ;;  %v6365_v22 = vpop.permute.xlu1 %1093 }
  0xcc   : > { %646 = vmatprep.mubr.f32.mxu0 %v12465_v5  ;;  %13106 = vst [vmem:[#allocation20_spill] sm:$0xff] %v6365_v22 }
  0xcf   : > { %5538 = vmatmul.mubr.msk.f32.gmra.mxu0 %vm437_vm0, %v425_v9 }
  0xd0   : > { %652 = vmatprep.mubr.f32.mxu0 %v12465_v5  ;;  %v6371_v23 = vpop.permute.xlu1 %1211 }
  0xd1   : > { %13107 = vst [vmem:[#allocation21_spill] sm:$0xff] %v6371_v23 }
  0xd3   : > { %5539 = vmatmul.mubr.msk.f32.gmra.mxu0 %vm437_vm0, %v426_v10 }
  0xd4   : > { %658 = vmatprep.mubr.f32.mxu0 %v12465_v5  ;;  %v6383_v29 = vpop.permute.xlu1 %1219 }
  0xd5   : > { %13109 = vst [vmem:[#allocation23_spill] sm:$0xff] %v6383_v29 }
  0xd7   : > { %5540 = vmatmul.mubr.msk.f32.gmra.mxu0 %vm437_vm0, %v427_v13 }
  0xd8   : > { %664 = vmatprep.mubr.f32.mxu0 %v12465_v5  ;;  %v6389_v31 = vpop.permute.xlu1 %1223 }
  0xd9   : > { %13110 = vst [vmem:[#allocation24_spill] sm:$0xff] %v6389_v31 }
  0xdb   : > { %5541 = vmatmul.mubr.msk.f32.gmra.mxu0 %vm437_vm0, %v428_v15 }
  0xdc   : > { %670 = vmatprep.mubr.f32.mxu0 %v12465_v5  ;;  %v6401_v35 = vpop.permute.xlu1 %1231 }
  0xdd   : > { %13111 = vst [vmem:[#allocation25_spill] sm:$0xff] %v6401_v35 }
  0xe0   : > { %v6407_v37 = vpop.permute.xlu1 %1239 }
  0xe1   : > { %13112 = vst [vmem:[#allocation26_spill] sm:$0xff] %v6407_v37 }
  0xe5   : > { %v6413_v39 = vpop.permute.xlu1 %1357 }
  0xe6   : > { %13113 = vst [vmem:[#allocation27_spill] sm:$0xff] %v6413_v39 }
  0xe9   : > { %v6425_v41 = vpop.permute.xlu1 %1361 }
  0xea   : > { %13115 = vst [vmem:[#allocation29_spill] sm:$0xff] %v6425_v41 }
  0xed   : > { %v6431_v42 = vpop.permute.xlu1 %1369 }
  0xee   : > { %13116 = vst [vmem:[#allocation30_spill] sm:$0xff] %v6431_v42 }
  0xf1   : > { %v6441_v49 = vpop.permute.xlu1 %1377 }
  0xf2   : > { %13117 = vst [vmem:[#allocation31_spill] sm:$0xff] %v6441_v49 }
  0xf6   : > { %v6449_v52 = vpop.permute.xlu1 %1495 }
  0xf7   : > { %13118 = vst [vmem:[#allocation32_spill] sm:$0xff] %v6449_v52 }
  0xfa   : > { %v6459_v53 = vpop.permute.xlu1 %1503 }
  0xfb   : > { %13119 = vst [vmem:[#allocation33_spill] sm:$0xff] %v6459_v53 }
  0xfe   : > { %v6467_v47 = vpop.permute.xlu1 %1507 }
  0xff   : > { %13121 = vst [vmem:[#allocation35_spill] sm:$0xff] %v6467_v47 }
 0x102   : > { %v6477_v54 = vpop.permute.xlu1 %1515 }
 0x103   : > { %13122 = vst [vmem:[#allocation36_spill] sm:$0xff] %v6477_v54 }
 0x106   : > { %v6485_v55 = vpop.permute.xlu1 %1523 }
 0x107   : > { %13124 = vst [vmem:[#allocation38_spill] sm:$0xff] %v6485_v55 }
 0x10b   : > { %v6491_v56 = vpop.permute.xlu1 %1641 }
 0x10c   : > { %13125 = vst [vmem:[#allocation39_spill] sm:$0xff] %v6491_v56 }
 0x10f   : > { %v6501_v44 = vpop.permute.xlu1 %1645 }
 0x110   : > { %13126 = vst [vmem:[#allocation40_spill] sm:$0xff] %v6501_v44 }
 0x113   : > { %v6513_v59 = vpop.permute.xlu1 %1653 }
 0x114   : > { %13130 = vst [vmem:[#allocation44_spill] sm:$0xff] %v6513_v59 }
 0x117   : > { %v6521_v24 = vpop.permute.xlu1 %1661 }
 0x118   : > { %13132 = vst [vmem:[#allocation46_spill] sm:$0xff] %v6521_v24 }
 0x11c   : > { %v6531_v61 = vpop.permute.xlu1 %1779 }
 0x11d   : > { %13133 = vst [vmem:[#allocation47_spill] sm:$0xff] %v6531_v61 }
 0x15f   : > { %v6359_v20 = vpop.f32.mrf.mxu0 }
 0x160   : > { %13105 = vst [vmem:[#allocation19_spill] sm:$0xff] %v6359_v20  ;;  %990 = vrot.lane.b32.xlu0 %v6359_v20, %s6021_s26  ;;  %847 = vrot.lane.b32.xlu1 %v6359_v20, %s6022_s10 }
 0x161   : > { %v6377_v27 = vpop.f32.mrf.mxu0 }
 0x162   : > { %13108 = vst [vmem:[#allocation22_spill] sm:$0xff] %v6377_v27 }
 0x163   : > { %v6395_v33 = vpop.f32.mrf.mxu0 }
 0x164   : > { %1274 = vrot.lane.b32.xlu0 %v6359_v20, %s6023_s12  ;;  %1132 = vrot.lane.b32.xlu1 %v6359_v20, %s6024_s13 }
 0x165   : > { %v6419_v40 = vpop.f32.mrf.mxu0 }
 0x166   : > { %13114 = vst [vmem:[#allocation28_spill] sm:$0xff] %v6419_v40 }
 0x167   : > { %v6443_v51 = vpop.f32.mrf.mxu0 }
 0x168   : > { %1558 = vrot.lane.b32.xlu0 %v6359_v20, %s6025_s17  ;;  %1416 = vrot.lane.b32.xlu1 %v6359_v20, %s6026_s18 }
 0x169   : > { %v6461_v50 = vpop.f32.mrf.mxu0 }
 0x16a   : > { %13120 = vst [vmem:[#allocation34_spill] sm:$0xff] %v6461_v50 }
 0x16b   : > { %v6479_v46 = vpop.f32.mrf.mxu0 }
 0x16c   : > { %1700 = vrot.lane.b32.xlu1 %v6359_v20, %s12915_s19  ;;  %1006 = vrot.lane.b32.xlu0 %v6377_v27, %s6021_s26  ;;  %13123 = vst [vmem:[#allocation37_spill] sm:$0xff] %v6479_v46 }
 0x16d   : > { %v6505_v45 = vpop.f32.mrf.mxu0 }
 0x16e   : > { %13128 = vst [vmem:[#allocation42_spill] sm:$0xff] %v6505_v45 }
 0x16f   : > { %v6535_v26 = vpop.f32.mrf.mxu0 }
 0x170   : > { %1290 = vrot.lane.b32.xlu0 %v6377_v27, %s6023_s12  ;;  %863 = vrot.lane.b32.xlu1 %v6377_v27, %s6022_s10  ;;  %13135 = vst [vmem:[#allocation49_spill] sm:$0xff] %v6535_v26 }
 0x171   : > { %v6561_v5 = vpop.f32.mrf.mxu0 }
 0x172   : > { %13142 = vst [vmem:[#allocation56_spill] sm:$0xff] %v6561_v5 }
 0x173   : > { %v6587_v25 = vpop.f32.mrf.mxu0 }
 0x174   : > { %1574 = vrot.lane.b32.xlu0 %v6377_v27, %s6025_s17  ;;  %1148 = vrot.lane.b32.xlu1 %v6377_v27, %s6024_s13  ;;  %13149 = vst [vmem:[#allocation63_spill] sm:$0xff] %v6587_v25 }
 0x175   : > { %v6621_v31 = vpop.f32.mrf.mxu0 }
 0x176   : > { %13158 = vst [vmem:[#allocation72_spill] sm:$0xff] %v6621_v31 }
 0x178   : > { %1432 = vrot.lane.b32.xlu1 %v6377_v27, %s6026_s18  ;;  %849 = vrot.lane.b32.xlu0 %v6395_v33, %s6022_s10 }
 0x17c   : > { %1716 = vrot.lane.b32.xlu1 %v6377_v27, %s12915_s19  ;;  %1134 = vrot.lane.b32.xlu0 %v6395_v33, %s6024_s13 }
 0x180   : > { %992 = vrot.lane.b32.xlu1 %v6395_v33, %s6021_s26  ;;  %1418 = vrot.lane.b32.xlu0 %v6395_v33, %s6026_s18 }
 0x184   : > { %1276 = vrot.lane.b32.xlu1 %v6395_v33, %s6023_s12  ;;  %1702 = vrot.lane.b32.xlu0 %v6395_v33, %s12915_s19 }
 0x188   : > { %1560 = vrot.lane.b32.xlu1 %v6395_v33, %s6025_s17  ;;  %865 = vrot.lane.b32.xlu0 %v6419_v40, %s6022_s10 }
 0x18c   : > { %1008 = vrot.lane.b32.xlu1 %v6419_v40, %s6021_s26  ;;  %1150 = vrot.lane.b32.xlu0 %v6419_v40, %s6024_s13 }
 0x190   : > { %1292 = vrot.lane.b32.xlu1 %v6419_v40, %s6023_s12  ;;  %1434 = vrot.lane.b32.xlu0 %v6419_v40, %s6026_s18 }
 0x194   : > { %1576 = vrot.lane.b32.xlu1 %v6419_v40, %s6025_s17  ;;  %1718 = vrot.lane.b32.xlu0 %v6419_v40, %s12915_s19 }
 0x198   : > { %994 = vrot.lane.b32.xlu0 %v6443_v51, %s6021_s26  ;;  %851 = vrot.lane.b32.xlu1 %v6443_v51, %s6022_s10 }
 0x19c   : > { %1278 = vrot.lane.b32.xlu0 %v6443_v51, %s6023_s12  ;;  %1136 = vrot.lane.b32.xlu1 %v6443_v51, %s6024_s13 }
 0x1a0   : > { %1562 = vrot.lane.b32.xlu0 %v6443_v51, %s6025_s17  ;;  %1420 = vrot.lane.b32.xlu1 %v6443_v51, %s6026_s18 }
 0x1a4   : > { %1704 = vrot.lane.b32.xlu1 %v6443_v51, %s12915_s19  ;;  %1010 = vrot.lane.b32.xlu0 %v6461_v50, %s6021_s26 }
 0x1a8   : > { %1294 = vrot.lane.b32.xlu0 %v6461_v50, %s6023_s12  ;;  %867 = vrot.lane.b32.xlu1 %v6461_v50, %s6022_s10 }
 0x1ac   : > { %1578 = vrot.lane.b32.xlu0 %v6461_v50, %s6025_s17  ;;  %1152 = vrot.lane.b32.xlu1 %v6461_v50, %s6024_s13 }
 0x1b0   : > { %1436 = vrot.lane.b32.xlu1 %v6461_v50, %s6026_s18  ;;  %853 = vrot.lane.b32.xlu0 %v6479_v46, %s6022_s10 }
 0x1b4   : > { %1720 = vrot.lane.b32.xlu1 %v6461_v50, %s12915_s19  ;;  %1138 = vrot.lane.b32.xlu0 %v6479_v46, %s6024_s13 }
 0x1b8   : > { %996 = vrot.lane.b32.xlu1 %v6479_v46, %s6021_s26  ;;  %1422 = vrot.lane.b32.xlu0 %v6479_v46, %s6026_s18 }
 0x1bc   : > { %1280 = vrot.lane.b32.xlu1 %v6479_v46, %s6023_s12  ;;  %1706 = vrot.lane.b32.xlu0 %v6479_v46, %s12915_s19 }
 0x1c0   : > { %1564 = vrot.lane.b32.xlu1 %v6479_v46, %s6025_s17  ;;  %869 = vrot.lane.b32.xlu0 %v6505_v45, %s6022_s10 }
 0x1c4   : > { %1012 = vrot.lane.b32.xlu1 %v6505_v45, %s6021_s26  ;;  %1154 = vrot.lane.b32.xlu0 %v6505_v45, %s6024_s13 }
 0x1c8   : > { %1296 = vrot.lane.b32.xlu1 %v6505_v45, %s6023_s12  ;;  %1438 = vrot.lane.b32.xlu0 %v6505_v45, %s6026_s18 }
 0x1cc   : > { %1580 = vrot.lane.b32.xlu1 %v6505_v45, %s6025_s17  ;;  %1722 = vrot.lane.b32.xlu0 %v6505_v45, %s12915_s19 }
 0x1d0   : > { %998 = vrot.lane.b32.xlu0 %v6535_v26, %s6021_s26  ;;  %855 = vrot.lane.b32.xlu1 %v6535_v26, %s6022_s10 }
 0x1d2   : > { %v6541_v4 = vpop.permute.xlu0 %990  ;;  %v6543_v7 = vpop.permute.xlu1 %847 }
 0x1d3   : > { %13136 = vst [vmem:[#allocation50_spill] sm:$0xff] %v6541_v4  ;;  %13137 = vst [vmem:[#allocation51_spill] sm:$0xff] %v6543_v7 }
 0x1d4   : > { %1282 = vrot.lane.b32.xlu0 %v6535_v26, %s6023_s12  ;;  %1140 = vrot.lane.b32.xlu1 %v6535_v26, %s6024_s13 }
 0x1d6   : > { %v6549_v9 = vpop.permute.xlu0 %1274  ;;  %v6551_v10 = vpop.permute.xlu1 %1132 }
 0x1d7   : > { %13138 = vst [vmem:[#allocation52_spill] sm:$0xff] %v6549_v9  ;;  %13139 = vst [vmem:[#allocation53_spill] sm:$0xff] %v6551_v10  ;;  %v879_v10 = vlaneseq }
 0x1d8   : > { %1566 = vrot.lane.b32.xlu0 %v6535_v26, %s6025_s17  ;;  %1424 = vrot.lane.b32.xlu1 %v6535_v26, %s6026_s18 }
 0x1da   : > { %v6557_v13 = vpop.permute.xlu0 %1558  ;;  %v6559_v15 = vpop.permute.xlu1 %1416 }
 0x1db   : > { %13140 = vst [vmem:[#allocation54_spill] sm:$0xff] %v6557_v13  ;;  %13141 = vst [vmem:[#allocation55_spill] sm:$0xff] %v6559_v15  ;;  %v6655_v15 = vpop.f32.mrf.mxu0 }
 0x1dc   : > { %1708 = vrot.lane.b32.xlu1 %v6535_v26, %s12915_s19  ;;  %1014 = vrot.lane.b32.xlu0 %v6561_v5, %s6021_s26  ;;  %13167 = vst [vmem:[#allocation81_spill] sm:$0xff] %v6655_v15 }
 0x1dd   : > { %v6683_v4 = vpop.f32.mrf.mxu0 }
 0x1de   : > { %v6567_v62 = vpop.permute.xlu1 %1700  ;;  %v6569_v58 = vpop.permute.xlu0 %1006  ;;  %13174 = vst [vmem:[#allocation88_spill] sm:$0xff] %v6683_v4 }
 0x1df   : > { %13143 = vst [vmem:[#allocation57_spill] sm:$0xff] %v6567_v62  ;;  %13144 = vst [vmem:[#allocation58_spill] sm:$0xff] %v6569_v58  ;;  %v6685_v58 = vand.u32 127, %v879_v10 }
 0x1e0   : > { %1298 = vrot.lane.b32.xlu0 %v6561_v5, %s6023_s12  ;;  %871 = vrot.lane.b32.xlu1 %v6561_v5, %s6022_s10 }
 0x1e1   : > { %13175 = vst [vmem:[#allocation89_spill] sm:$0xff] %v6685_v58  ;;  %vm1022_vm1 = vcmp.lt.s32.totalorder %v6685_v58, 16  ;;  %vm881_vm2 = vcmp.lt.s32.totalorder %v6685_v58, 17  ;;  %vm1306_vm3 = vcmp.lt.s32.totalorder %v6685_v58, 1  ;;  %vm1164_vm4 = vcmp.lt.s32.totalorder %v6685_v58, 15 }
 0x1e2   : > { %v6575_v48 = vpop.permute.xlu0 %1290  ;;  %v6577_v21 = vpop.permute.xlu1 %863  ;;  %vm1590_vm5 = vcmp.lt.s32.totalorder %v6685_v58, 113  ;;  %vm1448_vm6 = vcmp.lt.s32.totalorder %v6685_v58, 127  ;;  %vm1732_vm7 = vcmp.lt.s32.totalorder %v6685_v58, 112  ;;  %vm1874_vm8 = vcmp.lt.s32.totalorder %v6685_v58, 111 }
 0x1e3   : > { %13145 = vst [vmem:[#allocation59_spill] sm:$0xff] %v6575_v48  ;;  %13146 = vst [vmem:[#allocation60_spill] sm:$0xff] %v6577_v21  ;;  %v6677_v48 = vshrl.u32 %v879_v10, 7  ;;  %v898_v10 = vld [vmem:[%s12460_s4] ss:$8 sm:$0x3] }
 0x1e4   : > { %1582 = vrot.lane.b32.xlu0 %v6561_v5, %s6025_s17  ;;  %1156 = vrot.lane.b32.xlu1 %v6561_v5, %s6024_s13 }
 0x1e5   : > { %v6692_v21 = vsub.s32 0, %v6677_v48 }
 0x1e6   : > { %v6583_v2 = vpop.permute.xlu0 %1574  ;;  %v6585_v0 = vpop.permute.xlu1 %1148 }
 0x1e7   : > { %13147 = vst [vmem:[#allocation61_spill] sm:$0xff] %v6583_v2  ;;  %13148 = vst [vmem:[#allocation62_spill] sm:$0xff] %v6585_v0  ;;  %v6714_v49 = vrot.slane %v5550_v43, %v6692_v21  ;;  %v6718_v22 = vrot.slane %v898_v10, %v6692_v21  ;;  %v5551_v43 = vld [vmem:[%s12460_s4 + $0x2] ss:$8 sm:$0x3] }
 0x1e8   : > { %857 = vrot.lane.b32.xlu0 %v6587_v25, %s6022_s10  ;;  %1440 = vrot.lane.b32.xlu1 %v6561_v5, %s6026_s18  ;;  %13176 = vst [vmem:[#allocation90_spill] sm:$0xff] %v6692_v21  ;;  %v6757_v17 = vrot.slane %v5551_v43, %v6692_v21 }
 0x1e9   : > { %13179 = vst [vmem:[#allocation93_spill] sm:$0xff] %v6714_v49  ;;  %13180 = vst [vmem:[#allocation94_spill] sm:$0xff] %v6718_v22 }
 0x1ea   : > { %v6593_v12 = vpop.permute.xlu1 %1432  ;;  %v6595_v55 = vpop.permute.xlu0 %849  ;;  %13186 = vst [vmem:[#allocation100_spill] sm:$0xff] %v6757_v17 }
 0x1eb   : > { %13150 = vst [vmem:[#allocation64_spill] sm:$0xff] %v6593_v12  ;;  %13151 = vst [vmem:[#allocation65_spill] sm:$0xff] %v6595_v55 }
 0x1ec   : > { %1142 = vrot.lane.b32.xlu0 %v6587_v25, %s6024_s13  ;;  %1724 = vrot.lane.b32.xlu1 %v6561_v5, %s12915_s19 }
 0x1ee   : > { %v6601_v37 = vpop.permute.xlu1 %1716  ;;  %v6603_v16 = vpop.permute.xlu0 %1134 }
 0x1ef   : > { %13152 = vst [vmem:[#allocation66_spill] sm:$0xff] %v6601_v37  ;;  %13153 = vst [vmem:[#allocation67_spill] sm:$0xff] %v6603_v16 }
 0x1f0   : > { %1426 = vrot.lane.b32.xlu0 %v6587_v25, %s6026_s18  ;;  %1000 = vrot.lane.b32.xlu1 %v6587_v25, %s6021_s26 }
 0x1f2   : > { %v6609_v54 = vpop.permute.xlu1 %992  ;;  %v6611_v35 = vpop.permute.xlu0 %1418 }
 0x1f3   : > { %13154 = vst [vmem:[#allocation68_spill] sm:$0xff] %v6609_v54  ;;  %13155 = vst [vmem:[#allocation69_spill] sm:$0xff] %v6611_v35 }
 0x1f4   : > { %1710 = vrot.lane.b32.xlu0 %v6587_v25, %s12915_s19  ;;  %1284 = vrot.lane.b32.xlu1 %v6587_v25, %s6023_s12 }
 0x1f6   : > { %v6617_v14 = vpop.permute.xlu1 %1276  ;;  %v6619_v47 = vpop.permute.xlu0 %1702 }
 0x1f7   : > { %13156 = vst [vmem:[#allocation70_spill] sm:$0xff] %v6617_v14  ;;  %13157 = vst [vmem:[#allocation71_spill] sm:$0xff] %v6619_v47  ;;  %v5553_v47 = vld [vmem:[%s12460_s4 + $0x5] ss:$8 sm:$0x3] }
 0x1f8   : > { %873 = vrot.lane.b32.xlu0 %v6621_v31, %s6022_s10  ;;  %1568 = vrot.lane.b32.xlu1 %v6587_v25, %s6025_s17 }
 0x1fa   : > { %v6627_v11 = vpop.permute.xlu1 %1560  ;;  %v6629_v61 = vpop.permute.xlu0 %865 }
 0x1fb   : > { %13159 = vst [vmem:[#allocation73_spill] sm:$0xff] %v6627_v11  ;;  %13160 = vst [vmem:[#allocation74_spill] sm:$0xff] %v6629_v61 }
 0x1fc   : > { %1158 = vrot.lane.b32.xlu0 %v6621_v31, %s6024_s13  ;;  %1016 = vrot.lane.b32.xlu1 %v6621_v31, %s6021_s26 }
 0x1fe   : > { %v6635_v52 = vpop.permute.xlu1 %1008  ;;  %v6637_v23 = vpop.permute.xlu0 %1150 }
 0x1ff   : > { %13161 = vst [vmem:[#allocation75_spill] sm:$0xff] %v6635_v52  ;;  %13162 = vst [vmem:[#allocation76_spill] sm:$0xff] %v6637_v23 }
 0x200   : > { %1442 = vrot.lane.b32.xlu0 %v6621_v31, %s6026_s18  ;;  %1300 = vrot.lane.b32.xlu1 %v6621_v31, %s6023_s12 }
 0x202   : > { %v6643_v62 = vpop.permute.xlu1 %1292  ;;  %v6645_v37 = vpop.permute.xlu0 %1434 }
 0x203   : > { %13163 = vst [vmem:[#allocation77_spill] sm:$0xff] %v6643_v62  ;;  %13164 = vst [vmem:[#allocation78_spill] sm:$0xff] %v6645_v37 }
 0x204   : > { %1726 = vrot.lane.b32.xlu0 %v6621_v31, %s12915_s19  ;;  %1584 = vrot.lane.b32.xlu1 %v6621_v31, %s6025_s17 }
 0x206   : > { %v6651_v13 = vpop.permute.xlu1 %1576  ;;  %v6653_v2 = vpop.permute.xlu0 %1718 }
 0x207   : > { %13165 = vst [vmem:[#allocation79_spill] sm:$0xff] %v6651_v13  ;;  %13166 = vst [vmem:[#allocation80_spill] sm:$0xff] %v6653_v2 }
 0x208   : > { %1002 = vrot.lane.b32.xlu0 %v6655_v15, %s6021_s26  ;;  %859 = vrot.lane.b32.xlu1 %v6655_v15, %s6022_s10 }
 0x20a   : > { %v6661_v12 = vpop.permute.xlu0 %994  ;;  %v6663_v6 = vpop.permute.xlu1 %851 }
 0x20b   : > { %13168 = vst [vmem:[#allocation82_spill] sm:$0xff] %v6661_v12  ;;  %13169 = vst [vmem:[#allocation83_spill] sm:$0xff] %v6663_v6 }
 0x20c   : > { %1286 = vrot.lane.b32.xlu0 %v6655_v15, %s6023_s12  ;;  %1144 = vrot.lane.b32.xlu1 %v6655_v15, %s6024_s13 }
 0x20e   : > { %v6669_v0 = vpop.permute.xlu0 %1278  ;;  %v6671_v1 = vpop.permute.xlu1 %1136 }
 0x20f   : > { %13170 = vst [vmem:[#allocation84_spill] sm:$0xff] %v6669_v0  ;;  %13171 = vst [vmem:[#allocation85_spill] sm:$0xff] %v6671_v1 }
 0x210   : > { %1570 = vrot.lane.b32.xlu0 %v6655_v15, %s6025_s17  ;;  %1428 = vrot.lane.b32.xlu1 %v6655_v15, %s6026_s18 }
 0x212   : > { %v6679_v9 = vpop.permute.xlu0 %1562  ;;  %v6681_v60 = vpop.permute.xlu1 %1420 }
 0x213   : > { %13172 = vst [vmem:[#allocation86_spill] sm:$0xff] %v6679_v9  ;;  %13173 = vst [vmem:[#allocation87_spill] sm:$0xff] %v6681_v60 }
 0x214   : > { %1018 = vrot.lane.b32.xlu0 %v6683_v4, %s6021_s26  ;;  %1712 = vrot.lane.b32.xlu1 %v6655_v15, %s12915_s19 }
 0x216   : > { %v6694_v7 = vpop.permute.xlu1 %1704  ;;  %v6696_v57 = vpop.permute.xlu0 %1010 }
 0x217   : > { %13177 = vst [vmem:[#allocation91_spill] sm:$0xff] %v6694_v7  ;;  %13178 = vst [vmem:[#allocation92_spill] sm:$0xff] %v6696_v57  ;;  %v1033_v24 = vsel %vm1022_vm1, %v6696_v57, %v6661_v12  ;;  %v5552_v57 = vld [vmem:[%s12460_s4 + $0x3] ss:$8 sm:$0x3] }
 0x218   : > { %1302 = vrot.lane.b32.xlu0 %v6683_v4, %s6023_s12  ;;  %875 = vrot.lane.b32.xlu1 %v6683_v4, %s6022_s10  ;;  %v1056_v10 = vmul.f32 %v6714_v49, %v1033_v24  ;;  %v835_v24 = vmul.f32 %v6297_v63, %v6443_v51  ;;  %v6754_v39 = vrot.slane %v5552_v57, %v6692_v21 }
 0x21a   : > { %v6720_v59 = vpop.permute.xlu0 %1294  ;;  %v6722_v42 = vpop.permute.xlu1 %867  ;;  %13185 = vst [vmem:[#allocation99_spill] sm:$0xff] %v6754_v39  ;;  %v1104_v57 = vmul.f32 %v6355_v18, %v1056_v10 }
 0x21b   : > { %13181 = vst [vmem:[#allocation95_spill] sm:$0xff] %v6720_v59  ;;  %13182 = vst [vmem:[#allocation96_spill] sm:$0xff] %v6722_v42  ;;  %v892_v12 = vsel %vm881_vm2, %v6722_v42, %v6663_v6  ;;  %v1317_v6 = vsel %vm1306_vm3, %v6720_v59, %v6669_v0  ;;  %v6762_v0 = vpop.f32.mrf.mxu0  ;;  %v5554_v59 = vld [vmem:[%s12460_s4 + $0x6] ss:$8 sm:$0x3] }
 0x21c   : > { %v914_v19 = vmul.f32 %v6718_v22, %v892_v12  ;;  %1586 = vrot.lane.b32.xlu0 %v6683_v4, %s6025_s17  ;;  %1160 = vrot.lane.b32.xlu1 %v6683_v4, %s6024_s13  ;;  %13187 = vst [vmem:[#allocation101_spill] sm:$0xff] %v6762_v0  ;;  %v1340_v43 = vmul.f32 %v6754_v39, %v1317_v6 }
 0x21d   : > { %v6792_v6 = vrot.slane %v5554_v59, %v6692_v21 }
 0x21e   : > { %v962_v12 = vmul.f32 %v6325_v8, %v914_v19  ;;  %v6749_v42 = vpop.permute.xlu0 %1578  ;;  %v6751_v56 = vpop.permute.xlu1 %1152 }
 0x21f   : > { %13183 = vst [vmem:[#allocation97_spill] sm:$0xff] %v6749_v42  ;;  %13184 = vst [vmem:[#allocation98_spill] sm:$0xff] %v6751_v56  ;;  %v1175_v19 = vsel %vm1164_vm4, %v6751_v56, %v6671_v1  ;;  %v6781_v1 = vrot.slane %v5553_v47, %v6692_v21  ;;  %v1593_v10 = vsel %vm1590_vm5, %v6679_v9, %v6749_v42 }
 0x220   : > { %v978_v8 = vadd.f32 %v962_v12, %v835_v24  ;;  %861 = vrot.lane.b32.xlu0 %v6762_v0, %s6022_s10  ;;  %v1198_v63 = vmul.f32 %v6757_v17, %v1175_v19  ;;  %1444 = vrot.lane.b32.xlu1 %v6683_v4, %s6026_s18  ;;  %13191 = vst [vmem:[#allocation105_spill] sm:$0xff] %v6792_v6 }
 0x221   : > { %13188 = vst [vmem:[#allocation102_spill] sm:$0xff] %v6781_v1 }
 0x222   : > { %v1120_v24 = vadd.f32 %v1104_v57, %v978_v8  ;;  %v6787_v12 = vpop.permute.xlu1 %1436  ;;  %v6789_v18 = vpop.permute.xlu0 %853  ;;  %v1246_v19 = vmul.f32 %v6383_v29, %v1198_v63  ;;  %v1388_v8 = vmul.f32 %v6425_v41, %v1340_v43  ;;  %v1624_v57 = vmul.f32 %v6792_v6, %v1593_v10  ;;  %v6944_v29 = vld [vmem:[%s12459_s3 + $0x60] sm:$0xff] }
 0x223   : > { %13189 = vst [vmem:[#allocation103_spill] sm:$0xff] %v6787_v12  ;;  %13190 = vst [vmem:[#allocation104_spill] sm:$0xff] %v6789_v18  ;;  %v1451_v47 = vsel %vm1448_vm6, %v6681_v60, %v6787_v12 }
 0x224   : > { %v1482_v56 = vmul.f32 %v6781_v1, %v1451_v47  ;;  %1146 = vrot.lane.b32.xlu0 %v6762_v0, %s6024_s13  ;;  %v1262_v18 = vadd.f32 %v1246_v19, %v1120_v24  ;;  %1728 = vrot.lane.b32.xlu1 %v6683_v4, %s12915_s19  ;;  %v1672_v47 = vmul.f32 %v6501_v44, %v1624_v57 }
 0x226   : > { %v1530_v63 = vmul.f32 %v6459_v53, %v1482_v56  ;;  %v6807_v59 = vpop.permute.xlu1 %1720  ;;  %v6809_v42 = vpop.permute.xlu0 %1138  ;;  %v1404_v9 = vadd.f32 %v1388_v8, %v1262_v18 }
 0x227   : > { %13192 = vst [vmem:[#allocation106_spill] sm:$0xff] %v6807_v59  ;;  %13193 = vst [vmem:[#allocation107_spill] sm:$0xff] %v6809_v42 }
 0x228   : > { %1430 = vrot.lane.b32.xlu0 %v6762_v0, %s6026_s18  ;;  %v1546_v12 = vadd.f32 %v1530_v63, %v1404_v9  ;;  %1004 = vrot.lane.b32.xlu1 %v6762_v0, %s6021_s26  ;;  %v6830_v9 = vpop.f32.mrf.mxu0 }
 0x229   : > { %13198 = vst [vmem:[#allocation112_spill] sm:$0xff] %v6830_v9 }
 0x22a   : > { %v6816_v43 = vpop.permute.xlu1 %996  ;;  %v6818_v10 = vpop.permute.xlu0 %1422  ;;  %v6820_v24 = vadd.f32 %v1672_v47, %v1546_v12 }
 0x22b   : > { %13194 = vst [vmem:[#allocation108_spill] sm:$0xff] %v6816_v43  ;;  %13195 = vst [vmem:[#allocation109_spill] sm:$0xff] %v6818_v10 }
 0x22c   : > { %1714 = vrot.lane.b32.xlu0 %v6762_v0, %s12915_s19  ;;  %1288 = vrot.lane.b32.xlu1 %v6762_v0, %s6023_s12 }
 0x22e   : > { %v6826_v18 = vpop.permute.xlu1 %1280  ;;  %v6828_v56 = vpop.permute.xlu0 %1706 }
 0x22f   : > { %13196 = vst [vmem:[#allocation110_spill] sm:$0xff] %v6826_v18  ;;  %13197 = vst [vmem:[#allocation111_spill] sm:$0xff] %v6828_v56 }
 0x230   : > { %877 = vrot.lane.b32.xlu0 %v6830_v9, %s6022_s10  ;;  %1572 = vrot.lane.b32.xlu1 %v6762_v0, %s6025_s17 }
 0x232   : > { %v6836_v12 = vpop.permute.xlu1 %1564  ;;  %v6838_v19 = vpop.permute.xlu0 %869 }
 0x233   : > { %13199 = vst [vmem:[#allocation113_spill] sm:$0xff] %v6836_v12  ;;  %13200 = vst [vmem:[#allocation114_spill] sm:$0xff] %v6838_v19  ;;  %v6930_v19 = vld [vmem:[%s12459_s3 + $0x48] sm:$0xff] }
 0x234   : > { %1162 = vrot.lane.b32.xlu0 %v6830_v9, %s6024_s13  ;;  %1020 = vrot.lane.b32.xlu1 %v6830_v9, %s6021_s26 }
 0x236   : > { %v6844_v8 = vpop.permute.xlu1 %1012  ;;  %v6846_v57 = vpop.permute.xlu0 %1154 }
 0x237   : > { %13201 = vst [vmem:[#allocation115_spill] sm:$0xff] %v6844_v8  ;;  %13202 = vst [vmem:[#allocation116_spill] sm:$0xff] %v6846_v57  ;;  %v12552_v8 = vmov 8  }
 0x238   : > { %1446 = vrot.lane.b32.xlu0 %v6830_v9, %s6026_s18  ;;  %1304 = vrot.lane.b32.xlu1 %v6830_v9, %s6023_s12 }
 0x23a   : > { %v6852_v63 = vpop.permute.xlu1 %1296  ;;  %v6854_v47 = vpop.permute.xlu0 %1438 }
 0x23b   : > { %13203 = vst [vmem:[#allocation117_spill] sm:$0xff] %v6852_v63  ;;  %13204 = vst [vmem:[#allocation118_spill] sm:$0xff] %v6854_v47 }
 0x23c   : > { %1842 = vrot.lane.b32.xlu0 %v6359_v20, %s12580_s20  ;;  %1588 = vrot.lane.b32.xlu1 %v6830_v9, %s6025_s17 }
 0x23e   : > { %v6860_v56 = vpop.permute.xlu1 %1580  ;;  %v6862_v12 = vpop.permute.xlu0 %1722 }
 0x23f   : > { %13205 = vst [vmem:[#allocation119_spill] sm:$0xff] %v6860_v56  ;;  %13206 = vst [vmem:[#allocation120_spill] sm:$0xff] %v6862_v12 }
 0x240   : > { %1846 = vrot.lane.b32.xlu0 %v6443_v51, %s12580_s20  ;;  %1787 = vperm.xlu1 %5682, %v6162_v28  }
 0x242   : > { %v6867_v18 = vpop.permute.xlu0 %998  ;;  %v6869_v63 = vpop.permute.xlu1 %855 }
 0x243   : > { %13207 = vst [vmem:[#allocation121_spill] sm:$0xff] %v6867_v18  ;;  %13208 = vst [vmem:[#allocation122_spill] sm:$0xff] %v6869_v63 }
 0x244   : > { %1850 = vrot.lane.b32.xlu0 %v6535_v26, %s12580_s20  ;;  %1791 = vperm.xlu1 %5682, %v6167_v30  }
 0x246   : > { %v6874_v10 = vpop.permute.xlu0 %1282  ;;  %v6876_v47 = vpop.permute.xlu1 %1140 }
 0x247   : > { %13209 = vst [vmem:[#allocation123_spill] sm:$0xff] %v6874_v10  ;;  %13210 = vst [vmem:[#allocation124_spill] sm:$0xff] %v6876_v47  ;;  %v13246_v47 = vmov 4  }
 0x248   : > { %1854 = vrot.lane.b32.xlu0 %v6655_v15, %s12580_s20  ;;  %1799 = vperm.xlu1 %5682, %v6179_v34   ;;  %v6896_v34 = vpop.f32.mrf.mxu0 }
 0x249   : > { %13215 = vst [vmem:[#allocation129_spill] sm:$0xff] %v6896_v34 }
 0x24a   : > { %v6881_v51 = vpop.permute.xlu0 %1566  ;;  %v6883_v28 = vpop.permute.xlu1 %1424 }
 0x24b   : > { %13211 = vst [vmem:[#allocation125_spill] sm:$0xff] %v6881_v51  ;;  %13212 = vst [vmem:[#allocation126_spill] sm:$0xff] %v6883_v28  ;;  %v6909_v44 = vpop.f32.mrf.mxu0 }
 0x24c   : > { %1858 = vrot.lane.b32.xlu0 %v6377_v27, %s12580_s20  ;;  %1807 = vperm.xlu1 %5682, %v6191_v38   ;;  %13219 = vst [vmem:[#allocation133_spill] sm:$0xff] %v6909_v44 }
 0x24e   : > { %v6888_v12 = vpop.permute.xlu1 %1708  ;;  %v6890_v30 = vpop.permute.xlu0 %1014 }
 0x24f   : > { %13213 = vst [vmem:[#allocation127_spill] sm:$0xff] %v6888_v12  ;;  %13214 = vst [vmem:[#allocation128_spill] sm:$0xff] %v6890_v30 }
 0x250   : > { %1862 = vrot.lane.b32.xlu0 %v6461_v50, %s12580_s20  ;;  %1844 = vrot.lane.b32.xlu1 %v6395_v33, %s12580_s20  ;;  %v13235_v50 = vmov 2  }
 0x251   : > { %5683 = vset.pattern.permute.xlu1 %v12552_v8  ;;  %v6919_v8 = vpop.f32.mrf.mxu0 }
 0x252   : > { %v6898_v56 = vpop.permute.xlu0 %1298  ;;  %v6900_v43 = vpop.permute.xlu1 %871  ;;  %13222 = vst [vmem:[#allocation136_spill] sm:$0xff] %v6919_v8 }
 0x253   : > { %13216 = vst [vmem:[#allocation130_spill] sm:$0xff] %v6898_v56  ;;  %13217 = vst [vmem:[#allocation131_spill] sm:$0xff] %v6900_v43  ;;  %v6934_v60 = vpop.f32.mrf.mxu0 }
 0x254   : > { %1866 = vrot.lane.b32.xlu0 %v6561_v5, %s12580_s20  ;;  %1848 = vrot.lane.b32.xlu1 %v6479_v46, %s12580_s20  ;;  %13225 = vst [vmem:[#allocation139_spill] sm:$0xff] %v6934_v60 }
 0x256   : > { %v6907_v38 = vpop.permute.xlu0 %1582  ;;  %v6911_v42 = vpop.permute.xlu1 %1156 }
 0x257   : > { %13218 = vst [vmem:[#allocation132_spill] sm:$0xff] %v6907_v38  ;;  %13220 = vst [vmem:[#allocation134_spill] sm:$0xff] %v6911_v42  ;;  %v7039_v42 = vld [vmem:[%s12459_s3 + $0x40] sm:$0xff] }
 0x258   : > { %1870 = vrot.lane.b32.xlu0 %v6683_v4, %s12580_s20  ;;  %1852 = vrot.lane.b32.xlu1 %v6587_v25, %s12580_s20  ;;  %v6948_v4 = vpop.f32.mrf.mxu0 }
 0x259   : > { %13228 = vst [vmem:[#allocation142_spill] sm:$0xff] %v6948_v4 }
 0x25a   : > { %v6917_v57 = vpop.permute.xlu0 %857  ;;  %v6921_v53 = vpop.permute.xlu1 %1440 }
 0x25b   : > { %13221 = vst [vmem:[#allocation135_spill] sm:$0xff] %v6917_v57  ;;  %13223 = vst [vmem:[#allocation137_spill] sm:$0xff] %v6921_v53  ;;  %v6962_v46 = vpop.f32.mrf.mxu0 }
 0x25c   : > { %1730 = vrot.lane.b32.xlu0 %v6830_v9, %s12915_s19  ;;  %1856 = vrot.lane.b32.xlu1 %v6762_v0, %s12580_s20  ;;  %13231 = vst [vmem:[#allocation145_spill] sm:$0xff] %v6962_v46 }
 0x25e   : > { %v6932_v41 = vpop.permute.xlu0 %1142  ;;  %v6936_v57 = vpop.permute.xlu1 %1724 }
 0x25f   : > { %13224 = vst [vmem:[#allocation138_spill] sm:$0xff] %v6932_v41  ;;  %13226 = vst [vmem:[#allocation140_spill] sm:$0xff] %v6936_v57  ;;  %v6958_v41 = vld [vmem:[%s12459_s3 + $0x70] sm:$0xff] }
 0x260   : > { %2031 = vperm.xlu0 %5674, %v6930_v19   ;;  %1860 = vrot.lane.b32.xlu1 %v6419_v40, %s12580_s20 }
 0x262   : > { %v6946_v0 = vpop.permute.xlu0 %1426  ;;  %v6950_v25 = vpop.permute.xlu1 %1000 }
 0x263   : > { %13227 = vst [vmem:[#allocation141_spill] sm:$0xff] %v6946_v0  ;;  %13229 = vst [vmem:[#allocation143_spill] sm:$0xff] %v6950_v25  ;;  %v6971_v25 = vpop.f32.mrf.mxu0 }
 0x264   : > { %2046 = vperm.xlu0 %5674, %v6944_v29   ;;  %1864 = vrot.lane.b32.xlu1 %v6505_v45, %s12580_s20 }
 0x266   : > { %v6960_v5 = vpop.permute.xlu0 %1710  ;;  %v6964_v40 = vpop.permute.xlu1 %1284 }
 0x267   : > { %13230 = vst [vmem:[#allocation144_spill] sm:$0xff] %v6960_v5  ;;  %13232 = vst [vmem:[#allocation146_spill] sm:$0xff] %v6964_v40  ;;  %v6981_v5 = vld [vmem:[%s12459_s3 + $0x8] sm:$0xff] }
 0x268   : > { %2056 = vperm.xlu0 %5674, %v6958_v41   ;;  %1868 = vrot.lane.b32.xlu1 %v6621_v31, %s12580_s20  ;;  %v6986_v31 = vpop.f32.mrf.mxu0 }
 0x26a   : > { %v6969_v0 = vpop.permute.xlu0 %873  ;;  %v6973_v45 = vpop.permute.xlu1 %1568 }
 0x26b   : > { %13233 = vst [vmem:[#allocation147_spill] sm:$0xff] %v6969_v0  ;;  %13234 = vst [vmem:[#allocation148_spill] sm:$0xff] %v6973_v45  ;;  %v6994_v45 = vld [vmem:[%s12459_s3 + $0x20] sm:$0xff]  ;;  %v6999_v27 = vpop.f32.mrf.mxu0 }
 0x26c   : > { %5685 = vset.pattern.permute.xlu0 %v13235_v50  ;;  %1872 = vrot.lane.b32.xlu1 %v6830_v9, %s12580_s20  ;;  %s14179_s20 = smov 112  }
 0x26d   : > { %1215 = vperm.xlu0 %5685, %v6981_v5   ;;  %v7014_v57 = vpop.f32.mrf.mxu0 }
 0x26e   : > { %v6984_v40 = vpop.permute.xlu0 %1158  ;;  %v6988_v0 = vpop.permute.xlu1 %1016 }
 0x26f   : > { %13236 = vst [vmem:[#allocation149_spill] sm:$0xff] %v6984_v40  ;;  %13237 = vst [vmem:[#allocation150_spill] sm:$0xff] %v6988_v0  ;;  %v5924_v40 = vld [vmem:[%s12459_s3 + $0x10] sm:$0xff] }
 0x270   : > { %1925 = vperm.xlu1 %5683, %v6981_v5   ;;  %v7009_v0 = vld [vmem:[%s12459_s3 + $0x30] sm:$0xff] }
 0x271   : > { %1227 = vperm.xlu0 %5685, %v6994_v45  }
 0x272   : > { %v6997_v9 = vpop.permute.xlu0 %1442  ;;  %v7001_v20 = vpop.permute.xlu1 %1300 }
 0x273   : > { %13238 = vst [vmem:[#allocation151_spill] sm:$0xff] %v6997_v9  ;;  %13239 = vst [vmem:[#allocation152_spill] sm:$0xff] %v7001_v20 }
 0x274   : > { %1929 = vperm.xlu1 %5683, %v5924_v40   ;;  %v7023_v40 = vpop.f32.mrf.mxu0 }
 0x275   : > { %1235 = vperm.xlu0 %5685, %v7009_v0  }
 0x276   : > { %v7012_v12 = vpop.permute.xlu0 %1726  ;;  %v7016_v9 = vpop.permute.xlu1 %1584 }
 0x277   : > { %13240 = vst [vmem:[#allocation153_spill] sm:$0xff] %v7012_v12  ;;  %13241 = vst [vmem:[#allocation154_spill] sm:$0xff] %v7016_v9  ;;  %v7032_v53 = vpop.f32.mrf.mxu0 }
 0x278   : > { %1937 = vperm.xlu1 %5683, %v6994_v45  }
 0x279   : > { %2080 = vrot.lane.b32.xlu0 %v6896_v34, %s6022_s10  ;;  %v7047_v43 = vpop.f32.mrf.mxu0 }
 0x27a   : > { %v7021_v20 = vpop.permute.xlu0 %1002  ;;  %v7025_v28 = vpop.permute.xlu1 %859 }
 0x27b   : > { %13242 = vst [vmem:[#allocation155_spill] sm:$0xff] %v7021_v20  ;;  %13243 = vst [vmem:[#allocation156_spill] sm:$0xff] %v7025_v28  ;;  %v7061_v20 = vpop.f32.mrf.mxu0 }
 0x27c   : > { %1945 = vperm.xlu1 %5683, %v7009_v0  }
 0x27d   : > { %2084 = vrot.lane.b32.xlu0 %v6948_v4, %s6022_s10  ;;  %v7075_v2 = vpop.f32.mrf.mxu0 }
 0x27e   : > { %v7030_v12 = vpop.permute.xlu0 %1286  ;;  %v7034_v9 = vpop.permute.xlu1 %1144 }
 0x27f   : > { %13244 = vst [vmem:[#allocation157_spill] sm:$0xff] %v7030_v12  ;;  %13245 = vst [vmem:[#allocation158_spill] sm:$0xff] %v7034_v9  ;;  %v7054_v9 = vld [vmem:[%s12459_s3 + $0x50] sm:$0xff]  ;;  %v7089_v22 = vpop.f32.mrf.mxu0 }
 0x280   : > { %5684 = vset.pattern.permute.xlu1 %v13246_v47 }
 0x281   : > { %2088 = vrot.lane.b32.xlu0 %v6999_v27, %s6022_s10  ;;  %2026 = vperm.xlu1 %5684, %v7039_v42  }
 0x282   : > { %v7045_v28 = vpop.permute.xlu0 %1570  ;;  %v7049_v12 = vpop.permute.xlu1 %1428 }
 0x283   : > { %13247 = vst [vmem:[#allocation159_spill] sm:$0xff] %v7045_v28  ;;  %13248 = vst [vmem:[#allocation160_spill] sm:$0xff] %v7049_v12  ;;  %v7068_v12 = vld [vmem:[%s12459_s3 + $0x58] sm:$0xff] }
 0x285   : > { %2092 = vrot.lane.b32.xlu0 %v7047_v43, %s6022_s10  ;;  %2036 = vperm.xlu1 %5684, %v7054_v9  }
 0x286   : > { %v7059_v63 = vpop.permute.xlu0 %1018  ;;  %v7063_v1 = vpop.permute.xlu1 %1712 }
 0x287   : > { %13249 = vst [vmem:[#allocation161_spill] sm:$0xff] %v7059_v63  ;;  %13250 = vst [vmem:[#allocation162_spill] sm:$0xff] %v7063_v1  ;;  %v7082_v1 = vld [vmem:[%s12459_s3 + $0x68] sm:$0xff] }
 0x289   : > { %2108 = vrot.lane.b32.xlu0 %v7061_v20, %s6022_s10  ;;  %2041 = vperm.xlu1 %5684, %v7068_v12  }
 0x28a   : > { %v7073_v28 = vpop.permute.xlu0 %1302  ;;  %v7077_v17 = vpop.permute.xlu1 %875 }
 0x28b   : > { %13251 = vst [vmem:[#allocation163_spill] sm:$0xff] %v7073_v28  ;;  %13252 = vst [vmem:[#allocation164_spill] sm:$0xff] %v7077_v17  ;;  %v7096_v17 = vld [vmem:[%s12459_s3 + $0x78] sm:$0xff] }
 0x28d   : > { %2374 = vrot.lane.b32.xlu0 %v7075_v2, %s6024_s13  ;;  %2051 = vperm.xlu1 %5684, %v7082_v1  }
 0x28e   : > { %v7087_v63 = vpop.permute.xlu0 %1586  ;;  %v7091_v3 = vpop.permute.xlu1 %1160 }
 0x28f   : > { %13253 = vst [vmem:[#allocation165_spill] sm:$0xff] %v7087_v63  ;;  %13254 = vst [vmem:[#allocation166_spill] sm:$0xff] %v7091_v3 }
 0x291   : > { %2250 = vrot.lane.b32.xlu0 %v7089_v22, %s6021_s26  ;;  %2061 = vperm.xlu1 %5684, %v7096_v17  }
 0x292   : > { %v7101_v28 = vpop.permute.xlu0 %861  ;;  %v7103_v15 = vpop.permute.xlu1 %1444 }
 0x293   : > { %13255 = vst [vmem:[#allocation167_spill] sm:$0xff] %v7101_v28  ;;  %13256 = vst [vmem:[#allocation168_spill] sm:$0xff] %v7103_v15 }
 0x295   : > { %2248 = vrot.lane.b32.xlu0 %v7061_v20, %s6021_s26  ;;  %2082 = vrot.lane.b32.xlu1 %v6919_v8, %s6022_s10 }
 0x296   : > { %v7109_v3 = vpop.permute.xlu0 %1146  ;;  %v7111_v63 = vpop.permute.xlu1 %1728  ;;  %5686 = vset.pattern.permute.xlu1 %v13259_v36 }
 0x297   : > { %13257 = vst [vmem:[#allocation169_spill] sm:$0xff] %v7109_v3  ;;  %13258 = vst [vmem:[#allocation170_spill] sm:$0xff] %v7111_v63 }
 0x299   : > { %2514 = vrot.lane.b32.xlu0 %v7075_v2, %s6023_s12  ;;  %2086 = vrot.lane.b32.xlu1 %v6971_v25, %s6022_s10 }
 0x29a   : > { %v7118_v28 = vpop.permute.xlu0 %1430  ;;  %v7120_v15 = vpop.permute.xlu1 %1004 }
 0x29b   : > { %13260 = vst [vmem:[#allocation171_spill] sm:$0xff] %v7118_v28  ;;  %13261 = vst [vmem:[#allocation172_spill] sm:$0xff] %v7120_v15 }
 0x29d   : > { %2372 = vrot.lane.b32.xlu0 %v7047_v43, %s6024_s13  ;;  %2090 = vrot.lane.b32.xlu1 %v7023_v40, %s6022_s10 }
 0x29e   : > { %v7126_v3 = vpop.permute.xlu0 %1714  ;;  %v7128_v63 = vpop.permute.xlu1 %1288 }
 0x29f   : > { %13262 = vst [vmem:[#allocation173_spill] sm:$0xff] %v7126_v3  ;;  %13263 = vst [vmem:[#allocation174_spill] sm:$0xff] %v7128_v63 }
 0x2a1   : > { %2246 = vrot.lane.b32.xlu0 %v7032_v53, %s6021_s26  ;;  %2094 = vrot.lane.b32.xlu1 %v7075_v2, %s6022_s10 }
 0x2a2   : > { %v7134_v26 = vpop.permute.xlu0 %877  ;;  %v7138_v15 = vpop.permute.xlu1 %1572 }
 0x2a3   : > { %13264 = vst [vmem:[#allocation175_spill] sm:$0xff] %v7134_v26  ;;  %13265 = vst [vmem:[#allocation176_spill] sm:$0xff] %v7138_v15 }
 0x2a5   : > { %2512 = vrot.lane.b32.xlu0 %v7047_v43, %s6023_s12  ;;  %2110 = vrot.lane.b32.xlu1 %v7089_v22, %s6022_s10 }
 0x2a6   : > { %v7142_v28 = vpop.permute.xlu0 %1162  ;;  %v7149_v63 = vpop.permute.xlu1 %1020 }
 0x2a7   : > { %13266 = vst [vmem:[#allocation177_spill] sm:$0xff] %v7142_v28  ;;  %13268 = vst [vmem:[#allocation179_spill] sm:$0xff] %v7149_v63  ;;  %v5555_v63 = vld [vmem:[%s12460_s4 + $0x7] ss:$8 sm:$0x3] }
 0x2a8   : > { %v7182_v51 = vrot.slane %v5555_v63, %v6692_v21 }
 0x2a9   : > { %2370 = vrot.lane.b32.xlu0 %v7023_v40, %s6024_s13  ;;  %2325 = vperm.xlu1 %5686, %v7096_v17  }
 0x2aa   : > { %v7147_v3 = vpop.permute.xlu0 %1446  ;;  %v7160_v28 = vpop.permute.xlu1 %1304  ;;  %13274 = vst [vmem:[#allocation185_spill] sm:$0xff] %v7182_v51 }
 0x2ab   : > { %13267 = vst [vmem:[#allocation178_spill] sm:$0xff] %v7147_v3  ;;  %13270 = vst [vmem:[#allocation181_spill] sm:$0xff] %v7160_v28  ;;  %v1735_v28 = vsel %vm1732_vm7, %v6694_v7, %v6807_v59 }
 0x2ad   : > { %2244 = vrot.lane.b32.xlu0 %v7014_v57, %s6021_s26  ;;  %2234 = vrot.lane.b32.xlu1 %v7075_v2, %s6021_s26 }
 0x2ae   : > { %v7155_v15 = vpop.permute.xlu0 %1842  ;;  %5687 = vset.pattern.permute.xlu1 %v13235_v50  ;;  %v7179_v26 = vpop.permute.xlu1 %1588 }
 0x2af   : > { %13269 = vst [vmem:[#allocation180_spill] sm:$0xff] %v7155_v15  ;;  %13273 = vst [vmem:[#allocation184_spill] sm:$0xff] %v7179_v26 }
 0x2b1   : > { %2510 = vrot.lane.b32.xlu0 %v7023_v40, %s6023_s12  ;;  %2465 = vperm.xlu1 %5687, %v7096_v17  }
 0x2b2   : > { %v7163_v3 = vpop.permute.xlu0 %1846 }
 0x2b3   : > { %13271 = vst [vmem:[#allocation182_spill] sm:$0xff] %v7163_v3 }
 0x2b5   : > { %2102 = vrot.lane.b32.xlu0 %v6986_v31, %s6022_s10  ;;  %5688 = vset.pattern.permute.xlu1 %v13259_v36 }
 0x2b6   : > { %v7171_v15 = vpop.permute.xlu0 %1850  ;;  %2321 = vperm.xlu1 %5688, %v6958_v41  }
 0x2b7   : > { %13272 = vst [vmem:[#allocation183_spill] sm:$0xff] %v7171_v15  ;;  %v1766_v15 = vmul.f32 %v7182_v51, %v1735_v28 }
 0x2b9   : > { %2368 = vrot.lane.b32.xlu0 %v6999_v27, %s6024_s13 }
 0x2ba   : > { %v7186_v38 = vpop.permute.xlu0 %1854  ;;  %2390 = vrot.lane.b32.xlu1 %v7089_v22, %s6024_s13 }
 0x2bb   : > { %13275 = vst [vmem:[#allocation186_spill] sm:$0xff] %v7186_v38  ;;  %v7191_v6 = vpop.permute.xlu1 %1787  ;;  %5689 = vset.pattern.permute.xlu1 %v13277_v32 }
 0x2bc   : > { %13276 = vst [vmem:[#allocation187_spill] sm:$0xff] %v7191_v6  ;;  %v1814_v59 = vmul.f32 %v7191_v6, %v1766_v15 }
 0x2bd   : > { %2242 = vrot.lane.b32.xlu0 %v6986_v31, %s6021_s26 }
 0x2be   : > { %v7198_v63 = vadd.f32 %v1814_v59, %v6820_v24  ;;  %v7200_v26 = vpop.permute.xlu0 %1858  ;;  %2177 = vperm.xlu1 %5689, %v7082_v1  }
 0x2bf   : > { %13278 = vst [vmem:[#allocation188_spill] sm:$0xff] %v7200_v26  ;;  %v7203_v28 = vpop.permute.xlu1 %1791 }
 0x2c0   : > { %13279 = vst [vmem:[#allocation189_spill] sm:$0xff] %v7203_v28 }
 0x2c1   : > { %2508 = vrot.lane.b32.xlu0 %v6999_v27, %s6023_s12 }
 0x2c2   : > { %2232 = vrot.lane.b32.xlu1 %v7047_v43, %s6021_s26  ;;  %v7212_v15 = vpop.permute.xlu0 %1862 }
 0x2c3   : > { %v7209_v7 = vpop.permute.xlu1 %1799  ;;  %5690 = vset.pattern.permute.xlu1 %v13235_v50  ;;  %13281 = vst [vmem:[#allocation191_spill] sm:$0xff] %v7212_v15 }
 0x2c4   : > { %13280 = vst [vmem:[#allocation190_spill] sm:$0xff] %v7209_v7 }
 0x2c5   : > { %2100 = vrot.lane.b32.xlu0 %v6962_v46, %s6022_s10 }
 0x2c6   : > { %2461 = vperm.xlu1 %5690, %v6958_v41   ;;  %v7221_v24 = vpop.permute.xlu0 %1866 }
 0x2c7   : > { %v7217_v59 = vpop.permute.xlu1 %1807  ;;  %13283 = vst [vmem:[#allocation193_spill] sm:$0xff] %v7221_v24 }
 0x2c8   : > { %13282 = vst [vmem:[#allocation192_spill] sm:$0xff] %v7217_v59 }
 0x2c9   : > { %2366 = vrot.lane.b32.xlu0 %v6971_v25, %s6024_s13 }
 0x2ca   : > { %2530 = vrot.lane.b32.xlu1 %v7089_v22, %s6023_s12  ;;  %v7234_v59 = vpop.permute.xlu0 %1870 }
 0x2cb   : > { %v7225_v7 = vpop.permute.xlu1 %1844  ;;  %5691 = vset.pattern.permute.xlu1 %v13259_v36  ;;  %13286 = vst [vmem:[#allocation196_spill] sm:$0xff] %v7234_v59 }
 0x2cc   : > { %13284 = vst [vmem:[#allocation194_spill] sm:$0xff] %v7225_v7 }
 0x2cd   : > { %2240 = vrot.lane.b32.xlu0 %v6962_v46, %s6021_s26 }
 0x2ce   : > { %2106 = vrot.lane.b32.xlu1 %v7032_v53, %s6022_s10  ;;  %v7243_v6 = vpop.permute.xlu0 %1730 }
 0x2cf   : > { %v7232_v28 = vpop.permute.xlu1 %1848  ;;  %13288 = vst [vmem:[#allocation198_spill] sm:$0xff] %v7243_v6 }
 0x2d0   : > { %13285 = vst [vmem:[#allocation195_spill] sm:$0xff] %v7232_v28 }
 0x2d1   : > { %2506 = vrot.lane.b32.xlu0 %v6971_v25, %s6023_s12 }
 0x2d2   : > { %2317 = vperm.xlu1 %5691, %v7082_v1  }
 0x2d3   : > { %v7239_v26 = vpop.permute.xlu1 %1852 }
 0x2d4   : > { %13287 = vst [vmem:[#allocation197_spill] sm:$0xff] %v7239_v26 }
 0x2d5   : > { %2098 = vrot.lane.b32.xlu0 %v6934_v60, %s6022_s10 }
 0x2d6   : > { %2388 = vrot.lane.b32.xlu1 %v7061_v20, %s6024_s13 }
 0x2d7   : > { %v7247_v7 = vpop.permute.xlu1 %1856  ;;  %5692 = vset.pattern.permute.xlu1 %v13277_v32 }
 0x2d8   : > { %13289 = vst [vmem:[#allocation199_spill] sm:$0xff] %v7247_v7 }
 0x2d9   : > { %2364 = vrot.lane.b32.xlu0 %v6948_v4, %s6024_s13 }
 0x2da   : > { %2654 = vrot.lane.b32.xlu1 %v7075_v2, %s6026_s18 }
 0x2db   : > { %v7254_v28 = vpop.permute.xlu0 %2031  ;;  %v7256_v26 = vpop.permute.xlu1 %1860 }
 0x2dc   : > { %13290 = vst [vmem:[#allocation200_spill] sm:$0xff] %v7254_v28  ;;  %13291 = vst [vmem:[#allocation201_spill] sm:$0xff] %v7256_v26 }
 0x2dd   : > { %2238 = vrot.lane.b32.xlu0 %v6934_v60, %s6021_s26 }
 0x2de   : > { %2670 = vrot.lane.b32.xlu1 %v7089_v22, %s6026_s18 }
 0x2df   : > { %v7262_v6 = vpop.permute.xlu0 %2046  ;;  %v7264_v7 = vpop.permute.xlu1 %1864 }
 0x2e0   : > { %13292 = vst [vmem:[#allocation202_spill] sm:$0xff] %v7262_v6  ;;  %13293 = vst [vmem:[#allocation203_spill] sm:$0xff] %v7264_v7  ;;  %v5556_v7 = vld [vmem:[%s12460_s4 + $0x10] ss:$8 sm:$0x3] }
 0x2e1   : > { %2504 = vrot.lane.b32.xlu0 %v6948_v4, %s6023_s12 }
 0x2e2   : > { %2173 = vperm.xlu1 %5692, %v6944_v29  }
 0x2e3   : > { %v7269_v38 = vpop.permute.xlu0 %2056  ;;  %v7271_v28 = vpop.permute.xlu1 %1868 }
 0x2e4   : > { %13294 = vst [vmem:[#allocation204_spill] sm:$0xff] %v7269_v38  ;;  %13295 = vst [vmem:[#allocation205_spill] sm:$0xff] %v7271_v28  ;;  %v7298_v38 = vrot.slane %v5556_v7, %v6692_v21  ;;  %v7314_v7 = vld [vmem:[%s12459_s3] sm:$0xff] }
 0x2e5   : > { %2096 = vrot.lane.b32.xlu0 %v6909_v44, %s6022_s10 }
 0x2e6   : > { %2230 = vrot.lane.b32.xlu1 %v7023_v40, %s6021_s26  ;;  %13300 = vst [vmem:[#allocation210_spill] sm:$0xff] %v7298_v38 }
 0x2e7   : > { %v7277_v26 = vpop.permute.xlu1 %1872  ;;  %5693 = vset.pattern.permute.xlu1 %v13235_v50 }
 0x2e8   : > { %13296 = vst [vmem:[#allocation206_spill] sm:$0xff] %v7277_v26  ;;  %v7279_v6 = vpop.permute.xlu0 %1215  ;;  %v1877_v26 = vsel %vm1874_vm8, %v7163_v3, %v7212_v15  ;;  %v13303_v3 = vmov 3  }
 0x2e9   : > { %13297 = vst [vmem:[#allocation207_spill] sm:$0xff] %v7279_v6  ;;  %2362 = vrot.lane.b32.xlu0 %v6919_v8, %s6024_s13  ;;  %v1908_v59 = vmul.f32 %v7298_v38, %v1877_v26 }
 0x2ea   : > { %2457 = vperm.xlu1 %5693, %v7082_v1  }
 0x2eb   : > { %v7293_v28 = vpop.permute.xlu1 %1925 }
 0x2ec   : > { %13298 = vst [vmem:[#allocation208_spill] sm:$0xff] %v7293_v28  ;;  %v7295_v6 = vpop.permute.xlu0 %1227 }
 0x2ed   : > { %13299 = vst [vmem:[#allocation209_spill] sm:$0xff] %v7295_v6  ;;  %2437 = vperm.xlu0 %5685, %v7039_v42  }
 0x2ee   : > { %2528 = vrot.lane.b32.xlu1 %v7061_v20, %s6023_s12 }
 0x2ef   : > { %v7304_v24 = vpop.permute.xlu1 %1929  ;;  %5694 = vset.pattern.permute.xlu1 %v13259_v36 }
 0x2f0   : > { %13301 = vst [vmem:[#allocation211_spill] sm:$0xff] %v7304_v24  ;;  %v7306_v51 = vpop.permute.xlu0 %1235  ;;  %v1956_v15 = vmul.f32 %v7304_v24, %v1908_v59  ;;  %v7329_v59 = vld [vmem:[%s12459_s3 + $0x18] sm:$0xff] }
 0x2f1   : > { %13302 = vst [vmem:[#allocation212_spill] sm:$0xff] %v7306_v51  ;;  %5707 = vset.pattern.permute.xlu0 %v13303_v3 }
 0x2f2   : > { %1353 = vperm.xlu0 %5707, %v7314_v7   ;;  %v7318_v26 = vadd.f32 %v1956_v15, %v7198_v63  ;;  %2794 = vrot.lane.b32.xlu1 %v7075_v2, %s6025_s17  ;;  %v7341_v15 = vld [vmem:[%s12459_s3 + $0x28] sm:$0xff] }
 0x2f3   : > { %v7322_v51 = vpop.permute.xlu1 %1937 }
 0x2f4   : > { %13304 = vst [vmem:[#allocation213_spill] sm:$0xff] %v7318_v26  ;;  %13305 = vst [vmem:[#allocation214_spill] sm:$0xff] %v7322_v51  ;;  %v7324_v6 = vpop.permute.xlu0 %2080 }
 0x2f5   : > { %13306 = vst [vmem:[#allocation215_spill] sm:$0xff] %v7324_v6  ;;  %v7353_v6 = vld [vmem:[%s12459_s3 + $0x38] sm:$0xff] }
 0x2f6   : > { %1365 = vperm.xlu0 %5707, %v7329_v59   ;;  %2810 = vrot.lane.b32.xlu1 %v7089_v22, %s6025_s17 }
 0x2f7   : > { %v7334_v3 = vpop.permute.xlu1 %1945 }
 0x2f8   : > { %13307 = vst [vmem:[#allocation216_spill] sm:$0xff] %v7334_v3  ;;  %v7336_v63 = vpop.permute.xlu0 %2084 }
 0x2f9   : > { %13308 = vst [vmem:[#allocation217_spill] sm:$0xff] %v7336_v63 }
 0x2fa   : > { %1373 = vperm.xlu0 %5707, %v7341_v15   ;;  %2104 = vrot.lane.b32.xlu1 %v7014_v57, %s6022_s10 }
 0x2fc   : > { %v7346_v26 = vpop.permute.xlu0 %2088  ;;  %v7348_v24 = vpop.permute.xlu1 %2026 }
 0x2fd   : > { %13309 = vst [vmem:[#allocation218_spill] sm:$0xff] %v7346_v26  ;;  %13310 = vst [vmem:[#allocation219_spill] sm:$0xff] %v7348_v24 }
 0x2fe   : > { %1381 = vperm.xlu0 %5707, %v7353_v6   ;;  %2313 = vperm.xlu1 %5694, %v6944_v29  }
 0x300   : > { %v7357_v63 = vpop.permute.xlu0 %2092  ;;  %v7359_v3 = vpop.permute.xlu1 %2036 }
 0x301   : > { %13311 = vst [vmem:[#allocation220_spill] sm:$0xff] %v7357_v63  ;;  %13312 = vst [vmem:[#allocation221_spill] sm:$0xff] %v7359_v3 }
 0x302   : > { %2605 = vperm.xlu0 %5707, %v7096_v17   ;;  %2386 = vrot.lane.b32.xlu1 %v7032_v53, %s6024_s13 }
 0x303   : > { %5695 = vset.pattern.permute.xlu1 %v13277_v32 }
 0x304   : > { %v7364_v26 = vpop.permute.xlu0 %2108  ;;  %v7367_v24 = vpop.permute.xlu1 %2041 }
 0x305   : > { %13313 = vst [vmem:[#allocation222_spill] sm:$0xff] %v7364_v26  ;;  %13314 = vst [vmem:[#allocation223_spill] sm:$0xff] %v7367_v24 }
 0x306   : > { %2601 = vperm.xlu0 %5707, %v6958_v41   ;;  %2652 = vrot.lane.b32.xlu1 %v7047_v43, %s6026_s18 }
 0x308   : > { %v7372_v51 = vpop.permute.xlu0 %2374  ;;  %v7374_v63 = vpop.permute.xlu1 %2051 }
 0x309   : > { %13315 = vst [vmem:[#allocation224_spill] sm:$0xff] %v7372_v51  ;;  %13316 = vst [vmem:[#allocation225_spill] sm:$0xff] %v7374_v63 }
 0x30a   : > { %2597 = vperm.xlu0 %5707, %v7082_v1   ;;  %2668 = vrot.lane.b32.xlu1 %v7061_v20, %s6026_s18 }
 0x30c   : > { %v7379_v3 = vpop.permute.xlu0 %2250  ;;  %v7381_v26 = vpop.permute.xlu1 %2061 }
 0x30d   : > { %13317 = vst [vmem:[#allocation226_spill] sm:$0xff] %v7379_v3  ;;  %13318 = vst [vmem:[#allocation227_spill] sm:$0xff] %v7381_v26 }
 0x30e   : > { %2593 = vperm.xlu0 %5707, %v6944_v29   ;;  %2934 = vrot.lane.b32.xlu1 %v7075_v2, %s12915_s19 }
 0x310   : > { %v7386_v24 = vpop.permute.xlu0 %2248  ;;  %v7388_v28 = vpop.permute.xlu1 %2082 }
 0x311   : > { %13319 = vst [vmem:[#allocation228_spill] sm:$0xff] %v7386_v24  ;;  %13320 = vst [vmem:[#allocation229_spill] sm:$0xff] %v7388_v28 }
 0x312   : > { %2589 = vperm.xlu0 %5707, %v7068_v12   ;;  %2950 = vrot.lane.b32.xlu1 %v7089_v22, %s12915_s19 }
 0x314   : > { %v7393_v51 = vpop.permute.xlu0 %2514  ;;  %v7395_v63 = vpop.permute.xlu1 %2086 }
 0x315   : > { %13321 = vst [vmem:[#allocation230_spill] sm:$0xff] %v7393_v51  ;;  %13322 = vst [vmem:[#allocation231_spill] sm:$0xff] %v7395_v63 }
 0x316   : > { %2585 = vperm.xlu0 %5707, %v7054_v9   ;;  %2169 = vperm.xlu1 %5695, %v7068_v12  }
 0x318   : > { %v7399_v26 = vpop.permute.xlu0 %2372  ;;  %v7401_v3 = vpop.permute.xlu1 %2090 }
 0x319   : > { %13323 = vst [vmem:[#allocation232_spill] sm:$0xff] %v7399_v26  ;;  %13324 = vst [vmem:[#allocation233_spill] sm:$0xff] %v7401_v3  ;;  %v13331_v3 = vmov 5  }
 0x31a   : > { %2581 = vperm.xlu0 %5707, %v6930_v19   ;;  %2228 = vrot.lane.b32.xlu1 %v6999_v27, %s6021_s26 }
 0x31b   : > { %5696 = vset.pattern.permute.xlu1 %v13235_v50 }
 0x31c   : > { %v7406_v28 = vpop.permute.xlu0 %2246  ;;  %v7409_v51 = vpop.permute.xlu1 %2094 }
 0x31d   : > { %13325 = vst [vmem:[#allocation234_spill] sm:$0xff] %v7406_v28  ;;  %13326 = vst [vmem:[#allocation235_spill] sm:$0xff] %v7409_v51 }
 0x31e   : > { %2360 = vrot.lane.b32.xlu0 %v6896_v34, %s6024_s13  ;;  %2453 = vperm.xlu1 %5696, %v6944_v29  }
 0x320   : > { %v7414_v24 = vpop.permute.xlu0 %2512  ;;  %v7416_v26 = vpop.permute.xlu1 %2110 }
 0x321   : > { %13327 = vst [vmem:[#allocation236_spill] sm:$0xff] %v7414_v24  ;;  %13328 = vst [vmem:[#allocation237_spill] sm:$0xff] %v7416_v26 }
 0x322   : > { %2577 = vperm.xlu0 %5707, %v7039_v42   ;;  %2526 = vrot.lane.b32.xlu1 %v7032_v53, %s6023_s12 }
 0x323   : > { %5697 = vset.pattern.permute.xlu1 %v13259_v36 }
 0x324   : > { %v7421_v63 = vpop.permute.xlu0 %2370  ;;  %v7424_v28 = vpop.permute.xlu1 %2325 }
 0x325   : > { %13329 = vst [vmem:[#allocation238_spill] sm:$0xff] %v7421_v63  ;;  %13330 = vst [vmem:[#allocation239_spill] sm:$0xff] %v7424_v28 }
 0x326   : > { %5708 = vset.pattern.permute.xlu0 %v13331_v3  ;;  %2792 = vrot.lane.b32.xlu1 %v7047_v43, %s6025_s17 }
 0x327   : > { %1499 = vperm.xlu0 %5708, %v6981_v5  }
 0x328   : > { %v7430_v24 = vpop.permute.xlu0 %2244  ;;  %v7432_v51 = vpop.permute.xlu1 %2234 }
 0x329   : > { %13332 = vst [vmem:[#allocation240_spill] sm:$0xff] %v7430_v24  ;;  %13333 = vst [vmem:[#allocation241_spill] sm:$0xff] %v7432_v51 }
 0x32a   : > { %2808 = vrot.lane.b32.xlu1 %v7061_v20, %s6025_s17 }
 0x32b   : > { %1511 = vperm.xlu0 %5708, %v6994_v45  }
 0x32c   : > { %v7437_v63 = vpop.permute.xlu0 %2510  ;;  %v7439_v26 = vpop.permute.xlu1 %2465 }
 0x32d   : > { %13334 = vst [vmem:[#allocation242_spill] sm:$0xff] %v7437_v63  ;;  %13335 = vst [vmem:[#allocation243_spill] sm:$0xff] %v7439_v26 }
 0x32e   : > { %3074 = vrot.lane.b32.xlu1 %v7075_v2, %s13336_s22 }
 0x32f   : > { %1519 = vperm.xlu0 %5708, %v7009_v0  }
 0x330   : > { %v7444_v3 = vpop.permute.xlu0 %2102 }
 0x331   : > { %13337 = vst [vmem:[#allocation244_spill] sm:$0xff] %v7444_v3  ;;  %v7446_v28 = vpop.permute.xlu1 %2321 }
 0x332   : > { %13338 = vst [vmem:[#allocation245_spill] sm:$0xff] %v7446_v28  ;;  %3090 = vrot.lane.b32.xlu1 %v7089_v22, %s13336_s22 }
 0x333   : > { %2745 = vperm.xlu0 %5708, %v7096_v17  }
 0x334   : > { %v7451_v24 = vpop.permute.xlu0 %2368 }
 0x335   : > { %13339 = vst [vmem:[#allocation246_spill] sm:$0xff] %v7451_v24  ;;  %v7453_v51 = vpop.permute.xlu1 %2390 }
 0x336   : > { %13340 = vst [vmem:[#allocation247_spill] sm:$0xff] %v7453_v51  ;;  %2309 = vperm.xlu1 %5697, %v7068_v12  }
 0x337   : > { %2741 = vperm.xlu0 %5708, %v6958_v41  }
 0x338   : > { %v7457_v63 = vpop.permute.xlu0 %2242 }
 0x339   : > { %13341 = vst [vmem:[#allocation248_spill] sm:$0xff] %v7457_v63  ;;  %v7459_v26 = vpop.permute.xlu1 %2177 }
 0x33a   : > { %13342 = vst [vmem:[#allocation249_spill] sm:$0xff] %v7459_v26  ;;  %2384 = vrot.lane.b32.xlu1 %v7014_v57, %s6024_s13 }
 0x33b   : > { %2737 = vperm.xlu0 %5708, %v7082_v1   ;;  %5698 = vset.pattern.permute.xlu1 %v13277_v32 }
 0x33c   : > { %v7464_v28 = vpop.permute.xlu0 %2508 }
 0x33d   : > { %13343 = vst [vmem:[#allocation250_spill] sm:$0xff] %v7464_v28  ;;  %v7467_v24 = vpop.permute.xlu1 %2232 }
 0x33e   : > { %13344 = vst [vmem:[#allocation251_spill] sm:$0xff] %v7467_v24  ;;  %2650 = vrot.lane.b32.xlu1 %v7023_v40, %s6026_s18 }
 0x33f   : > { %2733 = vperm.xlu0 %5708, %v6944_v29  }
 0x340   : > { %v7472_v3 = vpop.permute.xlu0 %2100 }
 0x341   : > { %13345 = vst [vmem:[#allocation252_spill] sm:$0xff] %v7472_v3  ;;  %v7474_v63 = vpop.permute.xlu1 %2461 }
 0x342   : > { %13346 = vst [vmem:[#allocation253_spill] sm:$0xff] %v7474_v63  ;;  %2666 = vrot.lane.b32.xlu1 %v7032_v53, %s6026_s18 }
 0x343   : > { %2729 = vperm.xlu0 %5708, %v7068_v12  }
 0x344   : > { %v7479_v26 = vpop.permute.xlu0 %2366 }
 0x345   : > { %13347 = vst [vmem:[#allocation254_spill] sm:$0xff] %v7479_v26  ;;  %v7481_v28 = vpop.permute.xlu1 %2530 }
 0x346   : > { %13348 = vst [vmem:[#allocation255_spill] sm:$0xff] %v7481_v28  ;;  %2932 = vrot.lane.b32.xlu1 %v7047_v43, %s12915_s19 }
 0x347   : > { %2725 = vperm.xlu0 %5708, %v7054_v9  }
 0x348   : > { %v7486_v24 = vpop.permute.xlu0 %2240 }
 0x349   : > { %13349 = vst [vmem:[#allocation256_spill] sm:$0xff] %v7486_v24  ;;  %v7488_v51 = vpop.permute.xlu1 %2106  ;;  %v13355_v24 = vmov 6  }
 0x34a   : > { %13350 = vst [vmem:[#allocation257_spill] sm:$0xff] %v7488_v51  ;;  %2948 = vrot.lane.b32.xlu1 %v7061_v20, %s12915_s19 }
 0x34b   : > { %2721 = vperm.xlu0 %5708, %v6930_v19  }
 0x34c   : > { %v7493_v3 = vpop.permute.xlu0 %2506 }
 0x34d   : > { %13351 = vst [vmem:[#allocation258_spill] sm:$0xff] %v7493_v3  ;;  %v7495_v63 = vpop.permute.xlu1 %2317 }
 0x34e   : > { %13352 = vst [vmem:[#allocation259_spill] sm:$0xff] %v7495_v63  ;;  %2165 = vperm.xlu1 %5698, %v7054_v9  }
 0x34f   : > { %2717 = vperm.xlu0 %5708, %v7039_v42  }
 0x350   : > { %v7499_v26 = vpop.permute.xlu0 %2098 }
 0x351   : > { %13353 = vst [vmem:[#allocation260_spill] sm:$0xff] %v7499_v26  ;;  %v7501_v28 = vpop.permute.xlu1 %2388 }
 0x352   : > { %13354 = vst [vmem:[#allocation261_spill] sm:$0xff] %v7501_v28  ;;  %2226 = vrot.lane.b32.xlu1 %v6971_v25, %s6021_s26 }
 0x353   : > { %5709 = vset.pattern.permute.xlu0 %v13355_v24  ;;  %5699 = vset.pattern.permute.xlu1 %v13235_v50 }
 0x354   : > { %1637 = vperm.xlu0 %5709, %v7314_v7   ;;  %v7507_v51 = vpop.permute.xlu0 %2364 }
 0x355   : > { %13356 = vst [vmem:[#allocation262_spill] sm:$0xff] %v7507_v51  ;;  %v7510_v3 = vpop.permute.xlu1 %2654 }
 0x356   : > { %13357 = vst [vmem:[#allocation263_spill] sm:$0xff] %v7510_v3  ;;  %2449 = vperm.xlu1 %5699, %v7068_v12  }
 0x358   : > { %1649 = vperm.xlu0 %5709, %v7329_v59   ;;  %v7514_v26 = vpop.permute.xlu0 %2238 }
 0x359   : > { %13358 = vst [vmem:[#allocation264_spill] sm:$0xff] %v7514_v26  ;;  %v7516_v63 = vpop.permute.xlu1 %2670 }
 0x35a   : > { %13359 = vst [vmem:[#allocation265_spill] sm:$0xff] %v7516_v63  ;;  %2524 = vrot.lane.b32.xlu1 %v7014_v57, %s6023_s12 }
 0x35b   : > { %5700 = vset.pattern.permute.xlu1 %v13259_v36 }
 0x35c   : > { %1657 = vperm.xlu0 %5709, %v7341_v15   ;;  %v7521_v24 = vpop.permute.xlu0 %2504 }
 0x35d   : > { %13360 = vst [vmem:[#allocation266_spill] sm:$0xff] %v7521_v24  ;;  %v7524_v51 = vpop.permute.xlu1 %2173 }
 0x35e   : > { %13361 = vst [vmem:[#allocation267_spill] sm:$0xff] %v7524_v51  ;;  %2790 = vrot.lane.b32.xlu1 %v7023_v40, %s6025_s17 }
 0x360   : > { %1665 = vperm.xlu0 %5709, %v7353_v6   ;;  %v7529_v3 = vpop.permute.xlu0 %2096 }
 0x361   : > { %13362 = vst [vmem:[#allocation268_spill] sm:$0xff] %v7529_v3  ;;  %v7531_v26 = vpop.permute.xlu1 %2230 }
 0x362   : > { %13363 = vst [vmem:[#allocation269_spill] sm:$0xff] %v7531_v26  ;;  %2806 = vrot.lane.b32.xlu1 %v7032_v53, %s6025_s17 }
 0x364   : > { %2885 = vperm.xlu0 %5709, %v7096_v17   ;;  %v7536_v63 = vpop.permute.xlu0 %2362 }
 0x365   : > { %13364 = vst [vmem:[#allocation270_spill] sm:$0xff] %v7536_v63  ;;  %v7538_v24 = vpop.permute.xlu1 %2457 }
 0x366   : > { %13365 = vst [vmem:[#allocation271_spill] sm:$0xff] %v7538_v24  ;;  %3072 = vrot.lane.b32.xlu1 %v7047_v43, %s13336_s22 }
 0x368   : > { %2881 = vperm.xlu0 %5709, %v6958_v41   ;;  %v7543_v51 = vpop.permute.xlu0 %2437 }
 0x369   : > { %13366 = vst [vmem:[#allocation272_spill] sm:$0xff] %v7543_v51  ;;  %v7545_v28 = vpop.permute.xlu1 %2528 }
 0x36a   : > { %13367 = vst [vmem:[#allocation273_spill] sm:$0xff] %v7545_v28  ;;  %3088 = vrot.lane.b32.xlu1 %v7061_v20, %s13336_s22 }
 0x36c   : > { %2877 = vperm.xlu0 %5709, %v7082_v1  }
 0x36d   : > { %v7550_v3 = vpop.permute.xlu0 %1353  ;;  %v7552_v26 = vpop.permute.xlu1 %2794 }
 0x36e   : > { %13368 = vst [vmem:[#allocation274_spill] sm:$0xff] %v7550_v3  ;;  %13369 = vst [vmem:[#allocation275_spill] sm:$0xff] %v7552_v26  ;;  %2305 = vperm.xlu1 %5700, %v7054_v9  }
 0x370   : > { %2873 = vperm.xlu0 %5709, %v6944_v29  }
 0x371   : > { %v7556_v63 = vpop.permute.xlu0 %1365  ;;  %v7558_v24 = vpop.permute.xlu1 %2810 }
 0x372   : > { %13370 = vst [vmem:[#allocation276_spill] sm:$0xff] %v7556_v63  ;;  %13371 = vst [vmem:[#allocation277_spill] sm:$0xff] %v7558_v24  ;;  %2382 = vrot.lane.b32.xlu1 %v6986_v31, %s6024_s13 }
 0x373   : > { %5701 = vset.pattern.permute.xlu1 %v13277_v32 }
 0x374   : > { %2869 = vperm.xlu0 %5709, %v7068_v12  }
 0x375   : > { %v7564_v51 = vpop.permute.xlu0 %1373  ;;  %v7566_v3 = vpop.permute.xlu1 %2104 }
 0x376   : > { %13372 = vst [vmem:[#allocation278_spill] sm:$0xff] %v7564_v51  ;;  %13373 = vst [vmem:[#allocation279_spill] sm:$0xff] %v7566_v3  ;;  %2648 = vrot.lane.b32.xlu1 %v6999_v27, %s6026_s18 }
 0x378   : > { %2865 = vperm.xlu0 %5709, %v7054_v9  }
 0x379   : > { %v7571_v26 = vpop.permute.xlu0 %1381  ;;  %v7573_v63 = vpop.permute.xlu1 %2313 }
 0x37a   : > { %13374 = vst [vmem:[#allocation280_spill] sm:$0xff] %v7571_v26  ;;  %13375 = vst [vmem:[#allocation281_spill] sm:$0xff] %v7573_v63  ;;  %2664 = vrot.lane.b32.xlu1 %v7014_v57, %s6026_s18 }
 0x37c   : > { %2861 = vperm.xlu0 %5709, %v6930_v19  }
 0x37d   : > { %v7578_v24 = vpop.permute.xlu0 %2605  ;;  %v7580_v28 = vpop.permute.xlu1 %2386 }
 0x37e   : > { %13376 = vst [vmem:[#allocation282_spill] sm:$0xff] %v7578_v24  ;;  %13377 = vst [vmem:[#allocation283_spill] sm:$0xff] %v7580_v28  ;;  %2930 = vrot.lane.b32.xlu1 %v7023_v40, %s12915_s19  ;;  %v13382_v28 = vmov 7  }
 0x380   : > { %2640 = vrot.lane.b32.xlu0 %v6896_v34, %s6026_s18 }
 0x381   : > { %v7586_v51 = vpop.permute.xlu0 %2601  ;;  %v7588_v26 = vpop.permute.xlu1 %2652 }
 0x382   : > { %13378 = vst [vmem:[#allocation284_spill] sm:$0xff] %v7586_v51  ;;  %13379 = vst [vmem:[#allocation285_spill] sm:$0xff] %v7588_v26  ;;  %2946 = vrot.lane.b32.xlu1 %v7032_v53, %s12915_s19 }
 0x384   : > { %2857 = vperm.xlu0 %5709, %v7039_v42  }
 0x385   : > { %v7593_v63 = vpop.permute.xlu0 %2597  ;;  %v7595_v24 = vpop.permute.xlu1 %2668 }
 0x386   : > { %13380 = vst [vmem:[#allocation286_spill] sm:$0xff] %v7593_v63  ;;  %13381 = vst [vmem:[#allocation287_spill] sm:$0xff] %v7595_v24  ;;  %2161 = vperm.xlu1 %5701, %v6930_v19  }
 0x388   : > { %5710 = vset.pattern.permute.xlu0 %v13382_v28 }
 0x389   : > { %1783 = vperm.xlu0 %5710, %v6981_v5   ;;  %v7600_v3 = vpop.permute.xlu0 %2593  ;;  %v7602_v51 = vpop.permute.xlu1 %2934 }
 0x38a   : > { %13383 = vst [vmem:[#allocation288_spill] sm:$0xff] %v7600_v3  ;;  %13384 = vst [vmem:[#allocation289_spill] sm:$0xff] %v7602_v51  ;;  %2224 = vrot.lane.b32.xlu1 %v6948_v4, %s6021_s26 }
 0x38b   : > { %5702 = vset.pattern.permute.xlu1 %v13235_v50 }
 0x38d   : > { %1795 = vperm.xlu0 %5710, %v6994_v45   ;;  %v7608_v63 = vpop.permute.xlu0 %2589  ;;  %v7610_v26 = vpop.permute.xlu1 %2950 }
 0x38e   : > { %13385 = vst [vmem:[#allocation290_spill] sm:$0xff] %v7608_v63  ;;  %13386 = vst [vmem:[#allocation291_spill] sm:$0xff] %v7610_v26  ;;  %2445 = vperm.xlu1 %5702, %v7054_v9  }
 0x391   : > { %1803 = vperm.xlu0 %5710, %v7009_v0   ;;  %v7614_v28 = vpop.permute.xlu0 %2585  ;;  %v7616_v3 = vpop.permute.xlu1 %2169 }
 0x392   : > { %13387 = vst [vmem:[#allocation292_spill] sm:$0xff] %v7614_v28  ;;  %13388 = vst [vmem:[#allocation293_spill] sm:$0xff] %v7616_v3  ;;  %2522 = vrot.lane.b32.xlu1 %v6986_v31, %s6023_s12 }
 0x393   : > { %5703 = vset.pattern.permute.xlu1 %v13259_v36 }
 0x395   : > { %3025 = vperm.xlu0 %5710, %v7096_v17   ;;  %v7622_v51 = vpop.permute.xlu0 %2581  ;;  %v7624_v63 = vpop.permute.xlu1 %2228 }
 0x396   : > { %13389 = vst [vmem:[#allocation294_spill] sm:$0xff] %v7622_v51  ;;  %13390 = vst [vmem:[#allocation295_spill] sm:$0xff] %v7624_v63  ;;  %2788 = vrot.lane.b32.xlu1 %v6999_v27, %s6025_s17 }
 0x399   : > { %3021 = vperm.xlu0 %5710, %v6958_v41   ;;  %v7629_v26 = vpop.permute.xlu0 %2360  ;;  %v7631_v28 = vpop.permute.xlu1 %2453 }
 0x39a   : > { %13391 = vst [vmem:[#allocation296_spill] sm:$0xff] %v7629_v26  ;;  %13392 = vst [vmem:[#allocation297_spill] sm:$0xff] %v7631_v28  ;;  %2804 = vrot.lane.b32.xlu1 %v7014_v57, %s6025_s17 }
 0x39d   : > { %3017 = vperm.xlu0 %5710, %v7082_v1   ;;  %v7636_v3 = vpop.permute.xlu0 %2577  ;;  %v7638_v24 = vpop.permute.xlu1 %2526 }
 0x39e   : > { %13393 = vst [vmem:[#allocation298_spill] sm:$0xff] %v7636_v3  ;;  %13394 = vst [vmem:[#allocation299_spill] sm:$0xff] %v7638_v24  ;;  %3070 = vrot.lane.b32.xlu1 %v7023_v40, %s13336_s22 }
 0x3a1   : > { %3013 = vperm.xlu0 %5710, %v6944_v29   ;;  %v7643_v51 = vpop.permute.xlu1 %2792 }
 0x3a2   : > { %13395 = vst [vmem:[#allocation300_spill] sm:$0xff] %v7643_v51  ;;  %v7645_v63 = vpop.permute.xlu0 %1499  ;;  %3086 = vrot.lane.b32.xlu1 %v7032_v53, %s13336_s22 }
 0x3a3   : > { %13396 = vst [vmem:[#allocation301_spill] sm:$0xff] %v7645_v63 }
 0x3a5   : > { %3009 = vperm.xlu0 %5710, %v7068_v12   ;;  %v7650_v26 = vpop.permute.xlu1 %2808 }
 0x3a6   : > { %13397 = vst [vmem:[#allocation302_spill] sm:$0xff] %v7650_v26  ;;  %v7652_v28 = vpop.permute.xlu0 %1511  ;;  %2301 = vperm.xlu1 %5703, %v6930_v19  }
 0x3a7   : > { %13398 = vst [vmem:[#allocation303_spill] sm:$0xff] %v7652_v28 }
 0x3a9   : > { %3005 = vperm.xlu0 %5710, %v7054_v9   ;;  %v7656_v3 = vpop.permute.xlu1 %3074 }
 0x3aa   : > { %13399 = vst [vmem:[#allocation304_spill] sm:$0xff] %v7656_v3  ;;  %v7658_v24 = vpop.permute.xlu0 %1519  ;;  %2380 = vrot.lane.b32.xlu1 %v6962_v46, %s6024_s13 }
 0x3ab   : > { %13400 = vst [vmem:[#allocation305_spill] sm:$0xff] %v7658_v24  ;;  %5704 = vset.pattern.permute.xlu1 %v13277_v32  ;;  %v13405_v24 = vmov 8  }
 0x3ad   : > { %3001 = vperm.xlu0 %5710, %v6930_v19   ;;  %v7664_v63 = vpop.permute.xlu1 %3090 }
 0x3ae   : > { %13401 = vst [vmem:[#allocation306_spill] sm:$0xff] %v7664_v63  ;;  %v7666_v51 = vpop.permute.xlu0 %2745  ;;  %2646 = vrot.lane.b32.xlu1 %v6971_v25, %s6026_s18 }
 0x3af   : > { %13402 = vst [vmem:[#allocation307_spill] sm:$0xff] %v7666_v51 }
 0x3b1   : > { %2997 = vperm.xlu0 %5710, %v7039_v42   ;;  %v7671_v28 = vpop.permute.xlu1 %2309 }
 0x3b2   : > { %13403 = vst [vmem:[#allocation308_spill] sm:$0xff] %v7671_v28  ;;  %v7673_v3 = vpop.permute.xlu0 %2741  ;;  %2662 = vrot.lane.b32.xlu1 %v6986_v31, %s6026_s18 }
 0x3b3   : > { %13404 = vst [vmem:[#allocation309_spill] sm:$0xff] %v7673_v3 }
 0x3b5   : > { %5711 = vset.pattern.permute.xlu0 %v13405_v24  ;;  %v7678_v26 = vpop.permute.xlu1 %2384 }
 0x3b6   : > { %1921 = vperm.xlu0 %5711, %v7314_v7   ;;  %v7681_v63 = vpop.permute.xlu0 %2737  ;;  %2928 = vrot.lane.b32.xlu1 %v6999_v27, %s12915_s19 }
 0x3b7   : > { %13406 = vst [vmem:[#allocation310_spill] sm:$0xff] %v7681_v63 }
 0x3b9   : > { %v7685_v51 = vpop.permute.xlu1 %2650 }
 0x3ba   : > { %1933 = vperm.xlu0 %5711, %v7329_v59   ;;  %v7688_v28 = vpop.permute.xlu0 %2733  ;;  %2944 = vrot.lane.b32.xlu1 %v7014_v57, %s12915_s19 }
 0x3bb   : > { %13407 = vst [vmem:[#allocation311_spill] sm:$0xff] %v7688_v28 }
 0x3bd   : > { %v7692_v3 = vpop.permute.xlu1 %2666 }
 0x3be   : > { %1941 = vperm.xlu0 %5711, %v7341_v15   ;;  %v7695_v24 = vpop.permute.xlu0 %2729  ;;  %2157 = vperm.xlu1 %5704, %v7039_v42  }
 0x3bf   : > { %13408 = vst [vmem:[#allocation312_spill] sm:$0xff] %v7695_v24 }
 0x3c1   : > { %v7698_v7 = vpop.permute.xlu1 %2932 }
 0x3c2   : > { %13409 = vst [vmem:[#allocation313_spill] sm:$0xff] %v7698_v7  ;;  %1949 = vperm.xlu0 %5711, %v7353_v6   ;;  %v7701_v63 = vpop.permute.xlu0 %2725  ;;  %2222 = vrot.lane.b32.xlu1 %v6919_v8, %s6021_s26 }
 0x3c3   : > { %13410 = vst [vmem:[#allocation314_spill] sm:$0xff] %v7701_v63  ;;  %5705 = vset.pattern.permute.xlu1 %v13235_v50 }
 0x3c5   : > { %v7706_v59 = vpop.permute.xlu1 %2948 }
 0x3c6   : > { %3165 = vperm.xlu0 %5711, %v7096_v17   ;;  %v7709_v15 = vpop.permute.xlu0 %2721  ;;  %2441 = vperm.xlu1 %5705, %v6930_v19  }
 0x3c7   : > { %13411 = vst [vmem:[#allocation315_spill] sm:$0xff] %v7709_v15 }
 0x3c9   : > { %v7712_v24 = vpop.permute.xlu1 %2165 }
 0x3ca   : > { %13412 = vst [vmem:[#allocation316_spill] sm:$0xff] %v7712_v24  ;;  %3161 = vperm.xlu0 %5711, %v6958_v41   ;;  %v7715_v6 = vpop.permute.xlu0 %2717  ;;  %2520 = vrot.lane.b32.xlu1 %v6962_v46, %s6023_s12 }
 0x3cb   : > { %13413 = vst [vmem:[#allocation317_spill] sm:$0xff] %v7715_v6  ;;  %5706 = vset.pattern.permute.xlu1 %v13259_v36 }
 0x3cd   : > { %v7720_v50 = vpop.permute.xlu1 %2226 }
 0x3ce   : > { %3157 = vperm.xlu0 %5711, %v7082_v1   ;;  %2786 = vrot.lane.b32.xlu1 %v6971_v25, %s6025_s17 }
 0x3cf   : > { %v7725_v15 = vpop.permute.xlu0 %1637 }
 0x3d0   : > { %13414 = vst [vmem:[#allocation318_spill] sm:$0xff] %v7725_v15 }
 0x3d1   : > { %v7727_v63 = vpop.permute.xlu1 %2449 }
 0x3d2   : > { %13415 = vst [vmem:[#allocation319_spill] sm:$0xff] %v7727_v63  ;;  %3153 = vperm.xlu0 %5711, %v6944_v29   ;;  %2802 = vrot.lane.b32.xlu1 %v6986_v31, %s6025_s17 }
 0x3d3   : > { %v7732_v6 = vpop.permute.xlu0 %1649 }
 0x3d4   : > { %13416 = vst [vmem:[#allocation320_spill] sm:$0xff] %v7732_v6 }
 0x3d5   : > { %v7734_v24 = vpop.permute.xlu1 %2524 }
 0x3d6   : > { %3149 = vperm.xlu0 %5711, %v7068_v12   ;;  %3068 = vrot.lane.b32.xlu1 %v6999_v27, %s13336_s22 }
 0x3d7   : > { %v7739_v1 = vpop.permute.xlu0 %1657 }
 0x3d8   : > { %13417 = vst [vmem:[#allocation321_spill] sm:$0xff] %v7739_v1 }
 0x3d9   : > { %v7741_v36 = vpop.permute.xlu1 %2790 }
 0x3da   : > { %13418 = vst [vmem:[#allocation322_spill] sm:$0xff] %v7741_v36  ;;  %3145 = vperm.xlu0 %5711, %v7054_v9   ;;  %3084 = vrot.lane.b32.xlu1 %v7014_v57, %s13336_s22  ;;  %v13607_v36 = vld [vmem:[#allocation263_spill] sm:$0xff] }
 0x3db   : > { %v7746_v29 = vpop.permute.xlu0 %1665 }
 0x3dc   : > { %13419 = vst [vmem:[#allocation323_spill] sm:$0xff] %v7746_v29 }
 0x3dd   : > { %v7748_v15 = vpop.permute.xlu1 %2806 }
 0x3de   : > { %13420 = vst [vmem:[#allocation324_spill] sm:$0xff] %v7748_v15  ;;  %3141 = vperm.xlu0 %5711, %v6930_v19   ;;  %2297 = vperm.xlu1 %5706, %v7039_v42  }
 0x3df   : > { %v7752_v12 = vpop.permute.xlu0 %2885 }
 0x3e0   : > { %13421 = vst [vmem:[#allocation325_spill] sm:$0xff] %v7752_v12  ;;  %v13597_v12 = vld [vmem:[#allocation230_spill] sm:$0xff] }
 0x3e1   : > { %v7754_v6 = vpop.permute.xlu1 %3072 }
 0x3e2   : > { %13422 = vst [vmem:[#allocation326_spill] sm:$0xff] %v7754_v6  ;;  %2920 = vrot.lane.b32.xlu0 %v6896_v34, %s12915_s19  ;;  %2378 = vrot.lane.b32.xlu1 %v6934_v60, %s6024_s13  ;;  %v13494_v6 = vld [vmem:[#allocation18_spill] sm:$0xff] }
 0x3e3   : > { %v7760_v9 = vpop.permute.xlu0 %2881  ;;  %5713 = vset.pattern.permute.xlu1 %v13246_v47 }
 0x3e4   : > { %13423 = vst [vmem:[#allocation327_spill] sm:$0xff] %v7760_v9 }
 0x3e5   : > { %v7763_v29 = vpop.permute.xlu1 %3088 }
 0x3e6   : > { %13424 = vst [vmem:[#allocation328_spill] sm:$0xff] %v7763_v29  ;;  %3137 = vperm.xlu0 %5711, %v7039_v42   ;;  %2644 = vrot.lane.b32.xlu1 %v6948_v4, %s6026_s18 }
 0x3e7   : > { %v7768_v19 = vpop.permute.xlu0 %2877 }
 0x3e8   : > { %13425 = vst [vmem:[#allocation329_spill] sm:$0xff] %v7768_v19 }
 0x3e9   : > { %v7770_v1 = vpop.permute.xlu1 %2305 }
 0x3ea   : > { %13426 = vst [vmem:[#allocation330_spill] sm:$0xff] %v7770_v1  ;;  %5712 = vset.pattern.permute.xlu0 %v13277_v32  ;;  %2660 = vrot.lane.b32.xlu1 %v6962_v46, %s6026_s18 }
 0x3eb   : > { %931 = vperm.xlu0 %5712, %v6981_v5   ;;  %v7776_v28 = vpop.permute.xlu0 %2873 }
 0x3ec   : > { %13427 = vst [vmem:[#allocation331_spill] sm:$0xff] %v7776_v28 }
 0x3ed   : > { %v7778_v47 = vpop.permute.xlu1 %2382 }
 0x3ee   : > { %13428 = vst [vmem:[#allocation332_spill] sm:$0xff] %v7778_v47  ;;  %2926 = vrot.lane.b32.xlu1 %v6971_v25, %s12915_s19 }
 0x3ef   : > { %943 = vperm.xlu0 %5712, %v6994_v45   ;;  %v7783_v42 = vpop.permute.xlu0 %2869 }
 0x3f0   : > { %13429 = vst [vmem:[#allocation333_spill] sm:$0xff] %v7783_v42 }
 0x3f1   : > { %v7785_v63 = vpop.permute.xlu1 %2648 }
 0x3f2   : > { %13430 = vst [vmem:[#allocation334_spill] sm:$0xff] %v7785_v63  ;;  %2942 = vrot.lane.b32.xlu1 %v6986_v31, %s12915_s19 }
 0x3f3   : > { %951 = vperm.xlu0 %5712, %v7009_v0   ;;  %v7790_v32 = vpop.permute.xlu0 %2865 }
 0x3f4   : > { %13431 = vst [vmem:[#allocation335_spill] sm:$0xff] %v7790_v32 }
 0x3f5   : > { %v7792_v5 = vpop.permute.xlu1 %2664 }
 0x3f6   : > { %13432 = vst [vmem:[#allocation336_spill] sm:$0xff] %v7792_v5  ;;  %2220 = vrot.lane.b32.xlu1 %v6896_v34, %s6021_s26  ;;  %v13601_v5 = vld [vmem:[#allocation218_spill] sm:$0xff] }
 0x3f7   : > { %2185 = vperm.xlu0 %5712, %v7096_v17   ;;  %v7797_v1 = vpop.permute.xlu0 %2861 }
 0x3f8   : > { %13433 = vst [vmem:[#allocation337_spill] sm:$0xff] %v7797_v1 }
 0x3f9   : > { %v7799_v45 = vpop.permute.xlu1 %2930 }
 0x3fa   : > { %13434 = vst [vmem:[#allocation338_spill] sm:$0xff] %v7799_v45  ;;  %2236 = vrot.lane.b32.xlu1 %v6909_v44, %s6021_s26 }
 0x3fb   : > { %2181 = vperm.xlu0 %5712, %v6958_v41   ;;  %v7804_v42 = vpop.permute.xlu0 %2640 }
 0x3fc   : > { %13435 = vst [vmem:[#allocation339_spill] sm:$0xff] %v7804_v42 }
 0x3fd   : > { %v7806_v0 = vpop.permute.xlu1 %2946 }
 0x3fe   : > { %13436 = vst [vmem:[#allocation340_spill] sm:$0xff] %v7806_v0  ;;  %2502 = vrot.lane.b32.xlu1 %v6919_v8, %s6023_s12  ;;  %v13466_v0 = vld [vmem:[#allocation10_spill] sm:$0xff] }
 0x3ff   : > { %v7810_v32 = vpop.permute.xlu0 %2857 }
 0x400   : > { %13437 = vst [vmem:[#allocation341_spill] sm:$0xff] %v7810_v32 }
 0x401   : > { %v7812_v28 = vpop.permute.xlu1 %2161 }
 0x402   : > { %13438 = vst [vmem:[#allocation342_spill] sm:$0xff] %v7812_v28  ;;  %2518 = vrot.lane.b32.xlu1 %v6934_v60, %s6023_s12 }
 0x404   : > { %v7816_v17 = vpop.permute.xlu0 %1783 }
 0x405   : > { %13439 = vst [vmem:[#allocation343_spill] sm:$0xff] %v7816_v17  ;;  %v7818_v1 = vpop.permute.xlu1 %2224 }
 0x406   : > { %13440 = vst [vmem:[#allocation344_spill] sm:$0xff] %v7818_v1  ;;  %2784 = vrot.lane.b32.xlu1 %v6948_v4, %s6025_s17 }
 0x408   : > { %v7822_v41 = vpop.permute.xlu0 %1795 }
 0x409   : > { %13441 = vst [vmem:[#allocation345_spill] sm:$0xff] %v7822_v41  ;;  %v7824_v42 = vpop.permute.xlu1 %2445 }
 0x40a   : > { %13442 = vst [vmem:[#allocation346_spill] sm:$0xff] %v7824_v42  ;;  %2800 = vrot.lane.b32.xlu1 %v6962_v46, %s6025_s17 }
 0x40c   : > { %v7828_v32 = vpop.permute.xlu0 %1803 }
 0x40d   : > { %13443 = vst [vmem:[#allocation347_spill] sm:$0xff] %v7828_v32  ;;  %v7830_v28 = vpop.permute.xlu1 %2522 }
 0x40e   : > { %13444 = vst [vmem:[#allocation348_spill] sm:$0xff] %v7830_v28  ;;  %3066 = vrot.lane.b32.xlu1 %v6971_v25, %s13336_s22  ;;  %v13488_v28 = vld [vmem:[#allocation185_spill] sm:$0xff] }
 0x410   : > { %v7834_v17 = vpop.permute.xlu0 %3025 }
 0x411   : > { %13445 = vst [vmem:[#allocation349_spill] sm:$0xff] %v7834_v17  ;;  %v7836_v1 = vpop.permute.xlu1 %2788 }
 0x412   : > { %13446 = vst [vmem:[#allocation350_spill] sm:$0xff] %v7836_v1  ;;  %3082 = vrot.lane.b32.xlu1 %v6986_v31, %s13336_s22 }
 0x414   : > { %v7840_v41 = vpop.permute.xlu0 %3021 }
 0x415   : > { %13447 = vst [vmem:[#allocation351_spill] sm:$0xff] %v7840_v41  ;;  %v7842_v42 = vpop.permute.xlu1 %2804  ;;  %v1032_v41 = vsel %vm1022_vm1, %v6635_v52, %v6609_v54  ;;  %v891_v54 = vsel %vm881_vm2, %v6629_v61, %v6595_v55  ;;  %v13460_v55 = vld [vmem:[#allocation132_spill] sm:$0xff] }
 0x416   : > { %13448 = vst [vmem:[#allocation352_spill] sm:$0xff] %v7842_v42  ;;  %2376 = vrot.lane.b32.xlu1 %v6909_v44, %s6024_s13  ;;  %v1054_v52 = vmul.f32 %v6714_v49, %v1032_v41  ;;  %v1450_v41 = vsel %vm1448_vm6, %v6611_v35, %v6645_v37  ;;  %v13463_v37 = vld [vmem:[#allocation9_spill] sm:$0xff] }
 0x418   : > { %v7846_v32 = vpop.permute.xlu0 %3017 }
 0x419   : > { %13449 = vst [vmem:[#allocation353_spill] sm:$0xff] %v7846_v32  ;;  %v7848_v45 = vpop.permute.xlu1 %3070  ;;  %v7869_v32 = vsub.s32 1, %v6677_v48  ;;  %v1174_v48 = vsel %vm1164_vm4, %v6637_v23, %v6603_v16  ;;  %v13457_v16 = vld [vmem:[#allocation7_spill] sm:$0xff] }
 0x41a   : > { %13450 = vst [vmem:[#allocation354_spill] sm:$0xff] %v7848_v45  ;;  %2642 = vrot.lane.b32.xlu1 %v6919_v8, %s6026_s18  ;;  %v1316_v45 = vsel %vm1306_vm3, %v6643_v62, %v6617_v14  ;;  %v1035_v14 = vsel %vm1022_vm1, %v6890_v30, %v6867_v18  ;;  %v7905_v18 = vmul.f32 %v13457_v16, %v6395_v33  ;;  %v13459_v30 = vld [vmem:[#allocation105_spill] sm:$0xff]  ;;  %v13470_v33 = vld [vmem:[#allocation100_spill] sm:$0xff] }
 0x41b   : > { %13454 = vst [vmem:[#allocation358_spill] sm:$0xff] %v7869_v32  ;;  %v7924_v16 = vmul.f32 %v13470_v33, %v1174_v48  ;;  %v13478_v48 = vld [vmem:[#allocation161_spill] sm:$0xff] }
 0x41c   : > { %v7852_v17 = vpop.permute.xlu0 %3013  ;;  %13458 = vst [vmem:[#allocation361_spill] sm:$0xff] %v7905_v18  ;;  %v13472_v18 = vld [vmem:[#allocation71_spill] sm:$0xff] }
 0x41d   : > { %13451 = vst [vmem:[#allocation355_spill] sm:$0xff] %v7852_v17  ;;  %v7854_v1 = vpop.permute.xlu1 %3086  ;;  %v1592_v17 = vsel %vm1590_vm5, %v6627_v11, %v6651_v13  ;;  %v1338_v13 = vmul.f32 %v6754_v39, %v1316_v45  ;;  %v1319_v11 = vsel %vm1306_vm3, %v6898_v56, %v6874_v10  ;;  %v13461_v45 = vld [vmem:[#allocation125_spill] sm:$0xff]  ;;  %v13468_v56 = vld [vmem:[#allocation94_spill] sm:$0xff] }
 0x41e   : > { %13452 = vst [vmem:[#allocation356_spill] sm:$0xff] %v7854_v1  ;;  %2658 = vrot.lane.b32.xlu1 %v6934_v60, %s6026_s18  ;;  %v1622_v23 = vmul.f32 %v13459_v30, %v1592_v17  ;;  %v1595_v61 = vsel %vm1590_vm5, %v13461_v45, %v13460_v55  ;;  %v13471_v17 = vld [vmem:[#allocation80_spill] sm:$0xff]  ;;  %v1060_v55 = vmul.f32 %v6714_v49, %v1035_v14 }
 0x41f   : > { %v1734_v9 = vsel %vm1732_vm7, %v13472_v18, %v13471_v17  ;;  %v13479_v17 = vld [vmem:[#allocation27_spill] sm:$0xff]  ;;  %v13481_v18 = vld [vmem:[#allocation122_spill] sm:$0xff] }
 0x420   : > { %v7862_v42 = vpop.permute.xlu0 %3009  ;;  %v7947_v14 = vmul.f32 %v13479_v17, %v1338_v13  ;;  %v7964_v13 = vmul.f32 %v13488_v28, %v1734_v9  ;;  %v13490_v17 = vld [vmem:[#allocation124_spill] sm:$0xff] }
 0x421   : > { %13453 = vst [vmem:[#allocation357_spill] sm:$0xff] %v7862_v42  ;;  %v7875_v1 = vpop.permute.xlu1 %2301  ;;  %v13465_v42 = vld [vmem:[#allocation81_spill] sm:$0xff]  ;;  %v13498_v9 = vld [vmem:[#allocation140_spill] sm:$0xff] }
 0x422   : > { %13455 = vst [vmem:[#allocation359_spill] sm:$0xff] %v7875_v1  ;;  %2924 = vrot.lane.b32.xlu1 %v6948_v4, %s12915_s19  ;;  %v13462_v1 = vld [vmem:[#allocation49_spill] sm:$0xff]  ;;  %v7918_v10 = vmul.f32 %v13466_v0, %v13465_v42  ;;  %v13476_v42 = vld [vmem:[#allocation102_spill] sm:$0xff]  ;;  %13480 = vst [vmem:[#allocation365_spill] sm:$0xff] %v7947_v14 }
 0x423   : > { %v7914_v35 = vmul.f32 %v13463_v37, %v13462_v1  ;;  %v13474_v1 = vld [vmem:[#allocation16_spill] sm:$0xff]  ;;  %v7937_v0 = vmul.f32 %v13476_v42, %v1450_v41  ;;  %v1628_v41 = vmul.f32 %v13459_v30, %v1595_v61  ;;  %13489 = vst [vmem:[#allocation368_spill] sm:$0xff] %v7964_v13  ;;  %v13491_v14 = vld [vmem:[#allocation134_spill] sm:$0xff]  ;;  %v13493_v61 = vld [vmem:[#allocation159_spill] sm:$0xff] }
 0x424   : > { %v7901_v62 = vpop.permute.xlu0 %3005  ;;  %13467 = vst [vmem:[#allocation81_spill] sm:$0xff] %v7918_v10  ;;  %v7934_v37 = vmul.f32 %v13474_v1, %v1054_v52  ;;  %v13477_v10 = vld [vmem:[#allocation155_spill] sm:$0xff]  ;;  %v13483_v1 = vld [vmem:[#allocation157_spill] sm:$0xff]  ;;  %v13501_v13 = vld [vmem:[#allocation30_spill] sm:$0xff] }
 0x425   : > { %13456 = vst [vmem:[#allocation360_spill] sm:$0xff] %v7901_v62  ;;  %13464 = vst [vmem:[#allocation49_spill] sm:$0xff] %v7914_v35  ;;  %v7921_v62 = vmul.f32 %v13468_v56, %v891_v54  ;;  %v7931_v45 = vpop.permute.xlu1 %2380  ;;  %v1344_v54 = vmul.f32 %v6754_v39, %v1319_v11  ;;  %v1037_v35 = vsel %vm1022_vm1, %v13478_v48, %v13477_v10  ;;  %v13484_v11 = vld [vmem:[#allocation163_spill] sm:$0xff] }
 0x426   : > { %13473 = vst [vmem:[#allocation363_spill] sm:$0xff] %v7931_v45  ;;  %13475 = vst [vmem:[#allocation364_spill] sm:$0xff] %v7934_v37  ;;  %2940 = vrot.lane.b32.xlu1 %v6962_v46, %s12915_s19  ;;  %v13482_v45 = vld [vmem:[#allocation131_spill] sm:$0xff]  ;;  %v1321_v37 = vsel %vm1306_vm3, %v13484_v11, %v13483_v1  ;;  %v7975_v1 = vmul.f32 %v13494_v6, %v1060_v55  ;;  %v13496_v11 = vld [vmem:[#allocation137_spill] sm:$0xff] }
 0x427   : > { %13469 = vst [vmem:[#allocation362_spill] sm:$0xff] %v7921_v62  ;;  %v894_v52 = vsel %vm881_vm2, %v13482_v45, %v13481_v18  ;;  %v13486_v10 = vld [vmem:[#allocation39_spill] sm:$0xff]  ;;  %v1177_v18 = vsel %vm1164_vm4, %v13491_v14, %v13490_v17  ;;  %v13492_v45 = vld [vmem:[#allocation165_spill] sm:$0xff]  ;;  %v1064_v17 = vmul.f32 %v6714_v49, %v1037_v35  ;;  %v7989_v29 = vmul.f32 %v13501_v13, %v1344_v54  ;;  %v13505_v6 = vld [vmem:[#allocation164_spill] sm:$0xff] }
 0x428   : > { %v7958_v62 = vpop.permute.xlu0 %3001  ;;  %v7961_v48 = vmul.f32 %v13486_v10, %v1622_v23  ;;  %v1597_v19 = vsel %vm1590_vm5, %v13493_v61, %v13492_v45  ;;  %13495 = vst [vmem:[#allocation369_spill] sm:$0xff] %v7975_v1  ;;  %v13499_v10 = vld [vmem:[#allocation127_spill] sm:$0xff]  ;;  %v7992_v55 = vmul.f32 %v13468_v56, %v894_v52  ;;  %v1348_v45 = vmul.f32 %v6754_v39, %v1321_v37  ;;  %v13504_v61 = vld [vmem:[#allocation156_spill] sm:$0xff]  ;;  %v13508_v37 = vld [vmem:[#allocation158_spill] sm:$0xff] }
 0x429   : > { %13485 = vst [vmem:[#allocation366_spill] sm:$0xff] %v7958_v62  ;;  %v13497_v62 = vld [vmem:[#allocation126_spill] sm:$0xff]  ;;  %v7986_v14 = vpop.permute.xlu1 %2646  ;;  %13502 = vst [vmem:[#allocation371_spill] sm:$0xff] %v7989_v29  ;;  %v13506_v35 = vld [vmem:[#allocation44_spill] sm:$0xff]  ;;  %v1202_v52 = vmul.f32 %v13470_v33, %v1177_v18  ;;  %v1632_v13 = vmul.f32 %v13459_v30, %v1597_v19 }
 0x42a   : > { %13487 = vst [vmem:[#allocation367_spill] sm:$0xff] %v7961_v48  ;;  %v1453_v23 = vsel %vm1448_vm6, %v13497_v62, %v13496_v11  ;;  %v1737_v48 = vsel %vm1732_vm7, %v13499_v10, %v13498_v9  ;;  %13500 = vst [vmem:[#allocation370_spill] sm:$0xff] %v7986_v14  ;;  %v896_v11 = vsel %vm881_vm2, %v13505_v6, %v13504_v61  ;;  %v2128_v9 = vld [vmem:[%s12460_s4] ss:$8 sm:$0x3]  ;;  %2500 = vrot.lane.b32.xlu1 %v6896_v34, %s6023_s12  ;;  %v13509_v10 = vld [vmem:[#allocation166_spill] sm:$0xff] }
 0x42b   : > { %13503 = vst [vmem:[#allocation372_spill] sm:$0xff] %v7992_v55  ;;  %v8005_v54 = vmul.f32 %v13506_v35, %v1628_v41  ;;  %v1179_v62 = vsel %vm1164_vm4, %v13509_v10, %v13508_v37  ;;  %v8016_v6 = vmul.f32 %v13476_v42, %v1453_v23  ;;  %v8019_v39 = vmul.f32 %v13488_v28, %v1737_v48  ;;  %v13512_v49 = vld [vmem:[#allocation168_spill] sm:$0xff]  ;;  %v13514_v35 = vld [vmem:[#allocation170_spill] sm:$0xff] }
 0x42c   : > { %v8013_v61 = vpop.permute.xlu0 %2997  ;;  %v13513_v41 = vld [vmem:[#allocation160_spill] sm:$0xff]  ;;  %v13515_v19 = vld [vmem:[#allocation162_spill] sm:$0xff]  ;;  %v8033_v10 = vmul.f32 %v13468_v56, %v896_v11  ;;  %v8036_v23 = vrot.slane %v2128_v9, %v6692_v21  ;;  %v8039_v48 = vrot.slane %v2128_v9, %v7869_v32  ;;  %v1206_v11 = vmul.f32 %v13470_v33, %v1179_v62  ;;  %v13525_v56 = vld [vmem:[#allocation183_spill] sm:$0xff] }
 0x42d   : > { %13507 = vst [vmem:[#allocation373_spill] sm:$0xff] %v8005_v54  ;;  %13510 = vst [vmem:[#allocation374_spill] sm:$0xff] %v8013_v61  ;;  %v1455_v18 = vsel %vm1448_vm6, %v13513_v41, %v13512_v49  ;;  %v1739_v30 = vsel %vm1732_vm7, %v13515_v19, %v13514_v35  ;;  %v13516_v54 = vld [vmem:[#allocation20_spill] sm:$0xff]  ;;  %v8047_v19 = vpop.permute.xlu1 %2662  ;;  %v13527_v14 = vld [vmem:[#allocation186_spill] sm:$0xff] }
 0x42e   : > { %13511 = vst [vmem:[#allocation375_spill] sm:$0xff] %v8019_v39  ;;  %v8030_v37 = vmul.f32 %v13516_v54, %v1064_v17  ;;  %13518 = vst [vmem:[#allocation377_spill] sm:$0xff] %v8033_v10  ;;  %v5557_v49 = vld [vmem:[%s12460_s4 + $0x1] ss:$8 sm:$0x3]  ;;  %v13524_v54 = vld [vmem:[#allocation193_spill] sm:$0xff]  ;;  %2516 = vrot.lane.b32.xlu1 %v6909_v44, %s6023_s12  ;;  %v8070_v62 = vmul.f32 %v13476_v42, %v1455_v18 }
 0x42f   : > { %13519 = vst [vmem:[#allocation378_spill] sm:$0xff] %v8036_v23  ;;  %13520 = vst [vmem:[#allocation379_spill] sm:$0xff] %v8039_v48  ;;  %v5558_v35 = vld [vmem:[%s12460_s4 + $0x2] ss:$8 sm:$0x3]  ;;  %v1879_v9 = vsel %vm1874_vm8, %v13525_v56, %v13524_v54  ;;  %v8073_v54 = vmul.f32 %v13488_v28, %v1739_v30  ;;  %v13531_v56 = vld [vmem:[#allocation201_spill] sm:$0xff] }
 0x430   : > { %13517 = vst [vmem:[#allocation376_spill] sm:$0xff] %v8030_v37  ;;  %13521 = vst [vmem:[#allocation380_spill] sm:$0xff] %v8047_v19  ;;  %v13522_v17 = vld [vmem:[#allocation31_spill] sm:$0xff]  ;;  %v13526_v61 = vld [vmem:[#allocation196_spill] sm:$0xff]  ;;  %v8089_v18 = vrot.slane %v5558_v35, %v6692_v21  ;;  %v8092_v30 = vrot.slane %v5558_v35, %v7869_v32 }
 0x431   : > { %v8050_v41 = vmul.f32 %v13522_v17, %v1348_v45  ;;  %v1881_v37 = vsel %vm1874_vm8, %v13527_v14, %v13526_v61  ;;  %v5559_v29 = vld [vmem:[%s12460_s4 + $0x3] ss:$8 sm:$0x3]  ;;  %v13528_v45 = vld [vmem:[#allocation46_spill] sm:$0xff]  ;;  %13530 = vst [vmem:[#allocation383_spill] sm:$0xff] %v8073_v54  ;;  %v13549_v39 = vld [vmem:[#allocation209_spill] sm:$0xff] }
 0x432   : > { %v8067_v17 = vmul.f32 %v13528_v45, %v1632_v13  ;;  %v13532_v33 = vld [vmem:[#allocation194_spill] sm:$0xff]  ;;  %v5560_v14 = vld [vmem:[%s12460_s4 + $0x5] ss:$8 sm:$0x3]  ;;  %v8086_v13 = vrot.slane %v5557_v49, %v7869_v32  ;;  %13535 = vst [vmem:[#allocation386_spill] sm:$0xff] %v8089_v18  ;;  %13536 = vst [vmem:[#allocation387_spill] sm:$0xff] %v8092_v30  ;;  %v8094_v45 = vpop.permute.xlu0 %1921  ;;  %v8099_v28 = vrot.slane %v5559_v29, %v6692_v21  ;;  %2782 = vrot.lane.b32.xlu1 %v6919_v8, %s6025_s17 }
 0x433   : > { %13523 = vst [vmem:[#allocation381_spill] sm:$0xff] %v8050_v41  ;;  %v1876_v61 = vsel %vm1874_vm8, %v13532_v33, %v13531_v56  ;;  %v8083_v41 = vrot.slane %v5557_v49, %v6692_v21  ;;  %13537 = vst [vmem:[#allocation388_spill] sm:$0xff] %v8094_v45  ;;  %v1912_v56 = vmul.f32 %v7298_v38, %v1879_v9  ;;  %v8104_v49 = vpop.permute.xlu1 %2928  ;;  %v13541_v19 = vld [vmem:[#allocation202_spill] sm:$0xff]  ;;  %v13547_v10 = vld [vmem:[#allocation208_spill] sm:$0xff] }
 0x434   : > { %13529 = vst [vmem:[#allocation382_spill] sm:$0xff] %v8067_v17  ;;  %13534 = vst [vmem:[#allocation385_spill] sm:$0xff] %v8086_v13  ;;  %v1916_v33 = vmul.f32 %v7298_v38, %v1881_v37  ;;  %v8102_v42 = vrot.slane %v5559_v29, %v7869_v32  ;;  %v1906_v17 = vmul.f32 %v7298_v38, %v1876_v61  ;;  %v5561_v37 = vld [vmem:[%s12460_s4 + $0x6] ss:$8 sm:$0x3] }
 0x435   : > { %13533 = vst [vmem:[#allocation384_spill] sm:$0xff] %v8083_v41  ;;  %13538 = vst [vmem:[#allocation389_spill] sm:$0xff] %v8099_v28  ;;  %v8109_v35 = vmul.f32 %v13541_v19, %v6999_v27  ;;  %v8112_v45 = vrot.slane %v5560_v14, %v6692_v21  ;;  %v8115_v9 = vrot.slane %v5560_v14, %v7869_v32  ;;  %v13542_v27 = vld [vmem:[#allocation204_spill] sm:$0xff]  ;;  %v13545_v14 = vld [vmem:[#allocation207_spill] sm:$0xff] }
 0x436   : > { %13539 = vst [vmem:[#allocation390_spill] sm:$0xff] %v8102_v42  ;;  %13540 = vst [vmem:[#allocation391_spill] sm:$0xff] %v8104_v49  ;;  %v8124_v29 = vmul.f32 %v13541_v19, %v7014_v57  ;;  %v8128_v61 = vmul.f32 %v13542_v27, %v7047_v43  ;;  %v8132_v38 = vmul.f32 %v13542_v27, %v7061_v20  ;;  %v13551_v57 = vld [vmem:[#allocation222_spill] sm:$0xff]  ;;  %v13552_v19 = vld [vmem:[#allocation220_spill] sm:$0xff]  ;;  %v8152_v27 = vpop.permute.xlu0 %1933  ;;  %2798 = vrot.lane.b32.xlu1 %v6934_v60, %s6025_s17 }
 0x437   : > { %v8136_v49 = vmul.f32 %v13545_v14, %v7924_v16  ;;  %v8139_v54 = vmul.f32 %v13547_v10, %v1906_v17  ;;  %v8142_v1 = vmul.f32 %v13549_v39, %v1202_v52  ;;  %v2118_v43 = vsel %vm881_vm2, %v13552_v19, %v13551_v57  ;;  %13553 = vst [vmem:[#allocation222_spill] sm:$0xff] %v8152_v27  ;;  %v13554_v16 = vld [vmem:[#allocation212_spill] sm:$0xff]  ;;  %v13556_v17 = vld [vmem:[#allocation241_spill] sm:$0xff]  ;;  %v13557_v10 = vld [vmem:[#allocation226_spill] sm:$0xff] }
 0x438   : > { %13543 = vst [vmem:[#allocation202_spill] sm:$0xff] %v8128_v61  ;;  %13544 = vst [vmem:[#allocation204_spill] sm:$0xff] %v8132_v38  ;;  %v2126_v20 = vsel %vm881_vm2, %v13551_v57, %v13552_v19  ;;  %v8155_v14 = vmul.f32 %v13554_v16, %v1206_v11  ;;  %v2267_v52 = vsel %vm1022_vm1, %v13557_v10, %v13556_v17  ;;  %v8167_v61 = vpop.permute.xlu1 %2944  ;;  %v13561_v19 = vld [vmem:[#allocation216_spill] sm:$0xff]  ;;  %v13563_v11 = vld [vmem:[#allocation223_spill] sm:$0xff] }
 0x439   : > { %13546 = vst [vmem:[#allocation392_spill] sm:$0xff] %v8136_v49  ;;  %13548 = vst [vmem:[#allocation393_spill] sm:$0xff] %v8139_v54  ;;  %v8162_v39 = vrot.slane %v5561_v37, %v6692_v21  ;;  %v8165_v38 = vrot.slane %v5561_v37, %v7869_v32  ;;  %v13559_v54 = vld [vmem:[#allocation214_spill] sm:$0xff]  ;;  %v8173_v27 = vmul.f32 %v13561_v19, %v1916_v33 }
 0x43a   : > { %13550 = vst [vmem:[#allocation394_spill] sm:$0xff] %v8142_v1  ;;  %13555 = vst [vmem:[#allocation220_spill] sm:$0xff] %v8155_v14  ;;  %v8170_v57 = vmul.f32 %v13559_v54, %v1912_v56  ;;  %v8177_v16 = vmul.f32 %v13563_v11, %v6971_v25  ;;  %v2259_v14 = vsel %vm1022_vm1, %v13556_v17, %v13557_v10  ;;  %v13566_v25 = vld [vmem:[#allocation225_spill] sm:$0xff]  ;;  %v5562_v10 = vld [vmem:[%s12460_s4 + $0x7] ss:$8 sm:$0x3]  ;;  %v8215_v54 = vpop.permute.xlu0 %1941  ;;  %3064 = vrot.lane.b32.xlu1 %v6948_v4, %s13336_s22 }
 0x43b   : > { %13558 = vst [vmem:[#allocation241_spill] sm:$0xff] %v8167_v61  ;;  %13562 = vst [vmem:[#allocation395_spill] sm:$0xff] %v8173_v27  ;;  %v8187_v37 = vmul.f32 %v13563_v11, %v6986_v31  ;;  %v8190_v56 = vmul.f32 %v8036_v23, %v2126_v20  ;;  %v8193_v33 = vmul.f32 %v8039_v48, %v2118_v43  ;;  %v13567_v31 = vld [vmem:[#allocation237_spill] sm:$0xff]  ;;  %v13568_v11 = vld [vmem:[#allocation235_spill] sm:$0xff] }
 0x43c   : > { %13560 = vst [vmem:[#allocation226_spill] sm:$0xff] %v8170_v57  ;;  %v8197_v19 = vmul.f32 %v13566_v25, %v7023_v40  ;;  %v8204_v17 = vmul.f32 %v13566_v25, %v7032_v53  ;;  %v2119_v20 = vsel %vm881_vm2, %v13568_v11, %v13567_v31  ;;  %v2127_v43 = vsel %vm881_vm2, %v13567_v31, %v13568_v11  ;;  %v13570_v27 = vld [vmem:[#allocation227_spill] sm:$0xff]  ;;  %v8230_v31 = vpop.permute.xlu1 %2157  ;;  %v13577_v11 = vld [vmem:[#allocation233_spill] sm:$0xff]  ;;  %v13585_v1 = vld [vmem:[#allocation228_spill] sm:$0xff] }
 0x43d   : > { %13564 = vst [vmem:[#allocation223_spill] sm:$0xff] %v8190_v56  ;;  %13565 = vst [vmem:[#allocation396_spill] sm:$0xff] %v8193_v33  ;;  %v2294_v40 = vmul.f32 %v8083_v41, %v2267_v52  ;;  %v8219_v33 = vmul.f32 %v13570_v27, %v7075_v2  ;;  %v8223_v53 = vmul.f32 %v13570_v27, %v7089_v22  ;;  %v13573_v56 = vld [vmem:[#allocation224_spill] sm:$0xff]  ;;  %v13574_v57 = vld [vmem:[#allocation247_spill] sm:$0xff] }
 0x43e   : > { %13569 = vst [vmem:[#allocation225_spill] sm:$0xff] %v8215_v54  ;;  %v2295_v25 = vmul.f32 %v8086_v13, %v2259_v14  ;;  %v2407_v61 = vsel %vm1164_vm4, %v13574_v57, %v13573_v56  ;;  %13575 = vst [vmem:[#allocation227_spill] sm:$0xff] %v8230_v31  ;;  %v13576_v52 = vld [vmem:[#allocation257_spill] sm:$0xff]  ;;  %v8241_v22 = vrot.slane %v5562_v10, %v6692_v21  ;;  %v13582_v4 = vld [vmem:[#allocation239_spill] sm:$0xff]  ;;  %3080 = vrot.lane.b32.xlu1 %v6962_v46, %s13336_s22 }
 0x43f   : > { %13571 = vst [vmem:[#allocation237_spill] sm:$0xff] %v8219_v33  ;;  %13572 = vst [vmem:[#allocation235_spill] sm:$0xff] %v8223_v53  ;;  %v2117_v54 = vsel %vm881_vm2, %v13577_v11, %v13576_v52  ;;  %v2125_v2 = vsel %vm881_vm2, %v13576_v52, %v13577_v11  ;;  %v8244_v14 = vrot.slane %v5562_v10, %v7869_v32  ;;  %v13580_v53 = vld [vmem:[#allocation244_spill] sm:$0xff]  ;;  %v13581_v33 = vld [vmem:[#allocation231_spill] sm:$0xff] }
 0x440   : > { %v8249_v27 = vmul.f32 %v8036_v23, %v2127_v43  ;;  %v8252_v31 = vmul.f32 %v8039_v48, %v2119_v20  ;;  %v2115_v52 = vsel %vm881_vm2, %v13581_v33, %v13580_v53  ;;  %v2123_v10 = vsel %vm881_vm2, %v13580_v53, %v13581_v33  ;;  %v5563_v11 = vld [vmem:[%s12460_s4 + $0x10] ss:$8 sm:$0x3]  ;;  %v8277_v33 = vpop.permute.xlu0 %1949 }
 0x441   : > { %v8266_v43 = vmul.f32 %v13582_v4, %v2294_v40  ;;  %v2399_v20 = vsel %vm1164_vm4, %v13573_v56, %v13574_v57  ;;  %13586 = vst [vmem:[#allocation233_spill] sm:$0xff] %v8277_v33  ;;  %v8280_v53 = vmul.f32 %v13582_v4, %v2295_v25  ;;  %v2151_v57 = vmul.f32 %v8039_v48, %v2117_v54 }
 0x442   : > { %13578 = vst [vmem:[#allocation224_spill] sm:$0xff] %v8249_v27  ;;  %13579 = vst [vmem:[#allocation247_spill] sm:$0xff] %v8252_v31  ;;  %v2434_v31 = vmul.f32 %v8089_v18, %v2407_v61  ;;  %v13584_v27 = vld [vmem:[#allocation251_spill] sm:$0xff]  ;;  %v8288_v61 = vpop.permute.xlu1 %2222  ;;  %v8291_v56 = vmul.f32 %v8036_v23, %v2123_v10  ;;  %v8294_v55 = vmul.f32 %v8039_v48, %v2115_v52  ;;  %2656 = vrot.lane.b32.xlu1 %v6909_v44, %s6026_s18 }
 0x443   : > { %13583 = vst [vmem:[#allocation257_spill] sm:$0xff] %v8266_v43  ;;  %v2266_v49 = vsel %vm1022_vm1, %v13585_v1, %v13584_v27  ;;  %13587 = vst [vmem:[#allocation244_spill] sm:$0xff] %v8280_v53  ;;  %v2258_v40 = vsel %vm1022_vm1, %v13584_v27, %v13585_v1  ;;  %v2150_v43 = vmul.f32 %v8036_v23, %v2125_v2  ;;  %v13589_v2 = vld [vmem:[#allocation261_spill] sm:$0xff]  ;;  %v13590_v27 = vld [vmem:[#allocation232_spill] sm:$0xff] }
 0x444   : > { %13588 = vst [vmem:[#allocation231_spill] sm:$0xff] %v8288_v61  ;;  %v8297_v4 = vrot.slane %v5563_v11, %v6692_v21  ;;  %v8300_v25 = vrot.slane %v5563_v11, %v7869_v32  ;;  %v2435_v1 = vmul.f32 %v8092_v30, %v2399_v20  ;;  %v2292_v54 = vmul.f32 %v8083_v41, %v2266_v49  ;;  %v13591_v21 = vld [vmem:[#allocation243_spill] sm:$0xff]  ;;  %v13593_v32 = vld [vmem:[#allocation234_spill] sm:$0xff]  ;;  %v13594_v61 = vld [vmem:[#allocation269_spill] sm:$0xff]  ;;  %v8326_v46 = vpop.permute.xlu0 %3165 }
 0x445   : > { %v2398_v10 = vsel %vm1164_vm4, %v13590_v27, %v13589_v2  ;;  %v2406_v52 = vsel %vm1164_vm4, %v13589_v2, %v13590_v27  ;;  %v8315_v11 = vmul.f32 %v13591_v21, %v2434_v31  ;;  %v2293_v33 = vmul.f32 %v8086_v13, %v2258_v40  ;;  %13595 = vst [vmem:[#allocation251_spill] sm:$0xff] %v8326_v46  ;;  %v13596_v53 = vld [vmem:[#allocation255_spill] sm:$0xff]  ;;  %v13598_v2 = vld [vmem:[#allocation249_spill] sm:$0xff] }
 0x446   : > { %v2257_v49 = vsel %vm1022_vm1, %v13594_v61, %v13593_v32  ;;  %v2265_v20 = vsel %vm1022_vm1, %v13593_v32, %v13594_v61  ;;  %v2539_v31 = vsel %vm1306_vm3, %v13597_v12, %v13596_v53  ;;  %v2547_v40 = vsel %vm1306_vm3, %v13596_v53, %v13597_v12  ;;  %v8338_v63 = vpop.permute.xlu1 %2441  ;;  %v13600_v46 = vld [vmem:[#allocation279_spill] sm:$0xff]  ;;  %v13603_v53 = vld [vmem:[#allocation245_spill] sm:$0xff]  ;;  %2922 = vrot.lane.b32.xlu1 %v6919_v8, %s12915_s19 }
 0x447   : > { %13592 = vst [vmem:[#allocation239_spill] sm:$0xff] %v8315_v11  ;;  %v2198_v27 = vmul.f32 %v13598_v2, %v2150_v43  ;;  %v2199_v11 = vmul.f32 %v13598_v2, %v2151_v57  ;;  %13599 = vst [vmem:[#allocation228_spill] sm:$0xff] %v8338_v63  ;;  %v2432_v32 = vmul.f32 %v8089_v18, %v2406_v52 }
 0x448   : > { %v2433_v61 = vmul.f32 %v8092_v30, %v2398_v10  ;;  %v2116_v47 = vsel %vm881_vm2, %v13601_v5, %v13600_v46  ;;  %v2124_v12 = vsel %vm881_vm2, %v13600_v46, %v13601_v5  ;;  %v8353_v43 = vmul.f32 %v13591_v21, %v2435_v1  ;;  %v13606_v5 = vld [vmem:[#allocation265_spill] sm:$0xff]  ;;  %v8369_v1 = vpop.permute.xlu0 %3161 }
 0x449   : > { %v8356_v57 = vmul.f32 %v13603_v53, %v2292_v54  ;;  %v2290_v10 = vmul.f32 %v8083_v41, %v2265_v20  ;;  %v2291_v52 = vmul.f32 %v8086_v13, %v2257_v49  ;;  %v8361_v2 = vmul.f32 %v13603_v53, %v2293_v33  ;;  %13608 = vst [vmem:[#allocation234_spill] sm:$0xff] %v8369_v1 }
 0x44a   : > { %13602 = vst [vmem:[#allocation261_spill] sm:$0xff] %v8353_v43  ;;  %v2574_v63 = vmul.f32 %v8099_v28, %v2547_v40  ;;  %v2575_v46 = vmul.f32 %v8102_v42, %v2539_v31  ;;  %v2679_v21 = vsel %vm1448_vm6, %v13607_v36, %v13606_v5  ;;  %v2214_v54 = vadd.f32 %v2198_v27, %v8197_v19  ;;  %v8375_v53 = vpop.permute.xlu1 %2520  ;;  %v13610_v40 = vld [vmem:[#allocation253_spill] sm:$0xff]  ;;  %v13613_v19 = vld [vmem:[#allocation238_spill] sm:$0xff]  ;;  %v13614_v27 = vld [vmem:[#allocation283_spill] sm:$0xff] }
 0x44b   : > { %13604 = vst [vmem:[#allocation232_spill] sm:$0xff] %v8356_v57  ;;  %13605 = vst [vmem:[#allocation243_spill] sm:$0xff] %v8361_v2  ;;  %v2215_v20 = vadd.f32 %v2199_v11, %v8204_v17  ;;  %v2148_v49 = vmul.f32 %v8036_v23, %v2124_v12  ;;  %v2149_v33 = vmul.f32 %v8039_v48, %v2116_v47  ;;  %v13615_v11 = vld [vmem:[#allocation259_spill] sm:$0xff]  ;;  %v13616_v12 = vld [vmem:[#allocation273_spill] sm:$0xff]  ;;  %2938 = vrot.lane.b32.xlu1 %v6934_v60, %s12915_s19 }
 0x44c   : > { %13609 = vst [vmem:[#allocation269_spill] sm:$0xff] %v8375_v53  ;;  %v8378_v2 = vmul.f32 %v13610_v40, %v2432_v32  ;;  %v8381_v31 = vmul.f32 %v13610_v40, %v2433_v61  ;;  %v2687_v1 = vsel %vm1448_vm6, %v13606_v5, %v13607_v36  ;;  %v2405_v17 = vsel %vm1164_vm4, %v13614_v27, %v13613_v19  ;;  %v13617_v5 = vld [vmem:[#allocation236_spill] sm:$0xff]  ;;  %v13618_v53 = vld [vmem:[#allocation277_spill] sm:$0xff]  ;;  %v13619_v48 = vld [vmem:[#allocation275_spill] sm:$0xff] }
 0x44d   : > { %v8394_v47 = vmul.f32 %v8112_v45, %v2679_v21  ;;  %v2338_v32 = vmul.f32 %v13615_v11, %v2290_v10  ;;  %v2339_v61 = vmul.f32 %v13615_v11, %v2291_v52  ;;  %v2397_v36 = vsel %vm1164_vm4, %v13613_v19, %v13614_v27  ;;  %v8418_v19 = vpop.permute.xlu0 %3157  ;;  %v13621_v27 = vld [vmem:[#allocation267_spill] sm:$0xff] }
 0x44e   : > { %13611 = vst [vmem:[#allocation255_spill] sm:$0xff] %v8378_v2  ;;  %13612 = vst [vmem:[#allocation230_spill] sm:$0xff] %v8381_v31  ;;  %v2538_v40 = vsel %vm1306_vm3, %v13617_v5, %v13616_v12  ;;  %v2546_v21 = vsel %vm1306_vm3, %v13616_v12, %v13617_v5  ;;  %v2819_v10 = vsel %vm1590_vm5, %v13619_v48, %v13618_v53  ;;  %v13622_v2 = vld [vmem:[#allocation295_spill] sm:$0xff]  ;;  %v13623_v12 = vld [vmem:[#allocation240_spill] sm:$0xff]  ;;  %v8427_v57 = vpop.permute.xlu1 %2786 }
 0x44f   : > { %v2827_v52 = vsel %vm1590_vm5, %v13618_v53, %v13619_v48  ;;  %13620 = vst [vmem:[#allocation249_spill] sm:$0xff] %v8418_v19  ;;  %v2196_v11 = vmul.f32 %v13621_v27, %v2148_v49  ;;  %v2197_v23 = vmul.f32 %v13621_v27, %v2149_v33  ;;  %v2430_v31 = vmul.f32 %v8089_v18, %v2405_v17  ;;  %v13625_v53 = vld [vmem:[#allocation299_spill] sm:$0xff]  ;;  %v13626_v49 = vld [vmem:[#allocation242_spill] sm:$0xff] }
 0x450   : > { %v2264_v5 = vsel %vm1022_vm1, %v13623_v12, %v13622_v2  ;;  %13624 = vst [vmem:[#allocation279_spill] sm:$0xff] %v8427_v57  ;;  %v2431_v43 = vmul.f32 %v8092_v30, %v2397_v36  ;;  %v2256_v48 = vsel %vm1022_vm1, %v13622_v2, %v13623_v12  ;;  %v2537_v33 = vsel %vm1306_vm3, %v13626_v49, %v13625_v53 }
 0x451   : > { %v2545_v17 = vsel %vm1306_vm3, %v13625_v53, %v13626_v49  ;;  %v8445_v36 = vmul.f32 %v8115_v9, %v2687_v1  ;;  %v2354_v27 = vadd.f32 %v2338_v32, %v2214_v54  ;;  %v2355_v57 = vadd.f32 %v2339_v61, %v2215_v20  ;;  %v8456_v49 = vpop.permute.xlu0 %3153  ;;  %2780 = vrot.lane.b32.xlu1 %v6896_v34, %s6025_s17 }
 0x452   : > { %v2572_v2 = vmul.f32 %v8099_v28, %v2546_v21  ;;  %v2573_v12 = vmul.f32 %v8102_v42, %v2538_v40  ;;  %v8450_v19 = vmul.f32 %v8162_v39, %v2819_v10  ;;  %v8453_v15 = vmul.f32 %v8165_v38, %v2827_v52  ;;  %13629 = vst [vmem:[#allocation265_spill] sm:$0xff] %v8456_v49  ;;  %v8462_v32 = vpop.permute.xlu1 %2802  ;;  %v13631_v40 = vld [vmem:[#allocation282_spill] sm:$0xff]  ;;  %v13633_v10 = vld [vmem:[#allocation271_spill] sm:$0xff] }
 0x453   : > { %v2288_v53 = vmul.f32 %v8083_v41, %v2264_v5  ;;  %v2212_v7 = vadd.f32 %v2196_v11, %v8109_v35  ;;  %v2289_v1 = vmul.f32 %v8086_v13, %v2256_v48  ;;  %v2570_v54 = vmul.f32 %v8099_v28, %v2545_v17  ;;  %13630 = vst [vmem:[#allocation263_spill] sm:$0xff] %v8462_v32  ;;  %v13635_v11 = vld [vmem:[#allocation287_spill] sm:$0xff]  ;;  %v13636_v48 = vld [vmem:[#allocation285_spill] sm:$0xff] }
 0x454   : > { %13627 = vst [vmem:[#allocation218_spill] sm:$0xff] %v8450_v19  ;;  %13628 = vst [vmem:[#allocation245_spill] sm:$0xff] %v8453_v15  ;;  %v2571_v20 = vmul.f32 %v8102_v42, %v2537_v33  ;;  %v2213_v61 = vadd.f32 %v2197_v23, %v8124_v29  ;;  %v8466_v21 = vmul.f32 %v13631_v40, %v2574_v63  ;;  %v13637_v23 = vld [vmem:[#allocation291_spill] sm:$0xff]  ;;  %v13638_v29 = vld [vmem:[#allocation289_spill] sm:$0xff] }
 0x455   : > { %v2478_v52 = vmul.f32 %v13633_v10, %v2430_v31  ;;  %v2479_v5 = vmul.f32 %v13633_v10, %v2431_v43  ;;  %v8473_v35 = vmul.f32 %v13631_v40, %v2575_v46  ;;  %v2678_v33 = vsel %vm1448_vm6, %v13636_v48, %v13635_v11  ;;  %v13639_v31 = vld [vmem:[#allocation293_spill] sm:$0xff]  ;;  %v8496_v32 = vpop.permute.xlu0 %3149  ;;  %2796 = vrot.lane.b32.xlu1 %v6909_v44, %s6025_s17 }
 0x456   : > { %13632 = vst [vmem:[#allocation253_spill] sm:$0xff] %v8466_v21  ;;  %v2686_v63 = vsel %vm1448_vm6, %v13635_v11, %v13636_v48  ;;  %v2959_v43 = vsel %vm1732_vm7, %v13638_v29, %v13637_v23  ;;  %v2967_v46 = vsel %vm1732_vm7, %v13637_v23, %v13638_v29  ;;  %v2194_v17 = vmul.f32 %v13639_v31, %v8291_v56  ;;  %v13640_v10 = vld [vmem:[#allocation281_spill] sm:$0xff]  ;;  %v13642_v11 = vld [vmem:[#allocation284_spill] sm:$0xff]  ;;  %v13643_v21 = vld [vmem:[#allocation286_spill] sm:$0xff]  ;;  %v8504_v23 = vpop.permute.xlu1 %3068 }
 0x457   : > { %13634 = vst [vmem:[#allocation238_spill] sm:$0xff] %v8473_v35  ;;  %v2195_v40 = vmul.f32 %v13639_v31, %v8294_v55  ;;  %v2336_v49 = vmul.f32 %v13640_v10, %v2288_v53  ;;  %13641 = vst [vmem:[#allocation283_spill] sm:$0xff] %v8496_v32  ;;  %v8499_v48 = vmul.f32 %v13642_v11, %v2572_v2 }
 0x458   : > { %v2337_v35 = vmul.f32 %v13640_v10, %v2289_v1  ;;  %v2618_v15 = vmul.f32 %v13643_v21, %v2570_v54  ;;  %v2619_v19 = vmul.f32 %v13643_v21, %v2571_v20  ;;  %v2494_v29 = vadd.f32 %v2478_v52, %v2354_v27  ;;  %v13644_v54 = vld [vmem:[#allocation246_spill] sm:$0xff]  ;;  %v429_v27 = vld [vmem:[%s12458_s2 + $0x80] sm:$0xff]  ;;  %v13648_v10 = vld [vmem:[#allocation301_spill] sm:$0xff] }
 0x459   : > { %v2495_v56 = vadd.f32 %v2479_v5, %v2355_v57  ;;  %v8507_v34 = vmul.f32 %v13642_v11, %v2573_v12  ;;  %v2712_v55 = vmul.f32 %v8112_v45, %v2678_v33  ;;  %v2713_v2 = vmul.f32 %v8115_v9, %v2686_v63  ;;  %v13645_v52 = vld [vmem:[#allocation302_spill] sm:$0xff]  ;;  %v13646_v5 = vld [vmem:[#allocation300_spill] sm:$0xff]  ;;  %v8536_v63 = vpop.permute.xlu0 %3145  ;;  %5542 = vmatmul.mubr.msk.f32.gmra.mxu0 %vm437_vm0, %v429_v27 }
 0x45a   : > { %v8514_v53 = vmul.f32 %v8241_v22, %v2959_v43  ;;  %v8517_v1 = vmul.f32 %v8244_v14, %v2967_v46  ;;  %v2404_v57 = vsel %vm1164_vm4, %v7678_v26, %v13644_v54  ;;  %v8527_v12 = vadd.f32 %v2194_v17, %v8177_v16  ;;  %13647 = vst [vmem:[#allocation259_spill] sm:$0xff] %v8536_v63  ;;  %v8543_v17 = vpop.permute.xlu1 %3084  ;;  %v13653_v11 = vld [vmem:[#allocation304_spill] sm:$0xff] }
 0x45b   : > { %v8530_v20 = vadd.f32 %v2195_v40, %v8187_v37  ;;  %v2352_v21 = vadd.f32 %v2336_v49, %v2212_v7  ;;  %v2818_v33 = vsel %vm1590_vm5, %v13646_v5, %v13645_v52  ;;  %v2353_v43 = vadd.f32 %v2337_v35, %v2213_v61  ;;  %3062 = vrot.lane.b32.xlu1 %v6919_v8, %s13336_s22  ;;  %v13650_v61 = vld [vmem:[#allocation303_spill] sm:$0xff]  ;;  %v13651_v40 = vld [vmem:[#allocation248_spill] sm:$0xff] }
 0x45c   : > { %v2634_v46 = vadd.f32 %v2618_v15, %v2494_v29  ;;  %v2635_v31 = vadd.f32 %v2619_v19, %v2495_v56  ;;  %v8541_v16 = vmul.f32 %v13648_v10, %v7937_v0  ;;  %v13649_v37 = vmov 0.0   ;;  %v13658_v10 = vld [vmem:[#allocation297_spill] sm:$0xff] }
 0x45d   : > { %676 = vmatprep.mubr.f32.mxu0 %v13649_v37  ;;  %v2396_v7 = vsel %vm1164_vm4, %v13644_v54, %v7678_v26  ;;  %v2428_v49 = vmul.f32 %v8089_v18, %v2404_v57  ;;  %v2677_v15 = vsel %vm1448_vm6, %v7685_v51, %v7692_v3  ;;  %v2685_v0 = vsel %vm1448_vm6, %v7692_v3, %v7685_v51  ;;  %v13652_v51 = vld [vmem:[#allocation306_spill] sm:$0xff]  ;;  %v8592_v27 = vpop.permute.xlu0 %3141 }
 0x45e   : > { %v2826_v26 = vsel %vm1590_vm5, %v13645_v52, %v13646_v5  ;;  %v8566_v19 = vmul.f32 %v8162_v39, %v2818_v33  ;;  %v8570_v35 = vmul.f32 %v13650_v61, %v8016_v6  ;;  %v2263_v3 = vsel %vm1022_vm1, %v13651_v40, %v7720_v50  ;;  %v13654_v54 = vld [vmem:[#allocation250_spill] sm:$0xff]  ;;  %13655 = vst [vmem:[#allocation273_spill] sm:$0xff] %v8592_v27 }
 0x45f   : > { %v3099_v29 = vsel %vm1874_vm8, %v13653_v11, %v13652_v51  ;;  %v2255_v56 = vsel %vm1022_vm1, %v7720_v50, %v13651_v40  ;;  %v2536_v6 = vsel %vm1306_vm3, %v13654_v54, %v7734_v24  ;;  %v2544_v57 = vsel %vm1306_vm3, %v7734_v24, %v13654_v54  ;;  %v8601_v40 = vpop.permute.xlu1 %2297  ;;  %v13657_v24 = vld [vmem:[#allocation305_spill] sm:$0xff]  ;;  %3078 = vrot.lane.b32.xlu1 %v6934_v60, %s13336_s22 }
 0x460   : > { %v3107_v52 = vsel %vm1874_vm8, %v13652_v51, %v13653_v11  ;;  %v2429_v5 = vmul.f32 %v8092_v30, %v2396_v7  ;;  %v2710_v50 = vmul.f32 %v8112_v45, %v2677_v15  ;;  %v2711_v33 = vmul.f32 %v8115_v9, %v2685_v0  ;;  %13656 = vst [vmem:[#allocation236_spill] sm:$0xff] %v8601_v40  ;;  %v13659_v7 = vld [vmem:[#allocation307_spill] sm:$0xff]  ;;  %v13660_v11 = vld [vmem:[#allocation309_spill] sm:$0xff] }
 0x461   : > { %v8604_v61 = vmul.f32 %v8165_v38, %v2826_v26  ;;  %v8608_v54 = vmul.f32 %v13657_v24, %v8070_v62  ;;  %v2476_v27 = vmul.f32 %v13658_v10, %v2428_v49  ;;  %v2286_v8 = vmul.f32 %v8083_v41, %v2263_v3 }
 0x462   : > { %v8616_v15 = vmul.f32 %v13659_v7, %v8394_v47  ;;  %v2287_v0 = vmul.f32 %v8086_v13, %v2255_v56  ;;  %v2568_v26 = vmul.f32 %v8099_v28, %v2544_v57  ;;  %v2569_v51 = vmul.f32 %v8102_v42, %v2536_v6  ;;  %v8634_v47 = vpop.permute.xlu0 %2920  ;;  %v13663_v57 = vld [vmem:[#allocation310_spill] sm:$0xff] }
 0x463   : > { %v8622_v62 = vmul.f32 %v8297_v4, %v3099_v29  ;;  %v8625_v49 = vmul.f32 %v8300_v25, %v3107_v52  ;;  %v8629_v3 = vmul.f32 %v13659_v7, %v8445_v36  ;;  %v8632_v24 = vmul.f32 %v13660_v11, %v2712_v55  ;;  %13661 = vst [vmem:[#allocation277_spill] sm:$0xff] %v8634_v47  ;;  %v8642_v52 = vpop.permute.xlu1 %2378  ;;  %v13665_v36 = vld [vmem:[#allocation313_spill] sm:$0xff]  ;;  %v13666_v7 = vld [vmem:[#allocation308_spill] sm:$0xff] }
 0x464   : > { %v8637_v56 = vmul.f32 %v13660_v11, %v2713_v2  ;;  %v2477_v6 = vmul.f32 %v13658_v10, %v2429_v5  ;;  %v2758_v29 = vmul.f32 %v13663_v57, %v2710_v50  ;;  %v2759_v40 = vmul.f32 %v13663_v57, %v2711_v33  ;;  %13664 = vst [vmem:[#allocation267_spill] sm:$0xff] %v8642_v52  ;;  %v13667_v5 = vld [vmem:[#allocation288_spill] sm:$0xff]  ;;  %v13669_v33 = vld [vmem:[#allocation322_spill] sm:$0xff] }
 0x465   : > { %v2492_v60 = vadd.f32 %v2476_v27, %v2352_v21  ;;  %v2958_v55 = vsel %vm1732_vm7, %v13665_v36, %v7706_v59  ;;  %v2966_v2 = vsel %vm1732_vm7, %v7706_v59, %v13665_v36  ;;  %v2334_v11 = vmul.f32 %v13666_v7, %v2286_v8  ;;  %2936 = vrot.lane.b32.xlu1 %v6909_v44, %s12915_s19  ;;  %v13668_v27 = vld [vmem:[#allocation324_spill] sm:$0xff]  ;;  %v13671_v36 = vld [vmem:[#allocation254_spill] sm:$0xff] }
 0x466   : > { %13662 = vst [vmem:[#allocation275_spill] sm:$0xff] %v8637_v56  ;;  %v2335_v10 = vmul.f32 %v13666_v7, %v2287_v0  ;;  %v2616_v50 = vmul.f32 %v13667_v5, %v2568_v26  ;;  %v2617_v21 = vmul.f32 %v13667_v5, %v2569_v51  ;;  %v2817_v57 = vsel %vm1590_vm5, %v13669_v33, %v13668_v27  ;;  %v13670_v8 = vld [vmem:[#allocation332_spill] sm:$0xff]  ;;  %v13673_v51 = vld [vmem:[#allocation334_spill] sm:$0xff]  ;;  %v8678_v5 = vpop.permute.xlu0 %3137 }
 0x467   : > { %v2825_v59 = vsel %vm1590_vm5, %v13668_v27, %v13669_v33  ;;  %v2395_v47 = vsel %vm1164_vm4, %v13671_v36, %v13670_v8  ;;  %v2403_v0 = vsel %vm1164_vm4, %v13670_v8, %v13671_v36  ;;  %v13672_v26 = vld [vmem:[#allocation336_spill] sm:$0xff]  ;;  %13674 = vst [vmem:[#allocation295_spill] sm:$0xff] %v8678_v5  ;;  %v2493_v52 = vadd.f32 %v2477_v6, %v2353_v43  ;;  %v8684_v13 = vpop.permute.xlu1 %2644  ;;  %v13676_v43 = vld [vmem:[#allocation129_spill] sm:$0xff] }
 0x468   : > { %v2676_v7 = vsel %vm1448_vm6, %v13673_v51, %v13672_v26  ;;  %v2774_v63 = vadd.f32 %v2758_v29, %v2634_v46  ;;  %v2775_v27 = vadd.f32 %v2759_v40, %v2635_v31  ;;  %v2684_v33 = vsel %vm1448_vm6, %v13672_v26, %v13673_v51  ;;  %13675 = vst [vmem:[#allocation240_spill] sm:$0xff] %v8684_v13  ;;  %v13679_v51 = vld [vmem:[#allocation328_spill] sm:$0xff] }
 0x469   : > { %v8687_v41 = vmul.f32 %v8241_v22, %v2958_v55  ;;  %v8690_v8 = vmul.f32 %v8244_v14, %v2966_v2  ;;  %v2350_v36 = vadd.f32 %v2334_v11, %v8527_v12  ;;  %v2850_v5 = vmul.f32 %v8162_v39, %v2817_v57  ;;  %3060 = vrot.lane.b32.xlu1 %v13676_v43, %s13336_s22  ;;  %v13677_v12 = vld [vmem:[#allocation218_spill] sm:$0xff]  ;;  %v13678_v11 = vld [vmem:[#allocation325_spill] sm:$0xff] }
 0x46a   : > { %v2851_v46 = vmul.f32 %v8165_v38, %v2825_v59  ;;  %v2426_v31 = vmul.f32 %v8089_v18, %v2403_v0  ;;  %v2427_v40 = vmul.f32 %v8092_v30, %v2395_v47  ;;  %v2708_v6 = vmul.f32 %v8112_v45, %v2676_v7  ;;  %v13680_v43 = vld [vmem:[#allocation326_spill] sm:$0xff]  ;;  %v13681_v0 = vld [vmem:[#allocation329_spill] sm:$0xff] }
 0x46b   : > { %v2351_v29 = vadd.f32 %v2335_v10, %v8530_v20  ;;  %v2632_v55 = vadd.f32 %v2616_v50, %v2492_v60  ;;  %v2633_v2 = vadd.f32 %v2617_v21, %v2493_v52  ;;  %v2709_v26 = vmul.f32 %v8115_v9, %v2684_v33  ;;  %v8712_v7 = vpop.permute.xlu1 %2660  ;;  %v8714_v20 = vpop.permute.xlu0 %931  ;;  %v13684_v60 = vld [vmem:[#allocation245_spill] sm:$0xff]  ;;  %v13685_v50 = vld [vmem:[#allocation258_spill] sm:$0xff]  ;;  %v13686_v21 = vld [vmem:[#allocation348_spill] sm:$0xff] }
 0x46c   : > { %v8704_v57 = vmul.f32 %v13678_v11, %v13677_v12  ;;  %v3098_v59 = vsel %vm1874_vm8, %v13680_v43, %v13679_v51  ;;  %v2898_v13 = vmul.f32 %v13681_v0, %v2850_v5  ;;  %v2899_v47 = vmul.f32 %v13681_v0, %v2851_v46  ;;  %13682 = vst [vmem:[#allocation299_spill] sm:$0xff] %v8712_v7  ;;  %v13687_v33 = vld [vmem:[#allocation362_spill] sm:$0xff]  ;;  %v13688_v12 = vld [vmem:[#allocation327_spill] sm:$0xff] }
 0x46d   : > { %13683 = vst [vmem:[#allocation242_spill] sm:$0xff] %v8714_v20  ;;  %v8718_v52 = vmul.f32 %v13678_v11, %v13684_v60  ;;  %v3106_v10 = vsel %vm1874_vm8, %v13679_v51, %v13680_v43  ;;  %v2543_v5 = vsel %vm1306_vm3, %v13686_v21, %v13685_v50  ;;  %v960_v46 = vmul.f32 %v8714_v20, %v13687_v33  ;;  %v13690_v0 = vld [vmem:[#allocation319_spill] sm:$0xff]  ;;  %v13694_v20 = vld [vmem:[#allocation361_spill] sm:$0xff] }
 0x46e   : > { %3076 = vrot.lane.b32.xlu1 %v6909_v44, %s13336_s22  ;;  %v8734_v11 = vmul.f32 %v13688_v12, %v8566_v19  ;;  %v2474_v60 = vmul.f32 %v13690_v0, %v2426_v31  ;;  %v2475_v7 = vmul.f32 %v13690_v0, %v2427_v40  ;;  %v13691_v43 = vld [vmem:[#allocation311_spill] sm:$0xff]  ;;  %v8741_v30 = vmul.f32 %v13688_v12, %v8604_v61  ;;  %v13697_v12 = vld [vmem:[#allocation340_spill] sm:$0xff] }
 0x46f   : > { %v2756_v51 = vmul.f32 %v13691_v43, %v2708_v6  ;;  %v8744_v18 = vmul.f32 %v8297_v4, %v3098_v59  ;;  %v2757_v33 = vmul.f32 %v13691_v43, %v2709_v26  ;;  %v976_v44 = vadd.f32 %v960_v46, %v13694_v20  ;;  %v8756_v6 = vpop.permute.xlu1 %2926  ;;  %v8758_v61 = vpop.permute.xlu0 %943  ;;  %v13698_v59 = vld [vmem:[#allocation338_spill] sm:$0xff]  ;;  %v430_v43 = vld [vmem:[%s12458_s2 + $0x88] sm:$0xff] }
 0x470   : > { %13689 = vst [vmem:[#allocation282_spill] sm:$0xff] %v8734_v11  ;;  %13692 = vst [vmem:[#allocation271_spill] sm:$0xff] %v8741_v30  ;;  %v8749_v19 = vmul.f32 %v8300_v25, %v3106_v10  ;;  %v8751_v32 = vadd.f32 %v2898_v13, %v2774_v63  ;;  %v8753_v31 = vadd.f32 %v2899_v47, %v2775_v27  ;;  %v13699_v13 = vld [vmem:[#allocation364_spill] sm:$0xff]  ;;  %5543 = vmatmul.mubr.msk.f32.gmra.mxu0 %vm437_vm0, %v430_v43  ;;  %v13710_v43 = vld [vmem:[#allocation365_spill] sm:$0xff] }
 0x471   : > { %13693 = vst [vmem:[#allocation287_spill] sm:$0xff] %v8744_v18  ;;  %v2566_v40 = vmul.f32 %v8099_v28, %v2543_v5  ;;  %13696 = vst [vmem:[#allocation291_spill] sm:$0xff] %v8758_v61  ;;  %v2957_v26 = vsel %vm1732_vm7, %v13698_v59, %v13697_v12  ;;  %v2535_v20 = vsel %vm1306_vm3, %v13685_v50, %v13686_v21  ;;  %v13700_v27 = vld [vmem:[#allocation372_spill] sm:$0xff]  ;;  %v13703_v21 = vld [vmem:[#allocation350_spill] sm:$0xff]  ;;  %682 = vmatprep.mubr.f32.mxu0 %v13649_v37 }
 0x472   : > { %13695 = vst [vmem:[#allocation285_spill] sm:$0xff] %v8749_v19  ;;  %v1118_v63 = vadd.f32 %v13699_v13, %v976_v44  ;;  %v966_v47 = vmul.f32 %v8758_v61, %v13700_v27  ;;  %v2490_v10 = vadd.f32 %v2474_v60, %v2350_v36  ;;  %v8771_v5 = vadd.f32 %v2475_v7, %v2351_v29  ;;  %v13702_v44 = vld [vmem:[#allocation352_spill] sm:$0xff]  ;;  %v13714_v28 = vld [vmem:[#allocation383_spill] sm:$0xff]  ;;  %v13716_v30 = vld [vmem:[#allocation377_spill] sm:$0xff] }
 0x473   : > { %v8773_v46 = vadd.f32 %v2756_v51, %v2632_v55  ;;  %v2965_v0 = vsel %vm1732_vm7, %v13697_v12, %v13698_v59  ;;  %v8782_v50 = vadd.f32 %v2757_v33, %v2633_v2  ;;  %v2816_v36 = vsel %vm1590_vm5, %v13703_v21, %v13702_v44  ;;  %v13704_v29 = vld [vmem:[#allocation392_spill] sm:$0xff]  ;;  %v13705_v55 = vld [vmem:[#allocation49_spill] sm:$0xff]  ;;  %v13706_v59 = vld [vmem:[#allocation290_spill] sm:$0xff]  ;;  %v8798_v33 = vpop.permute.xlu1 %2942  ;;  %v8800_v27 = vpop.permute.xlu0 %951 }
 0x474   : > { %13701 = vst [vmem:[#allocation289_spill] sm:$0xff] %v8771_v5  ;;  %v1260_v7 = vadd.f32 %v13704_v29, %v1118_v63  ;;  %v982_v60 = vadd.f32 %v966_v47, %v13705_v55  ;;  %v2990_v51 = vmul.f32 %v8241_v22, %v2957_v26  ;;  %v2567_v12 = vmul.f32 %v8102_v42, %v2535_v20  ;;  %v431_v63 = vld [vmem:[%s12458_s2 + $0x90] sm:$0xff]  ;;  %v13708_v20 = vld [vmem:[#allocation368_spill] sm:$0xff]  ;;  %v13709_v47 = vld [vmem:[#allocation343_spill] sm:$0xff] }
 0x475   : > { %v2614_v13 = vmul.f32 %v13706_v59, %v2566_v40  ;;  %v2824_v2 = vsel %vm1590_vm5, %v13702_v44, %v13703_v21  ;;  %13707 = vst [vmem:[#allocation293_spill] sm:$0xff] %v8800_v27  ;;  %v2991_v26 = vmul.f32 %v8244_v14, %v2965_v0  ;;  %v1812_v40 = vmul.f32 %v13709_v47, %v13708_v20  ;;  %v13711_v55 = vld [vmem:[#allocation369_spill] sm:$0xff]  ;;  %v13712_v44 = vld [vmem:[#allocation375_spill] sm:$0xff]  ;;  %v13718_v20 = vld [vmem:[#allocation394_spill] sm:$0xff] }
 0x476   : > { %v1402_v29 = vadd.f32 %v13710_v43, %v1260_v7  ;;  %v1124_v61 = vadd.f32 %v13711_v55, %v982_v60  ;;  %v13713_v21 = vld [vmem:[#allocation345_spill] sm:$0xff]  ;;  %v13715_v5 = vld [vmem:[#allocation347_spill] sm:$0xff]  ;;  %v2848_v18 = vmul.f32 %v8162_v39, %v2816_v36  ;;  %v970_v11 = vmul.f32 %v8800_v27, %v13716_v30  ;;  %5544 = vmatmul.mubr.msk.f32.gmra.mxu0 %vm437_vm0, %v431_v63 }
 0x477   : > { %v1818_v42 = vmul.f32 %v13713_v21, %v13712_v44  ;;  %v8815_v19 = vmul.f32 %v13715_v5, %v13714_v28  ;;  %v13717_v0 = vld [vmem:[#allocation349_spill] sm:$0xff]  ;;  %v2849_v7 = vmul.f32 %v8165_v38, %v2824_v2  ;;  %v8829_v28 = vmul.f32 %v13706_v59, %v2567_v12  ;;  %v8838_v44 = vpop.permute.xlu1 %2220  ;;  %688 = vmatprep.mubr.f32.mxu0 %v13649_v37  ;;  %v2186_v2 = vpop.permute.xlu0 %2185  ;;  %v13725_v63 = vld [vmem:[#allocation331_spill] sm:$0xff]  ;;  %v13727_v5 = vld [vmem:[#allocation376_spill] sm:$0xff] }
 0x478   : > { %v8822_v56 = vmul.f32 %v13717_v0, %v8514_v53  ;;  %v1544_v60 = vadd.f32 %v8541_v16, %v1402_v29  ;;  %v1266_v43 = vadd.f32 %v13718_v20, %v1124_v61  ;;  %v8831_v55 = vadd.f32 %v2614_v13, %v2490_v10  ;;  %v13720_v36 = vld [vmem:[#allocation81_spill] sm:$0xff]  ;;  %13721 = vst [vmem:[#allocation284_spill] sm:$0xff] %v8838_v44  ;;  %v432_v16 = vld [vmem:[%s12458_s2 + $0x98] sm:$0xff]  ;;  %v13722_v61 = vld [vmem:[#allocation351_spill] sm:$0xff] }
 0x479   : > { %v8835_v30 = vmul.f32 %v13717_v0, %v8517_v1  ;;  %v986_v53 = vadd.f32 %v970_v11, %v13720_v36  ;;  %v8846_v12 = vmul.f32 %v13722_v61, %v8687_v41  ;;  %v8850_v10 = vmul.f32 %v13722_v61, %v8690_v8  ;;  %v13723_v1 = vld [vmem:[#allocation367_spill] sm:$0xff]  ;;  %v13726_v0 = vld [vmem:[#allocation353_spill] sm:$0xff] }
 0x47a   : > { %13719 = vst [vmem:[#allocation281_spill] sm:$0xff] %v8831_v55  ;;  %v1686_v59 = vadd.f32 %v13723_v1, %v1544_v60  ;;  %v13724_v13 = vld [vmem:[#allocation371_spill] sm:$0xff]  ;;  %v2896_v29 = vmul.f32 %v13725_v63, %v2848_v18  ;;  %v3038_v20 = vmul.f32 %v13726_v0, %v2990_v51  ;;  %v3039_v36 = vmul.f32 %v13726_v0, %v2991_v26  ;;  %v13728_v47 = vld [vmem:[#allocation241_spill] sm:$0xff]  ;;  %v13730_v51 = vld [vmem:[#allocation220_spill] sm:$0xff] }
 0x47b   : > { %v1408_v11 = vadd.f32 %v13724_v13, %v1266_v43  ;;  %v1128_v21 = vadd.f32 %v13727_v5, %v986_v53  ;;  %v2897_v41 = vmul.f32 %v13725_v63, %v2849_v7  ;;  %v13729_v27 = vld [vmem:[#allocation391_spill] sm:$0xff]  ;;  %5545 = vmatmul.mubr.msk.f32.gmra.mxu0 %vm437_vm0, %v432_v16  ;;  %v13731_v5 = vld [vmem:[#allocation224_spill] sm:$0xff]  ;;  %v8872_v1 = vpop.permute.xlu1 %2236  ;;  %v13735_v16 = vld [vmem:[#allocation370_spill] sm:$0xff] }
 0x47c   : > { %v2956_v8 = vsel %vm1732_vm7, %v13729_v27, %v13728_v47  ;;  %v1828_v61 = vadd.f32 %v1812_v40, %v1686_v59  ;;  %v2964_v18 = vsel %vm1732_vm7, %v13728_v47, %v13729_v27  ;;  %v2202_v43 = vmul.f32 %v2186_v2, %v13731_v5  ;;  %v13732_v7 = vld [vmem:[#allocation247_spill] sm:$0xff]  ;;  %13733 = vst [vmem:[#allocation286_spill] sm:$0xff] %v8872_v1  ;;  %v13734_v40 = vld [vmem:[#allocation380_spill] sm:$0xff]  ;;  %v13736_v47 = vld [vmem:[#allocation393_spill] sm:$0xff] }
 0x47d   : > { %v1550_v60 = vadd.f32 %v8570_v35, %v1408_v11  ;;  %v1270_v26 = vadd.f32 %v13730_v51, %v1128_v21  ;;  %v2203_v53 = vmul.f32 %v2186_v2, %v13732_v7  ;;  %694 = vmatprep.mubr.f32.mxu0 %v13649_v37  ;;  %v433_v35 = vld [vmem:[%s12458_s2 + $0xa0] sm:$0xff]  ;;  %v2675_v59 = vsel %vm1448_vm6, %v13735_v16, %v13734_v40  ;;  %v13738_v13 = vld [vmem:[#allocation373_spill] sm:$0xff] }
 0x47e   : > { %v2683_v27 = vsel %vm1448_vm6, %v13734_v40, %v13735_v16  ;;  %v8887_v21 = vadd.f32 %v13736_v47, %v1828_v61  ;;  %v2988_v2 = vmul.f32 %v8241_v22, %v2956_v8  ;;  %v13739_v63 = vld [vmem:[#allocation381_spill] sm:$0xff]  ;;  %v13741_v7 = vld [vmem:[#allocation235_spill] sm:$0xff]  ;;  %v3054_v1 = vadd.f32 %v3038_v20, %v8751_v32  ;;  %v13742_v61 = vld [vmem:[#allocation356_spill] sm:$0xff]  ;;  %v2182_v32 = vpop.permute.xlu0 %2181 }
 0x47f   : > { %v1692_v11 = vadd.f32 %v13738_v13, %v1550_v60  ;;  %v1412_v0 = vadd.f32 %v13739_v63, %v1270_v26  ;;  %v13740_v51 = vld [vmem:[#allocation237_spill] sm:$0xff]  ;;  %v2219_v44 = vadd.f32 %v2203_v53, %v13741_v7  ;;  %v8896_v55 = vadd.f32 %v3039_v36, %v8753_v31  ;;  %5546 = vmatmul.mubr.msk.f32.gmra.mxu0 %vm437_vm0, %v433_v35  ;;  %v13743_v60 = vld [vmem:[#allocation354_spill] sm:$0xff]  ;;  %v13745_v53 = vld [vmem:[#allocation244_spill] sm:$0xff]  ;;  %v8907_v20 = vpop.permute.xlu1 %2502 }
 0x480   : > { %13737 = vst [vmem:[#allocation246_spill] sm:$0xff] %v8887_v21  ;;  %v2218_v5 = vadd.f32 %v2202_v43, %v13740_v51  ;;  %v2989_v40 = vmul.f32 %v8244_v14, %v2964_v18  ;;  %v3097_v8 = vsel %vm1874_vm8, %v13743_v60, %v13742_v61  ;;  %v13744_v43 = vld [vmem:[#allocation257_spill] sm:$0xff]  ;;  %700 = vmatprep.mubr.f32.mxu0 %v13649_v37  ;;  %v13746_v18 = vld [vmem:[#allocation226_spill] sm:$0xff]  ;;  %v13748_v35 = vld [vmem:[#allocation355_spill] sm:$0xff] }
 0x481   : > { %v1834_v16 = vadd.f32 %v1818_v42, %v1692_v11  ;;  %v1554_v26 = vadd.f32 %v8608_v54, %v1412_v0  ;;  %v2359_v13 = vadd.f32 %v13745_v53, %v2219_v44  ;;  %v3105_v42 = vsel %vm1874_vm8, %v13742_v61, %v13743_v60  ;;  %v13749_v44 = vld [vmem:[#allocation382_spill] sm:$0xff]  ;;  %v13750_v0 = vld [vmem:[#allocation239_spill] sm:$0xff]  ;;  %v14145_v58 = vld [vmem:[#allocation293_spill] sm:$0xff] }
 0x482   : > { %v2358_v47 = vadd.f32 %v13744_v43, %v2218_v5  ;;  %v2706_v31 = vmul.f32 %v8112_v45, %v2675_v59  ;;  %v2707_v36 = vmul.f32 %v8115_v9, %v2683_v27  ;;  %v3036_v11 = vmul.f32 %v13748_v35, %v2988_v2  ;;  %v13751_v5 = vld [vmem:[#allocation261_spill] sm:$0xff]  ;;  %v13752_v61 = vld [vmem:[#allocation223_spill] sm:$0xff]  ;;  %v13753_v59 = vld [vmem:[#allocation396_spill] sm:$0xff] }
 0x483   : > { %v8917_v54 = vadd.f32 %v13746_v18, %v1834_v16  ;;  %v1696_v63 = vadd.f32 %v13749_v44, %v1554_v26  ;;  %v2499_v7 = vadd.f32 %v13751_v5, %v2359_v13  ;;  %v2912_v43 = vadd.f32 %v2896_v29, %v8773_v46  ;;  %v13754_v18 = vld [vmem:[#allocation253_spill] sm:$0xff]  ;;  %v8931_v44 = vpop.permute.xlu1 %2518  ;;  %v13756_v29 = vld [vmem:[#allocation202_spill] sm:$0xff]  ;;  %v13757_v13 = vld [vmem:[#allocation204_spill] sm:$0xff] }
 0x484   : > { %v2498_v51 = vadd.f32 %v13750_v0, %v2358_v47  ;;  %v3037_v53 = vmul.f32 %v13748_v35, %v2989_v40  ;;  %v2200_v60 = vmul.f32 %v2182_v32, %v13752_v61  ;;  %v2201_v21 = vmul.f32 %v2182_v32, %v13753_v59  ;;  %v13758_v0 = vld [vmem:[#allocation312_spill] sm:$0xff]  ;;  %v13763_v61 = vld [vmem:[#allocation243_spill] sm:$0xff] }
 0x485   : > { %13747 = vst [vmem:[#allocation302_spill] sm:$0xff] %v8917_v54  ;;  %v2913_v27 = vadd.f32 %v2897_v41, %v8782_v50  ;;  %v1838_v16 = vadd.f32 %v8815_v19, %v1696_v63  ;;  %v13755_v54 = vld [vmem:[#allocation238_spill] sm:$0xff]  ;;  %v3130_v47 = vmul.f32 %v8297_v4, %v3097_v8  ;;  %v3131_v46 = vmul.f32 %v8300_v25, %v3105_v42  ;;  %v13759_v41 = vld [vmem:[#allocation395_spill] sm:$0xff]  ;;  %v13762_v5 = vld [vmem:[#allocation232_spill] sm:$0xff] }
 0x486   : > { %v2638_v2 = vadd.f32 %v13754_v18, %v2498_v51  ;;  %v2639_v26 = vadd.f32 %v13755_v54, %v2499_v7  ;;  %v2216_v40 = vadd.f32 %v2200_v60, %v13756_v29  ;;  %v2217_v35 = vadd.f32 %v2201_v21, %v13757_v13  ;;  %v13761_v51 = vld [vmem:[#allocation249_spill] sm:$0xff]  ;;  %v13766_v18 = vld [vmem:[#allocation230_spill] sm:$0xff]  ;;  %v13767_v29 = vld [vmem:[#allocation263_spill] sm:$0xff] }
 0x487   : > { %v2754_v32 = vmul.f32 %v13758_v0, %v2706_v31  ;;  %v2755_v50 = vmul.f32 %v13758_v0, %v2707_v36  ;;  %v8940_v19 = vadd.f32 %v13759_v41, %v1838_v16  ;;  %v3052_v63 = vadd.f32 %v3036_v11, %v2912_v43  ;;  %v8953_v31 = vpop.permute.xlu1 %2784  ;;  %v13764_v43 = vld [vmem:[#allocation251_spill] sm:$0xff] }
 0x488   : > { %v3178_v54 = vmul.f32 %v13761_v51, %v3130_v47  ;;  %v2356_v7 = vadd.f32 %v13762_v5, %v2216_v40  ;;  %v2357_v8 = vadd.f32 %v13763_v61, %v2217_v35  ;;  %v3053_v59 = vadd.f32 %v3037_v53, %v2913_v27  ;;  %v13765_v27 = vld [vmem:[#allocation255_spill] sm:$0xff]  ;;  %v13770_v5 = vld [vmem:[#allocation265_spill] sm:$0xff] }
 0x489   : > { %13760 = vst [vmem:[#allocation300_spill] sm:$0xff] %v8940_v19  ;;  %v3096_v21 = vsel %vm1874_vm8, %v8504_v23, %v8543_v17  ;;  %v3104_v42 = vsel %vm1874_vm8, %v8543_v17, %v8504_v23  ;;  %v2778_v36 = vadd.f32 %v8616_v15, %v2638_v2  ;;  %v2779_v11 = vadd.f32 %v8629_v3, %v2639_v26  ;;  %v13768_v40 = vld [vmem:[#allocation279_spill] sm:$0xff] }
 0x48a   : > { %v3182_v60 = vmul.f32 %v13764_v43, %v8622_v62  ;;  %v3183_v53 = vmul.f32 %v13764_v43, %v8625_v49  ;;  %v2496_v16 = vadd.f32 %v13765_v27, %v2356_v7  ;;  %v2497_v47 = vadd.f32 %v13766_v18, %v2357_v8  ;;  %v13771_v8 = vld [vmem:[#allocation282_spill] sm:$0xff] }
 0x48b   : > { %v2815_v23 = vsel %vm1590_vm5, %v13768_v40, %v13767_v29  ;;  %v2823_v17 = vsel %vm1590_vm5, %v13767_v29, %v13768_v40  ;;  %v2918_v15 = vadd.f32 %v8704_v57, %v2778_v36  ;;  %v2919_v62 = vadd.f32 %v8718_v52, %v2779_v11  ;;  %v8980_v0 = vpop.permute.xlu1 %2800 }
 0x48c   : > { %v3128_v49 = vmul.f32 %v8297_v4, %v3096_v21  ;;  %v3129_v3 = vmul.f32 %v8300_v25, %v3104_v42  ;;  %v2636_v2 = vadd.f32 %v8499_v48, %v2496_v16  ;;  %v2637_v26 = vadd.f32 %v8507_v34, %v2497_v47  ;;  %v13772_v42 = vld [vmem:[#allocation271_spill] sm:$0xff]  ;;  %v13775_v16 = vld [vmem:[#allocation285_spill] sm:$0xff] }
 0x48d   : > { %v3179_v13 = vmul.f32 %v13761_v51, %v3131_v46  ;;  %v8978_v35 = vadd.f32 %v3178_v54, %v3054_v1  ;;  %v3058_v41 = vadd.f32 %v8822_v56, %v2918_v15  ;;  %v3059_v57 = vadd.f32 %v8835_v30, %v2919_v62  ;;  %v13769_v1 = vld [vmem:[#allocation275_spill] sm:$0xff]  ;;  %v13778_v15 = vld [vmem:[#allocation333_spill] sm:$0xff] }
 0x48e   : > { %v2955_v52 = vsel %vm1732_vm7, %v8756_v6, %v8798_v33  ;;  %v2963_v34 = vsel %vm1732_vm7, %v8798_v33, %v8756_v6  ;;  %v2776_v48 = vadd.f32 %v8632_v24, %v2636_v2  ;;  %v2777_v46 = vadd.f32 %v13769_v1, %v2637_v26 }
 0x48f   : > { %v2846_v51 = vmul.f32 %v8162_v39, %v2815_v23  ;;  %v2847_v56 = vmul.f32 %v8165_v38, %v2823_v17  ;;  %v8996_v54 = vadd.f32 %v3182_v60, %v3058_v41  ;;  %v8998_v30 = vadd.f32 %v3183_v53, %v3059_v57  ;;  %v3067_v43 = vpop.permute.xlu1 %3066  ;;  %v13773_v60 = vld [vmem:[#allocation287_spill] sm:$0xff]  ;;  %v13774_v53 = vld [vmem:[#allocation234_spill] sm:$0xff]  ;;  %v13777_v23 = vld [vmem:[#allocation281_spill] sm:$0xff] }
 0x490   : > { %v3176_v7 = vmul.f32 %v13770_v5, %v3128_v49  ;;  %v3177_v61 = vmul.f32 %v13770_v5, %v3129_v3  ;;  %v2916_v21 = vadd.f32 %v13771_v8, %v2776_v48  ;;  %v2917_v6 = vadd.f32 %v13772_v42, %v2777_v46 }
 0x491   : > { %v9005_v24 = vadd.f32 %v3179_v13, %v8896_v55  ;;  %v2986_v33 = vmul.f32 %v8241_v22, %v2955_v52  ;;  %v2987_v36 = vmul.f32 %v8244_v14, %v2963_v34  ;;  %v4477_v11 = vmax.f32 %v8996_v54, %v8998_v30  ;;  %v13776_v55 = vld [vmem:[#allocation289_spill] sm:$0xff] }
 0x492   : > { %v3180_v27 = vmul.f32 %v13774_v53, %v13773_v60  ;;  %v3181_v18 = vmul.f32 %v13774_v53, %v13775_v16  ;;  %v3056_v47 = vadd.f32 %v8846_v12, %v2916_v21  ;;  %v3057_v29 = vadd.f32 %v8850_v10, %v2917_v6  ;;  %v13779_v10 = vld [vmem:[#allocation357_spill] sm:$0xff]  ;;  %v434_v60 = vld [vmem:[%s12458_s2 + $0xa8] sm:$0xff] }
 0x493   : > { %v2631_v40 = vadd.f32 %v8829_v28, %v13776_v55  ;;  %v2770_v17 = vadd.f32 %v2754_v32, %v13777_v23  ;;  %v2894_v62 = vmul.f32 %v13778_v15, %v2846_v51  ;;  %v2895_v49 = vmul.f32 %v13778_v15, %v2847_v56  ;;  %4478 = vmax.xlane.f32.xlu0 %v4477_v11  ;;  %v3083_v57 = vpop.permute.xlu1 %3082  ;;  %v13780_v51 = vld [vmem:[#allocation283_spill] sm:$0xff]  ;;  %v13782_v16 = vld [vmem:[#allocation217_spill] sm:$0xff]  ;;  %v13784_v55 = vld [vmem:[#allocation344_spill] sm:$0xff] }
 0x494   : > { %v9022_v3 = vadd.f32 %v3180_v27, %v3056_v47  ;;  %v9024_v2 = vadd.f32 %v3181_v18, %v3057_v29  ;;  %v9026_v26 = vadd.f32 %v3176_v7, %v3052_v63  ;;  %v9028_v13 = vadd.f32 %v3177_v61, %v3053_v59  ;;  %5547 = vmatmul.mubr.msk.f32.gmra.mxu0 %vm437_vm0, %v434_v60  ;;  %v13781_v27 = vld [vmem:[#allocation252_spill] sm:$0xff] }
 0x495   : > { %v2771_v12 = vadd.f32 %v2755_v50, %v2631_v40  ;;  %v3034_v41 = vmul.f32 %v13779_v10, %v2986_v33  ;;  %v3035_v28 = vmul.f32 %v13779_v10, %v2987_v36  ;;  %v4471_v32 = vmax.f32 %v8978_v35, %v9005_v24  ;;  %706 = vmatprep.mubr.f32.mxu0 %v13649_v37  ;;  %v13783_v29 = vld [vmem:[#allocation256_spill] sm:$0xff]  ;;  %v13788_v10 = vld [vmem:[#allocation262_spill] sm:$0xff] }
 0x496   : > { %v4474_v52 = vmax.f32 %v9022_v3, %v9024_v2  ;;  %v3095_v34 = vsel %vm1874_vm8, %v3067_v43, %v3083_v57  ;;  %v3103_v63 = vsel %vm1874_vm8, %v3083_v57, %v3067_v43  ;;  %v2910_v59 = vadd.f32 %v2894_v62, %v2770_v17  ;;  %v13785_v17 = vld [vmem:[#allocation378_spill] sm:$0xff]  ;;  %v13786_v62 = vld [vmem:[#allocation379_spill] sm:$0xff]  ;;  %v13789_v57 = vld [vmem:[#allocation384_spill] sm:$0xff] }
 0x497   : > { %v2911_v48 = vadd.f32 %v2895_v49, %v2771_v12  ;;  %4472 = vmax.xlane.f32.xlu0 %v4471_v32  ;;  %v3126_v50 = vmul.f32 %v8297_v4, %v3095_v34  ;;  %v3127_v1 = vmul.f32 %v8300_v25, %v3103_v63  ;;  %v4468_v46 = vmax.f32 %v9026_v26, %v9028_v13  ;;  %v9046_v7 = vpop.permute.xlu1 %2376  ;;  %v13787_v12 = vld [vmem:[#allocation363_spill] sm:$0xff]  ;;  %v13790_v34 = vld [vmem:[#allocation385_spill] sm:$0xff] }
 0x498   : > { %4475 = vmax.xlane.f32.xlu1 %v4474_v52  ;;  %v3050_v61 = vadd.f32 %v3034_v41, %v2910_v59  ;;  %v2114_v18 = vsel %vm881_vm2, %v13782_v16, %v13781_v27  ;;  %v2122_v47 = vsel %vm881_vm2, %v13781_v27, %v13782_v16  ;;  %v2254_v40 = vsel %vm1022_vm1, %v13784_v55, %v13783_v29  ;;  %v435_v59 = vld [vmem:[%s12458_s2 + $0xb0] sm:$0xff]  ;;  %v13796_v27 = vld [vmem:[#allocation142_spill] sm:$0xff] }
 0x499   : > { %v3174_v56 = vmul.f32 %v13780_v51, %v3126_v50  ;;  %v3175_v5 = vmul.f32 %v13780_v51, %v3127_v1  ;;  %v3051_v8 = vadd.f32 %v3035_v28, %v2911_v48  ;;  %v2262_v23 = vsel %vm1022_vm1, %v13783_v29, %v13784_v55  ;;  %v13791_v48 = vld [vmem:[#allocation316_spill] sm:$0xff]  ;;  %5548 = vmatmul.mubr.msk.f32.gmra.mxu0 %vm437_vm0, %v435_v59  ;;  %v13797_v16 = vld [vmem:[#allocation221_spill] sm:$0xff] }
 0x49a   : > { %v2144_v15 = vmul.f32 %v13785_v17, %v2122_v47  ;;  %v2145_v49 = vmul.f32 %v13786_v62, %v2114_v18  ;;  %v2394_v41 = vsel %vm1164_vm4, %v13788_v10, %v13787_v12  ;;  %v2402_v28 = vsel %vm1164_vm4, %v13787_v12, %v13788_v10  ;;  %712 = vmatprep.mubr.f32.mxu0 %v13649_v37  ;;  %v13798_v47 = vld [vmem:[#allocation145_spill] sm:$0xff]  ;;  %v13801_v12 = vld [vmem:[#allocation240_spill] sm:$0xff] }
 0x49b   : > { %4469 = vmax.xlane.f32.xlu0 %v4468_v46  ;;  %v9048_v21 = vadd.f32 %v3174_v56, %v3050_v61  ;;  %v9050_v42 = vadd.f32 %v3175_v5, %v3051_v8  ;;  %v9052_v6 = vpop.permute.xlu1 %2642  ;;  %v2284_v52 = vmul.f32 %v13789_v57, %v2262_v23  ;;  %v2285_v63 = vmul.f32 %v13790_v34, %v2254_v40  ;;  %v13792_v46 = vld [vmem:[#allocation386_spill] sm:$0xff]  ;;  %v13793_v56 = vld [vmem:[#allocation387_spill] sm:$0xff]  ;;  %v13794_v61 = vld [vmem:[#allocation269_spill] sm:$0xff] }
 0x49c   : > { %v2192_v50 = vmul.f32 %v13791_v48, %v2144_v15  ;;  %v2193_v1 = vmul.f32 %v13791_v48, %v2145_v49  ;;  %v2424_v51 = vmul.f32 %v13792_v46, %v2402_v28  ;;  %v2425_v5 = vmul.f32 %v13793_v56, %v2394_v41  ;;  %v13795_v8 = vld [vmem:[#allocation266_spill] sm:$0xff]  ;;  %v13800_v49 = vld [vmem:[#allocation299_spill] sm:$0xff]  ;;  %v13802_v48 = vld [vmem:[#allocation389_spill] sm:$0xff] }
 0x49d   : > { %v4465_v33 = vmax.f32 %v9048_v21, %v9050_v42  ;;  %v2542_v60 = vsel %vm1306_vm3, %v13794_v61, %v13795_v8  ;;  %v2068_v18 = vmul.f32 %v13797_v16, %v13796_v27  ;;  %v2069_v29 = vmul.f32 %v13797_v16, %v13798_v47  ;;  %v13799_v40 = vld [vmem:[#allocation330_spill] sm:$0xff] }
 0x49e   : > { %v2332_v23 = vmul.f32 %v13799_v40, %v2284_v52  ;;  %v2333_v15 = vmul.f32 %v13799_v40, %v2285_v63  ;;  %v2674_v10 = vsel %vm1448_vm6, %v13801_v12, %v13800_v49  ;;  %v2682_v41 = vsel %vm1448_vm6, %v13800_v49, %v13801_v12  ;;  %v13804_v16 = vld [vmem:[#allocation346_spill] sm:$0xff] }
 0x49f   : > { %4466 = vmax.xlane.f32.xlu1 %v4465_v33  ;;  %v9056_v36 = vpop.permute.xlu1 %2658  ;;  %v2534_v33 = vsel %vm1306_vm3, %v13795_v8, %v13794_v61  ;;  %v2208_v28 = vadd.f32 %v2192_v50, %v2068_v18  ;;  %v2209_v59 = vadd.f32 %v2193_v1, %v2069_v29  ;;  %v2564_v61 = vmul.f32 %v13802_v48, %v2542_v60  ;;  %v13803_v8 = vld [vmem:[#allocation390_spill] sm:$0xff]  ;;  %v13805_v29 = vld [vmem:[#allocation292_spill] sm:$0xff] }
 0x4a0   : > { %v2565_v27 = vmul.f32 %v13803_v8, %v2534_v33  ;;  %v2472_v52 = vmul.f32 %v13804_v16, %v2424_v51  ;;  %v2473_v63 = vmul.f32 %v13804_v16, %v2425_v5  ;;  %v2814_v47 = vsel %vm1590_vm5, %v8953_v31, %v8980_v0 }
 0x4a1   : > { %v2822_v40 = vsel %vm1590_vm5, %v8980_v0, %v8953_v31  ;;  %v2704_v50 = vmul.f32 %v8112_v45, %v2674_v10  ;;  %v2705_v1 = vmul.f32 %v8115_v9, %v2682_v41  ;;  %v2348_v33 = vadd.f32 %v2332_v23, %v2208_v28  ;;  %v436_v10 = vld [vmem:[%s12458_s2 + $0xb8] sm:$0xff] }
 0x4a2   : > { %v2349_v51 = vadd.f32 %v2333_v15, %v2209_v59  ;;  %v2612_v49 = vmul.f32 %v13805_v29, %v2564_v61  ;;  %v2613_v12 = vmul.f32 %v13805_v29, %v2565_v27  ;;  %v2844_v31 = vmul.f32 %v8162_v39, %v2814_v47  ;;  %5549 = vmatmul.mubr.msk.f32.gmra.mxu0 %vm437_vm0, %v436_v10  ;;  %v13806_v41 = vld [vmem:[#allocation314_spill] sm:$0xff]  ;;  %v13807_v47 = vld [vmem:[#allocation335_spill] sm:$0xff] }
 0x4a3   : > { %v2925_v11 = vpop.permute.xlu1 %2924  ;;  %v2845_v0 = vmul.f32 %v8165_v38, %v2822_v40  ;;  %v2488_v23 = vadd.f32 %v2472_v52, %v2348_v33  ;;  %v2752_v28 = vmul.f32 %v13806_v41, %v2704_v50  ;;  %5310 = vmatprep.mubr.f32.mxu0 %v13649_v37  ;;  %v2673_v37 = vsel %vm1448_vm6, %v9052_v6, %v9056_v36 }
 0x4a4   : > { %v2489_v15 = vadd.f32 %v2473_v63, %v2349_v51  ;;  %v2892_v40 = vmul.f32 %v13807_v47, %v2844_v31  ;;  %v13808_v51 = vld [vmem:[#allocation360_spill] sm:$0xff] }
 0x4a5   : > { %v2628_v27 = vadd.f32 %v2612_v49, %v2488_v23  ;;  %v2893_v52 = vmul.f32 %v13807_v47, %v2845_v0  ;;  %v13809_v0 = vld [vmem:[#allocation259_spill] sm:$0xff] }
 0x4a6   : > { %v2629_v16 = vadd.f32 %v2613_v12, %v2489_v15  ;;  %v13813_v47 = vld [vmem:[#allocation231_spill] sm:$0xff] }
 0x4a7   : > { %v2941_v43 = vpop.permute.xlu1 %2940  ;;  %v2768_v63 = vadd.f32 %v2752_v28, %v2628_v27 }
 0x4a8   : > { %v2954_v5 = vsel %vm1732_vm7, %v2925_v11, %v2941_v43  ;;  %v2962_v18 = vsel %vm1732_vm7, %v2941_v43, %v2925_v11  ;;  %v2753_v11 = vmul.f32 %v13806_v41, %v2705_v1 }
 0x4a9   : > { %v2984_v43 = vmul.f32 %v8241_v22, %v2954_v5  ;;  %v2985_v59 = vmul.f32 %v8244_v14, %v2962_v18  ;;  %v2908_v10 = vadd.f32 %v2892_v40, %v2768_v63 }
 0x4aa   : > { %v2769_v33 = vadd.f32 %v2753_v11, %v2629_v16  ;;  %v13812_v16 = vld [vmem:[#allocation264_spill] sm:$0xff] }
 0x4ab   : > { %v9063_v53 = vpop.permute.xlu1 %2500  ;;  %v3032_v29 = vmul.f32 %v13808_v51, %v2984_v43  ;;  %v3033_v50 = vmul.f32 %v13808_v51, %v2985_v59  ;;  %v13810_v43 = vld [vmem:[#allocation260_spill] sm:$0xff]  ;;  %v13811_v59 = vld [vmem:[#allocation229_spill] sm:$0xff]  ;;  %v2253_v40 = vsel %vm1022_vm1, %v13813_v47, %v13812_v16 }
 0x4ac   : > { %v2909_v49 = vadd.f32 %v2893_v52, %v2769_v33  ;;  %v2113_v27 = vsel %vm881_vm2, %v13811_v59, %v13810_v43  ;;  %v2261_v52 = vsel %vm1022_vm1, %v13812_v16, %v13813_v47  ;;  %v13814_v51 = vld [vmem:[#allocation268_spill] sm:$0xff] }
 0x4ad   : > { %v3048_v28 = vadd.f32 %v3032_v29, %v2908_v10  ;;  %v13815_v29 = vld [vmem:[#allocation215_spill] sm:$0xff]  ;;  %v13819_v16 = vld [vmem:[#allocation136_spill] sm:$0xff] }
 0x4ae   : > { %v3049_v11 = vadd.f32 %v3033_v50, %v2909_v49  ;;  %v2112_v50 = vsel %vm881_vm2, %v13815_v29, %v13814_v51  ;;  %v2143_v49 = vmul.f32 %v13786_v62, %v2113_v27  ;;  %v13820_v47 = vld [vmem:[#allocation200_spill] sm:$0xff] }
 0x4af   : > { %v9091_v32 = vpop.permute.xlu1 %2516 }
 0x4b3   : > { %v9116_v55 = vpop.permute.xlu1 %2782 }
 0x4b7   : > { %v9142_v60 = vpop.permute.xlu1 %2798 }
 0x4bb   : > { %v3065_v61 = vpop.permute.xlu1 %3064 }
 0x4bf   : > { %v3081_v1 = vpop.permute.xlu1 %3080 }
 0x4c0   : > { %v3094_v5 = vsel %vm1874_vm8, %v3065_v61, %v3081_v1  ;;  %v3102_v18 = vsel %vm1874_vm8, %v3081_v1, %v3065_v61  ;;  %v2121_v61 = vsel %vm881_vm2, %v13810_v43, %v13811_v59  ;;  %v2120_v1 = vsel %vm881_vm2, %v13814_v51, %v13815_v29  ;;  %v13817_v43 = vld [vmem:[#allocation267_spill] sm:$0xff]  ;;  %v13818_v59 = vld [vmem:[#allocation270_spill] sm:$0xff] }
 0x4c1   : > { %v3124_v12 = vmul.f32 %v8297_v4, %v3094_v5  ;;  %v3125_v31 = vmul.f32 %v8300_v25, %v3102_v18  ;;  %v2142_v10 = vmul.f32 %v13785_v17, %v2121_v61  ;;  %v2393_v61 = vsel %vm1164_vm4, %v13818_v59, %v13817_v43 }
 0x4c2   : > { %v2401_v27 = vsel %vm1164_vm4, %v13817_v43, %v13818_v59 }
 0x4c3   : > { %v3172_v23 = vmul.f32 %v13809_v0, %v3124_v12  ;;  %v3173_v15 = vmul.f32 %v13809_v0, %v3125_v31  ;;  %v9173_v41 = vpop.permute.xlu1 %2656  ;;  %v2282_v12 = vmul.f32 %v13789_v57, %v2261_v52  ;;  %v2283_v31 = vmul.f32 %v13790_v34, %v2253_v40  ;;  %v13821_v40 = vld [vmem:[#allocation139_spill] sm:$0xff] }
 0x4c4   : > { %v2140_v0 = vmul.f32 %v13785_v17, %v2120_v1  ;;  %v2066_v17 = vmul.f32 %v13820_v47, %v13819_v16  ;;  %v13822_v52 = vld [vmem:[#allocation227_spill] sm:$0xff]  ;;  %v2422_v16 = vmul.f32 %v13792_v46, %v2401_v27 }
 0x4c5   : > { %v9191_v63 = vadd.f32 %v3172_v23, %v3048_v28  ;;  %v9193_v33 = vadd.f32 %v3173_v15, %v3049_v11  ;;  %v2141_v23 = vmul.f32 %v13786_v62, %v2112_v50  ;;  %v13816_v15 = vld [vmem:[#allocation342_spill] sm:$0xff]  ;;  %v2067_v62 = vmul.f32 %v13820_v47, %v13821_v40  ;;  %v13823_v1 = vld [vmem:[#allocation359_spill] sm:$0xff] }
 0x4c6   : > { %v2190_v28 = vmul.f32 %v13816_v15, %v2142_v10  ;;  %v2191_v11 = vmul.f32 %v13816_v15, %v2143_v49  ;;  %v2188_v51 = vmul.f32 %v13822_v52, %v2140_v0  ;;  %v2331_v10 = vmul.f32 %v13823_v1, %v2283_v31  ;;  %v13824_v49 = vld [vmem:[#allocation286_spill] sm:$0xff]  ;;  %v13825_v15 = vld [vmem:[#allocation284_spill] sm:$0xff]  ;;  %v13827_v47 = vld [vmem:[#allocation219_spill] sm:$0xff] }
 0x4c7   : > { %v2923_v5 = vpop.permute.xlu1 %2922  ;;  %v4462_v18 = vmax.f32 %v9191_v63, %v9193_v33  ;;  %v2189_v29 = vmul.f32 %v13822_v52, %v2141_v23  ;;  %v2252_v43 = vsel %vm1022_vm1, %v13825_v15, %v13824_v49  ;;  %v2260_v59 = vsel %vm1022_vm1, %v13824_v49, %v13825_v15  ;;  %v13826_v23 = vld [vmem:[#allocation129_spill] sm:$0xff] }
 0x4c8   : > { %v2423_v0 = vmul.f32 %v13793_v56, %v2393_v61  ;;  %v2541_v31 = vsel %vm1306_vm3, %v8931_v44, %v8907_v20  ;;  %v2064_v40 = vmul.f32 %v13827_v47, %v13826_v23  ;;  %v13828_v52 = vld [vmem:[#allocation133_spill] sm:$0xff]  ;;  %v2206_v49 = vadd.f32 %v2190_v28, %v2066_v17 }
 0x4c9   : > { %4463 = vmax.xlane.f32.xlu0 %v4462_v18  ;;  %v2330_v18 = vmul.f32 %v13823_v1, %v2282_v12  ;;  %v2533_v12 = vsel %vm1306_vm3, %v8907_v20, %v8931_v44  ;;  %v2065_v1 = vmul.f32 %v13827_v47, %v13828_v52  ;;  %v2207_v27 = vadd.f32 %v2191_v11, %v2067_v62 }
 0x4ca   : > { %v2280_v61 = vmul.f32 %v13789_v57, %v2260_v59  ;;  %v2281_v15 = vmul.f32 %v13790_v34, %v2252_v43  ;;  %v2681_v20 = vsel %vm1448_vm6, %v9056_v36, %v9052_v6  ;;  %v2204_v23 = vadd.f32 %v2188_v51, %v2064_v40  ;;  %v13829_v34 = vld [vmem:[#allocation228_spill] sm:$0xff] }
 0x4cb   : > { %v2939_v50 = vpop.permute.xlu1 %2938  ;;  %v2205_v19 = vadd.f32 %v2189_v29, %v2065_v1  ;;  %v2562_v28 = vmul.f32 %v13802_v48, %v2541_v31  ;;  %v2563_v11 = vmul.f32 %v13803_v8, %v2533_v12  ;;  %v2346_v57 = vadd.f32 %v2330_v18, %v2206_v49  ;;  %v13830_v51 = vld [vmem:[#allocation236_spill] sm:$0xff]  ;;  %v13832_v12 = vld [vmem:[#allocation294_spill] sm:$0xff] }
 0x4cc   : > { %v2347_v17 = vadd.f32 %v2331_v10, %v2207_v27  ;;  %v2470_v62 = vmul.f32 %v13829_v34, %v2422_v16  ;;  %v2471_v43 = vmul.f32 %v13829_v34, %v2423_v0  ;;  %v2702_v59 = vmul.f32 %v8112_v45, %v2673_v37  ;;  %v13831_v10 = vld [vmem:[#allocation296_spill] sm:$0xff] }
 0x4cd   : > { %v2703_v47 = vmul.f32 %v8115_v9, %v2681_v20  ;;  %v2813_v6 = vsel %vm1590_vm5, %v9116_v55, %v9142_v60  ;;  %v2821_v36 = vsel %vm1590_vm5, %v9142_v60, %v9116_v55  ;;  %v2328_v29 = vmul.f32 %v13830_v51, %v2280_v61 }
 0x4ce   : > { %v2329_v18 = vmul.f32 %v13830_v51, %v2281_v15  ;;  %v2392_v37 = vsel %vm1164_vm4, %v13831_v10, %v9046_v7  ;;  %v2400_v16 = vsel %vm1164_vm4, %v9046_v7, %v13831_v10  ;;  %v2610_v31 = vmul.f32 %v13832_v12, %v2562_v28  ;;  %v13833_v15 = vld [vmem:[#allocation315_spill] sm:$0xff] }
 0x4cf   : > { %v2781_v44 = vpop.permute.xlu1 %2780  ;;  %v2611_v40 = vmul.f32 %v13832_v12, %v2563_v11  ;;  %v2953_v55 = vsel %vm1732_vm7, %v2923_v5, %v2939_v50  ;;  %v2961_v60 = vsel %vm1732_vm7, %v2939_v50, %v2923_v5  ;;  %v2486_v52 = vadd.f32 %v2470_v62, %v2346_v57  ;;  %v13834_v62 = vld [vmem:[#allocation337_spill] sm:$0xff] }
 0x4d0   : > { %v2487_v1 = vadd.f32 %v2471_v43, %v2347_v17  ;;  %v2842_v49 = vmul.f32 %v8162_v39, %v2813_v6  ;;  %v2843_v27 = vmul.f32 %v8165_v38, %v2821_v36  ;;  %v2420_v61 = vmul.f32 %v13792_v46, %v2400_v16 }
 0x4d1   : > { %v2421_v7 = vmul.f32 %v13793_v56, %v2392_v37  ;;  %v2750_v20 = vmul.f32 %v13833_v15, %v2702_v59  ;;  %v2751_v28 = vmul.f32 %v13833_v15, %v2703_v47  ;;  %v2982_v11 = vmul.f32 %v8241_v22, %v2953_v55  ;;  %v13835_v47 = vld [vmem:[#allocation272_spill] sm:$0xff] }
 0x4d2   : > { %v2983_v34 = vmul.f32 %v8244_v14, %v2961_v60  ;;  %v2344_v5 = vadd.f32 %v2328_v29, %v2204_v23  ;;  %v2345_v50 = vadd.f32 %v2329_v18, %v2205_v19  ;;  %v2626_v57 = vadd.f32 %v2610_v31, %v2486_v52  ;;  %v13836_v29 = vld [vmem:[#allocation339_spill] sm:$0xff] }
 0x4d3   : > { %v2797_v0 = vpop.permute.xlu1 %2796  ;;  %v2627_v17 = vadd.f32 %v2611_v40, %v2487_v1  ;;  %v2532_v46 = vsel %vm1306_vm3, %v9063_v53, %v9091_v32  ;;  %v2540_v56 = vsel %vm1306_vm3, %v9091_v32, %v9063_v53  ;;  %v2890_v43 = vmul.f32 %v13834_v62, %v2842_v49  ;;  %v13837_v32 = vld [vmem:[#allocation366_spill] sm:$0xff] }
 0x4d4   : > { %v2891_v59 = vmul.f32 %v13834_v62, %v2843_v27  ;;  %v2468_v6 = vmul.f32 %v13835_v47, %v2420_v61  ;;  %v2469_v19 = vmul.f32 %v13835_v47, %v2421_v7  ;;  %v2766_v23 = vadd.f32 %v2750_v20, %v2626_v57  ;;  %v13838_v61 = vld [vmem:[#allocation273_spill] sm:$0xff] }
 0x4d5   : > { %v2767_v36 = vadd.f32 %v2751_v28, %v2627_v17  ;;  %v2672_v18 = vsel %vm1448_vm6, %v13836_v29, %v9173_v41  ;;  %v2680_v53 = vsel %vm1448_vm6, %v9173_v41, %v13836_v29  ;;  %v3030_v10 = vmul.f32 %v13837_v32, %v2982_v11 }
 0x4d6   : > { %v3031_v37 = vmul.f32 %v13837_v32, %v2983_v34  ;;  %v2560_v12 = vmul.f32 %v13802_v48, %v2540_v56  ;;  %v2561_v31 = vmul.f32 %v13803_v8, %v2532_v46  ;;  %v2906_v60 = vadd.f32 %v2890_v43, %v2766_v23  ;;  %v13839_v34 = vld [vmem:[#allocation298_spill] sm:$0xff]  ;;  %v13842_v32 = vld [vmem:[#allocation341_spill] sm:$0xff] }
 0x4d7   : > { %v3063_v51 = vpop.permute.xlu1 %3062  ;;  %v2907_v52 = vadd.f32 %v2891_v59, %v2767_v36  ;;  %v2700_v49 = vmul.f32 %v8112_v45, %v2672_v18  ;;  %v2701_v27 = vmul.f32 %v8115_v9, %v2680_v53  ;;  %v2812_v48 = vsel %vm1590_vm5, %v2781_v44, %v2797_v0  ;;  %v13840_v45 = vld [vmem:[#allocation277_spill] sm:$0xff] }
 0x4d8   : > { %v2820_v8 = vsel %vm1590_vm5, %v2797_v0, %v2781_v44  ;;  %v3046_v28 = vadd.f32 %v3030_v10, %v2906_v60  ;;  %v2609_v57 = vmul.f32 %v13839_v34, %v2561_v31  ;;  %v2840_v44 = vmul.f32 %v8162_v39, %v2812_v48  ;;  %v13841_v59 = vld [vmem:[#allocation317_spill] sm:$0xff] }
 0x4d9   : > { %v3047_v11 = vadd.f32 %v3031_v37, %v2907_v52  ;;  %v2841_v0 = vmul.f32 %v8165_v38, %v2820_v8  ;;  %v2484_v62 = vadd.f32 %v2468_v6, %v2344_v5  ;;  %v2485_v43 = vadd.f32 %v2469_v19, %v2345_v50  ;;  %v13843_v6 = vld [vmem:[#allocation374_spill] sm:$0xff]  ;;  %v13844_v52 = vld [vmem:[#allocation295_spill] sm:$0xff] }
 0x4da   : > { %v2748_v47 = vmul.f32 %v13841_v59, %v2700_v49  ;;  %v2749_v23 = vmul.f32 %v13841_v59, %v2701_v27  ;;  %v2888_v10 = vmul.f32 %v13842_v32, %v2840_v44 }
 0x4db   : > { %v3079_v16 = vpop.permute.xlu1 %3078  ;;  %v2625_v38 = vadd.f32 %v2609_v57, %v2485_v43  ;;  %v2889_v37 = vmul.f32 %v13842_v32, %v2841_v0 }
 0x4dc   : > { %v3093_v40 = vsel %vm1874_vm8, %v3063_v51, %v3079_v16  ;;  %v3101_v55 = vsel %vm1874_vm8, %v3079_v16, %v3063_v51  ;;  %v2608_v51 = vmul.f32 %v13839_v34, %v2560_v12 }
 0x4dd   : > { %v3122_v1 = vmul.f32 %v8297_v4, %v3093_v40  ;;  %v3123_v41 = vmul.f32 %v8300_v25, %v3101_v55  ;;  %v2765_v50 = vadd.f32 %v2749_v23, %v2625_v38 }
 0x4de   : > { %v2624_v53 = vadd.f32 %v2608_v51, %v2484_v62 }
 0x4df   : > { %v3170_v7 = vmul.f32 %v13838_v61, %v3122_v1  ;;  %v3171_v15 = vmul.f32 %v13838_v61, %v3123_v41  ;;  %v2937_v20 = vpop.permute.xlu1 %2936  ;;  %v2905_v40 = vadd.f32 %v2889_v37, %v2765_v50 }
 0x4e0   : > { %v2952_v9 = vsel %vm1732_vm7, %v13840_v45, %v2937_v20  ;;  %v2960_v17 = vsel %vm1732_vm7, %v2937_v20, %v13840_v45  ;;  %v2764_v5 = vadd.f32 %v2748_v47, %v2624_v53 }
 0x4e1   : > { %v9347_v46 = vadd.f32 %v3170_v7, %v3046_v28  ;;  %v9349_v56 = vadd.f32 %v3171_v15, %v3047_v11  ;;  %v2980_v36 = vmul.f32 %v8241_v22, %v2952_v9  ;;  %v2981_v29 = vmul.f32 %v8244_v14, %v2960_v17 }
 0x4e2   : > { %v2904_v31 = vadd.f32 %v2888_v10, %v2764_v5 }
 0x4e3   : > { %v3061_v18 = vpop.permute.xlu1 %3060  ;;  %v4459_v39 = vmax.f32 %v9347_v46, %v9349_v56  ;;  %v3028_v19 = vmul.f32 %v13843_v6, %v2980_v36  ;;  %v3029_v16 = vmul.f32 %v13843_v6, %v2981_v29 }
 0x4e5   : > { %4460 = vmax.xlane.f32.xlu1 %v4459_v39  ;;  %v3044_v49 = vadd.f32 %v3028_v19, %v2904_v31  ;;  %v3045_v27 = vadd.f32 %v3029_v16, %v2905_v40 }
 0x4e7   : > { %v3077_v22 = vpop.permute.xlu1 %3076 }
 0x4e8   : > { %v3092_v14 = vsel %vm1874_vm8, %v3061_v18, %v3077_v22  ;;  %v3100_v12 = vsel %vm1874_vm8, %v3077_v22, %v3061_v18 }
 0x4e9   : > { %v3120_v55 = vmul.f32 %v8297_v4, %v3092_v14  ;;  %v3121_v60 = vmul.f32 %v8300_v25, %v3100_v12 }
 0x4eb   : > { %v3168_v1 = vmul.f32 %v13844_v52, %v3120_v55  ;;  %v3169_v41 = vmul.f32 %v13844_v52, %v3121_v60 }
 0x4ed   : > { %v9369_v48 = vadd.f32 %v3168_v1, %v3044_v49  ;;  %v9371_v8 = vadd.f32 %v3169_v41, %v3045_v27 }
 0x4ef   : > { %v4456_v61 = vmax.f32 %v9369_v48, %v9371_v8 }
 0x4f1   : > { %4457 = vmax.xlane.f32.xlu0 %v4456_v61 }
 0x51c   : > { %v4479_v7 = vpop.xlane.xlu0 %4478 }
 0x51d   : > { %v4494_v15 = vsub.f32 %v8996_v54, %v4479_v7  ;;  %v4495_v4 = vsub.f32 %v8998_v30, %v4479_v7 }
 0x51f   : > { %v4524_v25 = vmul.f32 1.442695, %v4494_v15  ;;  %v4526_v20 = vmul.f32 1.442695, %v4495_v4  ;;  %v9445_v4 = vpop.f32.mrf.mxu0 }
 0x520   : > { %v4473_v28 = vpop.xlane.xlu0 %4472  ;;  %13850 = vst [vmem:[#allocation307_spill] sm:$0xff] %v9445_v4 }
 0x521   : > { %5742 = vpow2.f32 %v4524_v25  ;;  %v4476_v11 = vpop.xlane.xlu1 %4475  ;;  %v4490_v34 = vsub.f32 %v8978_v35, %v4473_v28  ;;  %v4491_v51 = vsub.f32 %v9005_v24, %v4473_v28  ;;  %v13851_v25 = vmov 1   ;;  %v9458_v28 = vld [vmem:[%s12459_s3 + $0x88] sm:$0xff] }
 0x522   : > { %5744 = vpow2.f32 %v4526_v20  ;;  %v4492_v57 = vsub.f32 %v9022_v3, %v4476_v11  ;;  %v4493_v45 = vsub.f32 %v9024_v2, %v4476_v11  ;;  %v9450_v20 = vpop.f32.mrf.mxu0  ;;  %v13853_v11 = vmov 4  }
 0x523   : > { %v4516_v9 = vmul.f32 1.442695, %v4490_v34  ;;  %v4518_v54 = vmul.f32 1.442695, %v4491_v51  ;;  %13852 = vst [vmem:[#allocation309_spill] sm:$0xff] %v9450_v20  ;;  %v13854_v34 = vmov 0  }
 0x524   : > { %v4520_v17 = vmul.f32 1.442695, %v4492_v57  ;;  %v4522_v44 = vmul.f32 1.442695, %v4493_v45  ;;  %v4470_v0 = vpop.xlane.xlu0 %4469  ;;  %v5930_v51 = vld [vmem:[%s12459_s3] sm:$0xff]  ;;  %v5931_v57 = vld [vmem:[%s12459_s3 + $0x18] sm:$0xff] }
 0x525   : > { %5746 = vpow2.f32 %v4516_v9  ;;  %v4488_v30 = vsub.f32 %v9026_v26, %v4470_v0  ;;  %v4489_v62 = vsub.f32 %v9028_v13, %v4470_v0  ;;  %v13855_v45 = vmov 2   ;;  %v5932_v9 = vld [vmem:[%s12459_s3 + $0x28] sm:$0xff] }
 0x526   : > { %5748 = vpow2.f32 %v4520_v17 }
 0x527   : > { %5750 = vpow2.f32 %v4522_v44  ;;  %v4512_v35 = vmul.f32 1.442695, %v4488_v30  ;;  %v4514_v43 = vmul.f32 1.442695, %v4489_v62  ;;  %v5933_v44 = vld [vmem:[%s12459_s3 + $0x38] sm:$0xff] }
 0x528   : > { %5752 = vpow2.f32 %v4518_v54  ;;  %v4467_v24 = vpop.xlane.xlu1 %4466 }
 0x529   : > { %5754 = vpow2.f32 %v4512_v35  ;;  %v4486_v3 = vsub.f32 %v9048_v21, %v4467_v24  ;;  %v4487_v2 = vsub.f32 %v9050_v42, %v4467_v24 }
 0x52a   : > { %5756 = vpow2.f32 %v4514_v43  ;;  %v9503_v43 = vld [vmem:[%s12459_s3 + $0x90] sm:$0xff] }
 0x52b   : > { %v4508_v59 = vmul.f32 1.442695, %v4486_v3  ;;  %v4510_v47 = vmul.f32 1.442695, %v4487_v2  ;;  %13858 = vst [vmem:[#allocation308_spill] sm:$0xff] %v9503_v43 }
 0x52d   : > { %5758 = vpow2.f32 %v4508_v59 }
 0x52e   : > { %v9385_v23 = vpop.eup %5742  ;;  %5760 = vpow2.f32 %v4510_v47 }
 0x52f   : > { %v9387_v26 = vpop.eup %5744 }
 0x530   : > { %v4549_v13 = vadd.f32 %v9387_v26, %v9385_v23  ;;  %v9480_v17 = vpop.f32.mrf.mxu0 }
 0x531   : > { %13856 = vst [vmem:[#allocation310_spill] sm:$0xff] %v9480_v17 }
 0x532   : > { %v9391_v36 = vpop.eup %5746  ;;  %4550 = vadd.xlane.f32.xlu1 %v4549_v13  ;;  %v9486_v0 = vpop.f32.mrf.mxu0 }
 0x533   : > { %v9393_v29 = vpop.eup %5748  ;;  %13857 = vst [vmem:[#allocation313_spill] sm:$0xff] %v9486_v0 }
 0x534   : > { %v9395_v21 = vpop.eup %5750 }
 0x535   : > { %v9397_v42 = vpop.eup %5752  ;;  %v4546_v18 = vadd.f32 %v9395_v21, %v9393_v29 }
 0x536   : > { %v9401_v39 = vpop.eup %5754  ;;  %v4543_v53 = vadd.f32 %v9397_v42, %v9391_v36  ;;  %v9507_v2 = vpop.f32.mrf.mxu0 }
 0x537   : > { %v9405_v38 = vpop.eup %5756  ;;  %4547 = vadd.xlane.f32.xlu0 %v4546_v18  ;;  %13859 = vst [vmem:[#allocation288_spill] sm:$0xff] %v9507_v2 }
 0x538   : > { %4544 = vadd.xlane.f32.xlu1 %v4543_v53  ;;  %v4540_v32 = vadd.f32 %v9405_v38, %v9401_v39  ;;  %v9511_v13 = vpop.f32.mrf.mxu0 }
 0x539   : > { %13860 = vst [vmem:[#allocation324_spill] sm:$0xff] %v9511_v13 }
 0x53a   : > { %v9409_v10 = vpop.eup %5758 }
 0x53b   : > { %v9411_v37 = vpop.eup %5760  ;;  %4541 = vadd.xlane.f32.xlu0 %v4540_v32 }
 0x53c   : > { %v4537_v5 = vadd.f32 %v9411_v37, %v9409_v10 }
 0x53e   : > { %4538 = vadd.xlane.f32.xlu1 %v4537_v5 }
 0x552   : > { %v4464_v50 = vpop.xlane.xlu0 %4463 }
 0x553   : > { %v4484_v6 = vsub.f32 %v9191_v63, %v4464_v50  ;;  %v4485_v19 = vsub.f32 %v9193_v33, %v4464_v50 }
 0x555   : > { %v4504_v16 = vmul.f32 1.442695, %v4484_v6  ;;  %v4506_v22 = vmul.f32 1.442695, %v4485_v19 }
 0x557   : > { %5762 = vpow2.f32 %v4504_v16 }
 0x558   : > { %5764 = vpow2.f32 %v4506_v22 }
 0x564   : > { %v9417_v14 = vpop.eup %5762 }
 0x565   : > { %v9419_v12 = vpop.eup %5764 }
 0x566   : > { %v4534_v31 = vadd.f32 %v9419_v12, %v9417_v14 }
 0x568   : > { %4535 = vadd.xlane.f32.xlu0 %v4534_v31 }
 0x56e   : > { %v4461_v40 = vpop.xlane.xlu1 %4460 }
 0x56f   : > { %v4482_v55 = vsub.f32 %v9347_v46, %v4461_v40  ;;  %v4483_v60 = vsub.f32 %v9349_v56, %v4461_v40  ;;  %v13866_v40 = vld [vmem:[#allocation83_spill] sm:$0xff] }
 0x571   : > { %v4500_v63 = vmul.f32 1.442695, %v4482_v55  ;;  %v4502_v52 = vmul.f32 1.442695, %v4483_v60  ;;  %v13867_v60 = vld [vmem:[#allocation358_spill] sm:$0xff] }
 0x573   : > { %5766 = vpow2.f32 %v4500_v63 }
 0x574   : > { %5768 = vpow2.f32 %v4502_v52 }
 0x57a   : > { %v4458_v33 = vpop.xlane.xlu0 %4457 }
 0x57b   : > { %v4480_v1 = vsub.f32 %v9369_v48, %v4458_v33  ;;  %v4481_v41 = vsub.f32 %v9371_v8, %v4458_v33  ;;  %v9442_v8 = vld [vmem:[%s12459_s3 + $0x80] sm:$0xff] }
 0x57c   : > { %13849 = vst [vmem:[#allocation297_spill] sm:$0xff] %v9442_v8  ;;  %v9567_v33 = vld [vmem:[%s12459_s3 + $0xa0] sm:$0xff] }
 0x57d   : > { %v4496_v49 = vmul.f32 1.442695, %v4480_v1  ;;  %v4498_v27 = vmul.f32 1.442695, %v4481_v41 }
 0x57f   : > { %5770 = vpow2.f32 %v4496_v49  ;;  %v13868_v49 = vld [vmem:[#allocation19_spill] sm:$0xff] }
 0x580   : > { %v9427_v61 = vpop.eup %5766  ;;  %5772 = vpow2.f32 %v4498_v27  ;;  %v13869_v27 = vld [vmem:[#allocation41_spill] sm:$0xff] }
 0x581   : > { %13845 = vst [vmem:[#allocation248_spill] sm:$0xff] %v9427_v61  ;;  %v9429_v7 = vpop.eup %5768 }
 0x582   : > { %13846 = vst [vmem:[#allocation306_spill] sm:$0xff] %v9429_v7  ;;  %v4531_v46 = vadd.f32 %v9429_v7, %v9427_v61 }
 0x584   : > { %4532 = vadd.xlane.f32.xlu1 %v4531_v46  ;;  %v9578_v46 = vmul.f32 %v13869_v27, %v13868_v49 }
 0x58c   : > { %v9433_v56 = vpop.eup %5770 }
 0x58d   : > { %13847 = vst [vmem:[#allocation304_spill] sm:$0xff] %v9433_v56  ;;  %v9435_v15 = vpop.eup %5772 }
 0x58e   : > { %13848 = vst [vmem:[#allocation250_spill] sm:$0xff] %v9435_v15  ;;  %v4528_v48 = vadd.f32 %v9435_v15, %v9433_v56  ;;  %v13914_v15 = vld [vmem:[#allocation11_spill] sm:$0xff] }
 0x590   : > { %4529 = vadd.xlane.f32.xlu0 %v4528_v48  ;;  %v13870_v48 = vld [vmem:[#allocation22_spill] sm:$0xff] }
 0x595   : > { %3242 = vperm.xlu1 %5713, %v9442_v8  }
 0x599   : > { %3296 = vrot.lane.b32.xlu1 %v9445_v4, %s6022_s10 }
 0x59a   : > { %5715 = vset.pattern.permute.xlu1 %v13851_v25 }
 0x59d   : > { %3312 = vrot.lane.b32.xlu1 %v9450_v20, %s6022_s10 }
 0x5a1   : > { %3513 = vperm.xlu1 %5715, %v9442_v8  }
 0x5a5   : > { %5716 = vset.pattern.permute.xlu1 %v13853_v11 }
 0x5a6   : > { %3373 = vperm.xlu0 %5712, %v9442_v8   ;;  %3247 = vperm.xlu1 %5716, %v9458_v28  }
 0x5aa   : > { %5714 = vset.pattern.permute.xlu0 %v13851_v25  ;;  %5717 = vset.pattern.permute.xlu1 %v13854_v34  ;;  %v9582_v25 = vmul.f32 %v13869_v27, %v13870_v48  ;;  %v13886_v27 = vld [vmem:[#allocation12_spill] sm:$0xff] }
 0x5ab   : > { %1069 = vperm.xlu0 %5714, %v5930_v51   ;;  %3377 = vperm.xlu1 %5717, %v9458_v28   ;;  %v5937_v51 = vld [vmem:[%s12460_s4 + $0x6] ss:$8 sm:$0x3] }
 0x5af   : > { %1081 = vperm.xlu0 %5714, %v5931_v57   ;;  %3436 = vrot.lane.b32.xlu1 %v9445_v4, %s6021_s26  ;;  %v9588_v57 = vrot.slane %v5937_v51, %v13867_v60  ;;  %v13887_v51 = vld [vmem:[#allocation56_spill] sm:$0xff] }
 0x5b0   : > { %5718 = vset.pattern.permute.xlu1 %v13855_v45 }
 0x5b3   : > { %1089 = vperm.xlu0 %5714, %v5932_v9   ;;  %3452 = vrot.lane.b32.xlu1 %v9450_v20, %s6021_s26  ;;  %v5938_v9 = vld [vmem:[%s12460_s4 + $0x2] ss:$8 sm:$0x3] }
 0x5b7   : > { %1097 = vperm.xlu0 %5714, %v5933_v44   ;;  %3653 = vperm.xlu1 %5718, %v9442_v8   ;;  %v9594_v44 = vrot.slane %v5938_v9, %v13867_v60  ;;  %v13888_v9 = vld [vmem:[#allocation9_spill] sm:$0xff] }
 0x5bb   : > { %v4551_v54 = vpop.xlane.xlu1 %4550  ;;  %3298 = vrot.lane.b32.xlu0 %v9480_v17, %s6022_s10  ;;  %3314 = vrot.lane.b32.xlu1 %v9486_v0, %s6022_s10 }
 0x5bc   : > { %5774 = vrcp.f32 %v4551_v54  ;;  %5719 = vset.pattern.permute.xlu1 %v13853_v11  ;;  %v13871_v54 = vld [vmem:[#allocation34_spill] sm:$0xff] }
 0x5bf   : > { %3517 = vperm.xlu0 %5714, %v9458_v28   ;;  %3576 = vrot.lane.b32.xlu1 %v9445_v4, %s6024_s13 }
 0x5c0   : > { %v4548_v30 = vpop.xlane.xlu0 %4547 }
 0x5c1   : > { %v4545_v62 = vpop.xlane.xlu1 %4544  ;;  %5776 = vrcp.f32 %v4548_v30  ;;  %v13872_v30 = vld [vmem:[#allocation8_spill] sm:$0xff] }
 0x5c2   : > { %5778 = vrcp.f32 %v4545_v62  ;;  %v836_v62 = vmul.f32 %v13872_v30, %v13871_v54  ;;  %v9650_v54 = vmul.f32 %v13888_v9, %v13887_v51  ;;  %v13890_v30 = vld [vmem:[#allocation63_spill] sm:$0xff]  ;;  %v13899_v51 = vld [vmem:[#allocation10_spill] sm:$0xff] }
 0x5c3   : > { %3438 = vrot.lane.b32.xlu0 %v9480_v17, %s6021_s26  ;;  %3592 = vrot.lane.b32.xlu1 %v9450_v20, %s6024_s13 }
 0x5c4   : > { %v4542_v35 = vpop.xlane.xlu0 %4541  ;;  %13889 = vst [vmem:[#allocation325_spill] sm:$0xff] %v9650_v54  ;;  %v13922_v54 = vld [vmem:[#allocation84_spill] sm:$0xff] }
 0x5c5   : > { %5780 = vrcp.f32 %v4542_v35  ;;  %v13873_v35 = vld [vmem:[#allocation28_spill] sm:$0xff] }
 0x5c7   : > { %v4539_v24 = vpop.xlane.xlu1 %4538  ;;  %3521 = vperm.xlu0 %5714, %v9503_v43   ;;  %3252 = vperm.xlu1 %5719, %v9503_v43  }
 0x5c8   : > { %5782 = vrcp.f32 %v4539_v24  ;;  %v13874_v24 = vld [vmem:[#allocation7_spill] sm:$0xff] }
 0x5c9   : > { %v5775_v3 = vpop.eup %5774 }
 0x5ca   : > { %v4575_v59 = vmul.f32 %v5775_v3, %v9387_v26  ;;  %v4574_v47 = vmul.f32 %v5775_v3, %v9385_v23  ;;  %v9522_v23 = vld [vmem:[%s12459_s3 + $0x98] sm:$0xff]  ;;  %v9524_v26 = vpop.f32.mrf.mxu0  ;;  %v9600_v3 = vmul.f32 %v13874_v24, %v13873_v35  ;;  %v13891_v35 = vld [vmem:[#allocation45_spill] sm:$0xff] }
 0x5cb   : > { %5720 = vset.pattern.permute.xlu1 %v13854_v34  ;;  %3440 = vrot.lane.b32.xlu0 %v9507_v2, %s6021_s26  ;;  %13861 = vst [vmem:[#allocation322_spill] sm:$0xff] %v9522_v23  ;;  %13862 = vst [vmem:[#allocation332_spill] sm:$0xff] %v9524_v26  ;;  %v9654_v24 = vmul.f32 %v13891_v35, %v13890_v30 }
 0x5cc   : > { %4608 = vmatprep.subr.mxu1 %v4575_v59  ;;  %3381 = vperm.xlu1 %5720, %v9503_v43   ;;  %13875 = vst [vmem:[#allocation334_spill] sm:$0xff] %v9600_v3  ;;  %v13876_v59 = vld [vmem:[#allocation37_spill] sm:$0xff] }
 0x5cd   : > { %4609 = vmatpush1.xpose.msra.mxu1 %v4574_v47  ;;  %v13877_v47 = vld [vmem:[#allocation43_spill] sm:$0xff] }
 0x5ce   : > { %v5777_v18 = vpop.eup %5776 }
 0x5cf   : > { %v5779_v53 = vpop.eup %5778  ;;  %v4572_v32 = vmul.f32 %v5777_v18, %v9395_v21  ;;  %v4571_v5 = vmul.f32 %v5777_v18, %v9393_v29  ;;  %3525 = vperm.xlu0 %5714, %v9522_v23   ;;  %v9530_v21 = vpop.f32.mrf.mxu0  ;;  %v9604_v18 = vmul.f32 %v13877_v47, %v13876_v59  ;;  %v13892_v59 = vld [vmem:[#allocation72_spill] sm:$0xff] }
 0x5d0   : > { %v4569_v50 = vmul.f32 %v5779_v53, %v9397_v42  ;;  %3454 = vrot.lane.b32.xlu1 %v9486_v0, %s6021_s26  ;;  %13863 = vst [vmem:[#allocation254_spill] sm:$0xff] %v9530_v21  ;;  %v4568_v29 = vmul.f32 %v5779_v53, %v9391_v36  ;;  %v13865_v36 = vld [vmem:[#allocation96_spill] sm:$0xff]  ;;  %v13878_v53 = vld [vmem:[#allocation51_spill] sm:$0xff] }
 0x5d1   : > { %4610 = vmatprep.subr.mxu1 %v4572_v32  ;;  %5721 = vset.pattern.permute.xlu1 %v13853_v11  ;;  %v9539_v42 = vpop.f32.mrf.mxu0  ;;  %v884_v55 = vsel %vm881_vm2, %v13866_v40, %v13865_v36  ;;  %v13879_v32 = vld [vmem:[#allocation60_spill] sm:$0xff]  ;;  %v13882_v40 = vld [vmem:[#allocation82_spill] sm:$0xff]  ;;  %v13930_v21 = vld [vmem:[#allocation87_spill] sm:$0xff] }
 0x5d2   : > { %v5781_v6 = vpop.eup %5780  ;;  %4611 = vmatpush1.xpose.msra.mxu1 %v4571_v5  ;;  %13864 = vst [vmem:[#allocation336_spill] sm:$0xff] %v9539_v42  ;;  %v890_v5 = vsel %vm881_vm2, %v13879_v32, %v13878_v53  ;;  %v13881_v36 = vld [vmem:[#allocation92_spill] sm:$0xff] }
 0x5d3   : > { %4612 = vmatprep.subr.mxu1 %v4569_v50  ;;  %v4566_v16 = vmul.f32 %v5781_v6, %v9405_v38  ;;  %3442 = vrot.lane.b32.xlu0 %v9524_v26, %s6021_s26  ;;  %v4565_v31 = vmul.f32 %v5781_v6, %v9401_v39  ;;  %v5934_v38 = vld [vmem:[%s12460_s4] ss:$8 sm:$0x3]  ;;  %v5935_v39 = vld [vmem:[%s12460_s4 + $0x1] ss:$8 sm:$0x3] }
 0x5d4   : > { %3716 = vrot.lane.b32.xlu1 %v9445_v4, %s6023_s12  ;;  %v9551_v63 = vrot.slane %v5934_v38, %v13867_v60  ;;  %v5939_v50 = vld [vmem:[%s12460_s4 + $0x5] ss:$8 sm:$0x3]  ;;  %v9637_v38 = vpop.f32.mrf.mxu0 }
 0x5d5   : > { %v5783_v19 = vpop.eup %5782  ;;  %v9614_v6 = vrot.slane %v5939_v50, %v13867_v60  ;;  %13883 = vst [vmem:[#allocation218_spill] sm:$0xff] %v9637_v38  ;;  %v13894_v50 = vld [vmem:[#allocation98_spill] sm:$0xff] }
 0x5d6   : > { %4613 = vmatpush1.xpose.msra.mxu1 %v4568_v29  ;;  %v4563_v22 = vmul.f32 %v5783_v19, %v9411_v37  ;;  %v4562_v52 = vmul.f32 %v5783_v19, %v9409_v10  ;;  %v9560_v37 = vrot.slane %v5935_v39, %v13867_v60  ;;  %v5936_v10 = vld [vmem:[%s12460_s4 + $0x3] ss:$8 sm:$0x3]  ;;  %v915_v41 = vmul.f32 %v9551_v63, %v884_v55  ;;  %v13880_v29 = vld [vmem:[#allocation42_spill] sm:$0xff] }
 0x5d7   : > { %4614 = vmatprep.subr.mxu1 %v4566_v16  ;;  %3304 = vrot.lane.b32.xlu0 %v9539_v42, %s6022_s10  ;;  %v9573_v1 = vrot.slane %v5936_v10, %v13867_v60  ;;  %v9619_v19 = vmul.f32 %v13877_v47, %v13880_v29  ;;  %v882_v16 = vsel %vm881_vm2, %v13878_v53, %v13879_v32  ;;  %v13885_v39 = vld [vmem:[#allocation50_spill] sm:$0xff]  ;;  %v13895_v29 = vld [vmem:[#allocation85_spill] sm:$0xff] }
 0x5d8   : > { %3732 = vrot.lane.b32.xlu1 %v9450_v20, %s6023_s12  ;;  %v1025_v55 = vsel %vm1022_vm1, %v13882_v40, %v13881_v36  ;;  %v963_v48 = vmul.f32 %v13886_v27, %v915_v41  ;;  %v9658_v47 = vmul.f32 %v13891_v35, %v13892_v59  ;;  %v13893_v53 = vld [vmem:[#allocation94_spill] sm:$0xff]  ;;  %v13896_v41 = vld [vmem:[#allocation52_spill] sm:$0xff]  ;;  %v13897_v36 = vld [vmem:[#allocation59_spill] sm:$0xff]  ;;  %v9685_v59 = vpop.f32.mrf.mxu0 }
 0x5d9   : > { %v910_v32 = vmul.f32 %v13893_v53, %v890_v5  ;;  %v1315_v40 = vsel %vm1306_vm3, %v13897_v36, %v13896_v41  ;;  %v13898_v27 = vld [vmem:[#allocation88_spill] sm:$0xff]  ;;  %v13901_v5 = vld [vmem:[#allocation93_spill] sm:$0xff]  ;;  %13904 = vst [vmem:[#allocation245_spill] sm:$0xff] %v9685_v59 }
 0x5da   : > { %4615 = vmatpush1.xpose.msra.mxu1 %v4565_v31  ;;  %v9673_v9 = vmul.f32 %v13899_v51, %v13898_v27  ;;  %v13910_v51 = vld [vmem:[#allocation62_spill] sm:$0xff]  ;;  %v979_v38 = vadd.f32 %v963_v48, %v836_v62  ;;  %v13917_v62 = vld [vmem:[#allocation61_spill] sm:$0xff] }
 0x5db   : > { %4616 = vmatprep.subr.mxu1 %v4563_v22  ;;  %3529 = vperm.xlu0 %5714, %v9567_v33   ;;  %v5940_v22 = vld [vmem:[%s12460_s4 + $0x7] ss:$8 sm:$0x3]  ;;  %v13918_v48 = vld [vmem:[#allocation54_spill] sm:$0xff] }
 0x5dc   : > { %v9629_v31 = vrot.slane %v5940_v22, %v13867_v60  ;;  %3300 = vrot.lane.b32.xlu1 %v9507_v2, %s6022_s10  ;;  %v1167_v22 = vsel %vm1164_vm4, %v13895_v29, %v13894_v50  ;;  %13900 = vst [vmem:[#allocation328_spill] sm:$0xff] %v9673_v9  ;;  %v13908_v29 = vld [vmem:[#allocation112_spill] sm:$0xff]  ;;  %v13916_v9 = vld [vmem:[#allocation55_spill] sm:$0xff] }
 0x5dd   : > { %v1199_v56 = vmul.f32 %v9594_v44, %v1167_v22  ;;  %v1591_v22 = vsel %vm1590_vm5, %v13918_v48, %v13917_v62 }
 0x5de   : > { %4617 = vmatpush1.xpose.msra.mxu1 %v4562_v52  ;;  %v13884_v52 = vld [vmem:[#allocation58_spill] sm:$0xff] }
 0x5df   : > { %v1023_v10 = vsel %vm1022_vm1, %v13885_v39, %v13884_v52  ;;  %v1031_v49 = vsel %vm1022_vm1, %v13884_v52, %v13885_v39  ;;  %v911_v52 = vmul.f32 %v9551_v63, %v882_v16  ;;  %v1057_v39 = vmul.f32 %v9560_v37, %v1025_v55  ;;  %3444 = vrot.lane.b32.xlu0 %v9539_v42, %s6021_s26  ;;  %v13905_v16 = vld [vmem:[#allocation101_spill] sm:$0xff]  ;;  %v13906_v55 = vld [vmem:[#allocation48_spill] sm:$0xff] }
 0x5e0   : > { %v9678_v30 = vmul.f32 %v13901_v5, %v1031_v49  ;;  %v9681_v35 = vmul.f32 %v9560_v37, %v1023_v10  ;;  %3316 = vrot.lane.b32.xlu1 %v9511_v13, %s6022_s10  ;;  %v9689_v50 = vmul.f32 %v13906_v55, %v13905_v16  ;;  %v9693_v27 = vmul.f32 %v13906_v55, %v13908_v29  ;;  %v13911_v42 = vld [vmem:[#allocation53_spill] sm:$0xff]  ;;  %v13912_v55 = vld [vmem:[#allocation99_spill] sm:$0xff] }
 0x5e1   : > { %v1165_v49 = vsel %vm1164_vm4, %v13911_v42, %v13910_v51  ;;  %v1173_v10 = vsel %vm1164_vm4, %v13910_v51, %v13911_v42  ;;  %v1307_v16 = vsel %vm1306_vm3, %v13896_v41, %v13897_v36  ;;  %v9709_v29 = vmul.f32 %v13912_v55, %v1315_v40  ;;  %v13919_v36 = vld [vmem:[#allocation17_spill] sm:$0xff] }
 0x5e2   : > { %13902 = vst [vmem:[#allocation326_spill] sm:$0xff] %v9678_v30  ;;  %13903 = vst [vmem:[#allocation329_spill] sm:$0xff] %v9681_v35  ;;  %v958_v35 = vmul.f32 %v13914_v15, %v910_v32  ;;  %v13915_v30 = vld [vmem:[#allocation64_spill] sm:$0xff]  ;;  %v959_v42 = vmul.f32 %v13914_v15, %v911_v52  ;;  %v1105_v40 = vmul.f32 %v13919_v36, %v1057_v39  ;;  %v13926_v36 = vld [vmem:[#allocation23_spill] sm:$0xff] }
 0x5e3   : > { %13907 = vst [vmem:[#allocation258_spill] sm:$0xff] %v9689_v50  ;;  %13909 = vst [vmem:[#allocation348_spill] sm:$0xff] %v9693_v27  ;;  %v1449_v8 = vsel %vm1448_vm6, %v13916_v9, %v13915_v30  ;;  %v1457_v41 = vsel %vm1448_vm6, %v13915_v30, %v13916_v9  ;;  %3306 = vrot.lane.b32.xlu0 %v9685_v59, %s6022_s10  ;;  %v1599_v15 = vsel %vm1590_vm5, %v13917_v62, %v13918_v48  ;;  %v13920_v32 = vld [vmem:[#allocation100_spill] sm:$0xff]  ;;  %v13923_v9 = vld [vmem:[#allocation102_spill] sm:$0xff] }
 0x5e4   : > { %13913 = vst [vmem:[#allocation362_spill] sm:$0xff] %v9709_v29  ;;  %v1194_v52 = vmul.f32 %v13920_v32, %v1173_v10  ;;  %v1195_v51 = vmul.f32 %v9594_v44, %v1165_v49  ;;  %v13921_v29 = vld [vmem:[#allocation95_spill] sm:$0xff]  ;;  %3578 = vrot.lane.b32.xlu1 %v9480_v17, %s6024_s13  ;;  %v9743_v39 = vld [vmem:[%s12459_s3 + $0xa8] sm:$0xff]  ;;  %v1478_v30 = vmul.f32 %v13923_v9, %v1449_v8  ;;  %v13924_v62 = vld [vmem:[#allocation66_spill] sm:$0xff] }
 0x5e5   : > { %v1309_v61 = vsel %vm1306_vm3, %v13922_v54, %v13921_v29  ;;  %v13925_v48 = vld [vmem:[#allocation57_spill] sm:$0xff]  ;;  %v1121_v10 = vadd.f32 %v1105_v40, %v979_v38  ;;  %v1247_v7 = vmul.f32 %v13926_v36, %v1199_v56  ;;  %v9752_v54 = vmul.f32 %v9573_v1, %v1307_v16  ;;  %v13931_v27 = vld [vmem:[#allocation103_spill] sm:$0xff] }
 0x5e6   : > { %v1733_v49 = vsel %vm1732_vm7, %v13925_v48, %v13924_v62  ;;  %v13928_v29 = vld [vmem:[#allocation105_spill] sm:$0xff]  ;;  %v1479_v2 = vmul.f32 %v9614_v6, %v1457_v41  ;;  %v1459_v8 = vsel %vm1448_vm6, %v13931_v27, %v13930_v21  ;;  %v9763_v50 = vmul.f32 %v9588_v57, %v1599_v15  ;;  %v13937_v27 = vld [vmem:[#allocation75_spill] sm:$0xff]  ;;  %v13938_v15 = vld [vmem:[#allocation68_spill] sm:$0xff] }
 0x5e7   : > { %13927 = vst [vmem:[#allocation327_spill] sm:$0xff] %v9752_v54  ;;  %v9755_v3 = vmul.f32 %v13928_v29, %v1591_v22  ;;  %v1741_v56 = vsel %vm1732_vm7, %v13924_v62, %v13925_v48  ;;  %v1341_v38 = vmul.f32 %v9573_v1, %v1309_v61  ;;  %3533 = vperm.xlu0 %5714, %v9743_v39   ;;  %v13934_v22 = vld [vmem:[#allocation21_spill] sm:$0xff]  ;;  %v9784_v62 = vpop.f32.mrf.mxu0 }
 0x5e8   : > { %13932 = vst [vmem:[#allocation311_spill] sm:$0xff] %v9763_v50  ;;  %v9772_v16 = vadd.f32 %v958_v35, %v9578_v46  ;;  %v9775_v41 = vmul.f32 %v13934_v22, %v1194_v52  ;;  %v13936_v40 = vld [vmem:[#allocation185_spill] sm:$0xff]  ;;  %v1024_v36 = vsel %vm1022_vm1, %v13938_v15, %v13937_v27  ;;  %3594 = vrot.lane.b32.xlu1 %v9486_v0, %s6024_s13  ;;  %13939 = vst [vmem:[#allocation338_spill] sm:$0xff] %v9784_v62  ;;  %v13942_v35 = vld [vmem:[#allocation32_spill] sm:$0xff] }
 0x5e9   : > { %13929 = vst [vmem:[#allocation319_spill] sm:$0xff] %v9755_v3  ;;  %v1762_v21 = vmul.f32 %v13936_v40, %v1733_v49  ;;  %v9787_v61 = vadd.f32 %v959_v42, %v9582_v25  ;;  %v9790_v46 = vmul.f32 %v13934_v22, %v1195_v51  ;;  %v9793_v52 = vmul.f32 %v13942_v35, %v1478_v30  ;;  %v13945_v15 = vld [vmem:[#allocation74_spill] sm:$0xff]  ;;  %v13948_v62 = vld [vmem:[#allocation97_spill] sm:$0xff]  ;;  %v13951_v22 = vld [vmem:[#allocation104_spill] sm:$0xff] }
 0x5ea   : > { %13933 = vst [vmem:[#allocation361_spill] sm:$0xff] %v9772_v16  ;;  %13935 = vst [vmem:[#allocation340_spill] sm:$0xff] %v9775_v41  ;;  %v1263_v48 = vadd.f32 %v1247_v7, %v1121_v10  ;;  %v1483_v49 = vmul.f32 %v9614_v6, %v1459_v8  ;;  %v9797_v41 = vmul.f32 %v13942_v35, %v1479_v2  ;;  %v13946_v16 = vld [vmem:[#allocation65_spill] sm:$0xff]  ;;  %v13947_v42 = vld [vmem:[#allocation86_spill] sm:$0xff] }
 0x5eb   : > { %13940 = vst [vmem:[#allocation364_spill] sm:$0xff] %v9787_v61  ;;  %13941 = vst [vmem:[#allocation372_spill] sm:$0xff] %v9790_v46  ;;  %v1763_v27 = vmul.f32 %v9629_v31, %v1741_v56  ;;  %v883_v25 = vsel %vm881_vm2, %v13946_v16, %v13945_v15  ;;  %v1601_v51 = vsel %vm1590_vm5, %v13948_v62, %v13947_v42  ;;  %v13949_v7 = vld [vmem:[#allocation29_spill] sm:$0xff]  ;;  %v13950_v8 = vld [vmem:[#allocation114_spill] sm:$0xff]  ;;  %3446 = vrot.lane.b32.xlu0 %v9685_v59, %s6021_s26 }
 0x5ec   : > { %13943 = vst [vmem:[#allocation352_spill] sm:$0xff] %v9793_v52  ;;  %13944 = vst [vmem:[#allocation350_spill] sm:$0xff] %v9797_v41  ;;  %v1055_v30 = vmul.f32 %v9560_v37, %v1024_v36  ;;  %v1389_v10 = vmul.f32 %v13949_v7, %v1341_v38  ;;  %v885_v2 = vsel %vm881_vm2, %v13951_v22, %v13950_v8  ;;  %v13952_v16 = vld [vmem:[#allocation47_spill] sm:$0xff]  ;;  %v13954_v62 = vld [vmem:[#allocation76_spill] sm:$0xff]  ;;  %3856 = vrot.lane.b32.xlu1 %v9445_v4, %s6026_s18 }
 0x5ed   : > { %v893_v56 = vsel %vm881_vm2, %v13950_v8, %v13951_v22  ;;  %v9821_v35 = vmul.f32 %v13952_v16, %v1762_v21  ;;  %v13955_v36 = vld [vmem:[#allocation67_spill] sm:$0xff]  ;;  %v13956_v15 = vld [vmem:[#allocation77_spill] sm:$0xff]  ;;  %v13957_v42 = vld [vmem:[#allocation70_spill] sm:$0xff]  ;;  %v9837_v21 = vpop.f32.mrf.mxu0  ;;  %v917_v61 = vmul.f32 %v9551_v63, %v885_v2 }
 0x5ee   : > { %v1166_v38 = vsel %vm1164_vm4, %v13955_v36, %v13954_v62  ;;  %v1308_v7 = vsel %vm1306_vm3, %v13957_v42, %v13956_v15  ;;  %v13958_v41 = vld [vmem:[#allocation69_spill] sm:$0xff]  ;;  %v13959_v52 = vld [vmem:[#allocation78_spill] sm:$0xff]  ;;  %13960 = vst [vmem:[#allocation49_spill] sm:$0xff] %v9837_v21  ;;  %v13962_v59 = vld [vmem:[#allocation79_spill] sm:$0xff]  ;;  %v1625_v36 = vmul.f32 %v9588_v57, %v1601_v51  ;;  %v9846_v42 = vmul.f32 %v13952_v16, %v1763_v27 }
 0x5ef   : > { %13953 = vst [vmem:[#allocation392_spill] sm:$0xff] %v9821_v35  ;;  %v1458_v8 = vsel %vm1448_vm6, %v13959_v52, %v13958_v41  ;;  %v13961_v22 = vld [vmem:[#allocation73_spill] sm:$0xff]  ;;  %v1405_v35 = vadd.f32 %v1389_v10, %v1263_v48  ;;  %v9849_v41 = vmul.f32 %v9551_v63, %v883_v25  ;;  %v916_v52 = vmul.f32 %v13893_v53, %v893_v56  ;;  %v13965_v50 = vld [vmem:[#allocation16_spill] sm:$0xff]  ;;  %v13968_v27 = vld [vmem:[#allocation71_spill] sm:$0xff] }
 0x5f0   : > { %v1600_v62 = vsel %vm1590_vm5, %v13962_v59, %v13961_v22  ;;  %v13963_v46 = vld [vmem:[#allocation33_spill] sm:$0xff]  ;;  %13964 = vst [vmem:[#allocation290_spill] sm:$0xff] %v9846_v42  ;;  %v9854_v3 = vmul.f32 %v13965_v50, %v1055_v30  ;;  %v9857_v59 = vmul.f32 %v9594_v44, %v1166_v38  ;;  %v1339_v48 = vmul.f32 %v9573_v1, %v1308_v7  ;;  %v13969_v25 = vld [vmem:[#allocation80_spill] sm:$0xff]  ;;  %v13971_v30 = vld [vmem:[#allocation107_spill] sm:$0xff] }
 0x5f1   : > { %v1531_v15 = vmul.f32 %v13963_v46, %v1483_v49  ;;  %v9861_v46 = vmul.f32 %v9614_v6, %v1458_v8  ;;  %3308 = vrot.lane.b32.xlu0 %v9837_v21, %s6022_s10  ;;  %v1623_v49 = vmul.f32 %v9588_v57, %v1600_v62  ;;  %v1742_v51 = vsel %vm1732_vm7, %v13969_v25, %v13968_v27  ;;  %v13970_v50 = vld [vmem:[#allocation116_spill] sm:$0xff]  ;;  %v4536_v56 = vpop.xlane.xlu0 %4535  ;;  %v9883_v16 = vld [vmem:[%s12459_s3 + $0xb0] sm:$0xff]  ;;  %v13973_v22 = vld [vmem:[#allocation91_spill] sm:$0xff] }
 0x5f2   : > { %13966 = vst [vmem:[#allocation368_spill] sm:$0xff] %v9857_v59  ;;  %v1168_v10 = vsel %vm1164_vm4, %v13971_v30, %v13970_v50  ;;  %v1176_v2 = vsel %vm1164_vm4, %v13970_v50, %v13971_v30  ;;  %3872 = vrot.lane.b32.xlu1 %v9450_v20, %s6026_s18  ;;  %v13972_v38 = vld [vmem:[#allocation40_spill] sm:$0xff]  ;;  %v13974_v62 = vld [vmem:[#allocation106_spill] sm:$0xff]  ;;  %5784 = vrcp.f32 %v4536_v56  ;;  %v13975_v25 = vld [vmem:[#allocation13_spill] sm:$0xff] }
 0x5f3   : > { %13967 = vst [vmem:[#allocation365_spill] sm:$0xff] %v9861_v46  ;;  %v1673_v7 = vmul.f32 %v13972_v38, %v1625_v36  ;;  %v1547_v8 = vadd.f32 %v1531_v15, %v1405_v35  ;;  %v1743_v27 = vsel %vm1732_vm7, %v13974_v62, %v13973_v22  ;;  %v964_v50 = vmul.f32 %v13975_v25, %v916_v52  ;;  %v13976_v42 = vld [vmem:[#allocation115_spill] sm:$0xff]  ;;  %v13977_v46 = vld [vmem:[#allocation108_spill] sm:$0xff]  ;;  %v13978_v38 = vld [vmem:[#allocation118_spill] sm:$0xff] }
 0x5f4   : > { %v965_v30 = vmul.f32 %v13975_v25, %v917_v61  ;;  %v1026_v54 = vsel %vm1022_vm1, %v13977_v46, %v13976_v42  ;;  %v1034_v35 = vsel %vm1022_vm1, %v13976_v42, %v13977_v46  ;;  %v1200_v36 = vmul.f32 %v13920_v32, %v1176_v2  ;;  %v13979_v56 = vld [vmem:[#allocation109_spill] sm:$0xff]  ;;  %v13980_v22 = vld [vmem:[#allocation27_spill] sm:$0xff]  ;;  %v9924_v25 = vpop.f32.mrf.mxu0  ;;  %v13988_v59 = vld [vmem:[#allocation110_spill] sm:$0xff] }
 0x5f5   : > { %v1201_v15 = vmul.f32 %v9594_v44, %v1168_v10  ;;  %v1452_v52 = vsel %vm1448_vm6, %v13979_v56, %v13978_v38  ;;  %v1460_v61 = vsel %vm1448_vm6, %v13978_v38, %v13979_v56  ;;  %3537 = vperm.xlu0 %5714, %v9883_v16   ;;  %v9912_v62 = vmul.f32 %v13980_v22, %v1339_v48  ;;  %v13982_v42 = vld [vmem:[#allocation39_spill] sm:$0xff]  ;;  %v13987_v56 = vld [vmem:[#allocation117_spill] sm:$0xff] }
 0x5f6   : > { %v9915_v46 = vmul.f32 %v13982_v42, %v1623_v49  ;;  %v9918_v10 = vmul.f32 %v9629_v31, %v1742_v51  ;;  %v9921_v2 = vmul.f32 %v9629_v31, %v1743_v27  ;;  %3257 = vperm.xlu1 %5721, %v9522_v23   ;;  %13985 = vst [vmem:[#allocation377_spill] sm:$0xff] %v9924_v25  ;;  %v13990_v42 = vld [vmem:[#allocation128_spill] sm:$0xff]  ;;  %v13991_v25 = vld [vmem:[#allocation121_spill] sm:$0xff] }
 0x5f7   : > { %13981 = vst [vmem:[#allocation369_spill] sm:$0xff] %v9912_v62  ;;  %v9927_v38 = vmul.f32 %v13901_v5, %v1034_v35  ;;  %v1310_v48 = vsel %vm1306_vm3, %v13988_v59, %v13987_v56  ;;  %v1318_v49 = vsel %vm1306_vm3, %v13987_v56, %v13988_v59  ;;  %v9937_v51 = vadd.f32 %v1673_v7, %v1547_v8  ;;  %v14004_v56 = vld [vmem:[#allocation135_spill] sm:$0xff] }
 0x5f8   : > { %13983 = vst [vmem:[#allocation375_spill] sm:$0xff] %v9915_v46  ;;  %13984 = vst [vmem:[#allocation383_spill] sm:$0xff] %v9918_v10  ;;  %v9940_v27 = vmul.f32 %v9560_v37, %v1026_v54  ;;  %v1484_v22 = vmul.f32 %v13923_v9, %v1452_v52  ;;  %v1485_v35 = vmul.f32 %v9614_v6, %v1460_v61  ;;  %v13992_v10 = vld [vmem:[#allocation24_spill] sm:$0xff]  ;;  %v14000_v52 = vld [vmem:[#allocation113_spill] sm:$0xff] }
 0x5f9   : > { %13986 = vst [vmem:[#allocation349_spill] sm:$0xff] %v9927_v38  ;;  %v1027_v46 = vsel %vm1022_vm1, %v13991_v25, %v13990_v42  ;;  %v9949_v38 = vmul.f32 %v13992_v10, %v1200_v36  ;;  %v9952_v62 = vmul.f32 %v13992_v10, %v1201_v15  ;;  %3448 = vrot.lane.b32.xlu0 %v9837_v21, %s6021_s26  ;;  %v13999_v36 = vld [vmem:[#allocation119_spill] sm:$0xff]  ;;  %v14009_v21 = vld [vmem:[#allocation130_spill] sm:$0xff] }
 0x5fa   : > { %13989 = vst [vmem:[#allocation394_spill] sm:$0xff] %v9940_v27  ;;  %v9957_v54 = vadd.f32 %v964_v50, %v9604_v18  ;;  %v9960_v59 = vadd.f32 %v965_v30, %v9619_v19  ;;  %v9963_v7 = vmul.f32 %v13912_v55, %v1318_v49  ;;  %v9966_v8 = vmul.f32 %v9573_v1, %v1310_v48  ;;  %v9977_v19 = vpop.f32.mrf.mxu0  ;;  %v14002_v50 = vld [vmem:[#allocation120_spill] sm:$0xff]  ;;  %v14003_v30 = vld [vmem:[#allocation111_spill] sm:$0xff] }
 0x5fb   : > { %13993 = vst [vmem:[#allocation81_spill] sm:$0xff] %v9949_v38  ;;  %13994 = vst [vmem:[#allocation351_spill] sm:$0xff] %v9952_v62  ;;  %v1594_v15 = vsel %vm1590_vm5, %v14000_v52, %v13999_v36  ;;  %v1602_v18 = vsel %vm1590_vm5, %v13999_v36, %v14000_v52  ;;  %5722 = vset.pattern.permute.xlu1 %v13854_v34  ;;  %v1736_v61 = vsel %vm1732_vm7, %v14003_v30, %v14002_v50  ;;  %v14005_v48 = vld [vmem:[#allocation147_spill] sm:$0xff] }
 0x5fc   : > { %13995 = vst [vmem:[#allocation367_spill] sm:$0xff] %v9957_v54  ;;  %13996 = vst [vmem:[#allocation371_spill] sm:$0xff] %v9960_v59  ;;  %v1744_v10 = vsel %vm1732_vm7, %v14002_v50, %v14003_v30  ;;  %v1061_v25 = vmul.f32 %v9560_v37, %v1027_v46  ;;  %v895_v49 = vsel %vm881_vm2, %v14005_v48, %v14004_v56  ;;  %3385 = vperm.xlu1 %5722, %v9522_v23   ;;  %v14006_v42 = vld [vmem:[#allocation35_spill] sm:$0xff]  ;;  %v14012_v46 = vld [vmem:[#allocation122_spill] sm:$0xff] }
 0x5fd   : > { %13997 = vst [vmem:[#allocation331_spill] sm:$0xff] %v9963_v7  ;;  %13998 = vst [vmem:[#allocation353_spill] sm:$0xff] %v9966_v8  ;;  %v9994_v36 = vmul.f32 %v14006_v42, %v1484_v22  ;;  %v9997_v52 = vmul.f32 %v14006_v42, %v1485_v35  ;;  %v14010_v34 = vld [vmem:[#allocation123_spill] sm:$0xff]  ;;  %v10008_v38 = vmul.f32 %v13928_v29, %v1594_v15  ;;  %v14015_v22 = vld [vmem:[#allocation125_spill] sm:$0xff]  ;;  %3310 = vrot.lane.b32.xlu0 %v9977_v19, %s6022_s10 }
 0x5fe   : > { %14001 = vst [vmem:[#allocation376_spill] sm:$0xff] %v9977_v19  ;;  %v1311_v50 = vsel %vm1306_vm3, %v14010_v34, %v14009_v21  ;;  %v14011_v30 = vld [vmem:[#allocation131_spill] sm:$0xff]  ;;  %v10011_v59 = vmul.f32 %v9588_v57, %v1602_v18  ;;  %v887_v34 = vsel %vm881_vm2, %v14004_v56, %v14005_v48  ;;  %v10024_v21 = vmul.f32 %v13936_v40, %v1736_v61  ;;  %v5941_v42 = vld [vmem:[%s12460_s4 + $0x10] ss:$8 sm:$0x3] }
 0x5ff   : > { %14007 = vst [vmem:[#allocation241_spill] sm:$0xff] %v9994_v36  ;;  %14008 = vst [vmem:[#allocation391_spill] sm:$0xff] %v9997_v52  ;;  %v886_v62 = vsel %vm881_vm2, %v14012_v46, %v14011_v30  ;;  %v14016_v36 = vld [vmem:[#allocation132_spill] sm:$0xff]  ;;  %v10027_v15 = vmul.f32 %v9629_v31, %v1744_v10  ;;  %v920_v18 = vmul.f32 %v13893_v53, %v895_v49  ;;  %v10039_v56 = vld [vmem:[%s12459_s3 + $0xb8] sm:$0xff] }
 0x600   : > { %14013 = vst [vmem:[#allocation220_spill] sm:$0xff] %v10008_v38  ;;  %14014 = vst [vmem:[#allocation224_spill] sm:$0xff] %v10011_v59  ;;  %v1603_v35 = vsel %vm1590_vm5, %v14016_v36, %v14015_v22  ;;  %v10034_v36 = vrot.slane %v5941_v42, %v13867_v60  ;;  %v14019_v48 = vld [vmem:[#allocation18_spill] sm:$0xff]  ;;  %v1345_v10 = vmul.f32 %v9573_v1, %v1311_v50  ;;  %v14022_v46 = vld [vmem:[#allocation149_spill] sm:$0xff]  ;;  %3456 = vrot.lane.b32.xlu1 %v9511_v13, %s6021_s26  ;;  %v5785_v42 = vpop.eup %5784 }
 0x601   : > { %14018 = vst [vmem:[#allocation380_spill] sm:$0xff] %v10039_v56  ;;  %v10042_v61 = vmul.f32 %v14019_v48, %v1061_v25  ;;  %v10046_v30 = vmul.f32 %v9551_v63, %v886_v62  ;;  %v14021_v49 = vld [vmem:[#allocation138_spill] sm:$0xff]  ;;  %v1629_v60 = vmul.f32 %v9588_v57, %v1603_v35  ;;  %v14024_v52 = vld [vmem:[#allocation124_spill] sm:$0xff]  ;;  %v921_v50 = vmul.f32 %v9551_v63, %v887_v34  ;;  %v14026_v54 = vld [vmem:[#allocation137_spill] sm:$0xff] }
 0x602   : > { %14017 = vst [vmem:[#allocation247_spill] sm:$0xff] %v10034_v36  ;;  %v1178_v22 = vsel %vm1164_vm4, %v14022_v46, %v14021_v49  ;;  %v14023_v19 = vld [vmem:[#allocation134_spill] sm:$0xff]  ;;  %v1170_v62 = vsel %vm1164_vm4, %v14021_v49, %v14022_v46  ;;  %5723 = vset.pattern.permute.xlu1 %v13853_v11  ;;  %v14027_v35 = vld [vmem:[#allocation127_spill] sm:$0xff]  ;;  %v14028_v59 = vld [vmem:[#allocation140_spill] sm:$0xff]  ;;  %3541 = vperm.xlu0 %5714, %v10039_v56  }
 0x603   : > { %14020 = vst [vmem:[#allocation370_spill] sm:$0xff] %v10042_v61  ;;  %v1169_v25 = vsel %vm1164_vm4, %v14024_v52, %v14023_v19  ;;  %v14025_v48 = vld [vmem:[#allocation126_spill] sm:$0xff]  ;;  %v1745_v38 = vsel %vm1732_vm7, %v14028_v59, %v14027_v35  ;;  %v4560_v19 = vmul.f32 %v5785_v42, %v9419_v12  ;;  %v4559_v52 = vmul.f32 %v5785_v42, %v9417_v14  ;;  %v14031_v11 = vld [vmem:[#allocation143_spill] sm:$0xff]  ;;  %v14033_v12 = vld [vmem:[#allocation141_spill] sm:$0xff] }
 0x604   : > { %v1461_v27 = vsel %vm1448_vm6, %v14026_v54, %v14025_v48  ;;  %v14029_v34 = vld [vmem:[#allocation14_spill] sm:$0xff]  ;;  %v1204_v59 = vmul.f32 %v13920_v32, %v1178_v22  ;;  %v1205_v48 = vmul.f32 %v9594_v44, %v1170_v62  ;;  %v14032_v35 = vld [vmem:[#allocation151_spill] sm:$0xff]  ;;  %3718 = vrot.lane.b32.xlu1 %v9480_v17, %s6023_s12  ;;  %v14036_v22 = vld [vmem:[#allocation44_spill] sm:$0xff]  ;;  %v10104_v62 = vmul.f32 %v9594_v44, %v1169_v25 }
 0x605   : > { %v968_v49 = vmul.f32 %v14029_v34, %v920_v18  ;;  %v14030_v46 = vld [vmem:[#allocation150_spill] sm:$0xff]  ;;  %v1454_v14 = vsel %vm1448_vm6, %v14033_v12, %v14032_v35  ;;  %v1462_v18 = vsel %vm1448_vm6, %v14032_v35, %v14033_v12  ;;  %4618 = vmatprep.subr.mxu1 %v4560_v19  ;;  %v969_v8 = vmul.f32 %v14029_v34, %v921_v50  ;;  %v14041_v12 = vld [vmem:[#allocation152_spill] sm:$0xff] }
 0x606   : > { %v1028_v61 = vsel %vm1022_vm1, %v14031_v11, %v14030_v46  ;;  %v1036_v54 = vsel %vm1022_vm1, %v14030_v46, %v14031_v11  ;;  %v14034_v42 = vld [vmem:[#allocation30_spill] sm:$0xff]  ;;  %v10101_v46 = vmul.f32 %v14036_v22, %v1629_v60  ;;  %4619 = vmatpush1.xpose.msra.mxu1 %v4559_v52  ;;  %v10108_v7 = vmul.f32 %v9614_v6, %v1461_v27  ;;  %v14043_v52 = vld [vmem:[#allocation161_spill] sm:$0xff] }
 0x607   : > { %v10098_v11 = vmul.f32 %v14034_v42, %v1345_v10  ;;  %v10111_v35 = vmul.f32 %v9629_v31, %v1745_v38  ;;  %v10114_v19 = vmul.f32 %v13901_v5, %v1036_v54  ;;  %v14040_v10 = vld [vmem:[#allocation146_spill] sm:$0xff]  ;;  %5731 = vset.pattern.permute.xlu0 %v13855_v45  ;;  %v10122_v25 = vmul.f32 %v9560_v37, %v1028_v61  ;;  %v14044_v38 = vld [vmem:[#allocation155_spill] sm:$0xff]  ;;  %v14045_v54 = vld [vmem:[#allocation25_spill] sm:$0xff] }
 0x608   : > { %14037 = vst [vmem:[#allocation373_spill] sm:$0xff] %v10101_v46  ;;  %v1320_v60 = vsel %vm1306_vm3, %v14041_v12, %v14040_v10  ;;  %v1488_v50 = vmul.f32 %v13923_v9, %v1454_v14  ;;  %v1489_v27 = vmul.f32 %v9614_v6, %v1462_v18  ;;  %v1029_v34 = vsel %vm1022_vm1, %v14044_v38, %v14043_v52  ;;  %v14049_v18 = vld [vmem:[#allocation153_spill] sm:$0xff]  ;;  %v14051_v52 = vld [vmem:[#allocation163_spill] sm:$0xff]  ;;  %v14055_v46 = vld [vmem:[#allocation148_spill] sm:$0xff] }
 0x609   : > { %14035 = vst [vmem:[#allocation393_spill] sm:$0xff] %v10098_v11  ;;  %14038 = vst [vmem:[#allocation381_spill] sm:$0xff] %v10111_v35  ;;  %3657 = vperm.xlu0 %5731, %v9458_v28   ;;  %v10132_v42 = vmul.f32 %v14045_v54, %v1204_v59  ;;  %v10135_v22 = vmul.f32 %v14045_v54, %v1205_v48  ;;  %v1312_v45 = vsel %vm1306_vm3, %v14040_v10, %v14041_v12  ;;  %v14050_v59 = vld [vmem:[#allocation144_spill] sm:$0xff]  ;;  %v14052_v38 = vld [vmem:[#allocation157_spill] sm:$0xff] }
 0x60a   : > { %14039 = vst [vmem:[#allocation237_spill] sm:$0xff] %v10114_v19  ;;  %14042 = vst [vmem:[#allocation235_spill] sm:$0xff] %v10122_v25  ;;  %3734 = vrot.lane.b32.xlu1 %v9486_v0, %s6023_s12  ;;  %v10144_v61 = vadd.f32 %v968_v49, %v9654_v24  ;;  %v10147_v14 = vmul.f32 %v13912_v55, %v1320_v60  ;;  %v1738_v48 = vsel %vm1732_vm7, %v14050_v59, %v14049_v18  ;;  %v14054_v12 = vld [vmem:[#allocation154_spill] sm:$0xff]  ;;  %v14069_v25 = vld [vmem:[#allocation177_spill] sm:$0xff] }
 0x60b   : > { %14046 = vst [vmem:[#allocation356_spill] sm:$0xff] %v10132_v42  ;;  %14047 = vst [vmem:[#allocation354_spill] sm:$0xff] %v10135_v22  ;;  %v1313_v54 = vsel %vm1306_vm3, %v14052_v38, %v14051_v52  ;;  %v10158_v10 = vadd.f32 %v969_v8, %v9658_v47  ;;  %v1596_v24 = vsel %vm1590_vm5, %v14055_v46, %v14054_v12  ;;  %v14056_v8 = vld [vmem:[#allocation36_spill] sm:$0xff]  ;;  %v14059_v42 = vld [vmem:[#allocation167_spill] sm:$0xff] }
 0x60c   : > { %14048 = vst [vmem:[#allocation257_spill] sm:$0xff] %v10144_v61  ;;  %v1604_v49 = vsel %vm1590_vm5, %v14054_v12, %v14055_v46  ;;  %v1746_v60 = vsel %vm1732_vm7, %v14049_v18, %v14050_v59  ;;  %v1065_v52 = vmul.f32 %v9560_v37, %v1029_v34  ;;  %v10174_v47 = vmul.f32 %v9573_v1, %v1312_v45  ;;  %v14061_v59 = vld [vmem:[#allocation164_spill] sm:$0xff]  ;;  %v14063_v12 = vld [vmem:[#allocation159_spill] sm:$0xff]  ;;  %v14068_v61 = vld [vmem:[#allocation169_spill] sm:$0xff] }
 0x60d   : > { %14053 = vst [vmem:[#allocation244_spill] sm:$0xff] %v10158_v10  ;;  %v10177_v38 = vmul.f32 %v14056_v8, %v1488_v50  ;;  %v10180_v22 = vmul.f32 %v14056_v8, %v1489_v27  ;;  %v14060_v10 = vld [vmem:[#allocation175_spill] sm:$0xff]  ;;  %3661 = vperm.xlu0 %5731, %v9503_v43   ;;  %v1349_v18 = vmul.f32 %v9573_v1, %v1313_v54  ;;  %v14062_v34 = vld [vmem:[#allocation156_spill] sm:$0xff]  ;;  %v14064_v50 = vld [vmem:[#allocation165_spill] sm:$0xff] }
 0x60e   : > { %v897_v46 = vsel %vm881_vm2, %v14060_v10, %v14059_v42  ;;  %v888_v45 = vsel %vm881_vm2, %v14062_v34, %v14061_v59  ;;  %v1605_v27 = vsel %vm1590_vm5, %v14064_v50, %v14063_v12  ;;  %v889_v8 = vsel %vm881_vm2, %v14059_v42, %v14060_v10  ;;  %3996 = vrot.lane.b32.xlu1 %v9445_v4, %s6025_s17  ;;  %v14065_v12 = vld [vmem:[#allocation20_spill] sm:$0xff]  ;;  %v14067_v42 = vld [vmem:[#allocation158_spill] sm:$0xff]  ;;  %v14084_v35 = vld [vmem:[#allocation181_spill] sm:$0xff] }
 0x60f   : > { %14057 = vst [vmem:[#allocation226_spill] sm:$0xff] %v10177_v38  ;;  %14058 = vst [vmem:[#allocation355_spill] sm:$0xff] %v10180_v22  ;;  %v10203_v54 = vmul.f32 %v13928_v29, %v1596_v24  ;;  %v10206_v22 = vmul.f32 %v9588_v57, %v1604_v49  ;;  %v10209_v59 = vmul.f32 %v13936_v40, %v1738_v48  ;;  %v14066_v38 = vld [vmem:[#allocation166_spill] sm:$0xff]  ;;  %v14073_v19 = vld [vmem:[#allocation168_spill] sm:$0xff] }
 0x610   : > { %v10212_v34 = vmul.f32 %v9629_v31, %v1746_v60  ;;  %v10215_v50 = vmul.f32 %v14065_v12, %v1065_v52  ;;  %v1171_v10 = vsel %vm1164_vm4, %v14067_v42, %v14066_v38  ;;  %v924_v24 = vmul.f32 %v13893_v53, %v897_v46  ;;  %v4533_v53 = vpop.xlane.xlu1 %4532  ;;  %v14070_v38 = vld [vmem:[#allocation31_spill] sm:$0xff]  ;;  %v14072_v42 = vld [vmem:[#allocation160_spill] sm:$0xff]  ;;  %v14074_v11 = vld [vmem:[#allocation162_spill] sm:$0xff] }
 0x611   : > { %v1180_v49 = vsel %vm1164_vm4, %v14069_v25, %v14068_v61  ;;  %v10227_v48 = vmul.f32 %v9551_v63, %v888_v45  ;;  %v1633_v60 = vmul.f32 %v9588_v57, %v1605_v27  ;;  %v925_v52 = vmul.f32 %v9551_v63, %v889_v8  ;;  %3665 = vperm.xlu0 %5731, %v9522_v23   ;;  %v14075_v27 = vld [vmem:[#allocation170_spill] sm:$0xff]  ;;  %v14077_v8 = vld [vmem:[#allocation171_spill] sm:$0xff] }
 0x612   : > { %v1172_v12 = vsel %vm1164_vm4, %v14068_v61, %v14069_v25  ;;  %v10237_v46 = vmul.f32 %v14070_v38, %v1349_v18  ;;  %v1463_v45 = vsel %vm1448_vm6, %v14073_v19, %v14072_v42  ;;  %v1747_v63 = vsel %vm1732_vm7, %v14075_v27, %v14074_v11  ;;  %4012 = vrot.lane.b32.xlu1 %v9450_v20, %s6025_s17  ;;  %v14076_v18 = vld [vmem:[#allocation178_spill] sm:$0xff]  ;;  %v14078_v11 = vld [vmem:[#allocation15_spill] sm:$0xff]  ;;  %v14080_v27 = vld [vmem:[#allocation172_spill] sm:$0xff] }
 0x613   : > { %5786 = vrcp.f32 %v4533_v53  ;;  %v10250_v25 = vmul.f32 %v9594_v44, %v1171_v10  ;;  %v1208_v61 = vmul.f32 %v13920_v32, %v1180_v49  ;;  %v1456_v38 = vsel %vm1448_vm6, %v14077_v8, %v14076_v18  ;;  %v14079_v42 = vld [vmem:[#allocation179_spill] sm:$0xff]  ;;  %v14085_v43 = vld [vmem:[#allocation174_spill] sm:$0xff] }
 0x614   : > { %14071 = vst [vmem:[#allocation382_spill] sm:$0xff] %v10237_v46  ;;  %v1464_v19 = vsel %vm1448_vm6, %v14076_v18, %v14077_v8  ;;  %v972_v53 = vmul.f32 %v14078_v11, %v924_v24  ;;  %v1030_v10 = vsel %vm1022_vm1, %v14080_v27, %v14079_v42  ;;  %v1038_v32 = vsel %vm1022_vm1, %v14079_v42, %v14080_v27  ;;  %v14081_v46 = vld [vmem:[#allocation46_spill] sm:$0xff]  ;;  %v10282_v8 = vpop.permute.xlu1 %3242  ;;  %v14087_v42 = vld [vmem:[#allocation187_spill] sm:$0xff] }
 0x615   : > { %v1209_v49 = vmul.f32 %v9594_v44, %v1172_v12  ;;  %v10272_v23 = vmul.f32 %v14081_v46, %v1633_v60  ;;  %v10275_v20 = vmul.f32 %v9614_v6, %v1463_v45  ;;  %v10278_v24 = vmul.f32 %v9629_v31, %v1747_v63  ;;  %3669 = vperm.xlu0 %5731, %v9567_v33   ;;  %v14086_v63 = vld [vmem:[#allocation26_spill] sm:$0xff] }
 0x616   : > { %v973_v18 = vmul.f32 %v14078_v11, %v925_v52  ;;  %14083 = vst [vmem:[#allocation261_spill] sm:$0xff] %v10282_v8  ;;  %v1314_v44 = vsel %vm1306_vm3, %v14085_v43, %v14084_v35  ;;  %v1322_v60 = vsel %vm1306_vm3, %v14084_v35, %v14085_v43  ;;  %v1492_v12 = vmul.f32 %v13923_v9, %v1456_v38  ;;  %v14088_v9 = vld [vmem:[#allocation184_spill] sm:$0xff] }
 0x617   : > { %14082 = vst [vmem:[#allocation239_spill] sm:$0xff] %v10278_v24  ;;  %v1493_v46 = vmul.f32 %v9614_v6, %v1464_v19  ;;  %3302 = vrot.lane.b32.xlu1 %v9524_v26, %s6022_s10  ;;  %v10297_v52 = vmul.f32 %v13901_v5, %v1038_v32  ;;  %v10300_v45 = vmul.f32 %v9560_v37, %v1030_v10  ;;  %v14089_v6 = vld [vmem:[#allocation176_spill] sm:$0xff]  ;;  %v14090_v5 = vld [vmem:[#allocation258_spill] sm:$0xff] }
 0x618   : > { %v10303_v11 = vmul.f32 %v14086_v63, %v1208_v61  ;;  %v1815_v27 = vmul.f32 %v14087_v42, %v9921_v2  ;;  %v10308_v43 = vmul.f32 %v14086_v63, %v1209_v49  ;;  %v1598_v35 = vsel %vm1590_vm5, %v14089_v6, %v14088_v9  ;;  %v14091_v19 = vld [vmem:[#allocation188_spill] sm:$0xff]  ;;  %v10332_v49 = vpop.permute.xlu1 %3296  ;;  %v14119_v24 = vld [vmem:[#allocation306_spill] sm:$0xff] }
 0x619   : > { %v1606_v37 = vsel %vm1590_vm5, %v14088_v9, %v14089_v6  ;;  %v10319_v38 = vadd.f32 %v972_v53, %v14090_v5  ;;  %v10322_v61 = vmul.f32 %v13912_v55, %v1322_v60  ;;  %v10325_v2 = vmul.f32 %v9573_v1, %v1314_v44  ;;  %v14092_v10 = vld [vmem:[#allocation180_spill] sm:$0xff]  ;;  %3673 = vperm.xlu0 %5731, %v9743_v39   ;;  %v14095_v53 = vld [vmem:[#allocation38_spill] sm:$0xff]  ;;  %v14099_v60 = vld [vmem:[#allocation191_spill] sm:$0xff] }
 0x61a   : > { %v1875_v32 = vsel %vm1874_vm8, %v14092_v10, %v14091_v19  ;;  %14093 = vst [vmem:[#allocation223_spill] sm:$0xff] %v10332_v49  ;;  %v14094_v63 = vld [vmem:[#allocation348_spill] sm:$0xff]  ;;  %v10338_v9 = vmul.f32 %v14095_v53, %v1492_v12  ;;  %v10341_v55 = vmul.f32 %v14095_v53, %v1493_v46  ;;  %v1883_v1 = vsel %vm1874_vm8, %v14091_v19, %v14092_v10  ;;  %v14098_v44 = vld [vmem:[#allocation182_spill] sm:$0xff]  ;;  %v14103_v53 = vld [vmem:[#allocation173_spill] sm:$0xff] }
 0x61b   : > { %v10335_v42 = vadd.f32 %v973_v18, %v14094_v63  ;;  %v1885_v6 = vsel %vm1874_vm8, %v14099_v60, %v14098_v44  ;;  %v14100_v5 = vld [vmem:[#allocation254_spill] sm:$0xff]  ;;  %v10354_v18 = vmul.f32 %v13928_v29, %v1598_v35  ;;  %v10357_v12 = vmul.f32 %v9588_v57, %v1606_v37  ;;  %v14105_v44 = vld [vmem:[#allocation183_spill] sm:$0xff]  ;;  %v14106_v60 = vld [vmem:[#allocation193_spill] sm:$0xff] }
 0x61c   : > { %14096 = vst [vmem:[#allocation396_spill] sm:$0xff] %v10338_v9  ;;  %14097 = vst [vmem:[#allocation253_spill] sm:$0xff] %v10341_v55  ;;  %3318 = vrot.lane.b32.xlu1 %v14100_v5, %s6022_s10  ;;  %v1831_v46 = vadd.f32 %v1815_v27, %v9937_v51  ;;  %v14102_v63 = vld [vmem:[#allocation198_spill] sm:$0xff]  ;;  %v1887_v49 = vsel %vm1874_vm8, %v14106_v60, %v14105_v44  ;;  %v10378_v27 = vmul.f32 %v10034_v36, %v1883_v1  ;;  %v14108_v35 = vld [vmem:[#allocation189_spill] sm:$0xff]  ;;  %v4530_v60 = vpop.xlane.xlu0 %4529 }
 0x61d   : > { %14101 = vst [vmem:[#allocation238_spill] sm:$0xff] %v10357_v12  ;;  %v1740_v19 = vsel %vm1732_vm7, %v14103_v53, %v14102_v63  ;;  %v14104_v10 = vld [vmem:[#allocation210_spill] sm:$0xff]  ;;  %v1748_v57 = vsel %vm1732_vm7, %v14102_v63, %v14103_v53  ;;  %v10382_v37 = vmul.f32 %v14108_v35, %v10024_v21  ;;  %v1909_v44 = vmul.f32 %v10034_v36, %v1885_v6  ;;  %v10390_v63 = vpop.permute.xlu1 %3312  ;;  %v14115_v9 = vld [vmem:[#allocation201_spill] sm:$0xff] }
 0x61e   : > { %v10365_v8 = vmul.f32 %v14104_v10, %v1875_v32  ;;  %v14107_v29 = vld [vmem:[#allocation242_spill] sm:$0xff]  ;;  %v10386_v32 = vmul.f32 %v14108_v35, %v10027_v15  ;;  %3677 = vperm.xlu0 %5731, %v9883_v16   ;;  %14109 = vst [vmem:[#allocation202_spill] sm:$0xff] %v10390_v63  ;;  %v1776_v26 = vmul.f32 %v13936_v40, %v1740_v19  ;;  %5788 = vrcp.f32 %v4530_v60  ;;  %v14113_v15 = vld [vmem:[#allocation288_spill] sm:$0xff]  ;;  %v14117_v40 = vld [vmem:[#allocation195_spill] sm:$0xff] }
 0x61f   : > { %v961_v51 = vmul.f32 %v14107_v29, %v9849_v41  ;;  %v14110_v41 = vld [vmem:[#allocation190_spill] sm:$0xff]  ;;  %v14112_v29 = vld [vmem:[#allocation196_spill] sm:$0xff]  ;;  %v1913_v63 = vmul.f32 %v10034_v36, %v1887_v49 }
 0x620   : > { %v10394_v53 = vmul.f32 %v14110_v41, %v10209_v59  ;;  %v14111_v1 = vld [vmem:[#allocation186_spill] sm:$0xff]  ;;  %3580 = vrot.lane.b32.xlu1 %v14113_v15, %s6024_s13  ;;  %v5787_v6 = vpop.eup %5786  ;;  %v10405_v35 = vmul.f32 %v14110_v41, %v10212_v34  ;;  %v1777_v59 = vmul.f32 %v9629_v31, %v1748_v57  ;;  %v14120_v34 = vld [vmem:[#allocation248_spill] sm:$0xff] }
 0x621   : > { %v1889_v21 = vsel %vm1874_vm8, %v14112_v29, %v14111_v1  ;;  %v14114_v55 = vld [vmem:[#allocation194_spill] sm:$0xff]  ;;  %v14116_v29 = vld [vmem:[#allocation203_spill] sm:$0xff]  ;;  %v4557_v12 = vmul.f32 %v5787_v6, %v14119_v24  ;;  %v4556_v41 = vmul.f32 %v5787_v6, %v14120_v34 }
 0x622   : > { %v1884_v1 = vsel %vm1874_vm8, %v14115_v9, %v14114_v55  ;;  %v1878_v19 = vsel %vm1874_vm8, %v14117_v40, %v14116_v29  ;;  %v14118_v60 = vld [vmem:[#allocation334_spill] sm:$0xff]  ;;  %v10421_v49 = vmul.f32 %v10034_v36, %v1889_v21  ;;  %v1886_v31 = vsel %vm1874_vm8, %v14116_v29, %v14117_v40  ;;  %v14122_v9 = vld [vmem:[#allocation205_spill] sm:$0xff]  ;;  %3681 = vperm.xlu0 %5731, %v10039_v56   ;;  %v14125_v21 = vld [vmem:[#allocation192_spill] sm:$0xff] }
 0x623   : > { %v977_v15 = vadd.f32 %v961_v51, %v14118_v60  ;;  %v14123_v55 = vld [vmem:[#allocation197_spill] sm:$0xff]  ;;  %v10436_v51 = vpop.permute.xlu1 %3513  ;;  %v10439_v6 = vmul.f32 %v14125_v21, %v1776_v26  ;;  %v14127_v60 = vld [vmem:[#allocation206_spill] sm:$0xff]  ;;  %v14128_v34 = vld [vmem:[#allocation199_spill] sm:$0xff]  ;;  %4620 = vmatprep.subr.mxu1 %v4557_v12  ;;  %v10454_v26 = vmul.f32 %v14104_v10, %v1878_v19 }
 0x624   : > { %14121 = vst [vmem:[#allocation204_spill] sm:$0xff] %v10421_v49  ;;  %v1880_v57 = vsel %vm1874_vm8, %v14123_v55, %v14122_v9  ;;  %v1888_v24 = vsel %vm1874_vm8, %v14122_v9, %v14123_v55  ;;  %14124 = vst [vmem:[#allocation312_spill] sm:$0xff] %v10436_v51  ;;  %v1882_v29 = vsel %vm1874_vm8, %v14128_v34, %v14127_v60  ;;  %v14129_v40 = vld [vmem:[#allocation291_spill] sm:$0xff]  ;;  %3596 = vrot.lane.b32.xlu1 %v9511_v13, %s6024_s13 }
 0x625   : > { %14126 = vst [vmem:[#allocation395_spill] sm:$0xff] %v10439_v6  ;;  %v967_v49 = vmul.f32 %v14129_v40, %v10046_v30  ;;  %v10450_v9 = vmul.f32 %v14125_v21, %v1777_v59  ;;  %v1907_v55 = vmul.f32 %v10034_v36, %v1884_v1  ;;  %v14131_v51 = vld [vmem:[#allocation211_spill] sm:$0xff]  ;;  %4621 = vmatpush1.xpose.msra.mxu1 %v4556_v41  ;;  %v14135_v1 = vld [vmem:[#allocation368_spill] sm:$0xff] }
 0x626   : > { %v1957_v56 = vmul.f32 %v14131_v51, %v1909_v44  ;;  %v10458_v6 = vmul.f32 %v10034_v36, %v1886_v31  ;;  %v10461_v30 = vmul.f32 %v14104_v10, %v1880_v57  ;;  %v10464_v40 = vmul.f32 %v10034_v36, %v1888_v24  ;;  %v14136_v19 = vld [vmem:[#allocation207_spill] sm:$0xff]  ;;  %v14137_v31 = vld [vmem:[#allocation208_spill] sm:$0xff]  ;;  %v10482_v24 = vpop.permute.xlu0 %3373 }
 0x627   : > { %14130 = vst [vmem:[#allocation249_spill] sm:$0xff] %v10450_v9  ;;  %v1119_v12 = vadd.f32 %v9854_v3, %v977_v15  ;;  %v10471_v59 = vsel %vm1874_vm8, %v14127_v60, %v14128_v34  ;;  %v10474_v44 = vmul.f32 %v14104_v10, %v1882_v29  ;;  %v1245_v41 = vmul.f32 %v14136_v19, %v14135_v1  ;;  %v10484_v3 = vpop.permute.xlu1 %3247  ;;  %v14142_v15 = vld [vmem:[#allocation209_spill] sm:$0xff]  ;;  %v14143_v60 = vld [vmem:[#allocation212_spill] sm:$0xff]  ;;  %v14147_v19 = vld [vmem:[#allocation214_spill] sm:$0xff] }
 0x628   : > { %14132 = vst [vmem:[#allocation232_spill] sm:$0xff] %v10464_v40  ;;  %14133 = vst [vmem:[#allocation243_spill] sm:$0xff] %v10471_v59  ;;  %v10479_v57 = vmul.f32 %v14137_v31, %v1907_v55  ;;  %v14139_v51 = vmov 3   ;;  %v1251_v21 = vmul.f32 %v14142_v15, %v10104_v62  ;;  %v1255_v34 = vmul.f32 %v14143_v60, %v10250_v25  ;;  %v14144_v10 = vld [vmem:[#allocation325_spill] sm:$0xff]  ;;  %3858 = vrot.lane.b32.xlu1 %v9480_v17, %s6026_s18  ;;  %v14151_v62 = vld [vmem:[#allocation327_spill] sm:$0xff] }
 0x629   : > { %14134 = vst [vmem:[#allocation251_spill] sm:$0xff] %v10474_v44  ;;  %5732 = vset.pattern.permute.xlu0 %v14139_v51  ;;  %14140 = vst [vmem:[#allocation230_spill] sm:$0xff] %v10482_v24  ;;  %v983_v29 = vadd.f32 %v967_v49, %v14144_v10  ;;  %v971_v1 = vmul.f32 %v14145_v58, %v10227_v48  ;;  %v10495_v55 = vadd.f32 %v1957_v56, %v1831_v46  ;;  %v14149_v51 = vld [vmem:[#allocation362_spill] sm:$0xff]  ;;  %v14152_v25 = vld [vmem:[#allocation297_spill] sm:$0xff] }
 0x62a   : > { %14138 = vst [vmem:[#allocation255_spill] sm:$0xff] %v10479_v57  ;;  %14141 = vst [vmem:[#allocation263_spill] sm:$0xff] %v10484_v3  ;;  %v10498_v31 = vmul.f32 %v14147_v19, %v1913_v63  ;;  %v14150_v3 = vld [vmem:[#allocation274_spill] sm:$0xff]  ;;  %3793 = vperm.xlu0 %5732, %v14152_v25   ;;  %v14153_v49 = vld [vmem:[#allocation331_spill] sm:$0xff]  ;;  %v1261_v63 = vadd.f32 %v1245_v41, %v1119_v12 }
 0x62b   : > { %14146 = vst [vmem:[#allocation279_spill] sm:$0xff] %v10495_v55  ;;  %v1384_v24 = vmul.f32 %v14150_v3, %v14149_v51  ;;  %v1385_v15 = vmul.f32 %v14150_v3, %v14151_v62  ;;  %v14154_v60 = vld [vmem:[#allocation276_spill] sm:$0xff]  ;;  %v14155_v58 = vld [vmem:[#allocation353_spill] sm:$0xff]  ;;  %v14156_v56 = vld [vmem:[#allocation278_spill] sm:$0xff]  ;;  %v5789_v13 = vpop.eup %5788 }
 0x62c   : > { %14148 = vst [vmem:[#allocation275_spill] sm:$0xff] %v10498_v31  ;;  %v10507_v10 = vmul.f32 %v14154_v60, %v14153_v49  ;;  %v10511_v48 = vmul.f32 %v14154_v60, %v14155_v58  ;;  %v10515_v46 = vmul.f32 %v14156_v56, %v10147_v14  ;;  %v10519_v19 = vmul.f32 %v14156_v56, %v10174_v47  ;;  %v14157_v3 = vld [vmem:[#allocation280_spill] sm:$0xff]  ;;  %v14158_v25 = vld [vmem:[#allocation365_spill] sm:$0xff]  ;;  %v14160_v58 = vld [vmem:[#allocation303_spill] sm:$0xff] }
 0x62d   : > { %v10523_v51 = vmul.f32 %v14157_v3, %v10322_v61  ;;  %v10527_v62 = vmul.f32 %v14157_v3, %v10325_v2  ;;  %v14159_v49 = vld [vmem:[#allocation301_spill] sm:$0xff]  ;;  %v10533_v14 = vmul.f32 %v14160_v58, %v10108_v7  ;;  %v14162_v47 = vld [vmem:[#allocation370_spill] sm:$0xff]  ;;  %v14163_v17 = vld [vmem:[#allocation328_spill] sm:$0xff]  ;;  %3874 = vrot.lane.b32.xlu1 %v9486_v0, %s6026_s18  ;;  %v1070_v2 = vpop.permute.xlu0 %1069  ;;  %v10543_v3 = vpop.permute.xlu1 %3377 }
 0x62e   : > { %v1529_v60 = vmul.f32 %v14159_v49, %v14158_v25  ;;  %v14161_v12 = vld [vmem:[#allocation305_spill] sm:$0xff]  ;;  %v1125_v56 = vadd.f32 %v14162_v47, %v983_v29  ;;  %v987_v61 = vadd.f32 %v971_v1, %v14163_v17  ;;  %14164 = vst [vmem:[#allocation265_spill] sm:$0xff] %v10543_v3  ;;  %v14165_v25 = vld [vmem:[#allocation319_spill] sm:$0xff]  ;;  %v14166_v49 = vld [vmem:[#allocation318_spill] sm:$0xff]  ;;  %3797 = vperm.xlu0 %5732, %v9458_v28  }
 0x62f   : > { %v10537_v41 = vmul.f32 %v14161_v12, %v10275_v20  ;;  %v1668_v9 = vmul.f32 %v14166_v49, %v14165_v25  ;;  %v14167_v7 = vld [vmem:[#allocation311_spill] sm:$0xff]  ;;  %v14168_v20 = vld [vmem:[#allocation326_spill] sm:$0xff]  ;;  %v14169_v29 = vld [vmem:[#allocation329_spill] sm:$0xff] }
 0x630   : > { %v1669_v58 = vmul.f32 %v14166_v49, %v14167_v7  ;;  %v1100_v12 = vmul.f32 %v1070_v2, %v14168_v20  ;;  %v1101_v47 = vmul.f32 %v1070_v2, %v14169_v29  ;;  %v14170_v17 = vld [vmem:[#allocation220_spill] sm:$0xff]  ;;  %v14172_v0 = vld [vmem:[#allocation369_spill] sm:$0xff]  ;;  %v14173_v3 = vld [vmem:[#allocation250_spill] sm:$0xff] }
 0x631   : > { %v14171_v1 = vld [vmem:[#allocation320_spill] sm:$0xff]  ;;  %v1403_v31 = vadd.f32 %v14172_v0, %v1261_v63  ;;  %v4554_v57 = vmul.f32 %v5789_v13, %v14173_v3  ;;  %v14176_v28 = vld [vmem:[#allocation321_spill] sm:$0xff]  ;;  %v1267_v0 = vadd.f32 %v1251_v21, %v1125_v56  ;;  %v1129_v63 = vadd.f32 %v10215_v50, %v987_v61  ;;  %4136 = vrot.lane.b32.xlu1 %v9445_v4, %s14179_s20  ;;  %v14186_v21 = vld [vmem:[#allocation323_spill] sm:$0xff] }
 0x632   : > { %v10554_v44 = vmul.f32 %v14171_v1, %v14170_v17  ;;  %v14174_v36 = vld [vmem:[#allocation304_spill] sm:$0xff]  ;;  %v10565_v49 = vmul.f32 %v14176_v28, %v10203_v54  ;;  %v14177_v7 = vld [vmem:[#allocation361_spill] sm:$0xff]  ;;  %v10571_v17 = vmul.f32 %v14176_v28, %v10206_v22  ;;  %v14185_v22 = vld [vmem:[#allocation394_spill] sm:$0xff]  ;;  %v10585_v50 = vmul.f32 %v14186_v21, %v10354_v18 }
 0x633   : > { %v4553_v59 = vmul.f32 %v5789_v13, %v14174_v36  ;;  %v14175_v25 = vld [vmem:[#allocation224_spill] sm:$0xff]  ;;  %v1116_v2 = vadd.f32 %v1100_v12, %v14177_v7  ;;  %4622 = vmatprep.subr.mxu1 %v4554_v57  ;;  %v1082_v13 = vpop.permute.xlu0 %1081  ;;  %v10576_v36 = vpop.permute.xlu1 %3436  ;;  %v14188_v56 = vld [vmem:[#allocation383_spill] sm:$0xff]  ;;  %v14191_v4 = vld [vmem:[#allocation345_spill] sm:$0xff] }
 0x634   : > { %v10561_v55 = vmul.f32 %v14171_v1, %v14175_v25  ;;  %v14178_v20 = vld [vmem:[#allocation364_spill] sm:$0xff]  ;;  %14180 = vst [vmem:[#allocation282_spill] sm:$0xff] %v10576_v36  ;;  %v1107_v28 = vmul.f32 %v1082_v13, %v14185_v22  ;;  %14187 = vst [vmem:[#allocation271_spill] sm:$0xff] %v10585_v50  ;;  %v14189_v61 = vld [vmem:[#allocation343_spill] sm:$0xff] }
 0x635   : > { %v1117_v29 = vadd.f32 %v1101_v47, %v14178_v20  ;;  %v14181_v54 = vld [vmem:[#allocation340_spill] sm:$0xff]  ;;  %v14184_v47 = vld [vmem:[#allocation349_spill] sm:$0xff]  ;;  %v1813_v57 = vmul.f32 %v14189_v61, %v14188_v56  ;;  %4623 = vmatpush1.xpose.msra.mxu1 %v4553_v59  ;;  %v1271_v61 = vadd.f32 %v1255_v34, %v1129_v63  ;;  %v14204_v34 = vld [vmem:[#allocation375_spill] sm:$0xff] }
 0x636   : > { %v1258_v3 = vadd.f32 %v14181_v54, %v1116_v2  ;;  %v14182_v1 = vld [vmem:[#allocation372_spill] sm:$0xff]  ;;  %v1106_v7 = vmul.f32 %v1082_v13, %v14184_v47  ;;  %v14190_v20 = vld [vmem:[#allocation381_spill] sm:$0xff]  ;;  %v1545_v2 = vadd.f32 %v1529_v60, %v1403_v31  ;;  %v14193_v47 = vld [vmem:[#allocation371_spill] sm:$0xff] }
 0x637   : > { %v1259_v12 = vadd.f32 %v14182_v1, %v1117_v29  ;;  %v14183_v25 = vld [vmem:[#allocation308_spill] sm:$0xff]  ;;  %v10591_v36 = vmul.f32 %v14191_v4, %v14190_v20  ;;  %v14192_v1 = vld [vmem:[#allocation367_spill] sm:$0xff]  ;;  %v1123_v40 = vadd.f32 %v1107_v28, %v14193_v47  ;;  %v14195_v50 = vld [vmem:[#allocation393_spill] sm:$0xff]  ;;  %v1090_v31 = vpop.permute.xlu0 %1089  ;;  %v10602_v59 = vpop.permute.xlu1 %3452 }
 0x638   : > { %3801 = vperm.xlu0 %5732, %v14183_v25   ;;  %v1400_v29 = vadd.f32 %v1384_v24, %v1258_v3  ;;  %v1122_v25 = vadd.f32 %v1106_v7, %v14192_v1  ;;  %v14194_v13 = vld [vmem:[#allocation388_spill] sm:$0xff]  ;;  %v1409_v56 = vadd.f32 %v14195_v50, %v1267_v0  ;;  %v14196_v4 = vld [vmem:[#allocation309_spill] sm:$0xff]  ;;  %14197 = vst [vmem:[#allocation287_spill] sm:$0xff] %v10602_v59  ;;  %v14199_v60 = vld [vmem:[#allocation350_spill] sm:$0xff] }
 0x639   : > { %v1401_v54 = vadd.f32 %v1385_v15, %v1259_v12  ;;  %v1952_v22 = vmul.f32 %v14194_v13, %v10365_v8  ;;  %v1953_v18 = vmul.f32 %v14194_v13, %v10378_v27  ;;  %4152 = vrot.lane.b32.xlu1 %v14196_v4, %s14179_s20  ;;  %v14198_v24 = vld [vmem:[#allocation352_spill] sm:$0xff]  ;;  %v14200_v12 = vld [vmem:[#allocation81_spill] sm:$0xff]  ;;  %v14201_v28 = vld [vmem:[#allocation351_spill] sm:$0xff]  ;;  %v1687_v63 = vadd.f32 %v14204_v34, %v1545_v2 }
 0x63a   : > { %v1542_v15 = vadd.f32 %v14198_v24, %v1400_v29  ;;  %v1264_v7 = vadd.f32 %v14200_v12, %v1122_v25  ;;  %v1265_v8 = vadd.f32 %v14201_v28, %v1123_v40  ;;  %v14202_v20 = vld [vmem:[#allocation322_spill] sm:$0xff]  ;;  %v14205_v50 = vld [vmem:[#allocation237_spill] sm:$0xff]  ;;  %v14206_v47 = vld [vmem:[#allocation235_spill] sm:$0xff]  ;;  %v1551_v25 = vadd.f32 %v10533_v14, %v1409_v56 }
 0x63b   : > { %v1543_v3 = vadd.f32 %v14199_v60, %v1401_v54  ;;  %v14203_v27 = vld [vmem:[#allocation222_spill] sm:$0xff]  ;;  %v1110_v1 = vmul.f32 %v1090_v31, %v14205_v50  ;;  %v1111_v13 = vmul.f32 %v1090_v31, %v14206_v47  ;;  %v14207_v24 = vld [vmem:[#allocation257_spill] sm:$0xff]  ;;  %v1098_v2 = vpop.permute.xlu0 %1097  ;;  %v10622_v28 = vpop.permute.xlu1 %3653  ;;  %v14210_v31 = vld [vmem:[#allocation392_spill] sm:$0xff]  ;;  %v1829_v56 = vadd.f32 %v1813_v57, %v1687_v63 }
 0x63c   : > { %3805 = vperm.xlu0 %5732, %v14202_v20   ;;  %v1958_v0 = vmul.f32 %v14203_v27, %v10454_v26  ;;  %v1684_v59 = vadd.f32 %v1668_v9, %v1542_v15  ;;  %v1406_v29 = vadd.f32 %v10507_v10, %v1264_v7  ;;  %v1407_v54 = vadd.f32 %v10511_v48, %v1265_v8  ;;  %v14208_v26 = vld [vmem:[#allocation244_spill] sm:$0xff]  ;;  %v14209_v9 = vld [vmem:[#allocation382_spill] sm:$0xff]  ;;  %v14211_v15 = vld [vmem:[#allocation241_spill] sm:$0xff] }
 0x63d   : > { %v1685_v4 = vadd.f32 %v1669_v58, %v1543_v3  ;;  %v1959_v40 = vmul.f32 %v14203_v27, %v10458_v6  ;;  %v1126_v60 = vadd.f32 %v1110_v1, %v14207_v24  ;;  %v1127_v12 = vadd.f32 %v1111_v13, %v14208_v26  ;;  %3262 = vperm.xlu1 %5723, %v9567_v33   ;;  %v14212_v3 = vld [vmem:[#allocation391_spill] sm:$0xff]  ;;  %v14213_v6 = vld [vmem:[#allocation225_spill] sm:$0xff]  ;;  %v14214_v8 = vld [vmem:[#allocation356_spill] sm:$0xff] }
 0x63e   : > { %v1413_v58 = vadd.f32 %v14209_v9, %v1271_v61  ;;  %v1826_v10 = vadd.f32 %v14210_v31, %v1684_v59  ;;  %v1548_v48 = vadd.f32 %v14211_v15, %v1406_v29  ;;  %v1549_v7 = vadd.f32 %v14212_v3, %v1407_v54  ;;  %v14215_v27 = vld [vmem:[#allocation354_spill] sm:$0xff] }
 0x63f   : > { %v1962_v14 = vmul.f32 %v14213_v6, %v10461_v30  ;;  %v1268_v20 = vadd.f32 %v14214_v8, %v1126_v60  ;;  %v1269_v34 = vadd.f32 %v14215_v27, %v1127_v12  ;;  %v14216_v50 = vld [vmem:[#allocation290_spill] sm:$0xff]  ;;  %v1114_v54 = vmul.f32 %v1098_v2, %v10297_v52  ;;  %v10643_v63 = vpop.permute.xlu0 %3298  ;;  %v10645_v24 = vpop.permute.xlu1 %3314  ;;  %v14220_v60 = vld [vmem:[#allocation213_spill] sm:$0xff]  ;;  %v14230_v8 = vld [vmem:[#allocation347_spill] sm:$0xff] }
 0x640   : > { %3809 = vperm.xlu0 %5732, %v9567_v33   ;;  %v1827_v1 = vadd.f32 %v14216_v50, %v1685_v4  ;;  %v10634_v47 = vadd.f32 %v1952_v22, %v1826_v10  ;;  %v1690_v61 = vadd.f32 %v10554_v44, %v1548_v48  ;;  %v1691_v59 = vadd.f32 %v10561_v55, %v1549_v7  ;;  %v14219_v22 = vld [vmem:[#allocation373_spill] sm:$0xff]  ;;  %v14221_v52 = vld [vmem:[#allocation226_spill] sm:$0xff]  ;;  %v14227_v48 = vld [vmem:[#allocation300_spill] sm:$0xff] }
 0x641   : > { %v1410_v13 = vadd.f32 %v10515_v46, %v1268_v20  ;;  %v1411_v29 = vadd.f32 %v10519_v19, %v1269_v34  ;;  %v1115_v30 = vmul.f32 %v1098_v2, %v10300_v45  ;;  %v14218_v57 = vmov 0   ;;  %v14222_v45 = vld [vmem:[#allocation355_spill] sm:$0xff]  ;;  %v14231_v27 = vld [vmem:[#allocation232_spill] sm:$0xff] }
 0x642   : > { %14217 = vst [vmem:[#allocation234_spill] sm:$0xff] %v10634_v47  ;;  %5724 = vset.pattern.permute.xlu1 %v14218_v57  ;;  %v1693_v4 = vadd.f32 %v14219_v22, %v1551_v25  ;;  %v1555_v44 = vadd.f32 %v10537_v41, %v1413_v58  ;;  %v4721_v55 = vmax.f32 %v10634_v47, %v14220_v60  ;;  %v14224_v41 = vld [vmem:[#allocation302_spill] sm:$0xff]  ;;  %v14229_v7 = vld [vmem:[#allocation239_spill] sm:$0xff] }
 0x643   : > { %v1832_v46 = vadd.f32 %v10382_v37, %v1690_v61  ;;  %v1552_v19 = vadd.f32 %v14221_v52, %v1410_v13  ;;  %v1553_v26 = vadd.f32 %v14222_v45, %v1411_v29  ;;  %v1130_v12 = vadd.f32 %v1114_v54, %v10319_v38  ;;  %3389 = vperm.xlu1 %5724, %v9567_v33   ;;  %v10668_v15 = vpop.permute.xlu0 %3517  ;;  %v14232_v50 = vld [vmem:[#allocation279_spill] sm:$0xff] }
 0x644   : > { %3813 = vperm.xlu0 %5732, %v9743_v39   ;;  %v1131_v2 = vadd.f32 %v1115_v30, %v10335_v42  ;;  %v10658_v25 = vadd.f32 %v1953_v18, %v1827_v1  ;;  %v4723_v9 = vmax.f32 %v4721_v55, %v14224_v41  ;;  %v1833_v58 = vadd.f32 %v10386_v32, %v1691_v59  ;;  %v10670_v42 = vpop.permute.xlu1 %3576  ;;  %v14226_v32 = vld [vmem:[#allocation246_spill] sm:$0xff]  ;;  %v14236_v1 = vld [vmem:[#allocation396_spill] sm:$0xff]  ;;  %v14237_v59 = vld [vmem:[#allocation253_spill] sm:$0xff] }
 0x645   : > { %v10662_v31 = vadd.f32 %v1958_v0, %v1832_v46  ;;  %v1694_v39 = vadd.f32 %v10565_v49, %v1552_v19  ;;  %v1695_v37 = vadd.f32 %v10571_v17, %v1553_v26  ;;  %v1272_v10 = vadd.f32 %v10303_v11, %v1130_v12  ;;  %v14238_v54 = vld [vmem:[#allocation243_spill] sm:$0xff]  ;;  %v14247_v12 = vld [vmem:[#allocation288_spill] sm:$0xff]  ;;  %v10983_v41 = vld [vmem:[%s12459_s3 + $0xb0] sm:$0xff] }
 0x646   : > { %14223 = vst [vmem:[#allocation285_spill] sm:$0xff] %v10658_v25  ;;  %v1273_v38 = vadd.f32 %v10308_v43, %v1131_v2  ;;  %v1835_v33 = vadd.f32 %v10591_v36, %v1693_v4  ;;  %v1697_v18 = vadd.f32 %v10272_v23, %v1555_v44  ;;  %v4725_v3 = vmax.f32 %v4723_v9, %v14227_v48  ;;  %v14228_v36 = vld [vmem:[#allocation238_spill] sm:$0xff]  ;;  %v14239_v30 = vld [vmem:[#allocation247_spill] sm:$0xff]  ;;  %v14248_v2 = vld [vmem:[#allocation204_spill] sm:$0xff] }
 0x647   : > { %14225 = vst [vmem:[#allocation289_spill] sm:$0xff] %v10662_v31  ;;  %v4722_v0 = vmax.f32 %v14226_v32, %v10662_v31  ;;  %v1836_v49 = vadd.f32 %v10394_v53, %v1694_v39  ;;  %v1837_v11 = vadd.f32 %v10405_v35, %v1695_v37  ;;  %v1414_v43 = vadd.f32 %v10523_v51, %v1272_v10  ;;  %v14240_v22 = vld [vmem:[#allocation255_spill] sm:$0xff]  ;;  %v14251_v39 = vld [vmem:[#allocation233_spill] sm:$0xff] }
 0x648   : > { %3817 = vperm.xlu0 %5732, %v9883_v16   ;;  %v1415_v17 = vadd.f32 %v10527_v62, %v1273_v38  ;;  %3458 = vrot.lane.b32.xlu1 %v14100_v5, %s6021_s26  ;;  %v1683_v23 = vmul.f32 %v14186_v21, %v14228_v36  ;;  %v1823_v20 = vmul.f32 %v14230_v8, %v14229_v7  ;;  %v14233_v35 = vmov 4   ;;  %v10699_v21 = vpop.permute.xlu0 %3438  ;;  %v10701_v29 = vpop.permute.xlu1 %3592  ;;  %v14242_v44 = vld [vmem:[#allocation275_spill] sm:$0xff]  ;;  %v14256_v36 = vld [vmem:[#allocation380_spill] sm:$0xff] }
 0x649   : > { %v1963_v34 = vmul.f32 %v14213_v6, %v14231_v27  ;;  %v4734_v53 = vmax.f32 %v10658_v25, %v14232_v50  ;;  %5725 = vset.pattern.permute.xlu1 %v14233_v35  ;;  %v10693_v51 = vadd.f32 %v1959_v40, %v1833_v58  ;;  %v10695_v62 = vadd.f32 %v1962_v14, %v1836_v49  ;;  %v14244_v14 = vld [vmem:[#allocation376_spill] sm:$0xff]  ;;  %v14246_v19 = vld [vmem:[#allocation271_spill] sm:$0xff]  ;;  %v14253_v49 = vld [vmem:[#allocation249_spill] sm:$0xff] }
 0x64a   : > { %v1556_v61 = vadd.f32 %v14236_v1, %v1414_v43  ;;  %v1557_v13 = vadd.f32 %v14237_v59, %v1415_v17  ;;  %v1919_v6 = vmul.f32 %v14239_v30, %v14238_v54  ;;  %v10706_v4 = vadd.f32 %v14240_v22, %v1829_v56  ;;  %v14249_v56 = vld [vmem:[#allocation216_spill] sm:$0xff]  ;;  %v14250_v58 = vld [vmem:[#allocation251_spill] sm:$0xff] }
 0x64b   : > { %14234 = vst [vmem:[#allocation281_spill] sm:$0xff] %v10693_v51  ;;  %14235 = vst [vmem:[#allocation333_spill] sm:$0xff] %v10695_v62  ;;  %v10709_v55 = vadd.f32 %v14242_v44, %v1835_v33  ;;  %v1839_v40 = vadd.f32 %v1823_v20, %v1697_v18  ;;  %v10713_v46 = vadd.f32 %v1963_v34, %v1837_v11  ;;  %v14252_v18 = vld [vmem:[#allocation395_spill] sm:$0xff]  ;;  %v14259_v27 = vld [vmem:[#allocation324_spill] sm:$0xff]  ;;  %v14261_v59 = vmov 5  }
 0x64c   : > { %14241 = vst [vmem:[#allocation357_spill] sm:$0xff] %v10706_v4  ;;  %3590 = vrot.lane.b32.xlu0 %v14244_v14, %s6024_s13  ;;  %v4724_v52 = vmax.f32 %v4722_v0, %v10695_v62  ;;  %v1698_v45 = vadd.f32 %v14246_v19, %v1556_v61  ;;  %v1699_v26 = vadd.f32 %v1683_v23, %v1557_v13  ;;  %v10729_v43 = vpop.permute.xlu1 %3252  ;;  %v10731_v17 = vpop.permute.xlu0 %3521  ;;  %v10753_v22 = vld [vmem:[%s12459_s3 + $0x80] sm:$0xff]  ;;  %v14296_v25 = vmov 7  }
 0x64d   : > { %14243 = vst [vmem:[#allocation283_spill] sm:$0xff] %v10709_v55  ;;  %14245 = vst [vmem:[#allocation252_spill] sm:$0xff] %v10713_v46  ;;  %3720 = vrot.lane.b32.xlu1 %v14247_v12, %s6023_s12  ;;  %v1965_v9 = vmul.f32 %v14249_v56, %v14248_v2  ;;  %v1966_v37 = vmul.f32 %v14251_v39, %v14250_v58  ;;  %v1967_v10 = vmul.f32 %v14251_v39, %v1919_v6  ;;  %v14263_v6 = vld [vmem:[#allocation310_spill] sm:$0xff]  ;;  %v10765_v2 = vld [vmem:[%s12459_s3 + $0x88] sm:$0xff] }
 0x64e   : > { %v4736_v38 = vmax.f32 %v4734_v53, %v10709_v55  ;;  %v4735_v33 = vmax.f32 %v10706_v4, %v10693_v51  ;;  %v1840_v0 = vadd.f32 %v14252_v18, %v1698_v45  ;;  %v1841_v11 = vadd.f32 %v14253_v49, %v1699_v26  ;;  %14254 = vst [vmem:[#allocation217_spill] sm:$0xff] %v10729_v43  ;;  %v5564_v48 = vld [vmem:[%s12460_s4 + $0x1] ss:$8 sm:$0x3]  ;;  %v14321_v43 = vld [vmem:[#allocation282_spill] sm:$0xff] }
 0x64f   : > { %14255 = vst [vmem:[#allocation256_spill] sm:$0xff] %v10731_v17  ;;  %v10734_v23 = vadd.f32 %v1965_v9, %v1839_v40 }
 0x650   : > { %3821 = vperm.xlu0 %5732, %v14256_v36   ;;  %v4737_v7 = vmax.f32 %v4735_v33, %v10713_v46  ;;  %v10737_v8 = vadd.f32 %v1966_v37, %v1840_v0  ;;  %v1983_v20 = vadd.f32 %v1967_v10, %v1841_v11  ;;  %v10743_v61 = vpop.permute.xlu0 %3440  ;;  %v10746_v13 = vpop.permute.xlu1 %3381  ;;  %v10777_v33 = vld [vmem:[%s12459_s3 + $0x90] sm:$0xff] }
 0x651   : > { %14257 = vst [vmem:[#allocation344_spill] sm:$0xff] %v10734_v23  ;;  %3736 = vrot.lane.b32.xlu1 %v14259_v27, %s6023_s12  ;;  %v4738_v34 = vmax.f32 %v4736_v38, %v10734_v23  ;;  %14260 = vst [vmem:[#allocation379_spill] sm:$0xff] %v10743_v61  ;;  %v14267_v38 = vld [vmem:[#allocation307_spill] sm:$0xff]  ;;  %v14311_v23 = vld [vmem:[#allocation90_spill] sm:$0xff] }
 0x652   : > { %14258 = vst [vmem:[#allocation378_spill] sm:$0xff] %v10737_v8  ;;  %v4726_v53 = vmax.f32 %v4724_v52, %v10737_v8  ;;  %v4739_v1 = vmax.f32 %v4737_v7, %v1983_v20  ;;  %14262 = vst [vmem:[#allocation363_spill] sm:$0xff] %v10746_v13  ;;  %v11019_v17 = vrot.slane %v5564_v48, %v14311_v23 }
 0x654   : > { %5733 = vset.pattern.permute.xlu0 %v14261_v59  ;;  %v4727_v54 = vmax.f32 %v4725_v3, %v4726_v53  ;;  %v4740_v30 = vmax.f32 %v4738_v34, %v4739_v1  ;;  %v10756_v52 = vpop.permute.xlu1 %3454  ;;  %v10758_v19 = vpop.permute.xlu0 %3525  ;;  %v14265_v3 = vld [vmem:[#allocation313_spill] sm:$0xff]  ;;  %v10793_v1 = vld [vmem:[%s12459_s3 + $0x98] sm:$0xff]  ;;  %v14282_v59 = vmov 6  }
 0x655   : > { %3998 = vrot.lane.b32.xlu1 %v14263_v6, %s6025_s17  ;;  %3933 = vperm.xlu0 %5733, %v10753_v22   ;;  %14264 = vst [vmem:[#allocation262_spill] sm:$0xff] %v10758_v19  ;;  %v14271_v53 = vld [vmem:[#allocation309_spill] sm:$0xff] }
 0x656   : > { %v4728_v44 = vrot.slane %v4727_v54, 4  ;;  %v4741_v40 = vrot.slane %v4740_v30, 4 }
 0x658   : > { %v4729_v45 = vmax.f32 %v4727_v54, %v4728_v44  ;;  %v4742_v26 = vmax.f32 %v4740_v30, %v4741_v40  ;;  %v10768_v58 = vpop.permute.xlu1 %3716  ;;  %v10770_v39 = vpop.permute.xlu0 %3442 }
 0x659   : > { %4014 = vrot.lane.b32.xlu1 %v14265_v3, %s6025_s17  ;;  %3937 = vperm.xlu0 %5733, %v10765_v2   ;;  %14266 = vst [vmem:[#allocation384_spill] sm:$0xff] %v10770_v39 }
 0x65a   : > { %v4730_v56 = vrot.slane %v4729_v45, 2  ;;  %v4743_v9 = vrot.slane %v4742_v26, 2 }
 0x65c   : > { %v4731_v37 = vmax.f32 %v4729_v45, %v4730_v56  ;;  %v4744_v10 = vmax.f32 %v4742_v26, %v4743_v9  ;;  %v10780_v49 = vpop.permute.xlu1 %3732  ;;  %v10782_v11 = vpop.permute.xlu0 %3304  ;;  %v14277_v45 = vld [vmem:[#allocation332_spill] sm:$0xff] }
 0x65d   : > { %4276 = vrot.lane.b32.xlu1 %v14267_v38, %s13336_s22  ;;  %3941 = vperm.xlu0 %5733, %v10777_v33   ;;  %14268 = vst [vmem:[#allocation385_spill] sm:$0xff] %v10782_v11 }
 0x65e   : > { %v4732_v18 = vrot.slane %v4731_v37, 1  ;;  %v4745_v0 = vrot.slane %v4744_v10, 1 }
 0x660   : > { %v10784_v7 = vmax.f32 %v4731_v37, %v4732_v18  ;;  %v10786_v34 = vmax.f32 %v4744_v10, %v4745_v0  ;;  %v10801_v44 = vpop.permute.xlu1 %3300  ;;  %v10803_v40 = vpop.permute.xlu0 %3529  ;;  %v14274_v37 = vld [vmem:[#allocation218_spill] sm:$0xff]  ;;  %v10818_v10 = vld [vmem:[%s12459_s3 + $0xa0] sm:$0xff]  ;;  %v10838_v18 = vld [vmem:[%s12459_s3 + $0xa8] sm:$0xff] }
 0x661   : > { %4292 = vrot.lane.b32.xlu1 %v14271_v53, %s13336_s22  ;;  %3945 = vperm.xlu0 %5733, %v10793_v1   ;;  %14272 = vst [vmem:[#allocation387_spill] sm:$0xff] %v10801_v44  ;;  %14273 = vst [vmem:[#allocation269_spill] sm:$0xff] %v10803_v40 }
 0x662   : > { %14269 = vst [vmem:[#allocation316_spill] sm:$0xff] %v10784_v7  ;;  %14270 = vst [vmem:[#allocation386_spill] sm:$0xff] %v10786_v34  ;;  %v4762_v54 = vsub.f32 %v1983_v20, %v10786_v34 }
 0x664   : > { %v4793_v20 = vmul.f32 1.442695, %v4762_v54  ;;  %v10829_v56 = vpop.permute.xlu1 %3316  ;;  %v10831_v26 = vpop.permute.xlu0 %3444 }
 0x665   : > { %3320 = vrot.lane.b32.xlu1 %v14274_v37, %s6022_s10  ;;  %3949 = vperm.xlu0 %5733, %v10818_v10   ;;  %14275 = vst [vmem:[#allocation266_spill] sm:$0xff] %v10829_v56  ;;  %14276 = vst [vmem:[#allocation142_spill] sm:$0xff] %v10831_v26  ;;  %v14330_v56 = vld [vmem:[#allocation265_spill] sm:$0xff] }
 0x666   : > { %5790 = vpow2.f32 %v4793_v20 }
 0x668   : > { %v10845_v54 = vpop.permute.xlu1 %3578  ;;  %v10847_v0 = vpop.permute.xlu0 %3306 }
 0x669   : > { %3582 = vrot.lane.b32.xlu1 %v14277_v45, %s6024_s13  ;;  %3953 = vperm.xlu0 %5733, %v10838_v18   ;;  %14278 = vst [vmem:[#allocation221_spill] sm:$0xff] %v10847_v0 }
 0x66c   : > { %v10858_v40 = vpop.permute.xlu1 %3594  ;;  %v10860_v20 = vpop.permute.xlu0 %3533 }
 0x66d   : > { %3598 = vrot.lane.b32.xlu1 %v14100_v5, %s6024_s13  ;;  %3957 = vperm.xlu0 %5733, %v9883_v16   ;;  %14279 = vst [vmem:[#allocation145_spill] sm:$0xff] %v10860_v20 }
 0x670   : > { %v10865_v30 = vpop.permute.xlu1 %3856  ;;  %v10867_v26 = vpop.permute.xlu0 %3446 }
 0x671   : > { %3860 = vrot.lane.b32.xlu1 %v14247_v12, %s6026_s18  ;;  %3961 = vperm.xlu0 %5733, %v14256_v36   ;;  %14280 = vst [vmem:[#allocation330_spill] sm:$0xff] %v10867_v26 }
 0x673   : > { %v10869_v11 = vpop.eup %5790 }
 0x674   : > { %14281 = vst [vmem:[#allocation299_spill] sm:$0xff] %v10869_v11  ;;  %4836 = vmatprep.subr.mxu1 %v10869_v11  ;;  %v10876_v9 = vpop.permute.xlu1 %3872  ;;  %v10878_v20 = vpop.permute.xlu0 %3308 }
 0x675   : > { %3876 = vrot.lane.b32.xlu1 %v14259_v27, %s6026_s18  ;;  %5734 = vset.pattern.permute.xlu0 %v14282_v59  ;;  %14283 = vst [vmem:[#allocation240_spill] sm:$0xff] %v10878_v20 }
 0x676   : > { %4073 = vperm.xlu0 %5734, %v10753_v22  }
 0x678   : > { %v10883_v26 = vpop.permute.xlu0 %3537  ;;  %v10887_v0 = vpop.permute.xlu1 %3257 }
 0x679   : > { %4138 = vrot.lane.b32.xlu1 %v14263_v6, %s14179_s20  ;;  %14284 = vst [vmem:[#allocation389_spill] sm:$0xff] %v10883_v26  ;;  %14285 = vst [vmem:[#allocation390_spill] sm:$0xff] %v10887_v0 }
 0x67a   : > { %4077 = vperm.xlu0 %5734, %v10765_v2  }
 0x67c   : > { %v10890_v59 = vpop.permute.xlu0 %3448  ;;  %v10894_v11 = vpop.permute.xlu1 %3385 }
 0x67d   : > { %4154 = vrot.lane.b32.xlu1 %v14265_v3, %s14179_s20  ;;  %14286 = vst [vmem:[#allocation346_spill] sm:$0xff] %v10890_v59  ;;  %14287 = vst [vmem:[#allocation292_spill] sm:$0xff] %v10894_v11 }
 0x67e   : > { %4081 = vperm.xlu0 %5734, %v10777_v33  }
 0x680   : > { %v10896_v20 = vpop.permute.xlu0 %3310  ;;  %v10901_v26 = vpop.permute.xlu1 %3456 }
 0x681   : > { %3267 = vperm.xlu1 %5725, %v10838_v18   ;;  %14288 = vst [vmem:[#allocation314_spill] sm:$0xff] %v10896_v20  ;;  %14289 = vst [vmem:[#allocation335_spill] sm:$0xff] %v10901_v26 }
 0x682   : > { %4085 = vperm.xlu0 %5734, %v10793_v1  }
 0x684   : > { %v10903_v19 = vpop.permute.xlu0 %3541  ;;  %v10908_v59 = vpop.permute.xlu1 %3718 }
 0x685   : > { %5726 = vset.pattern.permute.xlu1 %v14218_v57  ;;  %14290 = vst [vmem:[#allocation360_spill] sm:$0xff] %v10903_v19 }
 0x686   : > { %3393 = vperm.xlu1 %5726, %v10838_v18   ;;  %4089 = vperm.xlu0 %5734, %v10818_v10  }
 0x688   : > { %v10911_v20 = vpop.permute.xlu0 %3657  ;;  %v10916_v0 = vpop.permute.xlu1 %3734 }
 0x68a   : > { %3460 = vrot.lane.b32.xlu1 %v14274_v37, %s6021_s26  ;;  %4093 = vperm.xlu0 %5734, %v10838_v18  }
 0x68b   : > { %5727 = vset.pattern.permute.xlu1 %v14233_v35 }
 0x68c   : > { %v10918_v11 = vpop.permute.xlu0 %3661  ;;  %v10924_v19 = vpop.permute.xlu1 %3996 }
 0x68d   : > { %14291 = vst [vmem:[#allocation259_spill] sm:$0xff] %v10918_v11  ;;  %14292 = vst [vmem:[#allocation260_spill] sm:$0xff] %v10924_v19  ;;  %v14318_v11 = vld [vmem:[#allocation202_spill] sm:$0xff] }
 0x68e   : > { %3722 = vrot.lane.b32.xlu1 %v14277_v45, %s6023_s12  ;;  %4097 = vperm.xlu0 %5734, %v9883_v16   ;;  %v4435_v19 = vld [vmem:[%s12463_s7 + $0x18] sm:$0xff] }
 0x690   : > { %v10926_v39 = vpop.permute.xlu0 %3665  ;;  %v10931_v16 = vpop.permute.xlu1 %4012 }
 0x691   : > { %14293 = vst [vmem:[#allocation229_spill] sm:$0xff] %v10926_v39  ;;  %14294 = vst [vmem:[#allocation264_spill] sm:$0xff] %v10931_v16 }
 0x692   : > { %3738 = vrot.lane.b32.xlu1 %v14100_v5, %s6023_s12  ;;  %3870 = vrot.lane.b32.xlu0 %v14244_v14, %s6026_s18 }
 0x694   : > { %v10933_v47 = vpop.permute.xlu0 %3669  ;;  %v10938_v32 = vpop.permute.xlu1 %3302 }
 0x695   : > { %14295 = vst [vmem:[#allocation231_spill] sm:$0xff] %v10933_v47  ;;  %14297 = vst [vmem:[#allocation268_spill] sm:$0xff] %v10938_v32 }
 0x696   : > { %4000 = vrot.lane.b32.xlu1 %v14247_v12, %s6025_s17  ;;  %4101 = vperm.xlu0 %5734, %v14256_v36  }
 0x698   : > { %v10941_v4 = vpop.permute.xlu0 %3673  ;;  %v10945_v39 = vpop.permute.xlu1 %3318 }
 0x699   : > { %14298 = vst [vmem:[#allocation215_spill] sm:$0xff] %v10941_v4  ;;  %14299 = vst [vmem:[#allocation342_spill] sm:$0xff] %v10945_v39  ;;  %v14303_v4 = vld [vmem:[#allocation338_spill] sm:$0xff]  ;;  %v14305_v39 = vld [vmem:[#allocation336_spill] sm:$0xff] }
 0x69a   : > { %4016 = vrot.lane.b32.xlu1 %v14259_v27, %s6025_s17  ;;  %5735 = vset.pattern.permute.xlu0 %v14296_v25 }
 0x69b   : > { %4213 = vperm.xlu0 %5735, %v10753_v22  }
 0x69c   : > { %v10948_v60 = vpop.permute.xlu0 %3677  ;;  %v10952_v47 = vpop.permute.xlu1 %3580 }
 0x69d   : > { %14300 = vst [vmem:[#allocation267_spill] sm:$0xff] %v10948_v60  ;;  %14301 = vst [vmem:[#allocation270_spill] sm:$0xff] %v10952_v47 }
 0x69e   : > { %4278 = vrot.lane.b32.xlu1 %v14263_v6, %s13336_s22 }
 0x69f   : > { %4217 = vperm.xlu0 %5735, %v10765_v2  }
 0x6a0   : > { %v10955_v25 = vpop.permute.xlu0 %3681  ;;  %v10959_v32 = vpop.permute.xlu1 %3596 }
 0x6a1   : > { %14302 = vst [vmem:[#allocation136_spill] sm:$0xff] %v10955_v25  ;;  %14304 = vst [vmem:[#allocation200_spill] sm:$0xff] %v10959_v32 }
 0x6a2   : > { %4294 = vrot.lane.b32.xlu1 %v14265_v3, %s13336_s22 }
 0x6a3   : > { %4221 = vperm.xlu0 %5735, %v10777_v33  }
 0x6a4   : > { %v10964_v60 = vpop.permute.xlu1 %3858 }
 0x6a5   : > { %v10967_v50 = vpop.permute.xlu0 %3793 }
 0x6a6   : > { %3322 = vrot.lane.b32.xlu1 %v14303_v4, %s6022_s10 }
 0x6a7   : > { %4225 = vperm.xlu0 %5735, %v10793_v1  }
 0x6a8   : > { %v10971_v25 = vpop.permute.xlu1 %3874 }
 0x6a9   : > { %v10974_v31 = vpop.permute.xlu0 %3797 }
 0x6aa   : > { %3584 = vrot.lane.b32.xlu1 %v14305_v39, %s6024_s13 }
 0x6ab   : > { %4229 = vperm.xlu0 %5735, %v10818_v10  }
 0x6ac   : > { %v10978_v51 = vpop.permute.xlu1 %4136 }
 0x6ad   : > { %14306 = vst [vmem:[#allocation139_spill] sm:$0xff] %v10978_v51  ;;  %v3344_v51 = vld [vmem:[%s12460_s4] ss:$8 sm:$0x3] }
 0x6ae   : > { %3600 = vrot.lane.b32.xlu1 %v14274_v37, %s6024_s13  ;;  %v11006_v7 = vrot.slane %v3344_v51, %v14311_v23 }
 0x6af   : > { %4233 = vperm.xlu0 %5735, %v10838_v18  }
 0x6b0   : > { %v10990_v62 = vpop.permute.xlu1 %4152  ;;  %14312 = vst [vmem:[#allocation129_spill] sm:$0xff] %v11006_v7 }
 0x6b1   : > { %14308 = vst [vmem:[#allocation359_spill] sm:$0xff] %v10990_v62  ;;  %v14313_v62 = vmov 8  }
 0x6b2   : > { %3862 = vrot.lane.b32.xlu1 %v14277_v45, %s6026_s18 }
 0x6b3   : > { %4237 = vperm.xlu0 %5735, %v10983_v41   ;;  %v10986_v55 = vpop.permute.xlu0 %3801 }
 0x6b4   : > { %14307 = vst [vmem:[#allocation227_spill] sm:$0xff] %v10986_v55  ;;  %v14317_v55 = vld [vmem:[#allocation223_spill] sm:$0xff] }
 0x6b5   : > { %v3336_v16 = vsel %vm881_vm2, %v14318_v11, %v14317_v55 }
 0x6b6   : > { %3878 = vrot.lane.b32.xlu1 %v14100_v5, %s6026_s18  ;;  %v3356_v47 = vmul.f32 %v11006_v7, %v3336_v16  ;;  %v5567_v16 = vld [vmem:[%s12460_s4 + $0x5] ss:$8 sm:$0x3] }
 0x6b7   : > { %4241 = vperm.xlu0 %5735, %v14256_v36   ;;  %v10993_v46 = vpop.permute.xlu0 %3805 }
 0x6b8   : > { %14309 = vst [vmem:[#allocation286_spill] sm:$0xff] %v10993_v46  ;;  %v11003_v34 = vpop.permute.xlu1 %3262  ;;  %v14315_v46 = vld [vmem:[#allocation358_spill] sm:$0xff] }
 0x6b9   : > { %14310 = vst [vmem:[#allocation284_spill] sm:$0xff] %v11003_v34  ;;  %v11012_v8 = vrot.slane %v3344_v51, %v14315_v46  ;;  %v11022_v34 = vrot.slane %v5564_v48, %v14315_v46  ;;  %v3328_v51 = vsel %vm881_vm2, %v14317_v55, %v14318_v11  ;;  %v3329_v55 = vsel %vm881_vm2, %v10643_v63, %v10645_v24  ;;  %v5566_v11 = vld [vmem:[%s12460_s4 + $0x3] ss:$8 sm:$0x3] }
 0x6ba   : > { %4140 = vrot.lane.b32.xlu1 %v14247_v12, %s14179_s20 }
 0x6bb   : > { %5736 = vset.pattern.permute.xlu0 %v14313_v62  ;;  %v11009_v36 = vpop.permute.xlu0 %3809  ;;  %14316 = vst [vmem:[#allocation133_spill] sm:$0xff] %v11012_v8  ;;  %v5565_v62 = vld [vmem:[%s12460_s4 + $0x2] ss:$8 sm:$0x3]  ;;  %v3357_v61 = vmul.f32 %v11012_v8, %v3328_v51  ;;  %v11075_v51 = vrot.slane %v5566_v11, %v14311_v23 }
 0x6bc   : > { %14314 = vst [vmem:[#allocation219_spill] sm:$0xff] %v11009_v36  ;;  %4353 = vperm.xlu0 %5736, %v10753_v22   ;;  %v14320_v36 = vld [vmem:[#allocation287_spill] sm:$0xff]  ;;  %v3337_v22 = vsel %vm881_vm2, %v10645_v24, %v10643_v63 }
 0x6bd   : > { %v3468_v13 = vsel %vm1022_vm1, %v14321_v43, %v14320_v36  ;;  %v3476_v48 = vsel %vm1022_vm1, %v14320_v36, %v14321_v43  ;;  %v11055_v43 = vrot.slane %v5565_v62, %v14311_v23  ;;  %v11058_v36 = vrot.slane %v5565_v62, %v14315_v46  ;;  %v14324_v62 = vld [vmem:[#allocation230_spill] sm:$0xff] }
 0x6be   : > { %4156 = vrot.lane.b32.xlu1 %v14259_v27, %s14179_s20  ;;  %v3496_v63 = vmul.f32 %v11019_v17, %v3476_v48  ;;  %v3497_v24 = vmul.f32 %v11022_v34, %v3468_v13  ;;  %v3358_v26 = vmul.f32 %v11006_v7, %v3337_v22  ;;  %v11066_v44 = vpop.permute.xlu1 %3389  ;;  %v3404_v27 = vmul.f32 %v14324_v62, %v3356_v47 }
 0x6bf   : > { %v11060_v32 = vpop.permute.xlu0 %3813  ;;  %14323 = vst [vmem:[#allocation236_spill] sm:$0xff] %v11066_v44  ;;  %v11078_v48 = vrot.slane %v5566_v11, %v14315_v46  ;;  %v3405_v13 = vmul.f32 %v14324_v62, %v3357_v61  ;;  %v3616_v47 = vsel %vm1164_vm4, %v10701_v29, %v10670_v42  ;;  %v3469_v22 = vsel %vm1022_vm1, %v10699_v21, %v10756_v52 }
 0x6c0   : > { %14322 = vst [vmem:[#allocation228_spill] sm:$0xff] %v11060_v32  ;;  %4357 = vperm.xlu0 %5736, %v10765_v2   ;;  %v3359_v32 = vmul.f32 %v11012_v8, %v3329_v55  ;;  %v3608_v2 = vsel %vm1164_vm4, %v10670_v42, %v10701_v29  ;;  %v14325_v55 = vld [vmem:[#allocation261_spill] sm:$0xff]  ;;  %v3477_v11 = vsel %vm1022_vm1, %v10756_v52, %v10699_v21  ;;  %v14329_v8 = vld [vmem:[#allocation312_spill] sm:$0xff] }
 0x6c1   : > { %v3280_v61 = vmul.f32 %v14325_v55, %v14267_v38  ;;  %v11103_v44 = vrot.slane %v5567_v16, %v14311_v23  ;;  %v11106_v42 = vrot.slane %v5567_v16, %v14315_v46  ;;  %v3281_v29 = vmul.f32 %v14325_v55, %v14271_v53 }
 0x6c2   : > { %3272 = vperm.xlu1 %5727, %v10983_v41   ;;  %v3544_v7 = vmul.f32 %v14329_v8, %v3496_v63  ;;  %v3545_v38 = vmul.f32 %v14329_v8, %v3497_v24  ;;  %v3406_v12 = vmul.f32 %v14330_v56, %v3358_v26  ;;  %v11113_v5 = vpop.permute.xlu1 %3458  ;;  %v3407_v21 = vmul.f32 %v14330_v56, %v3359_v32  ;;  %v14331_v63 = vld [vmem:[#allocation263_spill] sm:$0xff] }
 0x6c3   : > { %v11100_v62 = vpop.permute.xlu0 %3817  ;;  %14327 = vst [vmem:[#allocation294_spill] sm:$0xff] %v11103_v44  ;;  %14328 = vst [vmem:[#allocation315_spill] sm:$0xff] %v11106_v42  ;;  %v3636_v52 = vmul.f32 %v11055_v43, %v3616_v47  ;;  %v3637_v16 = vmul.f32 %v11058_v36, %v3608_v2  ;;  %v3420_v46 = vadd.f32 %v3404_v27, %v3280_v61 }
 0x6c4   : > { %14326 = vst [vmem:[#allocation296_spill] sm:$0xff] %v11100_v62  ;;  %4361 = vperm.xlu0 %5736, %v10777_v33   ;;  %v3499_v62 = vmul.f32 %v11022_v34, %v3469_v22  ;;  %v3421_v53 = vadd.f32 %v3405_v13, %v3281_v29  ;;  %v3282_v55 = vmul.f32 %v14331_v63, %v14263_v6 }
 0x6c5   : > { %v3498_v8 = vmul.f32 %v11019_v17, %v3477_v11  ;;  %v3283_v33 = vmul.f32 %v14331_v63, %v14265_v3  ;;  %v3748_v32 = vsel %vm1306_vm3, %v10768_v58, %v10780_v49  ;;  %v3756_v27 = vsel %vm1306_vm3, %v10780_v49, %v10768_v58 }
 0x6c6   : > { %5728 = vset.pattern.permute.xlu1 %v14218_v57  ;;  %v3617_v6 = vsel %vm1164_vm4, %v10858_v40, %v10845_v54  ;;  %v3422_v3 = vadd.f32 %v3406_v12, %v3282_v55  ;;  %v3609_v56 = vsel %vm1164_vm4, %v10845_v54, %v10858_v40  ;;  %v3560_v24 = vadd.f32 %v3544_v7, %v3420_v46  ;;  %v11145_v2 = vpop.permute.xlu1 %3720 }
 0x6c7   : > { %3397 = vperm.xlu1 %5728, %v10983_v41   ;;  %v11139_v26 = vpop.permute.xlu0 %3590  ;;  %v3561_v13 = vadd.f32 %v3545_v38, %v3421_v53  ;;  %v3423_v58 = vadd.f32 %v3407_v21, %v3283_v33  ;;  %v3684_v49 = vmul.f32 %v10622_v28, %v3636_v52  ;;  %v3685_v47 = vmul.f32 %v10622_v28, %v3637_v16 }
 0x6c8   : > { %14332 = vst [vmem:[#allocation337_spill] sm:$0xff] %v11139_v26  ;;  %4365 = vperm.xlu0 %5736, %v10793_v1   ;;  %v3547_v22 = vmul.f32 %v10668_v15, %v3499_v62  ;;  %v3546_v12 = vmul.f32 %v10668_v15, %v3498_v8  ;;  %v3638_v61 = vmul.f32 %v11055_v43, %v3617_v6 }
 0x6c9   : > { %v3776_v11 = vmul.f32 %v11075_v51, %v3756_v27  ;;  %v3777_v46 = vmul.f32 %v11078_v48, %v3748_v32  ;;  %v3639_v7 = vmul.f32 %v11058_v36, %v3609_v56  ;;  %v3888_v1 = vsel %vm1448_vm6, %v10865_v30, %v10876_v9 }
 0x6ca   : > { %v3896_v28 = vsel %vm1448_vm6, %v10876_v9, %v10865_v30  ;;  %v3749_v15 = vsel %vm1306_vm3, %v10908_v59, %v10916_v0  ;;  %v3757_v54 = vsel %vm1306_vm3, %v10916_v0, %v10908_v59  ;;  %v11178_v30 = vpop.permute.xlu1 %3736  ;;  %v3700_v9 = vadd.f32 %v3684_v49, %v3560_v24 }
 0x6cb   : > { %3462 = vrot.lane.b32.xlu1 %v14303_v4, %s6021_s26  ;;  %v11170_v40 = vpop.permute.xlu0 %3821  ;;  %v3824_v62 = vmul.f32 %v10967_v50, %v3776_v11  ;;  %v3825_v29 = vmul.f32 %v10967_v50, %v3777_v46  ;;  %v3701_v38 = vadd.f32 %v3685_v47, %v3561_v13  ;;  %v3562_v21 = vadd.f32 %v3546_v12, %v3422_v3 }
 0x6cc   : > { %14333 = vst [vmem:[#allocation272_spill] sm:$0xff] %v11170_v40  ;;  %4369 = vperm.xlu0 %5736, %v10818_v10   ;;  %5729 = vset.pattern.permute.xlu1 %v14233_v35  ;;  %v3563_v52 = vadd.f32 %v3547_v22, %v3423_v58  ;;  %v3686_v16 = vmul.f32 %v10911_v20, %v3638_v61 }
 0x6cd   : > { %v3687_v53 = vmul.f32 %v10911_v20, %v3639_v7  ;;  %v3778_v0 = vmul.f32 %v11075_v51, %v3757_v54  ;;  %v3779_v59 = vmul.f32 %v11078_v48, %v3749_v15  ;;  %v3916_v50 = vmul.f32 %v11103_v44, %v3888_v1  ;;  %v11235_v15 = vld [vmem:[%s12459_s3 + $0xb8] sm:$0xff]  ;;  %v14336_v54 = vld [vmem:[#allocation288_spill] sm:$0xff] }
 0x6ce   : > { %v3917_v10 = vmul.f32 %v11106_v42, %v3896_v28  ;;  %v3840_v35 = vadd.f32 %v3824_v62, %v3700_v9  ;;  %v3841_v63 = vadd.f32 %v3825_v29, %v3701_v38  ;;  %v3889_v55 = vsel %vm1448_vm6, %v10964_v60, %v10971_v25  ;;  %v11198_v8 = vpop.permute.xlu1 %3998  ;;  %v14339_v9 = vld [vmem:[#allocation266_spill] sm:$0xff]  ;;  %v14340_v38 = vld [vmem:[#allocation387_spill] sm:$0xff] }
 0x6cf   : > { %3724 = vrot.lane.b32.xlu1 %v14305_v39, %s6023_s12  ;;  %v3897_v20 = vsel %vm1448_vm6, %v10971_v25, %v10964_v60  ;;  %v3826_v32 = vmul.f32 %v10974_v31, %v3778_v0  ;;  %v3827_v27 = vmul.f32 %v10974_v31, %v3779_v59  ;;  %v3702_v56 = vadd.f32 %v3686_v16, %v3562_v21  ;;  %v14341_v16 = vld [vmem:[#allocation324_spill] sm:$0xff]  ;;  %v14343_v59 = vld [vmem:[#allocation133_spill] sm:$0xff] }
 0x6d0   : > { %v3934_v33 = vpop.permute.xlu0 %3933  ;;  %4373 = vperm.xlu0 %5736, %v10838_v18   ;;  %v3703_v24 = vadd.f32 %v3687_v53, %v3563_v52  ;;  %v3918_v60 = vmul.f32 %v11103_v44, %v3889_v55  ;;  %v3919_v25 = vmul.f32 %v11106_v42, %v3897_v20  ;;  %v3330_v21 = vsel %vm881_vm2, %v14340_v38, %v14339_v9  ;;  %v14342_v53 = vld [vmem:[#allocation129_spill] sm:$0xff] }
 0x6d1   : > { %v3964_v6 = vmul.f32 %v3934_v33, %v3916_v50  ;;  %v3965_v3 = vmul.f32 %v3934_v33, %v3917_v10  ;;  %v3842_v31 = vadd.f32 %v3826_v32, %v3702_v56  ;;  %v3338_v52 = vsel %vm881_vm2, %v14339_v9, %v14340_v38  ;;  %v14344_v10 = vld [vmem:[#allocation335_spill] sm:$0xff]  ;;  %v14347_v32 = vld [vmem:[#allocation200_spill] sm:$0xff] }
 0x6d2   : > { %v11211_v18 = vpop.permute.xlu1 %4014  ;;  %v3843_v47 = vadd.f32 %v3827_v27, %v3703_v24  ;;  %v3360_v0 = vmul.f32 %v14342_v53, %v3338_v52  ;;  %v3361_v50 = vmul.f32 %v14343_v59, %v3330_v21  ;;  %v14348_v27 = vld [vmem:[#allocation270_spill] sm:$0xff]  ;;  %v5568_v52 = vld [vmem:[%s12460_s4 + $0x6] ss:$8 sm:$0x3] }
 0x6d3   : > { %v11203_v13 = vadd.f32 %v3964_v6, %v3840_v35  ;;  %v11205_v58 = vadd.f32 %v3965_v3, %v3841_v63  ;;  %3740 = vrot.lane.b32.xlu1 %v14274_v37, %s6023_s12  ;;  %v14345_v35 = vld [vmem:[#allocation379_spill] sm:$0xff]  ;;  %v3610_v6 = vsel %vm1164_vm4, %v14348_v27, %v14347_v32  ;;  %v3618_v3 = vsel %vm1164_vm4, %v14347_v32, %v14348_v27  ;;  %v14354_v32 = vld [vmem:[#allocation245_spill] sm:$0xff] }
 0x6d4   : > { %v3938_v49 = vpop.permute.xlu0 %3937  ;;  %4377 = vperm.xlu0 %5736, %v10983_v41   ;;  %v14334_v41 = vld [vmem:[#allocation254_spill] sm:$0xff]  ;;  %v3470_v63 = vsel %vm1022_vm1, %v14345_v35, %v14344_v10  ;;  %v3478_v55 = vsel %vm1022_vm1, %v14344_v10, %v14345_v35  ;;  %v3640_v38 = vmul.f32 %v11055_v43, %v3618_v3  ;;  %v3641_v21 = vmul.f32 %v11058_v36, %v3610_v6  ;;  %v14353_v35 = vld [vmem:[#allocation256_spill] sm:$0xff] }
 0x6d5   : > { %v3966_v22 = vmul.f32 %v3938_v49, %v3918_v60  ;;  %v3967_v12 = vmul.f32 %v3938_v49, %v3919_v25  ;;  %v3500_v56 = vmul.f32 %v11019_v17, %v3478_v55  ;;  %v3501_v24 = vmul.f32 %v11022_v34, %v3470_v63  ;;  %v14349_v60 = vld [vmem:[#allocation377_spill] sm:$0xff]  ;;  %v14350_v25 = vld [vmem:[#allocation363_spill] sm:$0xff] }
 0x6d6   : > { %v11220_v46 = vpop.permute.xlu1 %4276  ;;  %v3408_v49 = vmul.f32 %v14350_v25, %v3360_v0  ;;  %v14352_v0 = vld [vmem:[#allocation217_spill] sm:$0xff] }
 0x6d7   : > { %v11214_v61 = vadd.f32 %v3966_v22, %v3842_v31  ;;  %v11216_v11 = vadd.f32 %v3967_v12, %v3843_v47  ;;  %4002 = vrot.lane.b32.xlu1 %v14277_v45, %s6025_s17  ;;  %v3409_v31 = vmul.f32 %v14350_v25, %v3361_v50  ;;  %v3750_v47 = vsel %vm1306_vm3, %v11145_v2, %v11178_v30 }
 0x6d8   : > { %v11222_v7 = vpop.permute.xlu0 %3941  ;;  %4150 = vrot.lane.b32.xlu0 %v14244_v14, %s14179_s20  ;;  %v3758_v22 = vsel %vm1306_vm3, %v11178_v30, %v11145_v2  ;;  %v3284_v50 = vmul.f32 %v14352_v0, %v14336_v54  ;;  %v3285_v10 = vmul.f32 %v14352_v0, %v14341_v16  ;;  %v3548_v2 = vmul.f32 %v14353_v35, %v3500_v56  ;;  %v14359_v56 = vld [vmem:[#allocation264_spill] sm:$0xff] }
 0x6d9   : > { %v3549_v30 = vmul.f32 %v14353_v35, %v3501_v24  ;;  %v3780_v63 = vmul.f32 %v11075_v51, %v3758_v22  ;;  %v3781_v55 = vmul.f32 %v11078_v48, %v3750_v47  ;;  %v14360_v24 = vld [vmem:[#allocation260_spill] sm:$0xff] }
 0x6da   : > { %v11228_v1 = vpop.permute.xlu1 %4292  ;;  %v3424_v27 = vadd.f32 %v3408_v49, %v3284_v50  ;;  %v3425_v6 = vadd.f32 %v3409_v31, %v3285_v10  ;;  %v4028_v22 = vsel %vm1590_vm5, %v14360_v24, %v14359_v56  ;;  %v4036_v49 = vsel %vm1590_vm5, %v14359_v56, %v14360_v24  ;;  %v14361_v31 = vld [vmem:[#allocation259_spill] sm:$0xff] }
 0x6db   : > { %4018 = vrot.lane.b32.xlu1 %v14334_v41, %s6025_s17  ;;  %v3688_v47 = vmul.f32 %v14361_v31, %v3640_v38  ;;  %v3689_v50 = vmul.f32 %v14361_v31, %v3641_v21  ;;  %v4037_v38 = vsel %vm1590_vm5, %v11211_v18, %v11198_v8 }
 0x6dc   : > { %v11230_v28 = vpop.permute.xlu0 %3945  ;;  %4381 = vperm.xlu0 %5736, %v11235_v15   ;;  %v3564_v10 = vadd.f32 %v3548_v2, %v3424_v27  ;;  %v3565_v35 = vadd.f32 %v3549_v30, %v3425_v6 }
 0x6dd   : > { %14335 = vst [vmem:[#allocation339_spill] sm:$0xff] %v11230_v28 }
 0x6de   : > { %v11240_v62 = vpop.permute.xlu1 %3320 }
 0x6df   : > { %4280 = vrot.lane.b32.xlu1 %v14336_v54, %s13336_s22  ;;  %14337 = vst [vmem:[#allocation366_spill] sm:$0xff] %v11240_v62  ;;  %v11313_v54 = vrot.slane %v5568_v52, %v14311_v23  ;;  %v14385_v62 = vld [vmem:[#allocation300_spill] sm:$0xff] }
 0x6e0   : > { %v11242_v29 = vpop.permute.xlu0 %3949  ;;  %5737 = vset.pattern.permute.xlu0 %v14218_v57 }
 0x6e1   : > { %14338 = vst [vmem:[#allocation273_spill] sm:$0xff] %v11242_v29  ;;  %14356 = vst [vmem:[#allocation341_spill] sm:$0xff] %v11313_v54  ;;  %v4056_v2 = vmul.f32 %v11313_v54, %v4028_v22  ;;  %v14382_v29 = vld [vmem:[#allocation386_spill] sm:$0xff] }
 0x6e2   : > { %v11265_v20 = vpop.permute.xlu1 %3582 }
 0x6e3   : > { %4296 = vrot.lane.b32.xlu1 %v14341_v16, %s13336_s22  ;;  %v14357_v16 = vld [vmem:[#allocation358_spill] sm:$0xff] }
 0x6e4   : > { %v11267_v33 = vpop.permute.xlu0 %3953  ;;  %v11316_v0 = vrot.slane %v5568_v52, %v14357_v16 }
 0x6e5   : > { %14346 = vst [vmem:[#allocation298_spill] sm:$0xff] %v11267_v33 }
 0x6e6   : > { %v11291_v12 = vpop.permute.xlu1 %3598  ;;  %14358 = vst [vmem:[#allocation374_spill] sm:$0xff] %v11316_v0  ;;  %v4057_v30 = vmul.f32 %v11316_v0, %v4036_v49  ;;  %v4059_v49 = vmul.f32 %v11316_v0, %v4037_v38 }
 0x6e7   : > { %3324 = vrot.lane.b32.xlu1 %v14349_v60, %s6022_s10 }
 0x6e8   : > { %v11293_v9 = vpop.permute.xlu0 %3957 }
 0x6e9   : > { %14351 = vst [vmem:[#allocation277_spill] sm:$0xff] %v11293_v9  ;;  %v4029_v9 = vsel %vm1590_vm5, %v11198_v8, %v11211_v18 }
 0x6ea   : > { %v3861_v3 = vpop.permute.xlu1 %3860  ;;  %v4058_v22 = vmul.f32 %v11313_v54, %v4029_v9 }
 0x6eb   : > { %3586 = vrot.lane.b32.xlu1 %v14354_v32, %s6024_s13 }
 0x6ec   : > { %v11310_v25 = vpop.permute.xlu0 %3961 }
 0x6ed   : > { %14355 = vst [vmem:[#allocation317_spill] sm:$0xff] %v11310_v25  ;;  %v14362_v25 = vld [vmem:[#allocation227_spill] sm:$0xff] }
 0x6ee   : > { %v3828_v40 = vmul.f32 %v14362_v25, %v3780_v63  ;;  %v3829_v52 = vmul.f32 %v14362_v25, %v3781_v55  ;;  %v3877_v21 = vpop.permute.xlu1 %3876  ;;  %v3704_v63 = vadd.f32 %v3688_v47, %v3564_v10  ;;  %v3705_v55 = vadd.f32 %v3689_v50, %v3565_v35 }
 0x6ef   : > { %3602 = vrot.lane.b32.xlu1 %v14303_v4, %s6024_s13  ;;  %v3890_v27 = vsel %vm1448_vm6, %v3861_v3, %v3877_v21  ;;  %v3898_v6 = vsel %vm1448_vm6, %v3877_v21, %v3861_v3 }
 0x6f0   : > { %v3920_v56 = vmul.f32 %v11103_v44, %v3890_v27  ;;  %v3921_v24 = vmul.f32 %v11106_v42, %v3898_v6  ;;  %v3844_v18 = vadd.f32 %v3828_v40, %v3704_v63  ;;  %v3845_v26 = vadd.f32 %v3829_v52, %v3705_v55 }
 0x6f1   : > { %v4074_v25 = vpop.permute.xlu0 %4073 }
 0x6f2   : > { %v4104_v31 = vmul.f32 %v4074_v25, %v4056_v2  ;;  %v4105_v8 = vmul.f32 %v4074_v25, %v4057_v30  ;;  %v3968_v47 = vmul.f32 %v11222_v7, %v3920_v56  ;;  %v3969_v3 = vmul.f32 %v11222_v7, %v3921_v24  ;;  %v11360_v35 = vpop.permute.xlu1 %4138 }
 0x6f3   : > { %3864 = vrot.lane.b32.xlu1 %v14305_v39, %s6026_s18 }
 0x6f4   : > { %v11355_v50 = vadd.f32 %v4104_v31, %v11203_v13  ;;  %v11358_v10 = vadd.f32 %v4105_v8, %v11205_v58  ;;  %v3984_v52 = vadd.f32 %v3968_v47, %v3844_v18  ;;  %v3985_v21 = vadd.f32 %v3969_v3, %v3845_v26 }
 0x6f5   : > { %v4078_v40 = vpop.permute.xlu0 %4077 }
 0x6f6   : > { %v4106_v2 = vmul.f32 %v4078_v40, %v4058_v22  ;;  %v4107_v30 = vmul.f32 %v4078_v40, %v4059_v49  ;;  %v11370_v13 = vpop.permute.xlu1 %4154 }
 0x6f7   : > { %3880 = vrot.lane.b32.xlu1 %v14274_v37, %s6026_s18 }
 0x6f8   : > { %v11365_v9 = vadd.f32 %v4106_v2, %v11214_v61  ;;  %v11368_v7 = vadd.f32 %v4107_v30, %v11216_v11 }
 0x6f9   : > { %v4082_v58 = vpop.permute.xlu0 %4081 }
 0x6fb   : > { %4142 = vrot.lane.b32.xlu1 %v14277_v45, %s14179_s20 }
 0x6fc   : > { %v11374_v38 = vpop.permute.xlu1 %3267 }
 0x6fd   : > { %14363 = vst [vmem:[#allocation295_spill] sm:$0xff] %v11374_v38  ;;  %v11376_v26 = vpop.permute.xlu0 %4085  ;;  %v14390_v38 = vld [vmem:[#allocation359_spill] sm:$0xff] }
 0x6fe   : > { %14364 = vst [vmem:[#allocation96_spill] sm:$0xff] %v11376_v26 }
 0x6ff   : > { %4158 = vrot.lane.b32.xlu1 %v14334_v41, %s14179_s20 }
 0x701   : > { %v11380_v63 = vpop.permute.xlu1 %3393  ;;  %v11382_v61 = vpop.permute.xlu0 %4089 }
 0x702   : > { %14365 = vst [vmem:[#allocation83_spill] sm:$0xff] %v11380_v63  ;;  %14366 = vst [vmem:[#allocation19_spill] sm:$0xff] %v11382_v61  ;;  %v14381_v61 = vld [vmem:[#allocation344_spill] sm:$0xff] }
 0x703   : > { %3277 = vperm.xlu1 %5729, %v11235_v15  }
 0x705   : > { %v11385_v11 = vpop.permute.xlu1 %3460  ;;  %v11387_v55 = vpop.permute.xlu0 %4093 }
 0x706   : > { %14367 = vst [vmem:[#allocation41_spill] sm:$0xff] %v11385_v11  ;;  %14368 = vst [vmem:[#allocation22_spill] sm:$0xff] %v11387_v55  ;;  %v14384_v11 = vld [vmem:[#allocation49_spill] sm:$0xff] }
 0x707   : > { %5730 = vset.pattern.permute.xlu1 %v14218_v57 }
 0x708   : > { %3401 = vperm.xlu1 %5730, %v11235_v15  }
 0x709   : > { %v11391_v27 = vpop.permute.xlu1 %3722  ;;  %v11393_v6 = vpop.permute.xlu0 %4097 }
 0x70a   : > { %14369 = vst [vmem:[#allocation34_spill] sm:$0xff] %v11393_v6  ;;  %v5569_v6 = vld [vmem:[%s12460_s4 + $0x7] ss:$8 sm:$0x3] }
 0x70b   : > { %v11465_v33 = vrot.slane %v5569_v6, %v14311_v23  ;;  %v11477_v26 = vrot.slane %v5569_v6, %v14357_v16 }
 0x70c   : > { %3464 = vrot.lane.b32.xlu1 %v14349_v60, %s6021_s26 }
 0x70d   : > { %v11397_v25 = vpop.permute.xlu1 %3738  ;;  %v11399_v56 = vpop.permute.xlu0 %3870 }
 0x70e   : > { %14370 = vst [vmem:[#allocation8_spill] sm:$0xff] %v11399_v56 }
 0x710   : > { %3726 = vrot.lane.b32.xlu1 %v14354_v32, %s6023_s12 }
 0x711   : > { %v4001_v24 = vpop.permute.xlu1 %4000  ;;  %v11403_v31 = vpop.permute.xlu0 %4101 }
 0x712   : > { %14371 = vst [vmem:[#allocation28_spill] sm:$0xff] %v11403_v31 }
 0x714   : > { %3742 = vrot.lane.b32.xlu1 %v14303_v4, %s6023_s12 }
 0x715   : > { %v4017_v57 = vpop.permute.xlu1 %4016 }
 0x716   : > { %v4030_v15 = vsel %vm1590_vm5, %v4001_v24, %v4017_v57  ;;  %v4038_v8 = vsel %vm1590_vm5, %v4017_v57, %v4001_v24  ;;  %v4214_v18 = vpop.permute.xlu0 %4213 }
 0x717   : > { %v4060_v22 = vmul.f32 %v11313_v54, %v4030_v15  ;;  %v4061_v49 = vmul.f32 %v11316_v0, %v4038_v8  ;;  %v11439_v8 = vpop.f32.mrf.mxu0 }
 0x718   : > { %4004 = vrot.lane.b32.xlu1 %v14305_v39, %s6025_s17 }
 0x719   : > { %v4108_v47 = vmul.f32 %v4082_v58, %v4060_v22  ;;  %v4109_v3 = vmul.f32 %v4082_v58, %v4061_v49  ;;  %v11415_v40 = vpop.permute.xlu1 %4278  ;;  %v14377_v49 = vld [vmem:[#allocation378_spill] sm:$0xff] }
 0x71a   : > { %v11417_v2 = vpop.permute.xlu0 %4217 }
 0x71b   : > { %v11419_v30 = vadd.f32 %v4109_v3, %v3985_v21  ;;  %v11421_v31 = vadd.f32 %v4108_v47, %v3984_v52  ;;  %v14378_v47 = vld [vmem:[#allocation316_spill] sm:$0xff] }
 0x71c   : > { %4020 = vrot.lane.b32.xlu1 %v14274_v37, %s6025_s17  ;;  %v14379_v3 = vsub.f32 %v14377_v49, %v14378_v47  ;;  %v14386_v49 = vsub.f32 %v14385_v62, %v14378_v47 }
 0x71d   : > { %v4295_v24 = vpop.permute.xlu1 %4294 }
 0x71e   : > { %v11425_v57 = vpop.permute.xlu0 %4221  ;;  %v4791_v56 = vmul.f32 1.442695, %v14379_v3  ;;  %v4787_v3 = vmul.f32 1.442695, %v14386_v49  ;;  %v14393_v49 = vld [vmem:[#allocation333_spill] sm:$0xff] }
 0x71f   : > { %v14394_v28 = vsub.f32 %v14393_v49, %v14378_v47 }
 0x720   : > { %4282 = vrot.lane.b32.xlu1 %v14277_v45, %s13336_s22  ;;  %5792 = vpow2.f32 %v4791_v56 }
 0x721   : > { %v11429_v15 = vpop.permute.xlu1 %3322  ;;  %v4783_v0 = vmul.f32 1.442695, %v14394_v28  ;;  %v14397_v28 = vld [vmem:[#allocation302_spill] sm:$0xff] }
 0x722   : > { %14372 = vst [vmem:[#allocation7_spill] sm:$0xff] %v11429_v15  ;;  %v11431_v58 = vpop.permute.xlu0 %4225  ;;  %v14391_v15 = vld [vmem:[#allocation139_spill] sm:$0xff]  ;;  %v14398_v49 = vsub.f32 %v14397_v28, %v14378_v47  ;;  %v4308_v28 = vsel %vm1874_vm8, %v11220_v46, %v11228_v1 }
 0x723   : > { %14373 = vst [vmem:[#allocation37_spill] sm:$0xff] %v11431_v58  ;;  %v4168_v58 = vsel %vm1732_vm7, %v14391_v15, %v14390_v38 }
 0x724   : > { %4298 = vrot.lane.b32.xlu1 %v14334_v41, %s13336_s22  ;;  %v4779_v42 = vmul.f32 1.442695, %v14398_v49 }
 0x725   : > { %v11435_v21 = vpop.permute.xlu1 %3584 }
 0x726   : > { %14374 = vst [vmem:[#allocation43_spill] sm:$0xff] %v11435_v21  ;;  %v11437_v52 = vpop.permute.xlu0 %4229 }
 0x727   : > { %14375 = vst [vmem:[#allocation51_spill] sm:$0xff] %v11437_v52  ;;  %v14383_v52 = vsub.f32 %v14381_v61, %v14382_v29 }
 0x728   : > { %3326 = vrot.lane.b32.xlu1 %v11439_v8, %s6022_s10  ;;  %s5613_s10 = sshll.u32 %s6098_s9, 10 }
 0x729   : > { %v11443_v22 = vpop.permute.xlu1 %3600  ;;  %v4789_v21 = vmul.f32 1.442695, %v14383_v52  ;;  %s12409_s9 = scalar_lea.hbm %s12464_s8, %s5613_s10 }
 0x72a   : > { %14376 = vst [vmem:[#allocation60_spill] sm:$0xff] %v11443_v22  ;;  %v11451_v55 = vpop.permute.xlu0 %4233  ;;  %v5570_v22 = vld [vmem:[%s12460_s4 + $0x10] ss:$8 sm:$0x3] }
 0x72b   : > { %14380 = vst [vmem:[#allocation42_spill] sm:$0xff] %v11451_v55  ;;  %v14388_v55 = vld [vmem:[#allocation252_spill] sm:$0xff]  ;;  %v11489_v56 = vrot.slane %v5570_v22, %v14311_v23  ;;  %5794 = vpow2.f32 %v4789_v21  ;;  %v4196_v21 = vmul.f32 %v11465_v33, %v4168_v58  ;;  %v4169_v58 = vsel %vm1732_vm7, %v11360_v35, %v11370_v13 }
 0x72c   : > { %3588 = vrot.lane.b32.xlu1 %v14384_v11, %s6024_s13  ;;  %v14389_v61 = vsub.f32 %v14388_v55, %v14382_v29  ;;  %v4176_v55 = vsel %vm1732_vm7, %v14390_v38, %v14391_v15  ;;  %5796 = vpow2.f32 %v4787_v3  ;;  %v14399_v38 = vld [vmem:[#allocation281_spill] sm:$0xff] }
 0x72d   : > { %v11467_v63 = vpop.permute.xlu1 %3862  ;;  %v14400_v23 = vsub.f32 %v14399_v38, %v14382_v29  ;;  %v4316_v38 = vsel %vm1874_vm8, %v11228_v1, %v11220_v46  ;;  %v4198_v1 = vmul.f32 %v11465_v33, %v4169_v58 }
 0x72e   : > { %14387 = vst [vmem:[#allocation92_spill] sm:$0xff] %v11467_v63  ;;  %v4785_v52 = vmul.f32 1.442695, %v14389_v61  ;;  %v11479_v62 = vpop.permute.xlu0 %4237  ;;  %v14395_v61 = vld [vmem:[#allocation283_spill] sm:$0xff] }
 0x72f   : > { %14392 = vst [vmem:[#allocation82_spill] sm:$0xff] %v11479_v62  ;;  %v14396_v54 = vsub.f32 %v14395_v61, %v14382_v29  ;;  %v11497_v62 = vrot.slane %v5570_v22, %v14357_v16  ;;  %v4777_v15 = vmul.f32 1.442695, %v14400_v23  ;;  %v14404_v16 = vld [vmem:[#allocation279_spill] sm:$0xff]  ;;  %v4177_v23 = vsel %vm1732_vm7, %v11370_v13, %v11360_v35  ;;  %v14411_v13 = vld [vmem:[#allocation246_spill] sm:$0xff] }
 0x730   : > { %3604 = vrot.lane.b32.xlu1 %v14349_v60, %s6024_s13  ;;  %5798 = vpow2.f32 %v4785_v52  ;;  %v14405_v22 = vsub.f32 %v14404_v16, %v14382_v29  ;;  %v4197_v52 = vmul.f32 %v11477_v26, %v4176_v55  ;;  %v14407_v55 = vld [vmem:[#allocation213_spill] sm:$0xff]  ;;  %v4336_v35 = vmul.f32 %v11489_v56, %v4308_v28 }
 0x731   : > { %v4781_v6 = vmul.f32 1.442695, %v14396_v54  ;;  %v11506_v44 = vpop.permute.xlu1 %3878  ;;  %v14402_v54 = vld [vmem:[#allocation289_spill] sm:$0xff]  ;;  %5800 = vpow2.f32 %v4783_v0  ;;  %v14408_v0 = vsub.f32 %v14407_v55, %v14378_v47  ;;  %v4337_v58 = vmul.f32 %v11497_v62, %v4316_v38 }
 0x732   : > { %14401 = vst [vmem:[#allocation58_spill] sm:$0xff] %v11506_v44  ;;  %v14403_v61 = vsub.f32 %v14402_v54, %v14378_v47  ;;  %v4773_v3 = vmul.f32 1.442695, %v14405_v22  ;;  %v11523_v49 = vpop.permute.xlu0 %4241  ;;  %v4244_v54 = vmul.f32 %v4214_v18, %v4196_v21  ;;  %v14409_v22 = vld [vmem:[#allocation357_spill] sm:$0xff]  ;;  %v4309_v21 = vsel %vm1874_vm8, %v11415_v40, %v4295_v24 }
 0x733   : > { %14406 = vst [vmem:[#allocation50_spill] sm:$0xff] %v11523_v49  ;;  %5802 = vpow2.f32 %v4781_v6  ;;  %v4771_v16 = vmul.f32 1.442695, %v14408_v0  ;;  %v14410_v49 = vsub.f32 %v14409_v22, %v14382_v29  ;;  %v14413_v55 = vld [vmem:[#allocation285_spill] sm:$0xff] }
 0x734   : > { %v4775_v63 = vmul.f32 1.442695, %v14403_v61  ;;  %v4245_v61 = vmul.f32 %v4214_v18, %v4197_v52  ;;  %3866 = vrot.lane.b32.xlu1 %v14354_v32, %s6026_s18  ;;  %5804 = vpow2.f32 %v4779_v42  ;;  %v14412_v18 = vsub.f32 %v14411_v13, %v14378_v47 }
 0x735   : > { %v4769_v46 = vmul.f32 1.442695, %v14410_v49  ;;  %v4141_v44 = vpop.permute.xlu1 %4140  ;;  %5806 = vpow2.f32 %v4777_v15  ;;  %v4199_v42 = vmul.f32 %v11477_v26, %v4177_v23  ;;  %v4317_v52 = vsel %vm1874_vm8, %v4295_v24, %v11415_v40 }
 0x736   : > { %v4767_v6 = vmul.f32 1.442695, %v14412_v18  ;;  %v4260_v49 = vadd.f32 %v4244_v54, %v11355_v50  ;;  %v4246_v15 = vmul.f32 %v11417_v2, %v4198_v1  ;;  %5808 = vpow2.f32 %v4775_v63  ;;  %v14415_v63 = vld [vmem:[#allocation234_spill] sm:$0xff] }
 0x737   : > { %v4354_v28 = vpop.permute.xlu0 %4353  ;;  %v14414_v0 = vsub.f32 %v14413_v55, %v14382_v29  ;;  %v4247_v22 = vmul.f32 %v11417_v2, %v4199_v42  ;;  %v4261_v40 = vadd.f32 %v4245_v61, %v11358_v10  ;;  %v4338_v50 = vmul.f32 %v11489_v56, %v4309_v21 }
 0x738   : > { %v4384_v13 = vmul.f32 %v4354_v28, %v4336_v35  ;;  %v4385_v18 = vmul.f32 %v4354_v28, %v4337_v58  ;;  %3882 = vrot.lane.b32.xlu1 %v14303_v4, %s6026_s18  ;;  %v4339_v38 = vmul.f32 %v11497_v62, %v4317_v52  ;;  %5810 = vpow2.f32 %v4773_v3  ;;  %v11572_v58 = vpop.eup %5792 }
 0x739   : > { %v4765_v23 = vmul.f32 1.442695, %v14414_v0  ;;  %v4157_v24 = vpop.permute.xlu1 %4156  ;;  %v14416_v54 = vsub.f32 %v14415_v63, %v14378_v47  ;;  %14417 = vst [vmem:[#allocation12_spill] sm:$0xff] %v11572_v58  ;;  %v4262_v10 = vadd.f32 %v4246_v15, %v11365_v9  ;;  %5812 = vpow2.f32 %v4771_v16  ;;  %v11577_v47 = vpop.eup %5794 }
 0x73a   : > { %v4400_v1 = vadd.f32 %v4384_v13, %v4260_v49  ;;  %v4170_v2 = vsel %vm1732_vm7, %v4141_v44, %v4157_v24  ;;  %v4178_v35 = vsel %vm1732_vm7, %v4157_v24, %v4141_v44  ;;  %v4401_v42 = vadd.f32 %v4385_v18, %v4261_v40  ;;  %14418 = vst [vmem:[#allocation56_spill] sm:$0xff] %v11577_v47  ;;  %v11582_v44 = vpop.eup %5796 }
 0x73b   : > { %v4763_v29 = vmul.f32 1.442695, %v14416_v54  ;;  %v4200_v61 = vmul.f32 %v11465_v33, %v4170_v2  ;;  %v4201_v3 = vmul.f32 %v11477_v26, %v4178_v35  ;;  %v4358_v21 = vpop.permute.xlu0 %4357  ;;  %v4263_v52 = vadd.f32 %v4247_v22, %v11368_v7  ;;  %14419 = vst [vmem:[#allocation9_spill] sm:$0xff] %v11582_v44 }
 0x73c   : > { %v4386_v49 = vmul.f32 %v4358_v21, %v4338_v50  ;;  %v4387_v28 = vmul.f32 %v4358_v21, %v4339_v38  ;;  %4656 = vmatprep.mubr.f32.mxu1 %v4401_v42  ;;  %4144 = vrot.lane.b32.xlu1 %v14305_v39, %s14179_s20  ;;  %5814 = vpow2.f32 %v4769_v46 }
 0x73d   : > { %v4248_v9 = vmul.f32 %v11425_v57, %v4200_v61  ;;  %v4249_v15 = vmul.f32 %v11425_v57, %v4201_v3  ;;  %v11586_v55 = vpop.permute.xlu1 %3272  ;;  %4657 = vmatmul.mubr.f32.vlgmr.msra.gmra.mxu1 %v4400_v1  ;;  %5816 = vpow2.f32 %v4767_v6  ;;  %v11588_v16 = vpop.eup %5798 }
 0x73e   : > { %14420 = vst [vmem:[#allocation63_spill] sm:$0xff] %v11588_v16  ;;  %v4402_v7 = vadd.f32 %v4386_v49, %v4262_v10  ;;  %v4403_v0 = vadd.f32 %v4387_v28, %v4263_v52  ;;  %4837 = vmatpush1.msra.mxu1 %v11572_v58  ;;  %5818 = vpow2.f32 %v4765_v23  ;;  %v11591_v22 = vpop.eup %5800 }
 0x73f   : > { %14421 = vst [vmem:[#allocation45_spill] sm:$0xff] %v11591_v22  ;;  %4838 = vmatprep.subr.mxu1 %v11577_v47  ;;  %5820 = vpow2.f32 %v4763_v29  ;;  %v4265_v46 = vadd.f32 %v4249_v15, %v11419_v30  ;;  %v4264_v57 = vadd.f32 %v4248_v9, %v11421_v31  ;;  %v4362_v49 = vpop.permute.xlu0 %4361 }
 0x740   : > { %v11596_v13 = vpop.eup %5802  ;;  %4839 = vmatpush1.msra.mxu1 %v11582_v44  ;;  %4661 = vmatprep.mubr.f32.mxu1 %v4403_v0 }
 0x741   : > { %14422 = vst [vmem:[#allocation72_spill] sm:$0xff] %v11596_v13  ;;  %v11599_v6 = vpop.eup %5804  ;;  %4840 = vmatprep.subr.mxu1 %v11588_v16  ;;  %4160 = vrot.lane.b32.xlu1 %v14274_v37, %s14179_s20  ;;  %v14441_v16 = vld [vmem:[#allocation92_spill] sm:$0xff] }
 0x742   : > { %14423 = vst [vmem:[#allocation94_spill] sm:$0xff] %v11599_v6  ;;  %v11604_v23 = vpop.eup %5806  ;;  %4662 = vmatmul.mubr.f32.gmra.mxu1 %v4402_v7  ;;  %v11606_v18 = vpop.permute.xlu1 %3397 }
 0x743   : > { %14424 = vst [vmem:[#allocation98_spill] sm:$0xff] %v11604_v23  ;;  %4841 = vmatpush1.msra.mxu1 %v11591_v22  ;;  %v11609_v31 = vpop.eup %5808 }
 0x744   : > { %14425 = vst [vmem:[#allocation85_spill] sm:$0xff] %v11609_v31  ;;  %4842 = vmatprep.subr.mxu1 %v11596_v13 }
 0x745   : > { %4843 = vmatpush1.msra.mxu1 %v11599_v6  ;;  %3450 = vrot.lane.b32.xlu1 %v14244_v14, %s6021_s26  ;;  %v11615_v30 = vpop.eup %5810 }
 0x746   : > { %14426 = vst [vmem:[#allocation52_spill] sm:$0xff] %v11615_v30  ;;  %4844 = vmatprep.subr.mxu1 %v11604_v23  ;;  %v11618_v40 = vpop.permute.xlu1 %3462  ;;  %v11621_v24 = vpop.eup %5812 }
 0x747   : > { %4845 = vmatpush1.msra.mxu1 %v11609_v31  ;;  %14427 = vst [vmem:[#allocation59_spill] sm:$0xff] %v11621_v24  ;;  %v14437_v31 = vld [vmem:[#allocation292_spill] sm:$0xff] }
 0x748   : > { %4846 = vmatprep.subr.mxu1 %v11615_v30 }
 0x749   : > { %v11624_v50 = vpop.eup %5814  ;;  %4847 = vmatpush1.msra.mxu1 %v11621_v24  ;;  %3466 = vrot.lane.b32.xlu1 %v11439_v8, %s6021_s26 }
 0x74a   : > { %14428 = vst [vmem:[#allocation88_spill] sm:$0xff] %v11624_v50  ;;  %v11629_v38 = vpop.eup %5816  ;;  %4848 = vmatprep.subr.mxu1 %v11624_v50  ;;  %v11632_v63 = vpop.permute.xlu1 %3724 }
 0x74b   : > { %14429 = vst [vmem:[#allocation10_spill] sm:$0xff] %v11629_v38  ;;  %v11634_v54 = vpop.eup %5818  ;;  %4849 = vmatpush1.msra.mxu1 %v11629_v38  ;;  %v14436_v38 = vld [vmem:[#allocation384_spill] sm:$0xff] }
 0x74c   : > { %14430 = vst [vmem:[#allocation93_spill] sm:$0xff] %v11634_v54  ;;  %v11637_v29 = vpop.eup %5820  ;;  %4850 = vmatprep.subr.mxu1 %v11634_v54  ;;  %v3471_v50 = vsel %vm1022_vm1, %v14436_v38, %v11113_v5  ;;  %v3479_v24 = vsel %vm1022_vm1, %v11113_v5, %v14436_v38 }
 0x74d   : > { %14431 = vst [vmem:[#allocation101_spill] sm:$0xff] %v11637_v29  ;;  %4851 = vmatpush1.msra.mxu1 %v11637_v29  ;;  %3728 = vrot.lane.b32.xlu1 %v14384_v11, %s6023_s12 }
 0x74e   : > { %v11643_v1 = vpop.permute.xlu1 %3740 }
 0x751   : > { %3744 = vrot.lane.b32.xlu1 %v14349_v60, %s6023_s12 }
 0x752   : > { %v11647_v2 = vpop.permute.xlu1 %4002 }
 0x755   : > { %4006 = vrot.lane.b32.xlu1 %v14354_v32, %s6025_s17 }
 0x756   : > { %v11651_v35 = vpop.permute.xlu1 %4018 }
 0x759   : > { %4022 = vrot.lane.b32.xlu1 %v14303_v4, %s6025_s17 }
 0x75a   : > { %v4281_v42 = vpop.permute.xlu1 %4280 }
 0x75d   : > { %4284 = vrot.lane.b32.xlu1 %v14305_v39, %s13336_s22 }
 0x75e   : > { %v4297_v10 = vpop.permute.xlu1 %4296 }
 0x75f   : > { %v4310_v61 = vsel %vm1874_vm8, %v4281_v42, %v4297_v10  ;;  %v4318_v3 = vsel %vm1874_vm8, %v4297_v10, %v4281_v42 }
 0x760   : > { %v4340_v21 = vmul.f32 %v11489_v56, %v4310_v61  ;;  %v4341_v52 = vmul.f32 %v11497_v62, %v4318_v3 }
 0x761   : > { %4300 = vrot.lane.b32.xlu1 %v14274_v37, %s13336_s22 }
 0x762   : > { %v11665_v28 = vpop.permute.xlu1 %3324  ;;  %v4389_v9 = vmul.f32 %v4362_v49, %v4341_v52  ;;  %v4388_v15 = vmul.f32 %v4362_v49, %v4340_v21  ;;  %v14434_v49 = vld [vmem:[#allocation342_spill] sm:$0xff] }
 0x764   : > { %v4405_v7 = vadd.f32 %v4389_v9, %v4265_v46  ;;  %v4404_v0 = vadd.f32 %v4388_v15, %v4264_v57  ;;  %v14435_v9 = vld [vmem:[#allocation268_spill] sm:$0xff] }
 0x765   : > { %3606 = vrot.lane.b32.xlu1 %v11439_v8, %s6024_s13  ;;  %v3331_v15 = vsel %vm881_vm2, %v14435_v9, %v14434_v49 }
 0x766   : > { %v11669_v29 = vpop.permute.xlu1 %3586  ;;  %4666 = vmatprep.mubr.f32.mxu1 %v4405_v7  ;;  %v3339_v7 = vsel %vm881_vm2, %v14434_v49, %v14435_v9  ;;  %v3363_v54 = vmul.f32 %v14343_v59, %v3331_v15  ;;  %v3502_v49 = vmul.f32 %v11019_v17, %v3479_v24  ;;  %v3503_v9 = vmul.f32 %v11022_v34, %v3471_v50 }
 0x767   : > { %4667 = vmatmul.mubr.f32.gmra.mxu1 %v4404_v0  ;;  %v3362_v0 = vmul.f32 %v14342_v53, %v3339_v7  ;;  %v3611_v15 = vsel %vm1164_vm4, %v11265_v20, %v11291_v12  ;;  %v3619_v7 = vsel %vm1164_vm4, %v11291_v12, %v11265_v20  ;;  %v3751_v24 = vsel %vm1306_vm3, %v11391_v27, %v11397_v25 }
 0x768   : > { %v3411_v38 = vmul.f32 %v14437_v31, %v3363_v54  ;;  %v3759_v50 = vsel %vm1306_vm3, %v11397_v25, %v11391_v27  ;;  %v3642_v12 = vmul.f32 %v11055_v43, %v3619_v7  ;;  %v14438_v54 = vld [vmem:[#allocation390_spill] sm:$0xff] }
 0x769   : > { %3868 = vrot.lane.b32.xlu1 %v14384_v11, %s6026_s18  ;;  %v3410_v5 = vmul.f32 %v14437_v31, %v3362_v0  ;;  %v3643_v31 = vmul.f32 %v11058_v36, %v3611_v15  ;;  %v3286_v0 = vmul.f32 %v14438_v54, %v14277_v45  ;;  %v3287_v27 = vmul.f32 %v14438_v54, %v14334_v41  ;;  %v14439_v25 = vld [vmem:[#allocation262_spill] sm:$0xff] }
 0x76a   : > { %v11673_v42 = vpop.permute.xlu1 %3602  ;;  %v3550_v13 = vmul.f32 %v14439_v25, %v3502_v49  ;;  %v3551_v22 = vmul.f32 %v14439_v25, %v3503_v9  ;;  %v14440_v7 = vld [vmem:[#allocation58_spill] sm:$0xff]  ;;  %v14442_v49 = vld [vmem:[#allocation229_spill] sm:$0xff] }
 0x76b   : > { %v3891_v15 = vsel %vm1448_vm6, %v14441_v16, %v14440_v7  ;;  %v3899_v45 = vsel %vm1448_vm6, %v14440_v7, %v14441_v16  ;;  %v3426_v41 = vadd.f32 %v3410_v5, %v3286_v0  ;;  %v3427_v54 = vadd.f32 %v3411_v38, %v3287_v27  ;;  %v14443_v38 = vld [vmem:[#allocation294_spill] sm:$0xff] }
 0x76c   : > { %v3690_v47 = vmul.f32 %v14442_v49, %v3642_v12  ;;  %v3691_v9 = vmul.f32 %v14442_v49, %v3643_v31  ;;  %v3922_v0 = vmul.f32 %v14443_v38, %v3891_v15  ;;  %v14444_v12 = vld [vmem:[#allocation315_spill] sm:$0xff]  ;;  %v14445_v31 = vld [vmem:[#allocation286_spill] sm:$0xff] }
 0x76d   : > { %3884 = vrot.lane.b32.xlu1 %v14349_v60, %s6026_s18  ;;  %v3566_v16 = vadd.f32 %v3550_v13, %v3426_v41  ;;  %v3567_v5 = vadd.f32 %v3551_v22, %v3427_v54  ;;  %v3923_v27 = vmul.f32 %v14444_v12, %v3899_v45  ;;  %v14448_v45 = vld [vmem:[#allocation339_spill] sm:$0xff] }
 0x76e   : > { %v11677_v10 = vpop.permute.xlu1 %3864 }
 0x76f   : > { %14432 = vst [vmem:[#allocation48_spill] sm:$0xff] %v11677_v10  ;;  %v3707_v15 = vadd.f32 %v3691_v9, %v3567_v5 }
 0x771   : > { %4146 = vrot.lane.b32.xlu1 %v14354_v32, %s14179_s20 }
 0x772   : > { %v11681_v46 = vpop.permute.xlu1 %3880 }
 0x773   : > { %14433 = vst [vmem:[#allocation112_spill] sm:$0xff] %v11681_v46  ;;  %v14447_v46 = vld [vmem:[#allocation374_spill] sm:$0xff] }
 0x775   : > { %4162 = vrot.lane.b32.xlu1 %v14303_v4, %s14179_s20 }
 0x776   : > { %v4143_v57 = vpop.permute.xlu1 %4142 }
 0x779   : > { %3730 = vrot.lane.b32.xlu1 %v14244_v14, %s6023_s12 }
 0x77a   : > { %v4159_v61 = vpop.permute.xlu1 %4158 }
 0x77b   : > { %v4171_v49 = vsel %vm1732_vm7, %v4143_v57, %v4159_v61  ;;  %v4179_v58 = vsel %vm1732_vm7, %v4159_v61, %v4143_v57  ;;  %v3970_v57 = vmul.f32 %v14448_v45, %v3922_v0  ;;  %v3971_v61 = vmul.f32 %v14448_v45, %v3923_v27  ;;  %v14451_v27 = vld [vmem:[#allocation7_spill] sm:$0xff] }
 0x77c   : > { %v4202_v41 = vmul.f32 %v11465_v33, %v4171_v49  ;;  %v4203_v54 = vmul.f32 %v11477_v26, %v4179_v58  ;;  %v14452_v49 = vld [vmem:[#allocation221_spill] sm:$0xff] }
 0x77d   : > { %3746 = vrot.lane.b32.xlu1 %v11439_v8, %s6023_s12  ;;  %v3333_v58 = vsel %vm881_vm2, %v14452_v49, %v14451_v27  ;;  %s5457_s12 = sshll.u32 %s298_s24, 4  ;;  %s12411_s12 = int_to_ptr.vmem [resolvable:$true] %s5457_s12 }
 0x77e   : > { %v11689_v3 = vpop.permute.xlu1 %3277 }
 0x781   : > { %4008 = vrot.lane.b32.xlu1 %v14384_v11, %s6025_s17 }
 0x783   : > { %v11693_v21 = vpop.permute.xlu1 %3401 }
 0x785   : > { %4024 = vrot.lane.b32.xlu1 %v14349_v60, %s6025_s17 }
 0x787   : > { %v11697_v52 = vpop.permute.xlu1 %3464 }
 0x789   : > { %4286 = vrot.lane.b32.xlu1 %v14354_v32, %s13336_s22 }
 0x78b   : > { %v3727_v30 = vpop.permute.xlu1 %3726 }
 0x78d   : > { %4302 = vrot.lane.b32.xlu1 %v14303_v4, %s13336_s22 }
 0x78f   : > { %v3743_v23 = vpop.permute.xlu1 %3742 }
 0x790   : > { %v11743_v6 = vsel %vm1306_vm3, %v3727_v30, %v3743_v23  ;;  %v11747_v20 = vsel %vm1306_vm3, %v3743_v23, %v3727_v30  ;;  %v3782_v23 = vmul.f32 %v11075_v51, %v3759_v50  ;;  %v3783_v30 = vmul.f32 %v11078_v48, %v3751_v24 }
 0x791   : > { %3886 = vrot.lane.b32.xlu1 %v11439_v8, %s6026_s18  ;;  %v4031_v24 = vsel %vm1590_vm5, %v11647_v2, %v11651_v35  ;;  %v4039_v50 = vsel %vm1590_vm5, %v11651_v35, %v11647_v2  ;;  %v14446_v35 = vld [vmem:[#allocation341_spill] sm:$0xff]  ;;  %s12415_s18 = scalar_lea.sflag [#allocation5], %s296_s21 }
 0x792   : > { %v3830_v25 = vmul.f32 %v14445_v31, %v3782_v23  ;;  %v3831_v7 = vmul.f32 %v14445_v31, %v3783_v30  ;;  %v4062_v10 = vmul.f32 %v14446_v35, %v4031_v24  ;;  %v4063_v13 = vmul.f32 %v14447_v46, %v4039_v50  ;;  %v14449_v46 = vld [vmem:[#allocation96_spill] sm:$0xff] }
 0x793   : > { %v4005_v44 = vpop.permute.xlu1 %4004  ;;  %v3706_v30 = vadd.f32 %v3690_v47, %v3566_v16  ;;  %v14450_v16 = vld [vmem:[#allocation37_spill] sm:$0xff] }
 0x794   : > { %v3847_v31 = vadd.f32 %v3831_v7, %v3707_v15  ;;  %v4110_v35 = vmul.f32 %v14449_v46, %v4062_v10  ;;  %v4250_v5 = vmul.f32 %v14450_v16, %v4202_v41  ;;  %v4251_v0 = vmul.f32 %v14450_v16, %v4203_v54  ;;  %v4366_v54 = vpop.permute.xlu0 %4365 }
 0x795   : > { %4148 = vrot.lane.b32.xlu1 %v14384_v11, %s14179_s20  ;;  %v3846_v50 = vadd.f32 %v3830_v25, %v3706_v30  ;;  %v3341_v10 = vsel %vm881_vm2, %v14451_v27, %v14452_v49  ;;  %v14453_v30 = vld [vmem:[#allocation240_spill] sm:$0xff] }
 0x796   : > { %v3987_v9 = vadd.f32 %v3971_v61, %v3847_v31  ;;  %v3334_v15 = vsel %vm881_vm2, %v14453_v30, %v11665_v28  ;;  %v3342_v45 = vsel %vm881_vm2, %v11665_v28, %v14453_v30  ;;  %v3366_v41 = vmul.f32 %v14342_v53, %v3341_v10  ;;  %v14454_v31 = vld [vmem:[#allocation346_spill] sm:$0xff] }
 0x797   : > { %v4021_v2 = vpop.permute.xlu1 %4020  ;;  %v3986_v47 = vadd.f32 %v3970_v57, %v3846_v50  ;;  %v3482_v28 = vsel %vm1022_vm1, %v11697_v52, %v14454_v31  ;;  %v3368_v27 = vmul.f32 %v14342_v53, %v3342_v45  ;;  %v3369_v49 = vmul.f32 %v14343_v59, %v3334_v15 }
 0x798   : > { %v11793_v22 = vsel %vm1590_vm5, %v4005_v44, %v4021_v2  ;;  %v11797_v23 = vsel %vm1590_vm5, %v4021_v2, %v4005_v44  ;;  %v4111_v44 = vmul.f32 %v14449_v46, %v4063_v13  ;;  %v3508_v30 = vmul.f32 %v11019_v17, %v3482_v28 }
 0x799   : > { %4164 = vrot.lane.b32.xlu1 %v14349_v60, %s14179_s20  ;;  %v4126_v13 = vadd.f32 %v4110_v35, %v3986_v47  ;;  %v3367_v35 = vmul.f32 %v14343_v59, %v3333_v58  ;;  %v14455_v58 = vld [vmem:[#allocation314_spill] sm:$0xff]  ;;  %v3294_v45 = vmul.f32 %v11689_v3, %v14244_v14 }
 0x79a   : > { %v4127_v2 = vadd.f32 %v4111_v44, %v3987_v9  ;;  %v3474_v44 = vsel %vm1022_vm1, %v14454_v31, %v11697_v52  ;;  %v3416_v31 = vmul.f32 %v11606_v18, %v3368_v27  ;;  %v14458_v27 = vld [vmem:[#allocation295_spill] sm:$0xff] }
 0x79b   : > { %v4283_v24 = vpop.permute.xlu1 %4282  ;;  %v4266_v50 = vadd.f32 %v4250_v5, %v4126_v13  ;;  %v3509_v15 = vmul.f32 %v11022_v34, %v3474_v44  ;;  %v3417_v44 = vmul.f32 %v11606_v18, %v3369_v49  ;;  %v14457_v18 = vld [vmem:[#allocation389_spill] sm:$0xff]  ;;  %v3290_v49 = vmul.f32 %v14458_v27, %v14354_v32 }
 0x79d   : > { %4010 = vrot.lane.b32.xlu1 %v14244_v14, %s6025_s17 }
 0x79f   : > { %v4299_v46 = vpop.permute.xlu1 %4298 }
 0x7a0   : > { %v4311_v25 = vsel %vm1874_vm8, %v4283_v24, %v4299_v46  ;;  %v4319_v7 = vsel %vm1874_vm8, %v4299_v46, %v4283_v24  ;;  %v4267_v24 = vadd.f32 %v4251_v0, %v4127_v2 }
 0x7a1   : > { %v4342_v57 = vmul.f32 %v11489_v56, %v4311_v25  ;;  %v4343_v61 = vmul.f32 %v11497_v62, %v4319_v7  ;;  %4026 = vrot.lane.b32.xlu1 %v11439_v8, %s6025_s17  ;;  %v14456_v7 = vld [vmem:[#allocation330_spill] sm:$0xff] }
 0x7a2   : > { %v3473_v2 = vsel %vm1022_vm1, %v14456_v7, %v11618_v40  ;;  %v3481_v13 = vsel %vm1022_vm1, %v11618_v40, %v14456_v7  ;;  %v3293_v40 = vmul.f32 %v11586_v55, %v14349_v60 }
 0x7a3   : > { %v4390_v47 = vmul.f32 %v4366_v54, %v4342_v57  ;;  %v4391_v9 = vmul.f32 %v4366_v54, %v4343_v61  ;;  %v3327_v16 = vpop.permute.xlu1 %3326  ;;  %v3295_v57 = vmul.f32 %v11689_v3, %v11439_v8  ;;  %v3506_v28 = vmul.f32 %v11019_v17, %v3481_v13 }
 0x7a4   : > { %v3335_v5 = vsel %vm881_vm2, %v14455_v58, %v3327_v16  ;;  %v3343_v0 = vsel %vm881_vm2, %v3327_v16, %v14455_v58  ;;  %v3507_v3 = vmul.f32 %v11022_v34, %v3473_v2  ;;  %v3557_v16 = vmul.f32 %v14457_v18, %v3509_v15  ;;  %v14459_v58 = vld [vmem:[#allocation83_spill] sm:$0xff] }
 0x7a5   : > { %v3370_v10 = vmul.f32 %v14342_v53, %v3343_v0  ;;  %v3371_v46 = vmul.f32 %v14343_v59, %v3335_v5  ;;  %4288 = vrot.lane.b32.xlu1 %v14384_v11, %s13336_s22  ;;  %v4407_v52 = vadd.f32 %v4391_v9, %v4267_v24  ;;  %v4406_v25 = vadd.f32 %v4390_v47, %v4266_v50 }
 0x7a6   : > { %v3292_v50 = vmul.f32 %v11586_v55, %v14384_v11  ;;  %v3613_v11 = vsel %vm1164_vm4, %v11669_v29, %v11673_v42  ;;  %v3621_v55 = vsel %vm1164_vm4, %v11673_v42, %v11669_v29  ;;  %v3556_v9 = vmul.f32 %v14457_v18, %v3508_v30 }
 0x7a7   : > { %v3418_v61 = vmul.f32 %v11693_v21, %v3370_v10  ;;  %v3419_v54 = vmul.f32 %v11693_v21, %v3371_v46  ;;  %4671 = vmatprep.mubr.f32.mxu1 %v4407_v52  ;;  %v3589_v24 = vpop.permute.xlu1 %3588  ;;  %v3414_v5 = vmul.f32 %v14459_v58, %v3366_v41  ;;  %v3415_v0 = vmul.f32 %v14459_v58, %v3367_v35  ;;  %v14460_v41 = vld [vmem:[#allocation145_spill] sm:$0xff] }
 0x7a8   : > { %4672 = vmatmul.mubr.f32.gmra.mxu1 %v4406_v25  ;;  %v3432_v46 = vadd.f32 %v3416_v31, %v3292_v50  ;;  %v3433_v52 = vadd.f32 %v3417_v44, %v3293_v40  ;;  %v3646_v25 = vmul.f32 %v11055_v43, %v3621_v55  ;;  %v3647_v32 = vmul.f32 %v11058_v36, %v3613_v11  ;;  %v14462_v31 = vld [vmem:[#allocation215_spill] sm:$0xff]  ;;  %v14463_v55 = vld [vmem:[#allocation228_spill] sm:$0xff] }
 0x7a9   : > { %v11881_v47 = vadd.f32 %v3418_v61, %v3294_v45  ;;  %v11883_v21 = vadd.f32 %v3419_v54, %v3295_v57  ;;  %4304 = vrot.lane.b32.xlu1 %v14349_v60, %s13336_s22  ;;  %v3291_v60 = vmul.f32 %v14458_v27, %v14303_v4  ;;  %v3554_v35 = vmul.f32 %v14460_v41, %v3506_v28  ;;  %v14461_v57 = vld [vmem:[#allocation267_spill] sm:$0xff] }
 0x7aa   : > { %v3555_v2 = vmul.f32 %v14460_v41, %v3507_v3  ;;  %v3572_v13 = vadd.f32 %v3556_v9, %v3432_v46  ;;  %v3573_v30 = vadd.f32 %v3557_v16, %v3433_v52  ;;  %v3786_v15 = vmul.f32 %v11075_v51, %v11747_v20  ;;  %v14464_v52 = vld [vmem:[#allocation298_spill] sm:$0xff] }
 0x7ab   : > { %v3605_v10 = vpop.permute.xlu1 %3604  ;;  %v3787_v45 = vmul.f32 %v11078_v48, %v11743_v6  ;;  %v3430_v50 = vadd.f32 %v3414_v5, %v3290_v49  ;;  %v3431_v40 = vadd.f32 %v3415_v0, %v3291_v60  ;;  %v3694_v44 = vmul.f32 %v14462_v31, %v3646_v25 }
 0x7ac   : > { %v3614_v29 = vsel %vm1164_vm4, %v3589_v24, %v3605_v10  ;;  %v3622_v42 = vsel %vm1164_vm4, %v3605_v10, %v3589_v24  ;;  %v3695_v28 = vmul.f32 %v14462_v31, %v3647_v32  ;;  %v3834_v18 = vmul.f32 %v14463_v55, %v3786_v15  ;;  %v14466_v15 = vld [vmem:[#allocation385_spill] sm:$0xff] }
 0x7ad   : > { %v3648_v7 = vmul.f32 %v11055_v43, %v3622_v42  ;;  %v3649_v4 = vmul.f32 %v11058_v36, %v3614_v29  ;;  %4166 = vrot.lane.b32.xlu1 %v11439_v8, %s14179_s20  ;;  %v3570_v20 = vadd.f32 %v3554_v35, %v3430_v50  ;;  %v3571_v6 = vadd.f32 %v3555_v2, %v3431_v40  ;;  %s6030_s20 = smov [#allocation4]  }
 0x7ae   : > { %v3835_v9 = vmul.f32 %v14463_v55, %v3787_v45  ;;  %s5954_s19 = sshll.u32 %s6030_s20, 4  ;;  %s5955_s19 = int_to_ptr.vmem [resolvable:$false] %s5954_s19 }
 0x7af   : > { %v3696_v61 = vmul.f32 %v14461_v57, %v3648_v7  ;;  %v3697_v54 = vmul.f32 %v14461_v57, %v3649_v4  ;;  %v3867_v24 = vpop.permute.xlu1 %3866  ;;  %v3710_v60 = vadd.f32 %v3694_v44, %v3570_v20  ;;  %v3711_v58 = vadd.f32 %v3695_v28, %v3571_v6  ;;  %v14468_v20 = vld [vmem:[#allocation41_spill] sm:$0xff]  ;;  %v14469_v6 = vld [vmem:[#allocation142_spill] sm:$0xff]  ;;  %s5956_s25 = scalar_lea.vmem %s5955_s19, 2048  ;;  %p5957_p0 = scmp.lt.s32.totalorder %s12411_s12, %s5955_s19 }
 0x7b0   : > { %v3472_v55 = vsel %vm1022_vm1, %v14469_v6, %v14468_v20 }
 0x7b1   : > { %v11923_v3 = vadd.f32 %v3696_v61, %v3572_v13  ;;  %v11925_v11 = vadd.f32 %v3697_v54, %v3573_v30  ;;  %4290 = vrot.lane.b32.xlu1 %v14244_v14, %s13336_s22  ;;  %v5404_v14 = vld [vmem:[%s12462_s6 + $0x8] sm:$0xff]  ;;  %v3850_v10 = vadd.f32 %v3834_v18, %v3710_v60  ;;  %v3851_v46 = vadd.f32 %v3835_v9, %v3711_v58  ;;  %v14465_v30 = vld [vmem:[#allocation366_spill] sm:$0xff] }
 0x7b2   : > { %v3332_v45 = vsel %vm881_vm2, %v14466_v15, %v14465_v30  ;;  %v3340_v57 = vsel %vm881_vm2, %v14465_v30, %v14466_v15  ;;  %v3480_v18 = vsel %vm1022_vm1, %v14468_v20, %v14469_v6 }
 0x7b3   : > { %v3883_v16 = vpop.permute.xlu1 %3882  ;;  %v3364_v44 = vmul.f32 %v14342_v53, %v3340_v57  ;;  %v3365_v28 = vmul.f32 %v14343_v59, %v3332_v45  ;;  %v14471_v53 = vld [vmem:[#allocation43_spill] sm:$0xff]  ;;  %v3504_v58 = vmul.f32 %v11019_v17, %v3480_v18  ;;  %v14475_v45 = vld [vmem:[#allocation269_spill] sm:$0xff] }
 0x7b4   : > { %v3893_v27 = vsel %vm1448_vm6, %v3867_v24, %v3883_v16  ;;  %v3901_v49 = vsel %vm1448_vm6, %v3883_v16, %v3867_v24  ;;  %v14467_v24 = vld [vmem:[#allocation360_spill] sm:$0xff] }
 0x7b5   : > { %v3926_v5 = vmul.f32 %v14443_v38, %v3893_v27  ;;  %v3927_v0 = vmul.f32 %v14444_v12, %v3901_v49  ;;  %4306 = vrot.lane.b32.xlu1 %v11439_v8, %s13336_s22  ;;  %v5405_v8 = vld [vmem:[%s12462_s6 + $0x10] sm:$0xff]  ;;  %v14470_v27 = vld [vmem:[#allocation60_spill] sm:$0xff]  ;;  %v3552_v57 = vmul.f32 %v14475_v45, %v3504_v58  ;;  %s5950_s22 = scalar_lea.vmem %s12411_s12, 1024 }
 0x7b6   : > { %v3612_v59 = vsel %vm1164_vm4, %v14471_v53, %v14470_v27  ;;  %v3620_v49 = vsel %vm1164_vm4, %v14470_v27, %v14471_v53  ;;  %p5951_p11 = scmp.ne.s32.totalorder %s12411_s12, %s5950_s22  ;;  %p5958_p1 = scmp.lt.s32.totalorder %s5956_s25, %s5950_s22 }
 0x7b7   : > { %v3974_v29 = vmul.f32 %v14464_v52, %v3926_v5  ;;  %v3975_v42 = vmul.f32 %v14464_v52, %v3927_v0  ;;  %v11944_v25 = vpop.permute.xlu1 %4144  ;;  %v3505_v5 = vmul.f32 %v11022_v34, %v3472_v55  ;;  %v14472_v0 = vld [vmem:[#allocation236_spill] sm:$0xff] }
 0x7b8   : > { %p5952_p12 = pnand %p5951_p11, %p6115_p5  ;;  %p5959_p2 = por %p5958_p1, %p5957_p0 }
 0x7b9   : > { %v11946_v32 = vadd.f32 %v3974_v29, %v3850_v10  ;;  %v11948_v7 = vadd.f32 %v3975_v42, %v3851_v46  ;;  %5414 = vperm.xlu1 %5730, %v5404_v14   ;;  %v3412_v14 = vmul.f32 %v14472_v0, %v3364_v44  ;;  %v3413_v10 = vmul.f32 %v14472_v0, %v3365_v28  ;;  %v14478_v28 = vld [vmem:[#allocation231_spill] sm:$0xff] }
 0x7ba   : > { %v3644_v29 = vmul.f32 %v11055_v43, %v3620_v49  ;;  %v3760_v42 = vsel %vm1306_vm3, %v11643_v1, %v11632_v63  ;;  %v14479_v49 = vld [vmem:[#allocation219_spill] sm:$0xff]  ;;  %p5953_p13 = pneg %p5952_p12 }
 0x7bb   : > { %v4161_v4 = vpop.permute.xlu1 %4160 }
 0x7bc   : > { %v3692_v20 = vmul.f32 %v14478_v28, %v3644_v29  ;;  %p5960_p3 = pnand %p5959_p2, %p5953_p13 }
 0x7bd   : > { %5419 = vperm.xlu1 %5730, %v5405_v8   ;;  %v14473_v8 = vld [vmem:[#allocation284_spill] sm:$0xff] }
 0x7bf   : > { %v3451_v41 = vpop.permute.xlu1 %3450 }
 0x7c3   : > { %v3467_v35 = vpop.permute.xlu1 %3466 }
 0x7c4   : > { %v3475_v2 = vsel %vm1022_vm1, %v3451_v41, %v3467_v35  ;;  %v3483_v13 = vsel %vm1022_vm1, %v3467_v35, %v3451_v41  ;;  %v3288_v41 = vmul.f32 %v14473_v8, %v14305_v39  ;;  %v3289_v35 = vmul.f32 %v14473_v8, %v14274_v37  ;;  %v14483_v8 = vld [vmem:[#allocation19_spill] sm:$0xff] }
 0x7c5   : > { %v3510_v61 = vmul.f32 %v11019_v17, %v3483_v13  ;;  %v3511_v54 = vmul.f32 %v11022_v34, %v3475_v2  ;;  %v3645_v17 = vmul.f32 %v11058_v36, %v3612_v59  ;;  %v3752_v34 = vsel %vm1306_vm3, %v11632_v63, %v11643_v1  ;;  %v14474_v2 = vld [vmem:[#allocation296_spill] sm:$0xff] }
 0x7c6   : > { %v3784_v37 = vmul.f32 %v11075_v51, %v3760_v42  ;;  %v3785_v1 = vmul.f32 %v11078_v48, %v3752_v34  ;;  %v3429_v44 = vadd.f32 %v3413_v10, %v3289_v35 }
 0x7c7   : > { %v3558_v50 = vmul.f32 %v14467_v24, %v3510_v61  ;;  %v3559_v40 = vmul.f32 %v14467_v24, %v3511_v54  ;;  %v3729_v31 = vpop.permute.xlu1 %3728  ;;  %v3553_v61 = vmul.f32 %v14475_v45, %v3505_v5  ;;  %v14476_v54 = vld [vmem:[#allocation112_spill] sm:$0xff]  ;;  %v3693_v6 = vmul.f32 %v14478_v28, %v3645_v17  ;;  %v14480_v5 = vld [vmem:[#allocation341_spill] sm:$0xff] }
 0x7c8   : > { %v14477_v24 = vld [vmem:[#allocation48_spill] sm:$0xff]  ;;  %v3833_v58 = vmul.f32 %v14479_v49, %v3785_v1 }
 0x7c9   : > { %v11980_v9 = vadd.f32 %v3558_v50, %v11881_v47  ;;  %v11983_v16 = vadd.f32 %v3559_v40, %v11883_v21  ;;  %v3892_v63 = vsel %vm1448_vm6, %v14477_v24, %v14476_v54  ;;  %v3900_v39 = vsel %vm1448_vm6, %v14476_v54, %v14477_v24 }
 0x7ca   : > { %v3924_v55 = vmul.f32 %v14443_v38, %v3892_v63  ;;  %v3925_v18 = vmul.f32 %v14444_v12, %v3900_v39  ;;  %v3569_v59 = vadd.f32 %v3553_v61, %v3429_v44 }
 0x7cb   : > { %v3745_v60 = vpop.permute.xlu1 %3744 }
 0x7cc   : > { %v3754_v47 = vsel %vm1306_vm3, %v3729_v31, %v3745_v60  ;;  %v3762_v21 = vsel %vm1306_vm3, %v3745_v60, %v3729_v31  ;;  %v3428_v31 = vadd.f32 %v3412_v14, %v3288_v41  ;;  %v3832_v60 = vmul.f32 %v14479_v49, %v3784_v37  ;;  %v4370_v37 = vpop.permute.xlu0 %4369  ;;  %v14486_v49 = vld [vmem:[#allocation136_spill] sm:$0xff] }
 0x7cd   : > { %v3788_v46 = vmul.f32 %v11075_v51, %v3762_v21  ;;  %v3789_v52 = vmul.f32 %v11078_v48, %v3754_v47  ;;  %v4064_v47 = vmul.f32 %v14480_v5, %v11793_v22  ;;  %v14481_v21 = vld [vmem:[#allocation374_spill] sm:$0xff]  ;;  %v3709_v10 = vadd.f32 %v3693_v6, %v3569_v59  ;;  %v14485_v6 = vld [vmem:[#allocation337_spill] sm:$0xff] }
 0x7ce   : > { %v3568_v53 = vadd.f32 %v3552_v57, %v3428_v31  ;;  %v4065_v0 = vmul.f32 %v14481_v21, %v11797_v23  ;;  %v14484_v23 = vld [vmem:[#allocation51_spill] sm:$0xff] }
 0x7cf   : > { %v3836_v13 = vmul.f32 %v14474_v2, %v3788_v46  ;;  %v3837_v30 = vmul.f32 %v14474_v2, %v3789_v52  ;;  %v12019_v15 = vpop.permute.xlu1 %4006  ;;  %v14482_v46 = vld [vmem:[#allocation273_spill] sm:$0xff]  ;;  %v3849_v42 = vadd.f32 %v3833_v58, %v3709_v10  ;;  %v4112_v41 = vmul.f32 %v14483_v8, %v4064_v47 }
 0x7d0   : > { %v3708_v14 = vadd.f32 %v3692_v20, %v3568_v53  ;;  %v3972_v52 = vmul.f32 %v14482_v46, %v3924_v55  ;;  %v3973_v29 = vmul.f32 %v14482_v46, %v3925_v18  ;;  %v4113_v22 = vmul.f32 %v14483_v8, %v4065_v0 }
 0x7d1   : > { %v12034_v50 = vadd.f32 %v3836_v13, %v11923_v3  ;;  %v12037_v40 = vadd.f32 %v3837_v30, %v11925_v11  ;;  %v4172_v3 = vsel %vm1732_vm7, %v11944_v25, %v4161_v4  ;;  %v4180_v11 = vsel %vm1732_vm7, %v4161_v4, %v11944_v25 }
 0x7d2   : > { %v4204_v17 = vmul.f32 %v11465_v33, %v4172_v3  ;;  %v4205_v25 = vmul.f32 %v11477_v26, %v4180_v11  ;;  %v3848_v34 = vadd.f32 %v3832_v60, %v3708_v14  ;;  %v3989_v2 = vadd.f32 %v3973_v29, %v3849_v42 }
 0x7d3   : > { %v4023_v27 = vpop.permute.xlu1 %4022 }
 0x7d4   : > { %v3988_v35 = vadd.f32 %v3972_v52, %v3848_v34  ;;  %v4252_v13 = vmul.f32 %v14484_v23, %v4204_v17  ;;  %v4253_v30 = vmul.f32 %v14484_v23, %v4205_v25  ;;  %v4129_v24 = vadd.f32 %v4113_v22, %v3989_v2  ;;  %v12092_v17 = vld [vmem:[%s12463_s7] sm:$0xff]  ;;  %v12110_v22 = vld [vmem:[%s12463_s7 + $0x8] sm:$0xff] }
 0x7d6   : > { %v4128_v54 = vadd.f32 %v4112_v41, %v3988_v35  ;;  %v4269_v28 = vadd.f32 %v4253_v30, %v4129_v24  ;;  %v14488_v24 = vld [vmem:[#allocation42_spill] sm:$0xff] }
 0x7d7   : > { %v4285_v4 = vpop.permute.xlu1 %4284 }
 0x7d8   : > { %v4268_v20 = vadd.f32 %v4252_v13, %v4128_v54 }
 0x7db   : > { %v4301_v45 = vpop.permute.xlu1 %4300 }
 0x7dc   : > { %v4312_v57 = vsel %vm1874_vm8, %v4285_v4, %v4301_v45  ;;  %v4320_v61 = vsel %vm1874_vm8, %v4301_v45, %v4285_v4 }
 0x7dd   : > { %v4344_v63 = vmul.f32 %v11489_v56, %v4312_v57  ;;  %v4345_v39 = vmul.f32 %v11497_v62, %v4320_v61  ;;  %v14487_v57 = vld [vmem:[#allocation22_spill] sm:$0xff] }
 0x7df   : > { %v4392_v1 = vmul.f32 %v4370_v37, %v4344_v63  ;;  %v4393_v31 = vmul.f32 %v4370_v37, %v4345_v39  ;;  %v3607_v44 = vpop.permute.xlu1 %3606 }
 0x7e0   : > { %v3615_v55 = vsel %vm1164_vm4, %v14485_v6, %v3607_v44  ;;  %v3623_v18 = vsel %vm1164_vm4, %v3607_v44, %v14485_v6 }
 0x7e1   : > { %v3650_v53 = vmul.f32 %v11055_v43, %v3623_v18  ;;  %v3651_v59 = vmul.f32 %v11058_v36, %v3615_v55  ;;  %v4409_v3 = vadd.f32 %v4393_v31, %v4269_v28  ;;  %v4408_v11 = vadd.f32 %v4392_v1, %v4268_v20  ;;  %v4374_v55 = vpop.permute.xlu0 %4373 }
 0x7e3   : > { %v3698_v60 = vmul.f32 %v14486_v49, %v3650_v53  ;;  %v3699_v58 = vmul.f32 %v14486_v49, %v3651_v59  ;;  %4676 = vmatprep.mubr.f32.mxu1 %v4409_v3  ;;  %v3869_v47 = vpop.permute.xlu1 %3868 }
 0x7e4   : > { %4677 = vmatmul.mubr.f32.gmra.mxu1 %v4408_v11 }
 0x7e5   : > { %v12080_v0 = vadd.f32 %v3698_v60, %v11980_v9  ;;  %v12083_v14 = vadd.f32 %v3699_v58, %v11983_v16  ;;  %v4033_v9 = vsel %vm1590_vm5, %v12019_v15, %v4023_v27  ;;  %v4041_v16 = vsel %vm1590_vm5, %v4023_v27, %v12019_v15 }
 0x7e6   : > { %v4066_v35 = vmul.f32 %v14480_v5, %v4033_v9  ;;  %v4067_v15 = vmul.f32 %v14481_v21, %v4041_v16 }
 0x7e7   : > { %v3885_v10 = vpop.permute.xlu1 %3884 }
 0x7e8   : > { %v4114_v61 = vmul.f32 %v14487_v57, %v4066_v35  ;;  %v4115_v54 = vmul.f32 %v14487_v57, %v4067_v15 }
 0x7ea   : > { %v4130_v44 = vadd.f32 %v4114_v61, %v11946_v32  ;;  %v4131_v28 = vadd.f32 %v4115_v54, %v11948_v7  ;;  %v3894_v32 = vsel %vm1448_vm6, %v3869_v47, %v3885_v10  ;;  %v3902_v7 = vsel %vm1448_vm6, %v3885_v10, %v3869_v47  ;;  %v14490_v54 = vld [vmem:[#allocation34_spill] sm:$0xff] }
 0x7eb   : > { %v4147_v46 = vpop.permute.xlu1 %4146  ;;  %v3929_v9 = vmul.f32 %v14444_v12, %v3902_v7 }
 0x7ef   : > { %v4163_v43 = vpop.permute.xlu1 %4162 }
 0x7f0   : > { %v4173_v8 = vsel %vm1732_vm7, %v4147_v46, %v4163_v43  ;;  %v4181_v41 = vsel %vm1732_vm7, %v4163_v43, %v4147_v46 }
 0x7f1   : > { %v4206_v2 = vmul.f32 %v11465_v33, %v4173_v8  ;;  %v4207_v23 = vmul.f32 %v11477_v26, %v4181_v41 }
 0x7f3   : > { %v12085_v52 = vpop.permute.xlu1 %3730  ;;  %v4254_v63 = vmul.f32 %v14488_v24, %v4206_v2  ;;  %v4255_v39 = vmul.f32 %v14488_v24, %v4207_v23 }
 0x7f5   : > { %v4271_v3 = vadd.f32 %v4255_v39, %v4131_v28  ;;  %v4270_v11 = vadd.f32 %v4254_v63, %v4130_v44  ;;  %v14492_v44 = vld [vmem:[#allocation82_spill] sm:$0xff] }
 0x7f7   : > { %v12087_v36 = vpop.permute.xlu1 %3746 }
 0x7f8   : > { %v3763_v47 = vsel %vm1306_vm3, %v12087_v36, %v12085_v52  ;;  %v3755_v61 = vsel %vm1306_vm3, %v12085_v52, %v12087_v36 }
 0x7f9   : > { %v3790_v57 = vmul.f32 %v11075_v51, %v3763_v47 }
 0x7fb   : > { %v4009_v29 = vpop.permute.xlu1 %4008 }
 0x7fd   : > { %v4658_v25 = vpop.f32.mrf.mxu1 }
 0x7fe   : > { %v12101_v4 = vmul.f32 %v4658_v25, %v12092_v17  ;;  %v3928_v25 = vmul.f32 %v14443_v38, %v3894_v32 }
 0x7ff   : > { %v4660_v34 = vpop.f32.mrf.mxu1  ;;  %v4025_v42 = vpop.permute.xlu1 %4024 }
 0x800   : > { %v4034_v16 = vsel %vm1590_vm5, %v4009_v29, %v4025_v42  ;;  %v4042_v34 = vsel %vm1590_vm5, %v4025_v42, %v4009_v29 }
 0x801   : > { %v4068_v10 = vmul.f32 %v14480_v5, %v4034_v16  ;;  %v4069_v15 = vmul.f32 %v14481_v21, %v4042_v34 }
 0x802   : > { %v4663_v27 = vpop.f32.mrf.mxu1 }
 0x803   : > { %v12117_v13 = vmul.f32 %v4663_v27, %v12110_v22  ;;  %v4287_v30 = vpop.permute.xlu1 %4286  ;;  %v14489_v27 = vld [vmem:[#allocation277_spill] sm:$0xff]  ;;  %v4116_v24 = vmul.f32 %v14490_v54, %v4068_v10  ;;  %v4117_v63 = vmul.f32 %v14490_v54, %v4069_v15 }
 0x804   : > { %v4665_v45 = vpop.f32.mrf.mxu1  ;;  %v3976_v2 = vmul.f32 %v14489_v27, %v3928_v25  ;;  %v3977_v29 = vmul.f32 %v14489_v27, %v3929_v9  ;;  %v14494_v27 = vld [vmem:[#allocation317_spill] sm:$0xff] }
 0x805   : > { %v4378_v45 = vpop.permute.xlu0 %4377 }
 0x806   : > { %v3992_v39 = vadd.f32 %v3976_v2, %v12034_v50 }
 0x807   : > { %v4303_v37 = vpop.permute.xlu1 %4302 }
 0x808   : > { %v4313_v1 = vsel %vm1874_vm8, %v4287_v30, %v4303_v37  ;;  %v4321_v31 = vsel %vm1874_vm8, %v4303_v37, %v4287_v30  ;;  %v3993_v37 = vadd.f32 %v3977_v29, %v12037_v40 }
 0x809   : > { %v4346_v20 = vmul.f32 %v11489_v56, %v4313_v1  ;;  %v4347_v6 = vmul.f32 %v11497_v62, %v4321_v31  ;;  %v14491_v1 = vld [vmem:[#allocation8_spill] sm:$0xff] }
 0x80b   : > { %v4394_v18 = vmul.f32 %v4374_v55, %v4346_v20  ;;  %v4395_v53 = vmul.f32 %v4374_v55, %v4347_v6  ;;  %v3887_v59 = vpop.permute.xlu1 %3886  ;;  %v3791_v20 = vmul.f32 %v11078_v48, %v3755_v61  ;;  %v14493_v6 = vld [vmem:[#allocation272_spill] sm:$0xff] }
 0x80c   : > { %v3895_v31 = vsel %vm1448_vm6, %v14491_v1, %v3887_v59  ;;  %v3903_v51 = vsel %vm1448_vm6, %v3887_v59, %v14491_v1  ;;  %v3838_v55 = vmul.f32 %v14493_v6, %v3790_v57  ;;  %v14495_v57 = vld [vmem:[#allocation28_spill] sm:$0xff] }
 0x80d   : > { %v4411_v49 = vadd.f32 %v4395_v53, %v4271_v3  ;;  %v4410_v60 = vadd.f32 %v4394_v18, %v4270_v11  ;;  %v4132_v18 = vadd.f32 %v4116_v24, %v3992_v39  ;;  %v4133_v53 = vadd.f32 %v4117_v63, %v3993_v37  ;;  %v4434_v11 = vld [vmem:[%s12463_s7 + $0x10] sm:$0xff]  ;;  %v14496_v63 = vld [vmem:[#allocation50_spill] sm:$0xff] }
 0x80e   : > { %v3930_v48 = vmul.f32 %v14443_v38, %v3895_v31 }
 0x80f   : > { %4681 = vmatprep.mubr.f32.mxu1 %v4411_v49  ;;  %v4149_v58 = vpop.permute.xlu1 %4148  ;;  %v4151_v49 = vpop.permute.xlu0 %4150 }
 0x810   : > { %4682 = vmatmul.mubr.f32.gmra.mxu1 %v4410_v60  ;;  %v3931_v60 = vmul.f32 %v14444_v12, %v3903_v51  ;;  %v3978_v2 = vmul.f32 %v14494_v27, %v3930_v48 }
 0x812   : > { %v3979_v29 = vmul.f32 %v14494_v27, %v3931_v60 }
 0x813   : > { %v4165_v46 = vpop.permute.xlu1 %4164 }
 0x814   : > { %v4174_v41 = vsel %vm1732_vm7, %v4149_v58, %v4165_v46  ;;  %v4182_v35 = vsel %vm1732_vm7, %v4165_v46, %v4149_v58 }
 0x815   : > { %v4208_v42 = vmul.f32 %v11465_v33, %v4174_v41  ;;  %v4209_v23 = vmul.f32 %v11477_v26, %v4182_v35  ;;  %v3839_v41 = vmul.f32 %v14493_v6, %v3791_v20 }
 0x817   : > { %v4011_v43 = vpop.permute.xlu1 %4010  ;;  %v4256_v28 = vmul.f32 %v14492_v44, %v4208_v42  ;;  %v4257_v52 = vmul.f32 %v14492_v44, %v4209_v23  ;;  %v4382_v44 = vpop.permute.xlu0 %4381 }
 0x819   : > { %v4273_v16 = vadd.f32 %v4257_v52, %v4133_v53  ;;  %v4272_v34 = vadd.f32 %v4256_v28, %v4132_v18 }
 0x81b   : > { %v4027_v8 = vpop.permute.xlu1 %4026 }
 0x81c   : > { %v4035_v58 = vsel %vm1590_vm5, %v4011_v43, %v4027_v8  ;;  %v4043_v46 = vsel %vm1590_vm5, %v4027_v8, %v4011_v43 }
 0x81d   : > { %v4070_v47 = vmul.f32 %v14480_v5, %v4035_v58  ;;  %v4071_v43 = vmul.f32 %v14481_v21, %v4043_v46  ;;  %v3855_v5 = vadd.f32 %v3839_v41, %v12083_v14 }
 0x81f   : > { %v4289_v30 = vpop.permute.xlu1 %4288  ;;  %v4118_v21 = vmul.f32 %v14495_v57, %v4070_v47  ;;  %v4119_v61 = vmul.f32 %v14495_v57, %v4071_v43  ;;  %v3995_v24 = vadd.f32 %v3979_v29, %v3855_v5 }
 0x821   : > { %v4135_v31 = vadd.f32 %v4119_v61, %v3995_v24 }
 0x823   : > { %v4305_v36 = vpop.permute.xlu1 %4304 }
 0x824   : > { %v4314_v50 = vsel %vm1874_vm8, %v4289_v30, %v4305_v36  ;;  %v4322_v40 = vsel %vm1874_vm8, %v4305_v36, %v4289_v30 }
 0x825   : > { %v4348_v3 = vmul.f32 %v11489_v56, %v4314_v50  ;;  %v4349_v59 = vmul.f32 %v11497_v62, %v4322_v40  ;;  %v14497_v50 = vmov 0.0  }
 0x827   : > { %v4396_v32 = vmul.f32 %v4378_v45, %v4348_v3  ;;  %v4397_v7 = vmul.f32 %v4378_v45, %v4349_v59  ;;  %v4668_v25 = vpop.f32.mrf.mxu1  ;;  %v4167_v9 = vpop.permute.xlu1 %4166  ;;  %v3854_v45 = vadd.f32 %v3838_v55, %v12080_v0 }
 0x828   : > { %v12190_v35 = vmul.f32 %v4668_v25, %v4434_v11  ;;  %v4175_v38 = vsel %vm1732_vm7, %v4151_v49, %v4167_v9  ;;  %v4183_v12 = vsel %vm1732_vm7, %v4167_v9, %v4151_v49 }
 0x829   : > { %v4670_v8 = vpop.f32.mrf.mxu1  ;;  %v4413_v10 = vadd.f32 %v4397_v7, %v4273_v16  ;;  %v4412_v15 = vadd.f32 %v4396_v32, %v4272_v34  ;;  %v4210_v42 = vmul.f32 %v11465_v33, %v4175_v38  ;;  %v4211_v23 = vmul.f32 %v11477_v26, %v4183_v12 }
 0x82a   : > { %v3994_v54 = vadd.f32 %v3978_v2, %v3854_v45 }
 0x82b   : > { %4686 = vmatprep.mubr.f32.mxu1 %v4413_v10  ;;  %v4291_v30 = vpop.permute.xlu1 %4290  ;;  %v4258_v39 = vmul.f32 %v14496_v63, %v4210_v42  ;;  %v4259_v37 = vmul.f32 %v14496_v63, %v4211_v23 }
 0x82c   : > { %4687 = vmatmul.mubr.f32.gmra.mxu1 %v4412_v15  ;;  %v4134_v0 = vadd.f32 %v4118_v21, %v3994_v54 }
 0x82d   : > { %v4275_v36 = vadd.f32 %v4259_v37, %v4135_v31  ;;  %v14498_v37 = vld [vmem:[#allocation299_spill] sm:$0xff] }
 0x82e   : > { %v4274_v20 = vadd.f32 %v4258_v39, %v4134_v0  ;;  %v14499_v0 = vld [vmem:[#allocation12_spill] sm:$0xff] }
 0x82f   : > { %v4307_v33 = vpop.permute.xlu1 %4306 }
 0x830   : > { %v4315_v26 = vsel %vm1874_vm8, %v4291_v30, %v4307_v33  ;;  %v4323_v1 = vsel %vm1874_vm8, %v4307_v33, %v4291_v30 }
 0x831   : > { %v4350_v14 = vmul.f32 %v11489_v56, %v4315_v26  ;;  %v4351_v51 = vmul.f32 %v11497_v62, %v4323_v1  ;;  %v12231_v62 = vld [vmem:[%s12463_s7 + $0x20] sm:$0xff]  ;;  %v12239_v56 = vld [vmem:[%s12463_s7 + $0x28] sm:$0xff] }
 0x833   : > { %v4398_v28 = vmul.f32 %v4382_v44, %v4350_v14  ;;  %v4399_v52 = vmul.f32 %v4382_v44, %v4351_v51  ;;  %v14500_v44 = vld [vmem:[#allocation56_spill] sm:$0xff] }
 0x835   : > { %v4415_v6 = vadd.f32 %v4399_v52, %v4275_v36  ;;  %v4414_v55 = vadd.f32 %v4398_v28, %v4274_v20  ;;  %v14501_v20 = vld [vmem:[#allocation9_spill] sm:$0xff] }
 0x837   : > { %4691 = vmatprep.mubr.f32.mxu1 %v4415_v6 }
 0x838   : > { %4692 = vmatmul.mubr.f32.gmra.mxu1 %v4414_v55 }
 0x839   : > { %4884 = vmatprep.mubr.f32.mxu1 %v14497_v50 }
 0x83c   : > { %5571 = vmatmul.mubr.msk.f32.vlgmr.msra.gmra.mxu1 %vm4795_vm9, %v12092_v17  ;;  %v12247_v17 = vld [vmem:[%s12463_s7 + $0x30] sm:$0xff] }
 0x83d   : > { %4890 = vmatprep.mubr.f32.mxu1 %v14497_v50 }
 0x840   : > { %5572 = vmatmul.mubr.msk.f32.gmra.mxu1 %vm4795_vm9, %v12110_v22  ;;  %v12255_v22 = vld [vmem:[%s12463_s7 + $0x38] sm:$0xff] }
 0x841   : > { %4896 = vmatprep.mubr.f32.mxu1 %v14497_v50 }
 0x844   : > { %5573 = vmatmul.mubr.msk.f32.gmra.mxu1 %vm4795_vm9, %v4434_v11 }
 0x845   : > { %4902 = vmatprep.mubr.f32.mxu1 %v14497_v50 }
 0x848   : > { %5574 = vmatmul.mubr.msk.f32.gmra.mxu1 %vm4795_vm9, %v4435_v19 }
 0x849   : > { %4908 = vmatprep.mubr.f32.mxu1 %v14497_v50 }
 0x84c   : > { %5575 = vmatmul.mubr.msk.f32.gmra.mxu1 %vm4795_vm9, %v12231_v62 }
 0x84d   : > { %4914 = vmatprep.mubr.f32.mxu1 %v14497_v50 }
 0x850   : > { %5576 = vmatmul.mubr.msk.f32.gmra.mxu1 %vm4795_vm9, %v12239_v56 }
 0x851   : > { %4920 = vmatprep.mubr.f32.mxu1 %v14497_v50 }
 0x854   : > { %5577 = vmatmul.mubr.msk.f32.gmra.mxu1 %vm4795_vm9, %v12247_v17 }
 0x855   : > { %4926 = vmatprep.mubr.f32.mxu1 %v14497_v50 }
 0x858   : > { %5578 = vmatmul.mubr.msk.f32.gmra.mxu1 %vm4795_vm9, %v12255_v22 }
 0x859   : > { %5069 = vmatprep.mubr.f32.mxu1 %v14497_v50 }
 0x868   : > { %v4673_v40 = vpop.f32.mrf.mxu1 }
 0x869   : > { %v12260_v18 = vmul.f32 %v4673_v40, %v4435_v19  ;;  %v14502_v40 = vld [vmem:[#allocation63_spill] sm:$0xff] }
 0x86a   : > { %v4675_v53 = vpop.f32.mrf.mxu1 }
 0x8a4   : > { %v12262_v3 = vpop.f32.mrf.mxu1 }
 0x8a6   : > { %v4680_v59 = vpop.f32.mrf.mxu1 }
 0x8d0   : > { %v12264_v11 = vpop.f32.mrf.mxu1 }
 0x8d2   : > { %v4685_v49 = vpop.f32.mrf.mxu1 }
 0x8ec   : > { %v12266_v48 = vpop.f32.mrf.mxu1 }
 0x8ee   : > { %v4690_v60 = vpop.f32.mrf.mxu1 }
 0x8ef   : > { %v14503_v60 = vld [vmem:[#allocation45_spill] sm:$0xff] }
 0x8f8   : > { %v12268_v58 = vpop.f32.mrf.mxu1 }
 0x8fa   : > { %v4695_v46 = vpop.f32.mrf.mxu1 }
 0x8fc   : > { %v4886_v32 = vpop.f32.mrf.mxu1 }
 0x8fe   : > { %v4888_v7 = vpop.f32.mrf.mxu1 }
 0x900   : > { %v4892_v25 = vpop.f32.mrf.mxu1 }
 0x902   : > { %v4894_v9 = vpop.f32.mrf.mxu1 }
 0x904   : > { %v4898_v16 = vpop.f32.mrf.mxu1 }
 0x906   : > { %v4900_v34 = vpop.f32.mrf.mxu1 }
 0x908   : > { %v4904_v41 = vpop.f32.mrf.mxu1 }
 0x90a   : > { %v4906_v38 = vpop.f32.mrf.mxu1 }
 0x90c   : > { %v4910_v12 = vpop.f32.mrf.mxu1 }
 0x90e   : > { %v4912_v47 = vpop.f32.mrf.mxu1 }
 0x910   : > { %v4916_v43 = vpop.f32.mrf.mxu1 }
 0x912   : > { %v4918_v8 = vpop.f32.mrf.mxu1 }
 0x913   : > { %5822 = vrcp.f32 %v4918_v8 }
 0x914   : > { %v4922_v10 = vpop.f32.mrf.mxu1 }
 0x916   : > { %v4924_v15 = vpop.f32.mrf.mxu1 }
 0x917   : > { %5824 = vrcp.f32 %v4924_v15  ;;  %v14507_v15 = vld [vmem:[#allocation85_spill] sm:$0xff] }
 0x918   : > { %v4928_v27 = vpop.f32.mrf.mxu1 }
 0x919   : > { %5826 = vrcp.f32 %v4928_v27 }
 0x91a   : > { %5828 = vrcp.f32 %v4922_v10  ;;  %v4930_v2 = vpop.f32.mrf.mxu1 }
 0x91b   : > { %5830 = vrcp.f32 %v4930_v2 }
 0x91c   : > { %5832 = vrcp.f32 %v4916_v43  ;;  %v14506_v43 = vld [vmem:[#allocation98_spill] sm:$0xff] }
 0x91d   : > { %5834 = vrcp.f32 %v4912_v47 }
 0x91e   : > { %5836 = vrcp.f32 %v4910_v12 }
 0x91f   : > { %5838 = vrcp.f32 %v4906_v38 }
 0x920   : > { %5840 = vrcp.f32 %v4904_v41  ;;  %v5823_v29 = vpop.eup %5822  ;;  %v14505_v41 = vld [vmem:[#allocation94_spill] sm:$0xff] }
 0x921   : > { %5842 = vrcp.f32 %v4900_v34  ;;  %v4956_v39 = vmul.f32 0.25, %v5823_v29  ;;  %v14508_v29 = vld [vmem:[#allocation52_spill] sm:$0xff] }
 0x922   : > { %5844 = vrcp.f32 %v4898_v16 }
 0x923   : > { %5846 = vrcp.f32 %v4894_v9  ;;  %v4976_v53 = vmul.f32 %v14502_v40, %v4956_v39 }
 0x924   : > { %5848 = vrcp.f32 %v4892_v25  ;;  %v5825_v42 = vpop.eup %5824  ;;  %v14504_v25 = vld [vmem:[#allocation72_spill] sm:$0xff] }
 0x925   : > { %5850 = vrcp.f32 %v4888_v7  ;;  %v4960_v21 = vmul.f32 0.25, %v5825_v42 }
 0x926   : > { %v5827_v23 = vpop.eup %5826  ;;  %5852 = vrcp.f32 %v4886_v32 }
 0x927   : > { %v5829_v30 = vpop.eup %5828  ;;  %v4962_v5 = vmul.f32 0.25, %v5827_v23  ;;  %v4978_v28 = vmul.f32 %v14500_v44, %v4960_v21  ;;  %v14511_v21 = vld [vmem:[#allocation10_spill] sm:$0xff] }
 0x928   : > { %v5831_v45 = vpop.eup %5830  ;;  %v4958_v24 = vmul.f32 0.25, %v5829_v30  ;;  %v14509_v30 = vld [vmem:[#allocation59_spill] sm:$0xff] }
 0x929   : > { %v5833_v57 = vpop.eup %5832  ;;  %v4964_v61 = vmul.f32 0.25, %v5831_v45  ;;  %v4979_v31 = vmul.f32 %v14499_v0, %v4962_v5  ;;  %v14510_v5 = vld [vmem:[#allocation88_spill] sm:$0xff] }
 0x92a   : > { %v5835_v54 = vpop.eup %5834  ;;  %v4954_v1 = vmul.f32 0.25, %v5833_v57  ;;  %v4977_v6 = vmul.f32 %v14501_v20, %v4958_v24 }
 0x92b   : > { %v5837_v63 = vpop.eup %5836  ;;  %v4980_v33 = vmul.f32 %v14498_v37, %v4964_v61  ;;  %v4952_v51 = vmul.f32 0.25, %v5835_v54  ;;  %v14512_v54 = vld [vmem:[#allocation93_spill] sm:$0xff] }
 0x92c   : > { %v5839_v26 = vpop.eup %5838  ;;  %v4950_v36 = vmul.f32 0.25, %v5837_v63  ;;  %v4975_v46 = vmul.f32 %v14503_v60, %v4954_v1  ;;  %v14513_v63 = vld [vmem:[#allocation101_spill] sm:$0xff] }
 0x92d   : > { %v5841_v14 = vpop.eup %5840  ;;  %5021 = vmatprep.subr.mxu1 %v4980_v33  ;;  %v4948_v19 = vmul.f32 0.25, %v5839_v26  ;;  %v4974_v9 = vmul.f32 %v14504_v25, %v4952_v51 }
 0x92e   : > { %v5843_v52 = vpop.eup %5842  ;;  %5022 = vmatpush1.msra.mxu1 %v4979_v31  ;;  %v4946_v49 = vmul.f32 0.25, %v5841_v14  ;;  %v4973_v38 = vmul.f32 %v14505_v41, %v4950_v36 }
 0x92f   : > { %v5845_v55 = vpop.eup %5844  ;;  %5023 = vmatprep.subr.mxu1 %v4978_v28  ;;  %v4944_v7 = vmul.f32 0.25, %v5843_v52  ;;  %v4972_v8 = vmul.f32 %v14506_v43, %v4948_v19 }
 0x930   : > { %v5847_v59 = vpop.eup %5846  ;;  %5024 = vmatpush1.msra.mxu1 %v4977_v6  ;;  %v4942_v34 = vmul.f32 0.25, %v5845_v55  ;;  %v4971_v27 = vmul.f32 %v14507_v15, %v4946_v49 }
 0x931   : > { %v5849_v32 = vpop.eup %5848  ;;  %5025 = vmatprep.subr.mxu1 %v4976_v53  ;;  %v4940_v47 = vmul.f32 0.25, %v5847_v59  ;;  %v4970_v42 = vmul.f32 %v14508_v29, %v4944_v7 }
 0x932   : > { %v5851_v16 = vpop.eup %5850  ;;  %5026 = vmatpush1.msra.mxu1 %v4975_v46  ;;  %v4938_v10 = vmul.f32 0.25, %v5849_v32  ;;  %v4969_v45 = vmul.f32 %v14509_v30, %v4942_v34 }
 0x933   : > { %v5853_v12 = vpop.eup %5852  ;;  %5027 = vmatprep.subr.mxu1 %v4974_v9  ;;  %v4936_v2 = vmul.f32 0.25, %v5851_v16  ;;  %v4968_v57 = vmul.f32 %v14510_v5, %v4940_v47 }
 0x934   : > { %5028 = vmatpush1.msra.mxu1 %v4973_v38  ;;  %v4934_v23 = vmul.f32 0.25, %v5853_v12  ;;  %v4967_v61 = vmul.f32 %v14511_v21, %v4938_v10 }
 0x935   : > { %5029 = vmatprep.subr.mxu1 %v4972_v8  ;;  %v4966_v24 = vmul.f32 %v14512_v54, %v4936_v2 }
 0x936   : > { %5030 = vmatpush1.msra.mxu1 %v4971_v27  ;;  %v4965_v39 = vmul.f32 %v14513_v63, %v4934_v23 }
 0x937   : > { %5031 = vmatprep.subr.mxu1 %v4970_v42 }
 0x938   : > { %5032 = vmatpush1.msra.mxu1 %v4969_v45 }
 0x939   : > { %5033 = vmatprep.subr.mxu1 %v4968_v57 }
 0x93a   : > { %5034 = vmatpush1.msra.mxu1 %v4967_v61 }
 0x93b   : > { %5035 = vmatprep.subr.mxu1 %v4966_v24 }
 0x93c   : > { %5036 = vmatpush1.msra.mxu1 %v4965_v39 }
 0x93d   : > { %5579 = vmatmul.mubr.msk.f32.vlgmr.msra.gmra.mxu1 %vm4795_vm9, %v12101_v4  ;;  %v4701_v4 = vmul.f32 %v12262_v3, %v12231_v62  ;;  %v4704_v62 = vmul.f32 %v12268_v58, %v12255_v22 }
 0x93e   : > { %5075 = vmatprep.mubr.f32.mxu1 %v14497_v50 }
 0x941   : > { %5580 = vmatmul.mubr.msk.f32.gmra.mxu1 %vm4795_vm9, %v12117_v13  ;;  %v4702_v13 = vmul.f32 %v12264_v11, %v12239_v56  ;;  %v5403_v56 = vld [vmem:[%s12462_s6] sm:$0xff] }
 0x942   : > { %5081 = vmatprep.mubr.f32.mxu1 %v14497_v50  ;;  %5409 = vperm.xlu0 %5737, %v5403_v56  }
 0x945   : > { %5581 = vmatmul.mubr.msk.f32.gmra.mxu1 %vm4795_vm9, %v12190_v35  ;;  %v4703_v35 = vmul.f32 %v12266_v48, %v12247_v17 }
 0x946   : > { %5087 = vmatprep.mubr.f32.mxu1 %v14497_v50 }
 0x949   : > { %5582 = vmatmul.mubr.msk.f32.gmra.mxu1 %vm4795_vm9, %v12260_v18  ;;  %v5406_v18 = vld [vmem:[%s12462_s6 + $0x18] sm:$0xff] }
 0x94a   : > { %5093 = vmatprep.mubr.f32.mxu1 %v14497_v50  ;;  %5424 = vperm.xlu0 %5737, %v5406_v18  }
 0x94d   : > { %5583 = vmatmul.mubr.msk.f32.gmra.mxu1 %vm4795_vm9, %v4701_v4 }
 0x94e   : > { %5099 = vmatprep.mubr.f32.mxu1 %v14497_v50 }
 0x951   : > { %5584 = vmatmul.mubr.msk.f32.gmra.mxu1 %vm4795_vm9, %v4702_v13 }
 0x952   : > { %5105 = vmatprep.mubr.f32.mxu1 %v14497_v50 }
 0x955   : > { %5585 = vmatmul.mubr.msk.f32.gmra.mxu1 %vm4795_vm9, %v4703_v35 }
 0x956   : > { %5111 = vmatprep.mubr.f32.mxu1 %v14497_v50 }
 0x959   : > { %5586 = vmatmul.mubr.msk.f32.gmra.mxu1 %vm4795_vm9, %v4704_v62 }
 0x9fd   : > { %v12319_v17 = vpop.f32.mrf.mxu1 }
 0x9fe   : > { %v5587_v9 = vmul.f32 -1.442695, %v12319_v17 }
 0x9ff   : > { %v12321_v3 = vpop.f32.mrf.mxu1 }
 0xa00   : > { %v5588_v25 = vmul.f32 -1.442695, %v12321_v3 }
 0xa01   : > { %v12323_v11 = vpop.f32.mrf.mxu1 }
 0xa02   : > { %v5589_v7 = vmul.f32 -1.442695, %v12323_v11 }
 0xa03   : > { %v12325_v48 = vpop.f32.mrf.mxu1 }
 0xa04   : > { %v5590_v32 = vmul.f32 -1.442695, %v12325_v48 }
 0xa05   : > { %v12327_v22 = vpop.f32.mrf.mxu1 }
 0xa06   : > { %v5591_v46 = vmul.f32 -1.442695, %v12327_v22 }
 0xa07   : > { %v12329_v58 = vpop.f32.mrf.mxu1 }
 0xa08   : > { %v5592_v60 = vmul.f32 -1.442695, %v12329_v58 }
 0xa09   : > { %v12331_v37 = vpop.f32.mrf.mxu1 }
 0xa0a   : > { %v5593_v49 = vmul.f32 -1.442695, %v12331_v37 }
 0xa0b   : > { %v12333_v33 = vpop.f32.mrf.mxu1 }
 0xa0c   : > { %v5594_v59 = vmul.f32 -1.442695, %v12333_v33 }
 0xa0d   : > { %v12335_v26 = vpop.f32.mrf.mxu1 }
 0xa0e   : > { %v5595_v40 = vmul.f32 -1.442695, %v12335_v26 }
 0xa0f   : > { %v12337_v1 = vpop.f32.mrf.mxu1 }
 0xa10   : > { %v5596_v14 = vmul.f32 -1.442695, %v12337_v1 }
 0xa11   : > { %v12339_v0 = vpop.f32.mrf.mxu1 }
 0xa12   : > { %5854 = vpow2.f32 %v5596_v14  ;;  %v5597_v6 = vmul.f32 -1.442695, %v12339_v0 }
 0xa13   : > { %v12341_v31 = vpop.f32.mrf.mxu1 }
 0xa14   : > { %v5598_v44 = vmul.f32 -1.442695, %v12341_v31 }
 0xa15   : > { %v12344_v51 = vpop.f32.mrf.mxu1 }
 0xa16   : > { %v5599_v52 = vmul.f32 -1.442695, %v12344_v51  ;;  %5856 = vpow2.f32 %v5598_v44 }
 0xa17   : > { %v12347_v28 = vpop.f32.mrf.mxu1 }
 0xa18   : > { %v5600_v36 = vmul.f32 -1.442695, %v12347_v28 }
 0xa19   : > { %v12351_v20 = vpop.f32.mrf.mxu1 }
 0xa1a   : > { %v5601_v55 = vmul.f32 -1.442695, %v12351_v20  ;;  %5858 = vpow2.f32 %v5600_v36 }
 0xa1b   : > { %v12355_v19 = vpop.f32.mrf.mxu1  ;;  %5860 = vpow2.f32 %v5599_v52 }
 0xa1c   : > { %v5602_v53 = vmul.f32 -1.442695, %v12355_v19  ;;  %5862 = vpow2.f32 %v5601_v55 }
 0xa1d   : > { %5864 = vpow2.f32 %v5597_v6 }
 0xa1e   : > { %5866 = vpow2.f32 %v5602_v53 }
 0xa1f   : > { %5868 = vpow2.f32 %v5595_v40  ;;  %v5855_v16 = vpop.eup %5854 }
 0xa20   : > { %5870 = vpow2.f32 %v5594_v59  ;;  %v5175_v45 = vadd.f32 1.0, %v5855_v16 }
 0xa21   : > { %5872 = vpow2.f32 %v5593_v49 }
 0xa22   : > { %5874 = vpow2.f32 %v5592_v60 }
 0xa23   : > { %5876 = vpow2.f32 %v5591_v46  ;;  %v5857_v34 = vpop.eup %5856 }
 0xa24   : > { %5878 = vpow2.f32 %v5590_v32  ;;  %v5177_v2 = vadd.f32 1.0, %v5857_v34 }
 0xa25   : > { %5880 = vpow2.f32 %v5589_v7 }
 0xa26   : > { %5882 = vpow2.f32 %v5588_v25 }
 0xa27   : > { %v5859_v41 = vpop.eup %5858  ;;  %5884 = vpow2.f32 %v5587_v9 }
 0xa28   : > { %v5861_v38 = vpop.eup %5860  ;;  %v5179_v12 = vadd.f32 1.0, %v5859_v41 }
 0xa29   : > { %v5863_v47 = vpop.eup %5862  ;;  %v5178_v15 = vadd.f32 1.0, %v5861_v38 }
 0xa2a   : > { %v5865_v43 = vpop.eup %5864  ;;  %v5180_v8 = vadd.f32 1.0, %v5863_v47  ;;  %5886 = vrcp.f32 %v5179_v12 }
 0xa2b   : > { %v5867_v10 = vpop.eup %5866  ;;  %v5176_v23 = vadd.f32 1.0, %v5865_v43 }
 0xa2c   : > { %v5869_v27 = vpop.eup %5868  ;;  %v5181_v29 = vadd.f32 1.0, %v5867_v10  ;;  %5888 = vrcp.f32 %v5180_v8 }
 0xa2d   : > { %v5871_v42 = vpop.eup %5870  ;;  %v5174_v57 = vadd.f32 1.0, %v5869_v27 }
 0xa2e   : > { %v5873_v30 = vpop.eup %5872  ;;  %5890 = vrcp.f32 %v5181_v29  ;;  %v5173_v61 = vadd.f32 1.0, %v5871_v42 }
 0xa2f   : > { %v5875_v5 = vpop.eup %5874  ;;  %5892 = vrcp.f32 %v5178_v15  ;;  %v5172_v24 = vadd.f32 1.0, %v5873_v30 }
 0xa30   : > { %v5877_v21 = vpop.eup %5876  ;;  %5894 = vrcp.f32 %v5177_v2  ;;  %v5171_v39 = vadd.f32 1.0, %v5875_v5 }
 0xa31   : > { %v5879_v54 = vpop.eup %5878  ;;  %5896 = vrcp.f32 %v5176_v23  ;;  %v5170_v13 = vadd.f32 1.0, %v5877_v21 }
 0xa32   : > { %v5881_v63 = vpop.eup %5880  ;;  %5898 = vrcp.f32 %v5175_v45  ;;  %v5169_v62 = vadd.f32 1.0, %v5879_v54 }
 0xa33   : > { %v5883_v4 = vpop.eup %5882  ;;  %5900 = vrcp.f32 %v5174_v57  ;;  %v5168_v56 = vadd.f32 1.0, %v5881_v63 }
 0xa34   : > { %v5885_v35 = vpop.eup %5884  ;;  %5902 = vrcp.f32 %v5173_v61  ;;  %v5167_v18 = vadd.f32 1.0, %v5883_v4 }
 0xa35   : > { %5904 = vrcp.f32 %v5172_v24  ;;  %v5166_v14 = vadd.f32 1.0, %v5885_v35 }
 0xa36   : > { %5906 = vrcp.f32 %v5171_v39 }
 0xa37   : > { %5908 = vrcp.f32 %v5170_v13  ;;  %v5887_v44 = vpop.eup %5886 }
 0xa38   : > { %5910 = vrcp.f32 %v5169_v62  ;;  %v5227_v49 = vmul.f32 %v5887_v44, %v12347_v28 }
 0xa39   : > { %5912 = vrcp.f32 %v5168_v56  ;;  %v5889_v52 = vpop.eup %5888 }
 0xa3a   : > { %5914 = vrcp.f32 %v5167_v18  ;;  %v5228_v53 = vmul.f32 %v5889_v52, %v12351_v20 }
 0xa3b   : > { %v5891_v36 = vpop.eup %5890  ;;  %5916 = vrcp.f32 %v5166_v14 }
 0xa3c   : > { %v5893_v6 = vpop.eup %5892  ;;  %v5229_v55 = vmul.f32 %v5891_v36, %v12355_v19 }
 0xa3d   : > { %v5895_v40 = vpop.eup %5894  ;;  %v5226_v46 = vmul.f32 %v5893_v6, %v12344_v51 }
 0xa3e   : > { %v5897_v59 = vpop.eup %5896  ;;  %5262 = vmatprep.subr.mxu0 %v5229_v55  ;;  %v5225_v7 = vmul.f32 %v5895_v40, %v12341_v31 }
 0xa3f   : > { %v5899_v60 = vpop.eup %5898  ;;  %5263 = vmatpush1.msra.mxu0 %v5228_v53  ;;  %v5224_v9 = vmul.f32 %v5897_v59, %v12339_v0 }
 0xa40   : > { %v5901_v32 = vpop.eup %5900  ;;  %5264 = vmatprep.subr.mxu0 %v5227_v49  ;;  %v5223_v16 = vmul.f32 %v5899_v60, %v12337_v1 }
 0xa41   : > { %v5903_v25 = vpop.eup %5902  ;;  %5265 = vmatpush1.msra.mxu0 %v5226_v46  ;;  %v5222_v28 = vmul.f32 %v5901_v32, %v12335_v26 }
 0xa42   : > { %v5905_v19 = vpop.eup %5904  ;;  %5266 = vmatprep.subr.mxu0 %v5225_v7  ;;  %v5221_v51 = vmul.f32 %v5903_v25, %v12333_v33 }
 0xa43   : > { %v5907_v20 = vpop.eup %5906  ;;  %5267 = vmatpush1.msra.mxu0 %v5224_v9  ;;  %v5220_v31 = vmul.f32 %v5905_v19, %v12331_v37 }
 0xa44   : > { %v5909_v34 = vpop.eup %5908  ;;  %5268 = vmatprep.subr.mxu0 %v5223_v16  ;;  %v5219_v0 = vmul.f32 %v5907_v20, %v12329_v58  ;;  %v5230_v58 = vld [vmem:[%s12461_s5] sm:$0xff] }
 0xa45   : > { %v5911_v41 = vpop.eup %5910  ;;  %5269 = vmatpush1.msra.mxu0 %v5222_v28  ;;  %v5218_v1 = vmul.f32 %v5909_v34, %v12327_v22 }
 0xa46   : > { %v5913_v38 = vpop.eup %5912  ;;  %5270 = vmatprep.subr.mxu0 %v5221_v51  ;;  %v5217_v26 = vmul.f32 %v5911_v41, %v12325_v48 }
 0xa47   : > { %v5915_v12 = vpop.eup %5914  ;;  %5271 = vmatpush1.msra.mxu0 %v5220_v31  ;;  %v5216_v43 = vmul.f32 %v5913_v38, %v12323_v11  ;;  %v5231_v11 = vld [vmem:[%s12461_s5 + $0x8] sm:$0xff] }
 0xa48   : > { %v5917_v47 = vpop.eup %5916  ;;  %5272 = vmatprep.subr.mxu0 %v5219_v0  ;;  %v5215_v33 = vmul.f32 %v5915_v12, %v12321_v3  ;;  %v5233_v3 = vld [vmem:[%s12461_s5 + $0x18] sm:$0xff] }
 0xa49   : > { %5273 = vmatpush1.msra.mxu0 %v5218_v1  ;;  %v5214_v37 = vmul.f32 %v5917_v47, %v12319_v17  ;;  %v5232_v17 = vld [vmem:[%s12461_s5 + $0x10] sm:$0xff] }
 0xa4a   : > { %5274 = vmatprep.subr.mxu0 %v5217_v26 }
 0xa4b   : > { %5275 = vmatpush1.msra.mxu0 %v5216_v43 }
 0xa4c   : > { %5276 = vmatprep.subr.mxu0 %v5215_v33 }
 0xa4d   : > { %5277 = vmatpush1.msra.mxu0 %v5214_v37 }
 0xa4e   : > { %5603 = vmatmul.mubr.msk.f32.vlgmr.msra.gmra.mxu0 %vm4795_vm9, %v5230_v58 }
 0xa4f   : > { %5316 = vmatprep.mubr.f32.mxu0 %v14497_v50 }
 0xa52   : > { %5604 = vmatmul.mubr.msk.f32.gmra.mxu0 %vm4795_vm9, %v5231_v11 }
 0xa53   : > { %5322 = vmatprep.mubr.f32.mxu0 %v14497_v50 }
 0xa56   : > { %5605 = vmatmul.mubr.msk.f32.gmra.mxu0 %vm4795_vm9, %v5232_v17 }
 0xa57   : > { %5328 = vmatprep.mubr.f32.mxu0 %v14497_v50 }
 0xa5a   : > { %5606 = vmatmul.mubr.msk.f32.gmra.mxu0 %vm4795_vm9, %v5233_v3 }
 0xb0e   : > { %v5312_v48 = vpop.f32.mrf.mxu0 }
 0xb10   : > { %v5314_v22 = vpop.f32.mrf.mxu0 }
 0xb12   : > { %v5318_v8 = vpop.f32.mrf.mxu0 }
 0xb13   : > { %v5335_v27 = vadd.f32 %v5318_v8, %v5312_v48 }
 0xb14   : > { %v5320_v10 = vpop.f32.mrf.mxu0 }
 0xb15   : > { %v5344_v29 = vadd.f32 %v5320_v10, %v5314_v22 }
 0xb16   : > { %v5324_v15 = vpop.f32.mrf.mxu0 }
 0xb17   : > { %v5336_v42 = vadd.f32 %v5335_v27, %v5324_v15 }
 0xb18   : > { %v5326_v2 = vpop.f32.mrf.mxu0 }
 0xb19   : > { %v5345_v30 = vadd.f32 %v5344_v29, %v5326_v2 }
 0xb1a   : > { %v5330_v23 = vpop.f32.mrf.mxu0 }
 0xb1b   : > { %v5337_v45 = vadd.f32 %v5336_v42, %v5330_v23 }
 0xb1c   : > { %v5332_v5 = vpop.f32.mrf.mxu0 }
 0xb1d   : > { %v5338_v50 = vrot.slane %v5337_v45, 4  ;;  %v5346_v57 = vadd.f32 %v5345_v30, %v5332_v5 }
 0xb1f   : > { %v5339_v21 = vadd.f32 %v5338_v50, %v5337_v45  ;;  %v5347_v61 = vrot.slane %v5346_v57, 4 }
 0xb21   : > { %v5340_v54 = vrot.slane %v5339_v21, 2  ;;  %v5348_v24 = vadd.f32 %v5347_v61, %v5346_v57 }
 0xb23   : > { %v5341_v63 = vadd.f32 %v5340_v54, %v5339_v21  ;;  %v5349_v39 = vrot.slane %v5348_v24, 2 }
 0xb25   : > { %v5342_v4 = vrot.slane %v5341_v63, 1  ;;  %v5350_v13 = vadd.f32 %v5349_v39, %v5348_v24 }
 0xb27   : > { %v5343_v35 = vadd.f32 %v5342_v4, %v5341_v63  ;;  %v5351_v62 = vrot.slane %v5350_v13, 1 }
 0xb29   : > { %v5353_v56 = vmul.f32 0.03125, %v5343_v35  ;;  %v5352_v18 = vadd.f32 %v5351_v62, %v5350_v13 }
 0xb2b   : > { %v5355_v14 = vsub.f32 %v5312_v48, %v5353_v56  ;;  %v5357_v44 = vsub.f32 %v5318_v8, %v5353_v56  ;;  %v5359_v52 = vsub.f32 %v5324_v15, %v5353_v56  ;;  %v5354_v36 = vmul.f32 0.03125, %v5352_v18  ;;  %v5415_v8 = vpop.permute.xlu1 %5414 }
 0xb2c   : > { %v5361_v6 = vsub.f32 %v5330_v23, %v5353_v56 }
 0xb2d   : > { %v5363_v55 = vmul.f32 %v5355_v14, %v5355_v14  ;;  %v5365_v40 = vmul.f32 %v5357_v44, %v5357_v44  ;;  %v5356_v53 = vsub.f32 %v5314_v22, %v5354_v36  ;;  %v5358_v59 = vsub.f32 %v5320_v10, %v5354_v36  ;;  %v5410_v10 = vpop.permute.xlu0 %5409 }
 0xb2e   : > { %v5360_v49 = vsub.f32 %v5326_v2, %v5354_v36  ;;  %v5367_v60 = vmul.f32 %v5359_v52, %v5359_v52  ;;  %v5362_v32 = vsub.f32 %v5332_v5, %v5354_v36  ;;  %v5369_v9 = vmul.f32 %v5361_v6, %v5361_v6 }
 0xb2f   : > { %v5371_v46 = vadd.f32 %v5365_v40, %v5363_v55  ;;  %v5364_v7 = vmul.f32 %v5356_v53, %v5356_v53  ;;  %v5366_v25 = vmul.f32 %v5358_v59, %v5358_v59  ;;  %v5420_v23 = vpop.permute.xlu1 %5419 }
 0xb30   : > { %v5368_v16 = vmul.f32 %v5360_v49, %v5360_v49  ;;  %v5370_v34 = vmul.f32 %v5362_v32, %v5362_v32 }
 0xb31   : > { %v5372_v19 = vadd.f32 %v5371_v46, %v5367_v60  ;;  %v5380_v20 = vadd.f32 %v5366_v25, %v5364_v7  ;;  %v5425_v30 = vpop.permute.xlu0 %5424 }
 0xb33   : > { %v5373_v28 = vadd.f32 %v5372_v19, %v5369_v9  ;;  %v5381_v51 = vadd.f32 %v5380_v20, %v5368_v16 }
 0xb35   : > { %v5374_v41 = vrot.slane %v5373_v28, 4  ;;  %v5382_v31 = vadd.f32 %v5381_v51, %v5370_v34 }
 0xb37   : > { %v5375_v38 = vadd.f32 %v5374_v41, %v5373_v28  ;;  %v5383_v0 = vrot.slane %v5382_v31, 4 }
 0xb39   : > { %v5376_v12 = vrot.slane %v5375_v38, 2  ;;  %v5384_v1 = vadd.f32 %v5383_v0, %v5382_v31 }
 0xb3b   : > { %v5377_v47 = vadd.f32 %v5376_v12, %v5375_v38  ;;  %v5385_v26 = vrot.slane %v5384_v1, 2 }
 0xb3d   : > { %v5378_v43 = vrot.slane %v5377_v47, 1  ;;  %v5386_v33 = vadd.f32 %v5385_v26, %v5384_v1 }
 0xb3f   : > { %v5379_v37 = vadd.f32 %v5378_v43, %v5377_v47  ;;  %v5387_v58 = vrot.slane %v5386_v33, 1 }
 0xb41   : > { %v5389_v11 = vmul.f32 0.03125, %v5379_v37  ;;  %v5388_v17 = vadd.f32 %v5387_v58, %v5386_v33 }
 0xb43   : > { %v5391_v3 = vadd.f32 1e-05, %v5389_v11  ;;  %v5390_v48 = vmul.f32 0.03125, %v5388_v17 }
 0xb45   : > { %5918 = vrsqrt.f32 %v5391_v3  ;;  %v5392_v22 = vadd.f32 1e-05, %v5390_v48 }
 0xb47   : > { %5920 = vrsqrt.f32 %v5392_v22 }
 0xb52   : > { %v5919_v15 = vpop.eup %5918 }
 0xb53   : > { %v5397_v27 = vmul.f32 %v5919_v15, %v5357_v44  ;;  %v5399_v2 = vmul.f32 %v5919_v15, %v5359_v52  ;;  %v5395_v29 = vmul.f32 %v5919_v15, %v5355_v14  ;;  %v5401_v42 = vmul.f32 %v5919_v15, %v5361_v6 }
 0xb54   : > { %v5921_v45 = vpop.eup %5920 }
 0xb55   : > { %v5429_v5 = vmul.f32 %v5415_v8, %v5397_v27  ;;  %v5431_v50 = vmul.f32 %v5420_v23, %v5399_v2  ;;  %v5427_v57 = vmul.f32 %v5410_v10, %v5395_v29  ;;  %v5433_v21 = vmul.f32 %v5425_v30, %v5401_v42 }
 0xb56   : > { %v5398_v61 = vmul.f32 %v5921_v45, %v5358_v59  ;;  %v5400_v54 = vmul.f32 %v5921_v45, %v5360_v49  ;;  %v5396_v24 = vmul.f32 %v5921_v45, %v5356_v53  ;;  %v5402_v63 = vmul.f32 %v5921_v45, %v5362_v32 }
 0xb57   : > { %5437 = vst [vmem:[%s298_s24 + $0x10] sm:$0xff] %v5429_v5  ;;  %5439 = vst [vmem:[%s298_s24 + $0x20] sm:$0xff] %v5431_v50 }
 0xb58   : > { %5435 = vst [vmem:[%s298_s24] sm:$0xff] %v5427_v57  ;;  %5441 = vst [vmem:[%s298_s24 + $0x30] sm:$0xff] %v5433_v21  ;;  %v5430_v39 = vmul.f32 %v5415_v8, %v5398_v61  ;;  %v5432_v4 = vmul.f32 %v5420_v23, %v5400_v54  ;;  %v5428_v13 = vmul.f32 %v5410_v10, %v5396_v24 }
 0xb59   : > { %v5434_v35 = vmul.f32 %v5425_v30, %v5402_v63 }
 0xb5a   : > { %5438 = vst [vmem:[%s298_s24 + $0x18] sm:$0xff] %v5430_v39  ;;  %5440 = vst [vmem:[%s298_s24 + $0x28] sm:$0xff] %v5432_v4 }
 0xb5b   : > { %5436 = vst [vmem:[%s298_s24 + $0x8] sm:$0xff] %v5428_v13  ;;  %5442 = vst [vmem:[%s298_s24 + $0x38] sm:$0xff] %v5434_v35 }
 0xb5c   : > { %5963 = shalt.err (!%p5960_p3)
}
 0xb5d   : > { %s5964_s21 = scalar_lea.hbm %s12409_s9, 1024  ;;  %s5968_s24 = scalar_lea.hbm %s12464_s8, 2048 }
 0xb5e   : > { %p5965_p4 = scmp.ne.s32.totalorder %s12409_s9, %s5964_s21  ;;  %p5969_p9 = scmp.lt.s32.totalorder %s12409_s9, %s12464_s8 }
 0xb5f   : > { %p5970_p10 = scmp.lt.s32.totalorder %s5968_s24, %s5964_s21 }
 0xb60   : > { %p5966_p7 = pnand %p5965_p4, %p6115_p5 }
 0xb61   : > { %p5971_p11 = por %p5970_p10, %p5969_p9 }
 0xb62   : > { %p5967_p8 = pneg %p5966_p7 }
 0xb64   : > { %p5972_p12 = pnand %p5971_p11, %p5967_p8 }
 0xb66   : > { %5975 = shalt.err (!%p5972_p12)
}
 0xb67   : > { %s6031_s22 = smov 256  }
 0xb68   : > { %5614 = dma.vmem_to_hbm [thread:$0]  (%p6115_p5), %s12411_s12, 1024, %s12409_s9, %s12415_s18, %s6031_s22, %s6031_s22, %s6021_s26  }
 0xb69 PF: > { %p5620_p13 = scmp.ge.s32.totalorder %s6010_s30, 2  ;;  %s5472_s20 = sand.u32 1, %s5998_s27  }
 0xb6a   : > { %s5473_s19 = scalar_lea.sflag [#allocation5], %s5472_s20 }
 0xb6b   : > { %p5617_p0 = pnand %p5620_p13, %p6119_p6 }
 0xb6d   : > { %p5618_p1 = pneg %p5617_p0 }
 0xb6f   : > { %5993 = dma.done.wait (%p5618_p1), %s5473_s19, 1024  }
 0xb70   : > { %5995 = vsyncadd (%p5618_p1), %s5473_s19, 4294966272  ;;  %p18_p2 = scmp.ge.s32.totalorder %s6102_s11, 4   ;;  %s14514_s27 = smov %s6002_s28 }
 0xb71   : > { %s14515_s28 = smov %s6006_s29  ;;  %s14516_s29 = smov %s6113_s14 }
 0xb72   : > { %s14517_s30 = smov %s6102_s11  ;;  %20 = sbr.rel (!%p18_p2) target bundleno = 3 (0x3), region = 94 }
 0xb77   :  { %5478 = vsyncpa [#allocation5], 1 }
 0xb78   :  { %5480 = vsyncpa [#allocation5 + $0x1], 1 }

</bundles_post_ra>
